<compile_context>
chip_gen: v6e
topology: v6e:2x2x1
jax: 0.10.0
libtpu: 0.0.40
codegen_flags: <defaults>
</compile_context>

<pallas_src>
import functools

import jax
import jax.numpy as jnp
from jax.experimental import pallas as pl
from jax.experimental.pallas import tpu as pltpu

HIDDEN = 512  # GRU hidden size hard-coded in the module


def _proj_kernel(x_ref, bns_ref, bnb_ref, wc_ref, bc_ref, gx_ref):
    """Pre-pass: BN(eval) + LeakyReLU(0.3) + composed input projection.

    gx = LeakyReLU(BN(x)) @ W_comp + b_comp for BOTH GRU directions at once
    (W_comp is (C, 6H) = W1^T @ [Wih_f^T | Wih_b^T]).  Row-tiled over the
    flattened (B*T, C) input: one well-shaped matmul per grid step, fully
    parallel and off the serial recurrence path.
    """
    y = x_ref[...] * bns_ref[...] + bnb_ref[...]
    y = jnp.where(y >= 0.0, y, 0.3 * y)
    # Contraction dim is only C (= in_dim), a tiny fraction of total FLOPs, so
    # keep this matmul in f32 for accuracy.  (bf16 / fp8-on-v7x weights are an
    # option here if in_dim is ever large.)
    gx_ref[...] = (jnp.dot(y, wc_ref[...], preferred_element_type=jnp.float32)
                   + bc_ref[...])


def _gru_kernel(gxf_ref, gxb_ref, whhf_ref, bhhf_ref, whhb_ref, bhhb_ref,
                pf_ref, pb_ref, hf_ref, hb_ref, *, unroll, nb):
    """Bidirectional GRU recurrence + time pooling.

    Grid iterates sequentially over blocks of U = `unroll` GRU sequence steps.
    Per step only the recurrent gh matmul + gate math runs (gx precomputed).
    The forward and backward chains are independent and interleaved so the
    scheduler can overlap their MXU / EUP work.
    """
    H = HIDDEN
    bf16 = jnp.bfloat16
    i = pl.program_id(0)

    @pl.when(i == 0)
    def _init():
        hf_ref[...] = jnp.zeros_like(hf_ref)
        hb_ref[...] = jnp.zeros_like(hb_ref)

    def cell(gx, h, whh_ref, bhh_ref):
        # gh = h @ W_hh^T + b_hh ; PyTorch gate order (r, z, n).
        gh = (jnp.dot(h.astype(bf16), whh_ref[...],
                      preferred_element_type=jnp.float32) + bhh_ref[...])
        r = jax.nn.sigmoid(gx[:, 0 * H:1 * H] + gh[:, 0 * H:1 * H])
        z = jax.nn.sigmoid(gx[:, 1 * H:2 * H] + gh[:, 1 * H:2 * H])
        n = jnp.tanh(gx[:, 2 * H:3 * H] + r * gh[:, 2 * H:3 * H])
        return (1.0 - z) * n + z * h

    hf = hf_ref[...]
    hb = hb_ref[...]
    f_rows = []
    b_rows = []
    # Static unroll over `unroll` sequence steps (small).  Forward processes
    # sequence index i*U + u; backward processes nb-1-(i*U+u), which is local
    # row (U-1-u) of the reversed gxb block.
    for u in range(unroll):
        hf = cell(gxf_ref[u], hf, whhf_ref, bhhf_ref)
        hb = cell(gxb_ref[unroll - 1 - u], hb, whhb_ref, bhhb_ref)
        f_rows.append(jnp.sum(hf, axis=0, keepdims=True))   # pool over T
        b_rows.append(jnp.sum(hb, axis=0, keepdims=True))
    hf_ref[...] = hf
    hb_ref[...] = hb

    # One lane-dense (U, 512) store per direction per grid step.
    # Forward covers output rows [i*U, (i+1)*U) ascending; backward covers
    # rows [nb-(i+1)*U, nb-i*U) (reverse the per-step sums for ascending order).
    pf_ref[pl.ds(i * unroll, unroll), :] = jnp.concatenate(f_rows, axis=0)
    pb_ref[pl.ds(nb - (i + 1) * unroll, unroll), :] = jnp.concatenate(
        b_rows[::-1], axis=0)


def utterance_block_forward(X, p):
    """X: (B, in_dim, T) float32.  p: dict of parameters.  Returns (B, out_dim)."""
    B, C, T = X.shape
    H = HIDDEN
    out_dim = p["w2"].shape[0]
    f32 = jnp.float32
    bf16 = jnp.bfloat16

    # ---------------- parameter folding (weight prep only) ----------------
    eps = 1e-5
    scale_v = p["bn_gamma"] / jnp.sqrt(p["bn_var"] + eps)
    shift_v = p["bn_beta"] - p["bn_mean"] * scale_v
    bn_scale = scale_v.reshape(1, C).astype(f32)
    bn_shift = shift_v.reshape(1, C).astype(f32)

    # Fold l1 + GRU input projections:  (x @ W1^T + b1) @ Wih^T + bih
    #   == x @ (W1^T @ Wih^T) + (b1 @ Wih^T + bih)     (both directions concat).
    wih_cat_t = jnp.concatenate([p["wih_f"].T, p["wih_b"].T], axis=1)   # (512, 6H)
    w_comp = (p["w1"].T @ wih_cat_t).astype(f32)                        # (C, 6H)
    b_comp = (p["b1"] @ wih_cat_t
              + jnp.concatenate([p["bih_f"], p["bih_b"]])
              ).reshape(1, 6 * H).astype(f32)

    # ---------------- pre-pass: gx for all B*T rows ----------------
    rows = B * T
    x_flat = jnp.transpose(X, (0, 2, 1)).astype(f32).reshape(rows, C)
    tm = min(256, ((rows + 7) // 8) * 8)          # row tile (sublane multiple)
    rp = ((rows + tm - 1) // tm) * tm             # rows padded to tile multiple
    if rp != rows:
        x_flat = jnp.pad(x_flat, ((0, rp - rows), (0, 0)))

    prepass_vmem = int(min(64 << 20, max(
        16 << 20,
        2 * (tm * C * 4 + tm * 6 * H * 4)                 # x / gx blocks (2 bufs)
        + 2 * (C * 6 * H * 4 + 6 * H * 4 + 2 * C * 4)     # resident weights/biases
        + (2 << 20))))

    gx = pl.pallas_call(
        _proj_kernel,
        out_shape=jax.ShapeDtypeStruct((rp, 6 * H), f32),
        grid_spec=pltpu.PrefetchScalarGridSpec(
            num_scalar_prefetch=0,
            grid=(rp // tm,),
            in_specs=[
                pl.BlockSpec((tm, C), lambda i: (i, 0)),        # x rows
                pl.BlockSpec((1, C), lambda i: (0, 0)),         # BN scale
                pl.BlockSpec((1, C), lambda i: (0, 0)),         # BN shift
                pl.BlockSpec((C, 6 * H), lambda i: (0, 0)),     # W_comp (resident)
                pl.BlockSpec((1, 6 * H), lambda i: (0, 0)),     # b_comp
            ],
            out_specs=pl.BlockSpec((tm, 6 * H), lambda i: (i, 0)),
        ),
        compiler_params=pltpu.CompilerParams(
            dimension_semantics=("parallel",),
            vmem_limit_bytes=prepass_vmem,
        ),
    )(x_flat, bn_scale, bn_shift, w_comp, b_comp)

    if rp != rows:
        gx = gx[:rows]
    gx = gx.reshape(B, T, 6 * H)     # lanes [0:3H) = forward gx, [3H:6H) = backward gx

    # ---------------- recurrent kernel: unroll factor ----------------
    per_u = 2 * 2 * T * 3 * H * 4    # fwd+bwd gx blocks, double-buffered, f32
    unroll = 1
    for cand in range(min(B, 8), 0, -1):
        if B % cand == 0 and cand * per_u <= (12 << 20):
            unroll = cand
            break
    n_blocks = B // unroll

    main_vmem = int(min(48 << 20, max(
        16 << 20,
        2 * 2 * (H * 3 * H * 2)      # resident W_hh (bf16, both dirs, 2 bufs)
        + unroll * per_u             # gx input blocks
        + 2 * 2 * B * H * 4          # pooled outputs (resident)
        + 2 * T * H * 4              # hidden-state scratch
        + (2 << 20))))

    kernel = functools.partial(_gru_kernel, unroll=unroll, nb=B)
    pooled_f, pooled_b = pl.pallas_call(
        kernel,
        out_shape=(jax.ShapeDtypeStruct((B, H), f32),
                   jax.ShapeDtypeStruct((B, H), f32)),
        grid_spec=pltpu.PrefetchScalarGridSpec(
            num_scalar_prefetch=0,
            grid=(n_blocks,),
            in_specs=[
                # forward gx block: rows [i*U,(i+1)*U), lanes [0:3H)
                pl.BlockSpec((unroll, T, 3 * H), lambda i: (i, 0, 0)),
                # backward gx block: rows [B-(i+1)*U, B-i*U), lanes [3H:6H)
                pl.BlockSpec((unroll, T, 3 * H),
                             lambda i: (n_blocks - 1 - i, 0, 1)),
                pl.BlockSpec((H, 3 * H), lambda i: (0, 0)),     # W_hh fwd (resident)
                pl.BlockSpec((1, 3 * H), lambda i: (0, 0)),     # b_hh fwd
                pl.BlockSpec((H, 3 * H), lambda i: (0, 0)),     # W_hh bwd (resident)
                pl.BlockSpec((1, 3 * H), lambda i: (0, 0)),     # b_hh bwd
            ],
            out_specs=[
                pl.BlockSpec((B, H), lambda i: (0, 0)),         # pooled fwd halves
                pl.BlockSpec((B, H), lambda i: (0, 0)),         # pooled bwd halves
            ],
            scratch_shapes=[
                pltpu.VMEM((T, H), f32),    # forward hidden state
                pltpu.VMEM((T, H), f32),    # backward hidden state
            ],
        ),
        compiler_params=pltpu.CompilerParams(
            dimension_semantics=("arbitrary",),
            vmem_limit_bytes=main_vmem,
        ),
    )(gx, gx,
      p["whh_f"].T.astype(bf16), p["bhh_f"].reshape(1, 3 * H).astype(f32),
      p["whh_b"].T.astype(bf16), p["bhh_b"].reshape(1, 3 * H).astype(f32))

    # ------------- mean over time (/in_dim quirk) + l2 : tiny, in XLA -------------
    inv_b = 1.0 / C                                   # reference divides by y.shape[2] == in_dim
    w2t = p["w2"].T.astype(f32)                       # (1024, out_dim)
    out = ((pooled_f * inv_b) @ w2t[:H]
           + (pooled_b * inv_b) @ w2t[H:]
           + p["b2"].reshape(1, out_dim).astype(f32))
    return out


def make_params(key, in_dim, out_dim):
    ks = jax.random.split(key, 16)
    h = HIDDEN
    sc = 0.1
    p = {
        "bn_gamma": 1.0 + 0.1 * jax.random.normal(ks[0], (in_dim,), jnp.float32),
        "bn_beta": 0.1 * jax.random.normal(ks[1], (in_dim,), jnp.float32),
        "bn_mean": 0.1 * jax.random.normal(ks[2], (in_dim,), jnp.float32),
        "bn_var": 0.5 + jnp.abs(jax.random.normal(ks[3], (in_dim,), jnp.float32)),
        "w1": sc * jax.random.normal(ks[4], (h, in_dim), jnp.float32),
        "b1": sc * jax.random.normal(ks[5], (h,), jnp.float32),
        "wih_f": sc * jax.random.normal(ks[6], (3 * h, h), jnp.float32),
        "whh_f": sc * jax.random.normal(ks[7], (3 * h, h), jnp.float32),
        "bih_f": sc * jax.random.normal(ks[8], (3 * h,), jnp.float32),
        "bhh_f": sc * jax.random.normal(ks[9], (3 * h,), jnp.float32),
        "wih_b": sc * jax.random.normal(ks[10], (3 * h, h), jnp.float32),
        "whh_b": sc * jax.random.normal(ks[11], (3 * h, h), jnp.float32),
        "bih_b": sc * jax.random.normal(ks[12], (3 * h,), jnp.float32),
        "bhh_b": sc * jax.random.normal(ks[13], (3 * h,), jnp.float32),
        "w2": sc * jax.random.normal(ks[14], (out_dim, 2 * h), jnp.float32),
        "b2": sc * jax.random.normal(ks[15], (out_dim,), jnp.float32),
    }
    return p


def reference_forward(X, p):
    """Pure-JAX (f32) re-implementation of the PyTorch forward, for verification."""
    B, C, T = X.shape
    H = HIDDEN
    eps = 1e-5
    y = ((X - p["bn_mean"][None, :, None])
         / jnp.sqrt(p["bn_var"][None, :, None] + eps)
         * p["bn_gamma"][None, :, None] + p["bn_beta"][None, :, None])
    y = jnp.where(y >= 0.0, y, 0.3 * y)
    y = jnp.transpose(y, (0, 2, 1))                   # (B, T, C)
    b = y.shape[2]                                    # == in_dim
    y = y @ p["w1"].T + p["b1"]                       # (B, T, 512)

    def gru_dir(x, wih, whh, bih, bhh, reverse):
        steps = range(B - 1, -1, -1) if reverse else range(B)
        h = jnp.zeros((T, H), jnp.float32)
        outs = [None] * B
        for s in steps:
            gx = x[s] @ wih.T + bih
            gh = h @ whh.T + bhh
            r = jax.nn.sigmoid(gx[:, :H] + gh[:, :H])
            z = jax.nn.sigmoid(gx[:, H:2 * H] + gh[:, H:2 * H])
            n = jnp.tanh(gx[:, 2 * H:] + r * gh[:, 2 * H:])
            h = (1.0 - z) * n + z * h
            outs[s] = h
        return jnp.stack(outs)                        # (B, T, 512)

    of = gru_dir(y, p["wih_f"], p["whh_f"], p["bih_f"], p["bhh_f"], False)
    ob = gru_dir(y, p["wih_b"], p["whh_b"], p["bih_b"], p["bhh_b"], True)
    yo = jnp.concatenate([of, ob], axis=2)            # (B, T, 1024)
    yo = jnp.sum(yo, axis=1) / b                      # (B, 1024)
    return yo @ p["w2"].T + p["b2"]                   # (B, out_dim)


if __name__ == "__main__":
    in_dim, out_dim = 32, 16
    B, T = 2, 8

    key = jax.random.PRNGKey(0)
    k_x, k_p = jax.random.split(key)
    X = jax.random.normal(k_x, (B, in_dim, T), jnp.float32)
    params = make_params(k_p, in_dim, out_dim)

    out = jax.jit(utterance_block_forward)(X, params)
    out = jax.block_until_ready(out)

    ref = reference_forward(X, params)
    assert out.shape == (B, out_dim), out.shape
    # Recurrent matmul operands are bf16 (f32 accumulate, f32 gate math);
    # the input projection / pooling / l2 are f32.
    assert jnp.allclose(out, ref, rtol=2e-2, atol=2e-2), (
        f"max abs err {jnp.max(jnp.abs(out - ref))}")

    print("KERNEL_OK")
</pallas_src>

<mosaic_0001>
module attributes {stable_mosaic.version = 11 : i64} {
  func.func @_proj_kernel(%arg0: i32, %arg1: memref<16x32xf32, #tpu.memory_space<vmem>>, %arg2: memref<1x32xf32, #tpu.memory_space<vmem>>, %arg3: memref<1x32xf32, #tpu.memory_space<vmem>>, %arg4: memref<32x3072xf32, #tpu.memory_space<vmem>>, %arg5: memref<1x3072xf32, #tpu.memory_space<vmem>>, %arg6: memref<16x3072xf32, #tpu.memory_space<vmem>>) attributes {dimension_semantics = [#tpu.dimension_semantics<parallel>], iteration_bounds = array<i64: 1>, scalar_prefetch = 0 : i64, scratch_operands = 0 : i64, tpu.core_type = #tpu.core_type<tc>, window_params = [{transform_indices = @transform_0, window_bounds = array<i64: 16, 32>}, {pipeline_mode = #tpu.pipeline_mode<synchronous>, transform_indices = @transform_1, window_bounds = array<i64: 1, 32>}, {pipeline_mode = #tpu.pipeline_mode<synchronous>, transform_indices = @transform_2, window_bounds = array<i64: 1, 32>}, {pipeline_mode = #tpu.pipeline_mode<synchronous>, transform_indices = @transform_3, window_bounds = array<i64: 32, 3072>}, {pipeline_mode = #tpu.pipeline_mode<synchronous>, transform_indices = @transform_4, window_bounds = array<i64: 1, 3072>}, {transform_indices = @transform_5, window_bounds = array<i64: 16, 3072>}]} {
    %c0 = arith.constant 0 : index
    %c0_0 = arith.constant 0 : index
    %0 = vector.load %arg1[%c0, %c0_0] : memref<16x32xf32, #tpu.memory_space<vmem>>, vector<16x32xf32>
    %c0_1 = arith.constant 0 : index
    %c0_2 = arith.constant 0 : index
    %1 = vector.load %arg2[%c0_1, %c0_2] : memref<1x32xf32, #tpu.memory_space<vmem>>, vector<1x32xf32>
    %2 = vector.broadcast %1 : vector<1x32xf32> to vector<16x32xf32>
    %3 = arith.mulf %0, %2 : vector<16x32xf32>
    %c0_3 = arith.constant 0 : index
    %c0_4 = arith.constant 0 : index
    %4 = vector.load %arg3[%c0_3, %c0_4] : memref<1x32xf32, #tpu.memory_space<vmem>>, vector<1x32xf32>
    %5 = vector.broadcast %4 : vector<1x32xf32> to vector<16x32xf32>
    %6 = arith.addf %3, %5 : vector<16x32xf32>
    %cst = arith.constant 0.000000e+00 : f32
    %7 = vector.broadcast %cst : f32 to vector<16x32xf32>
    %8 = arith.cmpf oge, %6, %7 : vector<16x32xf32>
    %cst_5 = arith.constant 3.000000e-01 : f32
    %9 = vector.broadcast %cst_5 : f32 to vector<16x32xf32>
    %10 = arith.mulf %9, %6 : vector<16x32xf32>
    %11 = arith.select %8, %6, %10 : vector<16x32xi1>, vector<16x32xf32>
    %c0_6 = arith.constant 0 : index
    %c0_7 = arith.constant 0 : index
    %12 = vector.load %arg4[%c0_6, %c0_7] : memref<32x3072xf32, #tpu.memory_space<vmem>>, vector<32x3072xf32>
    %cst_8 = arith.constant dense<0.000000e+00> : vector<16x3072xf32>
    %13 = tpu.matmul %11, %12, %cst_8 {dimension_numbers = #tpu.dot_dimension_numbers<[1], [0], [0], [1], [0, 0, 1, 1], [], []>} : vector<16x32xf32>, vector<32x3072xf32>, vector<16x3072xf32> -> vector<16x3072xf32>
    %c0_9 = arith.constant 0 : index
    %c0_10 = arith.constant 0 : index
    %14 = vector.load %arg5[%c0_9, %c0_10] : memref<1x3072xf32, #tpu.memory_space<vmem>>, vector<1x3072xf32>
    %15 = vector.broadcast %14 : vector<1x3072xf32> to vector<16x3072xf32>
    %16 = arith.addf %13, %15 : vector<16x3072xf32>
    %c0_11 = arith.constant 0 : index
    %c0_12 = arith.constant 0 : index
    %17 = vector.load %arg6[%c0_11, %c0_12] : memref<16x3072xf32, #tpu.memory_space<vmem>>, vector<16x3072xf32>
    tpu.vector_store %arg6[%c0_11, %c0_12], %16 {strides = array<i32>} : memref<16x3072xf32, #tpu.memory_space<vmem>>, vector<16x3072xf32>,
    return
  }
  func.func @transform_0(%arg0: i32) -> (i32, i32) {
    %c0_i32 = arith.constant 0 : i32
    %c0_i32_0 = arith.constant 0 : i32
    return %arg0, %c0_i32 : i32, i32
  }
  func.func @transform_1(%arg0: i32) -> (i32, i32) {
    %c0_i32 = arith.constant 0 : i32
    %c0_i32_0 = arith.constant 0 : i32
    %c0_i32_1 = arith.constant 0 : i32
    return %c0_i32, %c0_i32_0 : i32, i32
  }
  func.func @transform_2(%arg0: i32) -> (i32, i32) {
    %c0_i32 = arith.constant 0 : i32
    %c0_i32_0 = arith.constant 0 : i32
    %c0_i32_1 = arith.constant 0 : i32
    return %c0_i32, %c0_i32_0 : i32, i32
  }
  func.func @transform_3(%arg0: i32) -> (i32, i32) {
    %c0_i32 = arith.constant 0 : i32
    %c0_i32_0 = arith.constant 0 : i32
    %c0_i32_1 = arith.constant 0 : i32
    return %c0_i32, %c0_i32_0 : i32, i32
  }
  func.func @transform_4(%arg0: i32) -> (i32, i32) {
    %c0_i32 = arith.constant 0 : i32
    %c0_i32_0 = arith.constant 0 : i32
    %c0_i32_1 = arith.constant 0 : i32
    return %c0_i32, %c0_i32_0 : i32, i32
  }
  func.func @transform_5(%arg0: i32) -> (i32, i32) {
    %c0_i32 = arith.constant 0 : i32
    %c0_i32_0 = arith.constant 0 : i32
    return %arg0, %c0_i32 : i32, i32
  }
}

module attributes {stable_mosaic.version = 11 : i64} {
  func.func @_gru_kernel(%arg0: i32, %arg1: memref<2x8x1536xf32, #tpu.memory_space<vmem>>, %arg2: memref<2x8x1536xf32, #tpu.memory_space<vmem>>, %arg3: memref<512x1536xbf16, #tpu.memory_space<vmem>>, %arg4: memref<1x1536xf32, #tpu.memory_space<vmem>>, %arg5: memref<512x1536xbf16, #tpu.memory_space<vmem>>, %arg6: memref<1x1536xf32, #tpu.memory_space<vmem>>, %arg7: memref<2x512xf32, #tpu.memory_space<vmem>>, %arg8: memref<2x512xf32, #tpu.memory_space<vmem>>, %arg9: memref<8x512xf32, #tpu.memory_space<vmem>>, %arg10: memref<8x512xf32, #tpu.memory_space<vmem>>) attributes {dimension_semantics = [#tpu.dimension_semantics<arbitrary>], iteration_bounds = array<i64: 1>, scalar_prefetch = 0 : i64, scratch_operands = 2 : i64, tpu.core_type = #tpu.core_type<tc>, window_params = [{transform_indices = @transform_0, window_bounds = array<i64: 2, 8, 1536>}, {transform_indices = @transform_1, window_bounds = array<i64: 2, 8, 1536>}, {pipeline_mode = #tpu.pipeline_mode<synchronous>, transform_indices = @transform_2, window_bounds = array<i64: 512, 1536>}, {pipeline_mode = #tpu.pipeline_mode<synchronous>, transform_indices = @transform_3, window_bounds = array<i64: 1, 1536>}, {pipeline_mode = #tpu.pipeline_mode<synchronous>, transform_indices = @transform_4, window_bounds = array<i64: 512, 1536>}, {pipeline_mode = #tpu.pipeline_mode<synchronous>, transform_indices = @transform_5, window_bounds = array<i64: 1, 1536>}, {pipeline_mode = #tpu.pipeline_mode<synchronous>, transform_indices = @transform_6, window_bounds = array<i64: 2, 512>}, {pipeline_mode = #tpu.pipeline_mode<synchronous>, transform_indices = @transform_7, window_bounds = array<i64: 2, 512>}]} {
    %c0_i32 = arith.constant 0 : i32
    %0 = arith.cmpi eq, %arg0, %c0_i32 : i32
    %1 = arith.extui %0 : i1 to i32
    %c0_i32_0 = arith.constant 0 : i32
    %2 = arith.cmpi ne, %1, %c0_i32_0 : i32
    scf.if %2 {
      %cst_58 = arith.constant 0.000000e+00 : f32
      %161 = vector.broadcast %cst_58 : f32 to vector<8x512xf32>
      %c0_59 = arith.constant 0 : index
      %c0_60 = arith.constant 0 : index
      %162 = vector.load %arg9[%c0_59, %c0_60] : memref<8x512xf32, #tpu.memory_space<vmem>>, vector<8x512xf32>
      tpu.vector_store %arg9[%c0_59, %c0_60], %161 {strides = array<i32>} : memref<8x512xf32, #tpu.memory_space<vmem>>, vector<8x512xf32>,
      %cst_61 = arith.constant 0.000000e+00 : f32
      %163 = vector.broadcast %cst_61 : f32 to vector<8x512xf32>
      %c0_62 = arith.constant 0 : index
      %c0_63 = arith.constant 0 : index
      %164 = vector.load %arg10[%c0_62, %c0_63] : memref<8x512xf32, #tpu.memory_space<vmem>>, vector<8x512xf32>
      tpu.vector_store %arg10[%c0_62, %c0_63], %163 {strides = array<i32>} : memref<8x512xf32, #tpu.memory_space<vmem>>, vector<8x512xf32>,
    } else {
    }
    %c0 = arith.constant 0 : index
    %c0_1 = arith.constant 0 : index
    %3 = vector.load %arg9[%c0, %c0_1] : memref<8x512xf32, #tpu.memory_space<vmem>>, vector<8x512xf32>
    %c0_2 = arith.constant 0 : index
    %c0_3 = arith.constant 0 : index
    %4 = vector.load %arg10[%c0_2, %c0_3] : memref<8x512xf32, #tpu.memory_space<vmem>>, vector<8x512xf32>
    %c0_4 = arith.constant 0 : index
    %c0_5 = arith.constant 0 : index
    %c0_6 = arith.constant 0 : index
    %5 = vector.load %arg1[%c0_4, %c0_5, %c0_6] : memref<2x8x1536xf32, #tpu.memory_space<vmem>>, vector<1x8x1536xf32>
    %6 = vector.shape_cast %5 : vector<1x8x1536xf32> to vector<8x1536xf32>
    %7 = arith.truncf %3 : vector<8x512xf32> to vector<8x512xbf16>
    %c0_7 = arith.constant 0 : index
    %c0_8 = arith.constant 0 : index
    %8 = vector.load %arg3[%c0_7, %c0_8] : memref<512x1536xbf16, #tpu.memory_space<vmem>>, vector<512x1536xbf16>
    %cst = arith.constant dense<0.000000e+00> : vector<8x1536xf32>
    %9 = tpu.matmul %7, %8, %cst {dimension_numbers = #tpu.dot_dimension_numbers<[1], [0], [0], [1], [0, 0, 1, 1], [], []>} : vector<8x512xbf16>, vector<512x1536xbf16>, vector<8x1536xf32> -> vector<8x1536xf32>
    %c0_9 = arith.constant 0 : index
    %c0_10 = arith.constant 0 : index
    %10 = vector.load %arg4[%c0_9, %c0_10] : memref<1x1536xf32, #tpu.memory_space<vmem>>, vector<1x1536xf32>
    %11 = vector.broadcast %10 : vector<1x1536xf32> to vector<8x1536xf32>
    %12 = arith.addf %9, %11 : vector<8x1536xf32>
    %13 = vector.extract_strided_slice %6 {offsets = [0, 0], sizes = [8, 512], strides = [1, 1]} : vector<8x1536xf32> to vector<8x512xf32>
    %14 = vector.extract_strided_slice %12 {offsets = [0, 0], sizes = [8, 512], strides = [1, 1]} : vector<8x1536xf32> to vector<8x512xf32>
    %15 = arith.addf %13, %14 : vector<8x512xf32>
    %16 = arith.negf %15 : vector<8x512xf32>
    %17 = math.exp %16 : vector<8x512xf32>
    %cst_11 = arith.constant 1.000000e+00 : f32
    %18 = vector.broadcast %cst_11 : f32 to vector<8x512xf32>
    %19 = arith.addf %18, %17 : vector<8x512xf32>
    %20 = arith.divf %18, %19 : vector<8x512xf32>
    %21 = vector.extract_strided_slice %6 {offsets = [0, 512], sizes = [8, 512], strides = [1, 1]} : vector<8x1536xf32> to vector<8x512xf32>
    %22 = vector.extract_strided_slice %12 {offsets = [0, 512], sizes = [8, 512], strides = [1, 1]} : vector<8x1536xf32> to vector<8x512xf32>
    %23 = arith.addf %21, %22 : vector<8x512xf32>
    %24 = arith.negf %23 : vector<8x512xf32>
    %25 = math.exp %24 : vector<8x512xf32>
    %cst_12 = arith.constant 1.000000e+00 : f32
    %26 = vector.broadcast %cst_12 : f32 to vector<8x512xf32>
    %27 = arith.addf %26, %25 : vector<8x512xf32>
    %28 = arith.divf %26, %27 : vector<8x512xf32>
    %29 = vector.extract_strided_slice %6 {offsets = [0, 1024], sizes = [8, 512], strides = [1, 1]} : vector<8x1536xf32> to vector<8x512xf32>
    %30 = vector.extract_strided_slice %12 {offsets = [0, 1024], sizes = [8, 512], strides = [1, 1]} : vector<8x1536xf32> to vector<8x512xf32>
    %31 = arith.mulf %20, %30 : vector<8x512xf32>
    %32 = arith.addf %29, %31 : vector<8x512xf32>
    %33 = math.tanh %32 : vector<8x512xf32>
    %cst_13 = arith.constant 1.000000e+00 : f32
    %34 = vector.broadcast %cst_13 : f32 to vector<8x512xf32>
    %35 = arith.subf %34, %28 : vector<8x512xf32>
    %36 = arith.mulf %35, %33 : vector<8x512xf32>
    %37 = arith.mulf %28, %3 : vector<8x512xf32>
    %38 = arith.addf %36, %37 : vector<8x512xf32>
    %c1 = arith.constant 1 : index
    %c0_14 = arith.constant 0 : index
    %c0_15 = arith.constant 0 : index
    %39 = vector.load %arg2[%c1, %c0_14, %c0_15] : memref<2x8x1536xf32, #tpu.memory_space<vmem>>, vector<1x8x1536xf32>
    %40 = vector.shape_cast %39 : vector<1x8x1536xf32> to vector<8x1536xf32>
    %41 = arith.truncf %4 : vector<8x512xf32> to vector<8x512xbf16>
    %c0_16 = arith.constant 0 : index
    %c0_17 = arith.constant 0 : index
    %42 = vector.load %arg5[%c0_16, %c0_17] : memref<512x1536xbf16, #tpu.memory_space<vmem>>, vector<512x1536xbf16>
    %cst_18 = arith.constant dense<0.000000e+00> : vector<8x1536xf32>
    %43 = tpu.matmul %41, %42, %cst_18 {dimension_numbers = #tpu.dot_dimension_numbers<[1], [0], [0], [1], [0, 0, 1, 1], [], []>} : vector<8x512xbf16>, vector<512x1536xbf16>, vector<8x1536xf32> -> vector<8x1536xf32>
    %c0_19 = arith.constant 0 : index
    %c0_20 = arith.constant 0 : index
    %44 = vector.load %arg6[%c0_19, %c0_20] : memref<1x1536xf32, #tpu.memory_space<vmem>>, vector<1x1536xf32>
    %45 = vector.broadcast %44 : vector<1x1536xf32> to vector<8x1536xf32>
    %46 = arith.addf %43, %45 : vector<8x1536xf32>
    %47 = vector.extract_strided_slice %40 {offsets = [0, 0], sizes = [8, 512], strides = [1, 1]} : vector<8x1536xf32> to vector<8x512xf32>
    %48 = vector.extract_strided_slice %46 {offsets = [0, 0], sizes = [8, 512], strides = [1, 1]} : vector<8x1536xf32> to vector<8x512xf32>
    %49 = arith.addf %47, %48 : vector<8x512xf32>
    %50 = arith.negf %49 : vector<8x512xf32>
    %51 = math.exp %50 : vector<8x512xf32>
    %cst_21 = arith.constant 1.000000e+00 : f32
    %52 = vector.broadcast %cst_21 : f32 to vector<8x512xf32>
    %53 = arith.addf %52, %51 : vector<8x512xf32>
    %54 = arith.divf %52, %53 : vector<8x512xf32>
    %55 = vector.extract_strided_slice %40 {offsets = [0, 512], sizes = [8, 512], strides = [1, 1]} : vector<8x1536xf32> to vector<8x512xf32>
    %56 = vector.extract_strided_slice %46 {offsets = [0, 512], sizes = [8, 512], strides = [1, 1]} : vector<8x1536xf32> to vector<8x512xf32>
    %57 = arith.addf %55, %56 : vector<8x512xf32>
    %58 = arith.negf %57 : vector<8x512xf32>
    %59 = math.exp %58 : vector<8x512xf32>
    %cst_22 = arith.constant 1.000000e+00 : f32
    %60 = vector.broadcast %cst_22 : f32 to vector<8x512xf32>
    %61 = arith.addf %60, %59 : vector<8x512xf32>
    %62 = arith.divf %60, %61 : vector<8x512xf32>
    %63 = vector.extract_strided_slice %40 {offsets = [0, 1024], sizes = [8, 512], strides = [1, 1]} : vector<8x1536xf32> to vector<8x512xf32>
    %64 = vector.extract_strided_slice %46 {offsets = [0, 1024], sizes = [8, 512], strides = [1, 1]} : vector<8x1536xf32> to vector<8x512xf32>
    %65 = arith.mulf %54, %64 : vector<8x512xf32>
    %66 = arith.addf %63, %65 : vector<8x512xf32>
    %67 = math.tanh %66 : vector<8x512xf32>
    %cst_23 = arith.constant 1.000000e+00 : f32
    %68 = vector.broadcast %cst_23 : f32 to vector<8x512xf32>
    %69 = arith.subf %68, %62 : vector<8x512xf32>
    %70 = arith.mulf %69, %67 : vector<8x512xf32>
    %71 = arith.mulf %62, %4 : vector<8x512xf32>
    %72 = arith.addf %70, %71 : vector<8x512xf32>
    %cst_24 = arith.constant dense<0.000000e+00> : vector<512xf32>
    %73 = vector.multi_reduction <add>, %38, %cst_24 [0] : vector<8x512xf32> to vector<512xf32>
    %74 = vector.shape_cast %73 : vector<512xf32> to vector<1x512xf32>
    %cst_25 = arith.constant dense<0.000000e+00> : vector<512xf32>
    %75 = vector.multi_reduction <add>, %72, %cst_25 [0] : vector<8x512xf32> to vector<512xf32>
    %76 = vector.shape_cast %75 : vector<512xf32> to vector<1x512xf32>
    %c1_26 = arith.constant 1 : index
    %c0_27 = arith.constant 0 : index
    %c0_28 = arith.constant 0 : index
    %77 = vector.load %arg1[%c1_26, %c0_27, %c0_28] : memref<2x8x1536xf32, #tpu.memory_space<vmem>>, vector<1x8x1536xf32>
    %78 = vector.shape_cast %77 : vector<1x8x1536xf32> to vector<8x1536xf32>
    %79 = arith.truncf %38 : vector<8x512xf32> to vector<8x512xbf16>
    %c0_29 = arith.constant 0 : index
    %c0_30 = arith.constant 0 : index
    %80 = vector.load %arg3[%c0_29, %c0_30] : memref<512x1536xbf16, #tpu.memory_space<vmem>>, vector<512x1536xbf16>
    %cst_31 = arith.constant dense<0.000000e+00> : vector<8x1536xf32>
    %81 = tpu.matmul %79, %80, %cst_31 {dimension_numbers = #tpu.dot_dimension_numbers<[1], [0], [0], [1], [0, 0, 1, 1], [], []>} : vector<8x512xbf16>, vector<512x1536xbf16>, vector<8x1536xf32> -> vector<8x1536xf32>
    %c0_32 = arith.constant 0 : index
    %c0_33 = arith.constant 0 : index
    %82 = vector.load %arg4[%c0_32, %c0_33] : memref<1x1536xf32, #tpu.memory_space<vmem>>, vector<1x1536xf32>
    %83 = vector.broadcast %82 : vector<1x1536xf32> to vector<8x1536xf32>
    %84 = arith.addf %81, %83 : vector<8x1536xf32>
    %85 = vector.extract_strided_slice %78 {offsets = [0, 0], sizes = [8, 512], strides = [1, 1]} : vector<8x1536xf32> to vector<8x512xf32>
    %86 = vector.extract_strided_slice %84 {offsets = [0, 0], sizes = [8, 512], strides = [1, 1]} : vector<8x1536xf32> to vector<8x512xf32>
    %87 = arith.addf %85, %86 : vector<8x512xf32>
    %88 = arith.negf %87 : vector<8x512xf32>
    %89 = math.exp %88 : vector<8x512xf32>
    %cst_34 = arith.constant 1.000000e+00 : f32
    %90 = vector.broadcast %cst_34 : f32 to vector<8x512xf32>
    %91 = arith.addf %90, %89 : vector<8x512xf32>
    %92 = arith.divf %90, %91 : vector<8x512xf32>
    %93 = vector.extract_strided_slice %78 {offsets = [0, 512], sizes = [8, 512], strides = [1, 1]} : vector<8x1536xf32> to vector<8x512xf32>
    %94 = vector.extract_strided_slice %84 {offsets = [0, 512], sizes = [8, 512], strides = [1, 1]} : vector<8x1536xf32> to vector<8x512xf32>
    %95 = arith.addf %93, %94 : vector<8x512xf32>
    %96 = arith.negf %95 : vector<8x512xf32>
    %97 = math.exp %96 : vector<8x512xf32>
    %cst_35 = arith.constant 1.000000e+00 : f32
    %98 = vector.broadcast %cst_35 : f32 to vector<8x512xf32>
    %99 = arith.addf %98, %97 : vector<8x512xf32>
    %100 = arith.divf %98, %99 : vector<8x512xf32>
    %101 = vector.extract_strided_slice %78 {offsets = [0, 1024], sizes = [8, 512], strides = [1, 1]} : vector<8x1536xf32> to vector<8x512xf32>
    %102 = vector.extract_strided_slice %84 {offsets = [0, 1024], sizes = [8, 512], strides = [1, 1]} : vector<8x1536xf32> to vector<8x512xf32>
    %103 = arith.mulf %92, %102 : vector<8x512xf32>
    %104 = arith.addf %101, %103 : vector<8x512xf32>
    %105 = math.tanh %104 : vector<8x512xf32>
    %cst_36 = arith.constant 1.000000e+00 : f32
    %106 = vector.broadcast %cst_36 : f32 to vector<8x512xf32>
    %107 = arith.subf %106, %100 : vector<8x512xf32>
    %108 = arith.mulf %107, %105 : vector<8x512xf32>
    %109 = arith.mulf %100, %38 : vector<8x512xf32>
    %110 = arith.addf %108, %109 : vector<8x512xf32>
    %c0_37 = arith.constant 0 : index
    %c0_38 = arith.constant 0 : index
    %c0_39 = arith.constant 0 : index
    %111 = vector.load %arg2[%c0_37, %c0_38, %c0_39] : memref<2x8x1536xf32, #tpu.memory_space<vmem>>, vector<1x8x1536xf32>
    %112 = vector.shape_cast %111 : vector<1x8x1536xf32> to vector<8x1536xf32>
    %113 = arith.truncf %72 : vector<8x512xf32> to vector<8x512xbf16>
    %c0_40 = arith.constant 0 : index
    %c0_41 = arith.constant 0 : index
    %114 = vector.load %arg5[%c0_40, %c0_41] : memref<512x1536xbf16, #tpu.memory_space<vmem>>, vector<512x1536xbf16>
    %cst_42 = arith.constant dense<0.000000e+00> : vector<8x1536xf32>
    %115 = tpu.matmul %113, %114, %cst_42 {dimension_numbers = #tpu.dot_dimension_numbers<[1], [0], [0], [1], [0, 0, 1, 1], [], []>} : vector<8x512xbf16>, vector<512x1536xbf16>, vector<8x1536xf32> -> vector<8x1536xf32>
    %c0_43 = arith.constant 0 : index
    %c0_44 = arith.constant 0 : index
    %116 = vector.load %arg6[%c0_43, %c0_44] : memref<1x1536xf32, #tpu.memory_space<vmem>>, vector<1x1536xf32>
    %117 = vector.broadcast %116 : vector<1x1536xf32> to vector<8x1536xf32>
    %118 = arith.addf %115, %117 : vector<8x1536xf32>
    %119 = vector.extract_strided_slice %112 {offsets = [0, 0], sizes = [8, 512], strides = [1, 1]} : vector<8x1536xf32> to vector<8x512xf32>
    %120 = vector.extract_strided_slice %118 {offsets = [0, 0], sizes = [8, 512], strides = [1, 1]} : vector<8x1536xf32> to vector<8x512xf32>
    %121 = arith.addf %119, %120 : vector<8x512xf32>
    %122 = arith.negf %121 : vector<8x512xf32>
    %123 = math.exp %122 : vector<8x512xf32>
    %cst_45 = arith.constant 1.000000e+00 : f32
    %124 = vector.broadcast %cst_45 : f32 to vector<8x512xf32>
    %125 = arith.addf %124, %123 : vector<8x512xf32>
    %126 = arith.divf %124, %125 : vector<8x512xf32>
    %127 = vector.extract_strided_slice %112 {offsets = [0, 512], sizes = [8, 512], strides = [1, 1]} : vector<8x1536xf32> to vector<8x512xf32>
    %128 = vector.extract_strided_slice %118 {offsets = [0, 512], sizes = [8, 512], strides = [1, 1]} : vector<8x1536xf32> to vector<8x512xf32>
    %129 = arith.addf %127, %128 : vector<8x512xf32>
    %130 = arith.negf %129 : vector<8x512xf32>
    %131 = math.exp %130 : vector<8x512xf32>
    %cst_46 = arith.constant 1.000000e+00 : f32
    %132 = vector.broadcast %cst_46 : f32 to vector<8x512xf32>
    %133 = arith.addf %132, %131 : vector<8x512xf32>
    %134 = arith.divf %132, %133 : vector<8x512xf32>
    %135 = vector.extract_strided_slice %112 {offsets = [0, 1024], sizes = [8, 512], strides = [1, 1]} : vector<8x1536xf32> to vector<8x512xf32>
    %136 = vector.extract_strided_slice %118 {offsets = [0, 1024], sizes = [8, 512], strides = [1, 1]} : vector<8x1536xf32> to vector<8x512xf32>
    %137 = arith.mulf %126, %136 : vector<8x512xf32>
    %138 = arith.addf %135, %137 : vector<8x512xf32>
    %139 = math.tanh %138 : vector<8x512xf32>
    %cst_47 = arith.constant 1.000000e+00 : f32
    %140 = vector.broadcast %cst_47 : f32 to vector<8x512xf32>
    %141 = arith.subf %140, %134 : vector<8x512xf32>
    %142 = arith.mulf %141, %139 : vector<8x512xf32>
    %143 = arith.mulf %134, %72 : vector<8x512xf32>
    %144 = arith.addf %142, %143 : vector<8x512xf32>
    %cst_48 = arith.constant dense<0.000000e+00> : vector<512xf32>
    %145 = vector.multi_reduction <add>, %110, %cst_48 [0] : vector<8x512xf32> to vector<512xf32>
    %146 = vector.shape_cast %145 : vector<512xf32> to vector<1x512xf32>
    %cst_49 = arith.constant dense<0.000000e+00> : vector<512xf32>
    %147 = vector.multi_reduction <add>, %144, %cst_49 [0] : vector<8x512xf32> to vector<512xf32>
    %148 = vector.shape_cast %147 : vector<512xf32> to vector<1x512xf32>
    %c0_50 = arith.constant 0 : index
    %c0_51 = arith.constant 0 : index
    %149 = vector.load %arg9[%c0_50, %c0_51] : memref<8x512xf32, #tpu.memory_space<vmem>>, vector<8x512xf32>
    tpu.vector_store %arg9[%c0_50, %c0_51], %110 {strides = array<i32>} : memref<8x512xf32, #tpu.memory_space<vmem>>, vector<8x512xf32>,
    %c0_52 = arith.constant 0 : index
    %c0_53 = arith.constant 0 : index
    %150 = vector.load %arg10[%c0_52, %c0_53] : memref<8x512xf32, #tpu.memory_space<vmem>>, vector<8x512xf32>
    tpu.vector_store %arg10[%c0_52, %c0_53], %144 {strides = array<i32>} : memref<8x512xf32, #tpu.memory_space<vmem>>, vector<8x512xf32>,
    %151 = tpu.concatenate %74, %146 in 0 : vector<1x512xf32>, vector<1x512xf32> -> vector<2x512xf32>
    %c2_i32 = arith.constant 2 : i32
    %152 = arith.muli %arg0, %c2_i32 : i32
    %153 = arith.index_cast %152 : i32 to index
    %c0_54 = arith.constant 0 : index
    %154 = vector.load %arg7[%153, %c0_54] : memref<2x512xf32, #tpu.memory_space<vmem>>, vector<2x512xf32>
    tpu.vector_store %arg7[%153, %c0_54], %151 {strides = array<i32>} : memref<2x512xf32, #tpu.memory_space<vmem>>, vector<2x512xf32>,
    %155 = tpu.concatenate %148, %76 in 0 : vector<1x512xf32>, vector<1x512xf32> -> vector<2x512xf32>
    %c1_i32 = arith.constant 1 : i32
    %156 = arith.addi %arg0, %c1_i32 : i32
    %c2_i32_55 = arith.constant 2 : i32
    %157 = arith.muli %156, %c2_i32_55 : i32
    %c2_i32_56 = arith.constant 2 : i32
    %158 = arith.subi %c2_i32_56, %157 : i32
    %159 = arith.index_cast %158 : i32 to index
    %c0_57 = arith.constant 0 : index
    %160 = vector.load %arg8[%159, %c0_57] : memref<2x512xf32, #tpu.memory_space<vmem>>, vector<2x512xf32>
    tpu.vector_store %arg8[%159, %c0_57], %155 {strides = array<i32>} : memref<2x512xf32, #tpu.memory_space<vmem>>, vector<2x512xf32>,
    return
  }
  func.func @transform_0(%arg0: i32) -> (i32, i32, i32) {
    %c0_i32 = arith.constant 0 : i32
    %c0_i32_0 = arith.constant 0 : i32
    %c0_i32_1 = arith.constant 0 : i32
    return %arg0, %c0_i32, %c0_i32_0 : i32, i32, i32
  }
  func.func @transform_1(%arg0: i32) -> (i32, i32, i32) {
    %c0_i32 = arith.constant 0 : i32
    %0 = arith.subi %c0_i32, %arg0 : i32
    %c0_i32_0 = arith.constant 0 : i32
    %c1_i32 = arith.constant 1 : i32
    %c0_i32_1 = arith.constant 0 : i32
    return %0, %c0_i32_0, %c1_i32 : i32, i32, i32
  }
  func.func @transform_2(%arg0: i32) -> (i32, i32) {
    %c0_i32 = arith.constant 0 : i32
    %c0_i32_0 = arith.constant 0 : i32
    %c0_i32_1 = arith.constant 0 : i32
    return %c0_i32, %c0_i32_0 : i32, i32
  }
  func.func @transform_3(%arg0: i32) -> (i32, i32) {
    %c0_i32 = arith.constant 0 : i32
    %c0_i32_0 = arith.constant 0 : i32
    %c0_i32_1 = arith.constant 0 : i32
    return %c0_i32, %c0_i32_0 : i32, i32
  }
  func.func @transform_4(%arg0: i32) -> (i32, i32) {
    %c0_i32 = arith.constant 0 : i32
    %c0_i32_0 = arith.constant 0 : i32
    %c0_i32_1 = arith.constant 0 : i32
    return %c0_i32, %c0_i32_0 : i32, i32
  }
  func.func @transform_5(%arg0: i32) -> (i32, i32) {
    %c0_i32 = arith.constant 0 : i32
    %c0_i32_0 = arith.constant 0 : i32
    %c0_i32_1 = arith.constant 0 : i32
    return %c0_i32, %c0_i32_0 : i32, i32
  }
  func.func @transform_6(%arg0: i32) -> (i32, i32) {
    %c0_i32 = arith.constant 0 : i32
    %c0_i32_0 = arith.constant 0 : i32
    %c0_i32_1 = arith.constant 0 : i32
    return %c0_i32, %c0_i32_0 : i32, i32
  }
  func.func @transform_7(%arg0: i32) -> (i32, i32) {
    %c0_i32 = arith.constant 0 : i32
    %c0_i32_0 = arith.constant 0 : i32
    %c0_i32_1 = arith.constant 0 : i32
    return %c0_i32, %c0_i32_0 : i32, i32
  }
}

</mosaic_0001>

<bundles_post_ra>
// kernel: utterance_block_forward.2
= control target key start
LH: loop header
LB: loop body
LE: loop exit
PB: predicated region body
PF: predicated region fallthrough
CT: control target
= control target key end

     0   :  { %v1278_v3 = vmov 0.0   ;;  %vm268_vm1 = vcmask 261120   ;;  %s1878_s3 = inlined_call_operand.vmem [shape: f32[32,3072], index: 3, kind: input, shape index: {}]   ;;  %s1879_s0 = inlined_call_operand.vmem [shape: f32[16,32], index: 0, kind: input, shape index: {}]   ;;  %s1880_s1 = inlined_call_operand.vmem [shape: f32[1,32], index: 1, kind: input, shape index: {}]   ;;  %s1881_s2 = inlined_call_operand.vmem [shape: f32[1,32], index: 2, kind: input, shape index: {}]   ;;  %s1882_s4 = inlined_call_operand.vmem [shape: f32[1,3072], index: 4, kind: input, shape index: {}]   ;;  %s1883_s5 = inlined_call_operand.vmem [shape: f32[16,3072], index: 5, kind: output, shape index: {}]  }
   0x1   :  { %v119_v0 = vld [vmem:[%s1878_s3 + $0x248] sm:$0xff]  ;;  %v121_v1 = vld [vmem:[%s1878_s3 + $0x258] sm:$0xff]  ;;  %v118_v2 = vld [vmem:[%s1878_s3 + $0x240] sm:$0xff]  ;;  %339 = vmatprep.mubr.f32.mxu0 %v1278_v3  ;;  %416 = vmatprep.mubr.f32.mxu1 %v1278_v3 }
   0x2   :  { %299 = vmatprep.subr.mxu0 %v119_v0  ;;  %376 = vmatprep.subr.mxu1 %v121_v1  ;;  %v120_v4 = vld [vmem:[%s1878_s3 + $0x250] sm:$0xff]  ;;  %v95_v5 = vld [vmem:[%s1878_s3 + $0x188] sm:$0xff]  ;;  %v97_v6 = vld [vmem:[%s1878_s3 + $0x198] sm:$0xff] }
   0x3   :  { %300 = vmatpush1.msra.mxu0 %v118_v2  ;;  %377 = vmatpush1.msra.mxu1 %v120_v4  ;;  %v94_v7 = vld [vmem:[%s1878_s3 + $0x180] sm:$0xff]  ;;  %v96_v8 = vld [vmem:[%s1878_s3 + $0x190] sm:$0xff]  ;;  %v71_v9 = vld [vmem:[%s1878_s3 + $0xc8] sm:$0xff] }
   0x4   :  { %301 = vmatprep.subr.mxu0 %v95_v5  ;;  %378 = vmatprep.subr.mxu1 %v97_v6  ;;  %v73_v10 = vld [vmem:[%s1878_s3 + $0xd8] sm:$0xff]  ;;  %v70_v11 = vld [vmem:[%s1878_s3 + $0xc0] sm:$0xff]  ;;  %v72_v12 = vld [vmem:[%s1878_s3 + $0xd0] sm:$0xff] }
   0x5   :  { %302 = vmatpush1.msra.mxu0 %v94_v7  ;;  %379 = vmatpush1.msra.mxu1 %v96_v8  ;;  %v47_v13 = vld [vmem:[%s1878_s3 + $0x8] sm:$0xff]  ;;  %v49_v14 = vld [vmem:[%s1878_s3 + $0x18] sm:$0xff]  ;;  %v46_v15 = vld [vmem:[%s1878_s3] sm:$0xff] }
   0x6   :  { %303 = vmatprep.subr.mxu0 %v71_v9  ;;  %380 = vmatprep.subr.mxu1 %v73_v10  ;;  %v48_v16 = vld [vmem:[%s1878_s3 + $0x10] sm:$0xff]  ;;  %v20_v17 = vld [vmem:[%s1879_s0] sm:$0xff]  ;;  %v123_v21 = vld [vmem:[%s1878_s3 + $0x268] sm:$0xff] }
   0x7   :  { %v1251_v18 = vld [vmem:[%s1880_s1] ss:$0 sm:$0xff]  ;;  %304 = vmatpush1.msra.mxu0 %v70_v11  ;;  %381 = vmatpush1.msra.mxu1 %v72_v12  ;;  %v125_v22 = vld [vmem:[%s1878_s3 + $0x278] sm:$0xff]  ;;  %v21_v24 = vld [vmem:[%s1879_s0 + $0x8] sm:$0xff] }
   0x8   :  { %v29_v19 = vmul.f32 %v1251_v18, %v20_v17  ;;  %v1252_v20 = vld [vmem:[%s1881_s2] ss:$0 sm:$0xff]  ;;  %305 = vmatprep.subr.mxu0 %v47_v13  ;;  %382 = vmatprep.subr.mxu1 %v49_v14  ;;  %v30_v26 = vmul.f32 %v1251_v18, %v21_v24  ;;  %v124_v28 = vld [vmem:[%s1878_s3 + $0x270] sm:$0xff]  ;;  %v99_v30 = vld [vmem:[%s1878_s3 + $0x1a8] sm:$0xff] }
   0x9   :  { %306 = vmatpush1.msra.mxu0 %v46_v15  ;;  %383 = vmatpush1.msra.mxu1 %v48_v16  ;;  %v122_v27 = vld [vmem:[%s1878_s3 + $0x260] sm:$0xff]  ;;  %v101_v31 = vld [vmem:[%s1878_s3 + $0x1b8] sm:$0xff]  ;;  %v100_v34 = vld [vmem:[%s1878_s3 + $0x1b0] sm:$0xff] }
   0xa   :  { %v38_v23 = vadd.f32 %v1252_v20, %v29_v19  ;;  %453 = vmatprep.subr.mxu0 %v123_v21  ;;  %530 = vmatprep.subr.mxu1 %v125_v22  ;;  %v39_v32 = vadd.f32 %v1252_v20, %v30_v26  ;;  %v98_v33 = vld [vmem:[%s1878_s3 + $0x1a0] sm:$0xff]  ;;  %v75_v37 = vld [vmem:[%s1878_s3 + $0xe8] sm:$0xff]  ;;  %v77_v38 = vld [vmem:[%s1878_s3 + $0xf8] sm:$0xff] }
   0xb   :  { %v74_v39 = vld [vmem:[%s1878_s3 + $0xe0] sm:$0xff]  ;;  %v76_v40 = vld [vmem:[%s1878_s3 + $0xf0] sm:$0xff]  ;;  %v51_v41 = vld [vmem:[%s1878_s3 + $0x28] sm:$0xff] }
   0xc   :  { %vm40_vm0 = vcmp.ge.f32.partialorder %v38_v23, 0.0  ;;  %v42_v25 = vmul.f32 0.3, %v38_v23  ;;  %vm41_vm2 = vcmp.ge.f32.partialorder %v39_v32, 0.0  ;;  %v43_v35 = vmul.f32 0.3, %v39_v32 }
   0xd   :  { %v53_v42 = vld [vmem:[%s1878_s3 + $0x38] sm:$0xff]  ;;  %v50_v43 = vld [vmem:[%s1878_s3 + $0x20] sm:$0xff]  ;;  %v52_v44 = vld [vmem:[%s1878_s3 + $0x30] sm:$0xff] }
   0xe   :  { %v1383_v29 = vsel %vm40_vm0, %v38_v23, %v42_v25  ;;  %v1403_v36 = vsel %vm41_vm2, %v39_v32, %v43_v35  ;;  %v127_v45 = vld [vmem:[%s1878_s3 + $0x288] sm:$0xff]  ;;  %v129_v46 = vld [vmem:[%s1878_s3 + $0x298] sm:$0xff]  ;;  %v126_v47 = vld [vmem:[%s1878_s3 + $0x280] sm:$0xff] }
   0xf   :  { %1253 = vmatmul.mubr.msk.f32.vlgmr.msra.gmra.mxu0 %vm268_vm1, %v1383_v29  ;;  %1255 = vmatmul.mubr.msk.f32.vlgmr.msra.gmra.mxu1 %vm268_vm1, %v1383_v29  ;;  %v128_v48 = vld [vmem:[%s1878_s3 + $0x290] sm:$0xff]  ;;  %v103_v49 = vld [vmem:[%s1878_s3 + $0x1c8] sm:$0xff]  ;;  %v105_v50 = vld [vmem:[%s1878_s3 + $0x1d8] sm:$0xff] }
  0x10   :  { %454 = vmatpush1.msra.mxu0 %v122_v27  ;;  %531 = vmatpush1.msra.mxu1 %v124_v28  ;;  %v102_v51 = vld [vmem:[%s1878_s3 + $0x1c0] sm:$0xff]  ;;  %v104_v52 = vld [vmem:[%s1878_s3 + $0x1d0] sm:$0xff]  ;;  %v79_v53 = vld [vmem:[%s1878_s3 + $0x108] sm:$0xff] }
  0x11   :  { %455 = vmatprep.subr.mxu0 %v99_v30  ;;  %532 = vmatprep.subr.mxu1 %v101_v31  ;;  %v81_v54 = vld [vmem:[%s1878_s3 + $0x118] sm:$0xff]  ;;  %v78_v55 = vld [vmem:[%s1878_s3 + $0x100] sm:$0xff]  ;;  %v80_v56 = vld [vmem:[%s1878_s3 + $0x110] sm:$0xff] }
  0x12   :  { %345 = vmatprep.mubr.f32.mxu0 %v1278_v3  ;;  %422 = vmatprep.mubr.f32.mxu1 %v1278_v3  ;;  %v55_v57 = vld [vmem:[%s1878_s3 + $0x48] sm:$0xff]  ;;  %v57_v58 = vld [vmem:[%s1878_s3 + $0x58] sm:$0xff]  ;;  %v54_v59 = vld [vmem:[%s1878_s3 + $0x40] sm:$0xff] }
  0x13   :  { %456 = vmatpush1.msra.mxu0 %v98_v33  ;;  %533 = vmatpush1.msra.mxu1 %v100_v34  ;;  %v56_v60 = vld [vmem:[%s1878_s3 + $0x50] sm:$0xff]  ;;  %v131_v61 = vld [vmem:[%s1878_s3 + $0x2a8] sm:$0xff]  ;;  %v133_v62 = vld [vmem:[%s1878_s3 + $0x2b8] sm:$0xff] }
  0x14   :  { %1254 = vmatmul.mubr.msk.f32.gmra.mxu0 %vm268_vm1, %v1403_v36  ;;  %1256 = vmatmul.mubr.msk.f32.gmra.mxu1 %vm268_vm1, %v1403_v36  ;;  %v130_v63 = vld [vmem:[%s1878_s3 + $0x2a0] sm:$0xff]  ;;  %v132_v0 = vld [vmem:[%s1878_s3 + $0x2b0] sm:$0xff]  ;;  %v107_v1 = vld [vmem:[%s1878_s3 + $0x1e8] sm:$0xff] }
  0x15   :  { %457 = vmatprep.subr.mxu0 %v75_v37  ;;  %534 = vmatprep.subr.mxu1 %v77_v38  ;;  %v109_v2 = vld [vmem:[%s1878_s3 + $0x1f8] sm:$0xff]  ;;  %v106_v4 = vld [vmem:[%s1878_s3 + $0x1e0] sm:$0xff]  ;;  %v108_v5 = vld [vmem:[%s1878_s3 + $0x1f0] sm:$0xff] }
  0x16   :  { %458 = vmatpush1.msra.mxu0 %v74_v39  ;;  %535 = vmatpush1.msra.mxu1 %v76_v40  ;;  %v83_v6 = vld [vmem:[%s1878_s3 + $0x128] sm:$0xff]  ;;  %v85_v7 = vld [vmem:[%s1878_s3 + $0x138] sm:$0xff]  ;;  %v82_v8 = vld [vmem:[%s1878_s3 + $0x120] sm:$0xff] }
  0x17   :  { %459 = vmatprep.subr.mxu0 %v51_v41  ;;  %536 = vmatprep.subr.mxu1 %v53_v42  ;;  %v84_v9 = vld [vmem:[%s1878_s3 + $0x130] sm:$0xff]  ;;  %v59_v10 = vld [vmem:[%s1878_s3 + $0x68] sm:$0xff]  ;;  %v61_v11 = vld [vmem:[%s1878_s3 + $0x78] sm:$0xff] }
  0x18   :  { %460 = vmatpush1.msra.mxu0 %v50_v43  ;;  %493 = vmatprep.mubr.f32.mxu0 %v1278_v3  ;;  %v58_v12 = vld [vmem:[%s1878_s3 + $0x60] sm:$0xff]  ;;  %v60_v13 = vld [vmem:[%s1878_s3 + $0x70] sm:$0xff]  ;;  %v135_v14 = vld [vmem:[%s1878_s3 + $0x2c8] sm:$0xff] }
  0x19   :  { %537 = vmatpush1.msra.mxu1 %v52_v44  ;;  %570 = vmatprep.mubr.f32.mxu1 %v1278_v3  ;;  %v137_v15 = vld [vmem:[%s1878_s3 + $0x2d8] sm:$0xff]  ;;  %v134_v16 = vld [vmem:[%s1878_s3 + $0x2c0] sm:$0xff]  ;;  %v136_v17 = vld [vmem:[%s1878_s3 + $0x2d0] sm:$0xff] }
  0x1a   :  { %1257 = vmatmul.mubr.msk.f32.vlgmr.msra.gmra.mxu0 %vm268_vm1, %v1383_v29  ;;  %1259 = vmatmul.mubr.msk.f32.vlgmr.msra.gmra.mxu1 %vm268_vm1, %v1383_v29  ;;  %v111_v18 = vld [vmem:[%s1878_s3 + $0x208] sm:$0xff]  ;;  %v113_v19 = vld [vmem:[%s1878_s3 + $0x218] sm:$0xff]  ;;  %v110_v20 = vld [vmem:[%s1878_s3 + $0x200] sm:$0xff] }
  0x1b   :  { %607 = vmatprep.subr.mxu0 %v127_v45  ;;  %684 = vmatprep.subr.mxu1 %v129_v46  ;;  %v112_v21 = vld [vmem:[%s1878_s3 + $0x210] sm:$0xff]  ;;  %v87_v22 = vld [vmem:[%s1878_s3 + $0x148] sm:$0xff]  ;;  %v89_v23 = vld [vmem:[%s1878_s3 + $0x158] sm:$0xff] }
  0x1c   :  { %608 = vmatpush1.msra.mxu0 %v126_v47  ;;  %685 = vmatpush1.msra.mxu1 %v128_v48  ;;  %v86_v24 = vld [vmem:[%s1878_s3 + $0x140] sm:$0xff]  ;;  %v88_v25 = vld [vmem:[%s1878_s3 + $0x150] sm:$0xff]  ;;  %v63_v26 = vld [vmem:[%s1878_s3 + $0x88] sm:$0xff]  ;;  %v148_v48 = vlaneseq }
  0x1d   :  { %609 = vmatprep.subr.mxu0 %v103_v49  ;;  %686 = vmatprep.subr.mxu1 %v105_v50  ;;  %v65_v27 = vld [vmem:[%s1878_s3 + $0x98] sm:$0xff]  ;;  %v62_v28 = vld [vmem:[%s1878_s3 + $0x80] sm:$0xff]  ;;  %v64_v30 = vld [vmem:[%s1878_s3 + $0x90] sm:$0xff] }
  0x1e   :  { %499 = vmatprep.mubr.f32.mxu0 %v1278_v3  ;;  %576 = vmatprep.mubr.f32.mxu1 %v1278_v3  ;;  %v139_v31 = vld [vmem:[%s1878_s3 + $0x2e8] sm:$0xff]  ;;  %v141_v32 = vld [vmem:[%s1878_s3 + $0x2f8] sm:$0xff]  ;;  %v138_v33 = vld [vmem:[%s1878_s3 + $0x2e0] sm:$0xff]  ;;  %v149_v49 = vshrl.u32 %v148_v48, 7 }
  0x1f   :  { %610 = vmatpush1.msra.mxu0 %v102_v51  ;;  %687 = vmatpush1.msra.mxu1 %v104_v52  ;;  %v140_v34 = vld [vmem:[%s1878_s3 + $0x2f0] sm:$0xff]  ;;  %v115_v35 = vld [vmem:[%s1878_s3 + $0x228] sm:$0xff]  ;;  %v117_v37 = vld [vmem:[%s1878_s3 + $0x238] sm:$0xff] }
  0x20   :  { %1258 = vmatmul.mubr.msk.f32.gmra.mxu0 %vm268_vm1, %v1403_v36  ;;  %1260 = vmatmul.mubr.msk.f32.gmra.mxu1 %vm268_vm1, %v1403_v36  ;;  %v114_v38 = vld [vmem:[%s1878_s3 + $0x220] sm:$0xff]  ;;  %v116_v39 = vld [vmem:[%s1878_s3 + $0x230] sm:$0xff]  ;;  %v91_v40 = vld [vmem:[%s1878_s3 + $0x168] sm:$0xff]  ;;  %v1685_v50 = vsub.s32 0, %v149_v49  ;;  %v1687_v51 = vsub.s32 2, %v149_v49  ;;  %v1692_v52 = vsub.s32 1, %v149_v49 }
  0x21   :  { %611 = vmatprep.subr.mxu0 %v79_v53  ;;  %688 = vmatprep.subr.mxu1 %v81_v54  ;;  %v93_v41 = vld [vmem:[%s1878_s3 + $0x178] sm:$0xff]  ;;  %v90_v42 = vld [vmem:[%s1878_s3 + $0x160] sm:$0xff]  ;;  %v92_v43 = vld [vmem:[%s1878_s3 + $0x170] sm:$0xff]  ;;  %v1694_v53 = vsub.s32 3, %v149_v49 }
  0x22   :  { %612 = vmatpush1.msra.mxu0 %v78_v55  ;;  %689 = vmatpush1.msra.mxu1 %v80_v56  ;;  %v67_v44 = vld [vmem:[%s1878_s3 + $0xa8] sm:$0xff]  ;;  %v69_v45 = vld [vmem:[%s1878_s3 + $0xb8] sm:$0xff]  ;;  %v66_v46 = vld [vmem:[%s1878_s3 + $0xa0] sm:$0xff] }
  0x23   :  { %613 = vmatprep.subr.mxu0 %v55_v57  ;;  %690 = vmatprep.subr.mxu1 %v57_v58  ;;  %v68_v47 = vld [vmem:[%s1878_s3 + $0xb0] sm:$0xff] }
  0x24   :  { %614 = vmatpush1.msra.mxu0 %v54_v59  ;;  %647 = vmatprep.mubr.f32.mxu0 %v1278_v3 }
  0x25   :  { %691 = vmatpush1.msra.mxu1 %v56_v60  ;;  %724 = vmatprep.mubr.f32.mxu1 %v1278_v3 }
  0x26   :  { %1261 = vmatmul.mubr.msk.f32.vlgmr.msra.gmra.mxu0 %vm268_vm1, %v1383_v29  ;;  %1263 = vmatmul.mubr.msk.f32.vlgmr.msra.gmra.mxu1 %vm268_vm1, %v1383_v29 }
  0x27   :  { %761 = vmatprep.subr.mxu0 %v131_v61  ;;  %838 = vmatprep.subr.mxu1 %v133_v62 }
  0x28   :  { %762 = vmatpush1.msra.mxu0 %v130_v63  ;;  %839 = vmatpush1.msra.mxu1 %v132_v0  ;;  %v1706_v0 = vsub.s32 4, %v149_v49 }
  0x29   :  { %763 = vmatprep.subr.mxu0 %v107_v1  ;;  %840 = vmatprep.subr.mxu1 %v109_v2  ;;  %v1708_v1 = vsub.s32 6, %v149_v49 }
  0x2a   :  { %653 = vmatprep.mubr.f32.mxu0 %v1278_v3  ;;  %730 = vmatprep.mubr.f32.mxu1 %v1278_v3 }
  0x2b   :  { %764 = vmatpush1.msra.mxu0 %v106_v4  ;;  %841 = vmatpush1.msra.mxu1 %v108_v5 }
  0x2c   :  { %1262 = vmatmul.mubr.msk.f32.gmra.mxu0 %vm268_vm1, %v1403_v36  ;;  %1264 = vmatmul.mubr.msk.f32.gmra.mxu1 %vm268_vm1, %v1403_v36 }
  0x2d   :  { %765 = vmatprep.subr.mxu0 %v83_v6  ;;  %842 = vmatprep.subr.mxu1 %v85_v7  ;;  %v1716_v7 = vsub.s32 5, %v149_v49 }
  0x2e   :  { %766 = vmatpush1.msra.mxu0 %v82_v8  ;;  %843 = vmatpush1.msra.mxu1 %v84_v9  ;;  %v1718_v8 = vsub.s32 7, %v149_v49 }
  0x2f   :  { %767 = vmatprep.subr.mxu0 %v59_v10  ;;  %844 = vmatprep.subr.mxu1 %v61_v11 }
  0x30   :  { %768 = vmatpush1.msra.mxu0 %v58_v12  ;;  %801 = vmatprep.mubr.f32.mxu0 %v1278_v3 }
  0x31   :  { %845 = vmatpush1.msra.mxu1 %v60_v13  ;;  %878 = vmatprep.mubr.f32.mxu1 %v1278_v3 }
  0x32   :  { %1265 = vmatmul.mubr.msk.f32.vlgmr.msra.gmra.mxu0 %vm268_vm1, %v1383_v29  ;;  %1267 = vmatmul.mubr.msk.f32.vlgmr.msra.gmra.mxu1 %vm268_vm1, %v1383_v29 }
  0x33   :  { %915 = vmatprep.subr.mxu0 %v135_v14  ;;  %992 = vmatprep.subr.mxu1 %v137_v15 }
  0x34   :  { %916 = vmatpush1.msra.mxu0 %v134_v16  ;;  %993 = vmatpush1.msra.mxu1 %v136_v17 }
  0x35   :  { %917 = vmatprep.subr.mxu0 %v111_v18  ;;  %994 = vmatprep.subr.mxu1 %v113_v19 }
  0x36   :  { %807 = vmatprep.mubr.f32.mxu0 %v1278_v3  ;;  %884 = vmatprep.mubr.f32.mxu1 %v1278_v3 }
  0x37   :  { %918 = vmatpush1.msra.mxu0 %v110_v20  ;;  %995 = vmatpush1.msra.mxu1 %v112_v21 }
  0x38   :  { %1266 = vmatmul.mubr.msk.f32.gmra.mxu0 %vm268_vm1, %v1403_v36  ;;  %1268 = vmatmul.mubr.msk.f32.gmra.mxu1 %vm268_vm1, %v1403_v36 }
  0x39   :  { %919 = vmatprep.subr.mxu0 %v87_v22  ;;  %996 = vmatprep.subr.mxu1 %v89_v23 }
  0x3a   :  { %920 = vmatpush1.msra.mxu0 %v86_v24  ;;  %997 = vmatpush1.msra.mxu1 %v88_v25 }
  0x3b   :  { %921 = vmatprep.subr.mxu0 %v63_v26  ;;  %998 = vmatprep.subr.mxu1 %v65_v27  ;;  %v143_v27 = vld [vmem:[%s1882_s4 + $0x8] sm:$0xff] }
  0x3c   :  { %922 = vmatpush1.msra.mxu0 %v62_v28  ;;  %955 = vmatprep.mubr.f32.mxu0 %v1278_v3 }
  0x3d   :  { %999 = vmatpush1.msra.mxu1 %v64_v30  ;;  %1032 = vmatprep.mubr.f32.mxu1 %v1278_v3 }
  0x3e   :  { %1269 = vmatmul.mubr.msk.f32.vlgmr.msra.gmra.mxu0 %vm268_vm1, %v1383_v29  ;;  %1271 = vmatmul.mubr.msk.f32.vlgmr.msra.gmra.mxu1 %vm268_vm1, %v1383_v29 }
  0x3f   :  { %1069 = vmatprep.subr.mxu0 %v139_v31  ;;  %1146 = vmatprep.subr.mxu1 %v141_v32 }
  0x40   :  { %1070 = vmatpush1.msra.mxu0 %v138_v33  ;;  %1147 = vmatpush1.msra.mxu1 %v140_v34 }
  0x41   :  { %1071 = vmatprep.subr.mxu0 %v115_v35  ;;  %1148 = vmatprep.subr.mxu1 %v117_v37  ;;  %v183_v35 = vrot.slane %v143_v27, %v1685_v50  ;;  %v191_v37 = vrot.slane %v143_v27, %v1687_v51 }
  0x42   :  { %961 = vmatprep.mubr.f32.mxu0 %v1278_v3  ;;  %1038 = vmatprep.mubr.f32.mxu1 %v1278_v3 }
  0x43   :  { %1072 = vmatpush1.msra.mxu0 %v114_v38  ;;  %1149 = vmatpush1.msra.mxu1 %v116_v39  ;;  %v187_v38 = vrot.slane %v143_v27, %v1692_v52  ;;  %v195_v39 = vrot.slane %v143_v27, %v1694_v53 }
  0x44   :  { %1270 = vmatmul.mubr.msk.f32.gmra.mxu0 %vm268_vm1, %v1403_v36  ;;  %1272 = vmatmul.mubr.msk.f32.gmra.mxu1 %vm268_vm1, %v1403_v36 }
  0x45   :  { %1073 = vmatprep.subr.mxu0 %v91_v40  ;;  %1150 = vmatprep.subr.mxu1 %v93_v41 }
  0x46   :  { %1074 = vmatpush1.msra.mxu0 %v90_v42  ;;  %1151 = vmatpush1.msra.mxu1 %v92_v43 }
  0x47   :  { %1075 = vmatprep.subr.mxu0 %v67_v44  ;;  %1152 = vmatprep.subr.mxu1 %v69_v45 }
  0x48   :  { %1076 = vmatpush1.msra.mxu0 %v66_v46  ;;  %1109 = vmatprep.mubr.f32.mxu0 %v1278_v3 }
  0x49   :  { %1153 = vmatpush1.msra.mxu1 %v68_v47  ;;  %1186 = vmatprep.mubr.f32.mxu1 %v1278_v3 }
  0x4a   :  { %1273 = vmatmul.mubr.msk.f32.vlgmr.msra.gmra.mxu0 %vm268_vm1, %v1383_v29  ;;  %1275 = vmatmul.mubr.msk.f32.vlgmr.msra.gmra.mxu1 %vm268_vm1, %v1383_v29  ;;  %v142_v29 = vld [vmem:[%s1882_s4] sm:$0xff] }
  0x4b   :  { %1115 = vmatprep.mubr.f32.mxu0 %v1278_v3  ;;  %1192 = vmatprep.mubr.f32.mxu1 %v1278_v3  ;;  %v151_v3 = vrot.slane %v142_v29, %v1685_v50  ;;  %v159_v54 = vrot.slane %v142_v29, %v1687_v51  ;;  %v163_v55 = vrot.slane %v142_v29, %v1694_v53 }
  0x4c   :  { %v167_v13 = vrot.slane %v142_v29, %v1706_v0  ;;  %v175_v14 = vrot.slane %v142_v29, %v1708_v1  ;;  %v171_v15 = vrot.slane %v142_v29, %v1716_v7  ;;  %v179_v16 = vrot.slane %v142_v29, %v1718_v8 }
  0x4e   :  { %1274 = vmatmul.mubr.msk.f32.gmra.mxu0 %vm268_vm1, %v1403_v36  ;;  %1276 = vmatmul.mubr.msk.f32.gmra.mxu1 %vm268_vm1, %v1403_v36  ;;  %v155_v36 = vrot.slane %v142_v29, %v1692_v52 }
  0xcf   :  { %v341_v56 = vpop.f32.mrf.mxu0  ;;  %v418_v57 = vpop.f32.mrf.mxu1 }
  0xd0   :  { %v342_v58 = vadd.f32 %v341_v56, %v151_v3  ;;  %v419_v59 = vadd.f32 %v418_v57, %v159_v54  ;;  %v199_v57 = vrot.slane %v143_v27, %v1706_v0 }
  0xd1   :  { %v343_v60 = vpop.f32.mrf.mxu0  ;;  %v420_v61 = vpop.f32.mrf.mxu1 }
  0xd2   :  { %1199 = vst [vmem:[%s1883_s5] sm:$0xff] %v342_v58  ;;  %1201 = vst [vmem:[%s1883_s5 + $0x10] sm:$0xff] %v419_v59  ;;  %v344_v62 = vadd.f32 %v343_v60, %v155_v36  ;;  %v421_v63 = vadd.f32 %v420_v61, %v163_v55  ;;  %v207_v58 = vrot.slane %v143_v27, %v1708_v1 }
  0xd3   :  { %v203_v59 = vrot.slane %v143_v27, %v1716_v7  ;;  %v211_v60 = vrot.slane %v143_v27, %v1718_v8 }
  0xd4   :  { %1200 = vst [vmem:[%s1883_s5 + $0x8] sm:$0xff] %v344_v62  ;;  %1202 = vst [vmem:[%s1883_s5 + $0x18] sm:$0xff] %v421_v63  ;;  %v347_v2 = vpop.f32.mrf.mxu0  ;;  %v424_v4 = vpop.f32.mrf.mxu1 }
  0xd5   :  { %v348_v5 = vadd.f32 %v347_v2, %v151_v3  ;;  %v425_v6 = vadd.f32 %v424_v4, %v159_v54 }
  0xd6   :  { %v349_v9 = vpop.f32.mrf.mxu0  ;;  %v426_v10 = vpop.f32.mrf.mxu1 }
  0xd7   :  { %1223 = vst [vmem:[%s1883_s5 + $0xc0] sm:$0xff] %v348_v5  ;;  %1225 = vst [vmem:[%s1883_s5 + $0xd0] sm:$0xff] %v425_v6  ;;  %v350_v11 = vadd.f32 %v349_v9, %v155_v36  ;;  %v427_v12 = vadd.f32 %v426_v10, %v163_v55 }
  0xd9   :  { %1224 = vst [vmem:[%s1883_s5 + $0xc8] sm:$0xff] %v350_v11  ;;  %1226 = vst [vmem:[%s1883_s5 + $0xd8] sm:$0xff] %v427_v12  ;;  %v144_v12 = vld [vmem:[%s1882_s4 + $0x10] sm:$0xff] }
  0xda   :  { %v495_v17 = vpop.f32.mrf.mxu0  ;;  %v572_v18 = vpop.f32.mrf.mxu1 }
  0xdb   :  { %v496_v19 = vadd.f32 %v495_v17, %v167_v13  ;;  %v573_v20 = vadd.f32 %v572_v18, %v175_v14 }
  0xdc   :  { %v497_v21 = vpop.f32.mrf.mxu0  ;;  %v574_v22 = vpop.f32.mrf.mxu1 }
  0xdd   :  { %1203 = vst [vmem:[%s1883_s5 + $0x20] sm:$0xff] %v496_v19  ;;  %1205 = vst [vmem:[%s1883_s5 + $0x30] sm:$0xff] %v573_v20  ;;  %v498_v23 = vadd.f32 %v497_v21, %v171_v15  ;;  %v575_v24 = vadd.f32 %v574_v22, %v179_v16  ;;  %v215_v19 = vrot.slane %v144_v12, %v1685_v50 }
  0xde   :  { %v223_v20 = vrot.slane %v144_v12, %v1687_v51  ;;  %v219_v21 = vrot.slane %v144_v12, %v1692_v52  ;;  %v227_v22 = vrot.slane %v144_v12, %v1694_v53 }
  0xdf   :  { %1204 = vst [vmem:[%s1883_s5 + $0x28] sm:$0xff] %v498_v23  ;;  %1206 = vst [vmem:[%s1883_s5 + $0x38] sm:$0xff] %v575_v24 }
  0xe0   :  { %v501_v25 = vpop.f32.mrf.mxu0  ;;  %v578_v26 = vpop.f32.mrf.mxu1 }
  0xe1   :  { %v502_v28 = vadd.f32 %v501_v25, %v167_v13  ;;  %v579_v30 = vadd.f32 %v578_v26, %v175_v14 }
  0xe2   :  { %v503_v31 = vpop.f32.mrf.mxu0  ;;  %v580_v32 = vpop.f32.mrf.mxu1 }
  0xe3   :  { %1227 = vst [vmem:[%s1883_s5 + $0xe0] sm:$0xff] %v502_v28  ;;  %1229 = vst [vmem:[%s1883_s5 + $0xf0] sm:$0xff] %v579_v30  ;;  %v504_v33 = vadd.f32 %v503_v31, %v171_v15  ;;  %v581_v34 = vadd.f32 %v580_v32, %v179_v16 }
  0xe5   :  { %1228 = vst [vmem:[%s1883_s5 + $0xe8] sm:$0xff] %v504_v33  ;;  %1230 = vst [vmem:[%s1883_s5 + $0xf8] sm:$0xff] %v581_v34 }
  0xe6   :  { %v649_v40 = vpop.f32.mrf.mxu0  ;;  %v726_v41 = vpop.f32.mrf.mxu1 }
  0xe7   :  { %v650_v42 = vadd.f32 %v649_v40, %v183_v35  ;;  %v727_v43 = vadd.f32 %v726_v41, %v191_v37  ;;  %v243_v40 = vrot.slane %v144_v12, %v1718_v8 }
  0xe8   :  { %v651_v44 = vpop.f32.mrf.mxu0  ;;  %v728_v45 = vpop.f32.mrf.mxu1 }
  0xe9   :  { %1207 = vst [vmem:[%s1883_s5 + $0x40] sm:$0xff] %v650_v42  ;;  %1209 = vst [vmem:[%s1883_s5 + $0x50] sm:$0xff] %v727_v43  ;;  %v652_v46 = vadd.f32 %v651_v44, %v187_v38  ;;  %v729_v47 = vadd.f32 %v728_v45, %v195_v39 }
  0xeb   :  { %1208 = vst [vmem:[%s1883_s5 + $0x48] sm:$0xff] %v652_v46  ;;  %1210 = vst [vmem:[%s1883_s5 + $0x58] sm:$0xff] %v729_v47 }
  0xec   :  { %v655_v48 = vpop.f32.mrf.mxu0  ;;  %v732_v49 = vpop.f32.mrf.mxu1 }
  0xed   :  { %v656_v29 = vadd.f32 %v655_v48, %v183_v35  ;;  %v733_v3 = vadd.f32 %v732_v49, %v191_v37  ;;  %v231_v37 = vrot.slane %v144_v12, %v1706_v0 }
  0xee   :  { %v657_v54 = vpop.f32.mrf.mxu0  ;;  %v734_v36 = vpop.f32.mrf.mxu1 }
  0xef   :  { %1231 = vst [vmem:[%s1883_s5 + $0x100] sm:$0xff] %v656_v29  ;;  %1233 = vst [vmem:[%s1883_s5 + $0x110] sm:$0xff] %v733_v3  ;;  %v658_v55 = vadd.f32 %v657_v54, %v187_v38  ;;  %v735_v56 = vadd.f32 %v734_v36, %v195_v39  ;;  %v239_v38 = vrot.slane %v144_v12, %v1708_v1 }
  0xf0   :  { %v235_v39 = vrot.slane %v144_v12, %v1716_v7 }
  0xf1   :  { %1232 = vst [vmem:[%s1883_s5 + $0x108] sm:$0xff] %v658_v55  ;;  %1234 = vst [vmem:[%s1883_s5 + $0x118] sm:$0xff] %v735_v56 }
  0xf2   :  { %v803_v61 = vpop.f32.mrf.mxu0  ;;  %v880_v62 = vpop.f32.mrf.mxu1 }
  0xf3   :  { %v804_v63 = vadd.f32 %v803_v61, %v199_v57  ;;  %v881_v2 = vadd.f32 %v880_v62, %v207_v58 }
  0xf4   :  { %v805_v4 = vpop.f32.mrf.mxu0  ;;  %v882_v5 = vpop.f32.mrf.mxu1 }
  0xf5   :  { %1211 = vst [vmem:[%s1883_s5 + $0x60] sm:$0xff] %v804_v63  ;;  %1213 = vst [vmem:[%s1883_s5 + $0x70] sm:$0xff] %v881_v2  ;;  %v806_v6 = vadd.f32 %v805_v4, %v203_v59  ;;  %v883_v9 = vadd.f32 %v882_v5, %v211_v60 }
  0xf7   :  { %1212 = vst [vmem:[%s1883_s5 + $0x68] sm:$0xff] %v806_v6  ;;  %1214 = vst [vmem:[%s1883_s5 + $0x78] sm:$0xff] %v883_v9 }
  0xf8   :  { %v809_v10 = vpop.f32.mrf.mxu0  ;;  %v886_v11 = vpop.f32.mrf.mxu1 }
  0xf9   :  { %v810_v13 = vadd.f32 %v809_v10, %v199_v57  ;;  %v887_v14 = vadd.f32 %v886_v11, %v207_v58 }
  0xfa   :  { %v811_v15 = vpop.f32.mrf.mxu0  ;;  %v888_v16 = vpop.f32.mrf.mxu1 }
  0xfb   :  { %1235 = vst [vmem:[%s1883_s5 + $0x120] sm:$0xff] %v810_v13  ;;  %1237 = vst [vmem:[%s1883_s5 + $0x130] sm:$0xff] %v887_v14  ;;  %v812_v17 = vadd.f32 %v811_v15, %v203_v59  ;;  %v889_v18 = vadd.f32 %v888_v16, %v211_v60 }
  0xfd   :  { %1236 = vst [vmem:[%s1883_s5 + $0x128] sm:$0xff] %v812_v17  ;;  %1238 = vst [vmem:[%s1883_s5 + $0x138] sm:$0xff] %v889_v18 }
  0xfe   :  { %v957_v23 = vpop.f32.mrf.mxu0  ;;  %v1034_v24 = vpop.f32.mrf.mxu1 }
  0xff   :  { %v958_v25 = vadd.f32 %v957_v23, %v215_v19  ;;  %v1035_v26 = vadd.f32 %v1034_v24, %v223_v20 }
 0x100   :  { %v959_v27 = vpop.f32.mrf.mxu0  ;;  %v1036_v50 = vpop.f32.mrf.mxu1 }
 0x101   :  { %1215 = vst [vmem:[%s1883_s5 + $0x80] sm:$0xff] %v958_v25  ;;  %1217 = vst [vmem:[%s1883_s5 + $0x90] sm:$0xff] %v1035_v26  ;;  %v960_v51 = vadd.f32 %v959_v27, %v219_v21  ;;  %v1037_v28 = vadd.f32 %v1036_v50, %v227_v22 }
 0x103   :  { %1216 = vst [vmem:[%s1883_s5 + $0x88] sm:$0xff] %v960_v51  ;;  %1218 = vst [vmem:[%s1883_s5 + $0x98] sm:$0xff] %v1037_v28 }
 0x104   :  { %v963_v52 = vpop.f32.mrf.mxu0  ;;  %v1040_v53 = vpop.f32.mrf.mxu1 }
 0x105   :  { %v964_v30 = vadd.f32 %v963_v52, %v215_v19  ;;  %v1041_v31 = vadd.f32 %v1040_v53, %v223_v20 }
 0x106   :  { %v965_v32 = vpop.f32.mrf.mxu0  ;;  %v1042_v33 = vpop.f32.mrf.mxu1 }
 0x107   :  { %1239 = vst [vmem:[%s1883_s5 + $0x140] sm:$0xff] %v964_v30  ;;  %1241 = vst [vmem:[%s1883_s5 + $0x150] sm:$0xff] %v1041_v31  ;;  %v966_v34 = vadd.f32 %v965_v32, %v219_v21  ;;  %v1043_v35 = vadd.f32 %v1042_v33, %v227_v22 }
 0x109   :  { %1240 = vst [vmem:[%s1883_s5 + $0x148] sm:$0xff] %v966_v34  ;;  %1242 = vst [vmem:[%s1883_s5 + $0x158] sm:$0xff] %v1043_v35 }
 0x10a   :  { %v1111_v41 = vpop.f32.mrf.mxu0  ;;  %v1188_v42 = vpop.f32.mrf.mxu1 }
 0x10b   :  { %v1112_v43 = vadd.f32 %v1111_v41, %v231_v37  ;;  %v1189_v44 = vadd.f32 %v1188_v42, %v239_v38 }
 0x10c   :  { %v1113_v45 = vpop.f32.mrf.mxu0  ;;  %v1190_v0 = vpop.f32.mrf.mxu1 }
 0x10d   :  { %1219 = vst [vmem:[%s1883_s5 + $0xa0] sm:$0xff] %v1112_v43  ;;  %1221 = vst [vmem:[%s1883_s5 + $0xb0] sm:$0xff] %v1189_v44  ;;  %v1114_v1 = vadd.f32 %v1113_v45, %v235_v39  ;;  %v1191_v46 = vadd.f32 %v1190_v0, %v243_v40 }
 0x10e   :  { %v1117_v47 = vpop.f32.mrf.mxu0  ;;  %v1194_v7 = vpop.f32.mrf.mxu1 }
 0x10f   :  { %1220 = vst [vmem:[%s1883_s5 + $0xa8] sm:$0xff] %v1114_v1  ;;  %1222 = vst [vmem:[%s1883_s5 + $0xb8] sm:$0xff] %v1191_v46  ;;  %v1118_v8 = vadd.f32 %v1117_v47, %v231_v37  ;;  %v1195_v48 = vadd.f32 %v1194_v7, %v239_v38 }
 0x110   :  { %v1119_v49 = vpop.f32.mrf.mxu0  ;;  %v1196_v29 = vpop.f32.mrf.mxu1 }
 0x111   :  { %1243 = vst [vmem:[%s1883_s5 + $0x160] sm:$0xff] %v1118_v8  ;;  %1245 = vst [vmem:[%s1883_s5 + $0x170] sm:$0xff] %v1195_v48  ;;  %v1120_v3 = vadd.f32 %v1119_v49, %v235_v39  ;;  %v1197_v54 = vadd.f32 %v1196_v29, %v243_v40 }
 0x113   :  { %1244 = vst [vmem:[%s1883_s5 + $0x168] sm:$0xff] %v1120_v3  ;;  %1246 = vst [vmem:[%s1883_s5 + $0x178] sm:$0xff] %v1197_v54 }

// kernel: utterance_block_forward.3
= control target key start
LH: loop header
LB: loop body
LE: loop exit
PB: predicated region body
PF: predicated region fallthrough
CT: control target
= control target key end

     0   :  { %v10393_v2 = vmov 0.0|0.0   ;;  %vm7393_vm0 = vcmask 1040384   ;;  %s15679_s0 = inlined_call_operand.vmem [shape: f32[2,8,3072], index: 0, kind: input, shape index: {}, may-alias: {0,1}]   ;;  %s15680_s1 = inlined_call_operand.vmem [shape: f32[2,8,3072], index: 1, kind: input, shape index: {}, may-alias: {0,1}]   ;;  %s15681_s2 = inlined_call_operand.vmem [shape: bf16[512,1536], index: 2, kind: input, shape index: {}]   ;;  %s15682_s3 = inlined_call_operand.vmem [shape: f32[1,1536], index: 3, kind: input, shape index: {}]   ;;  %s15683_s4 = inlined_call_operand.vmem [shape: bf16[512,1536], index: 4, kind: input, shape index: {}]   ;;  %s15684_s5 = inlined_call_operand.vmem [shape: f32[1,1536], index: 5, kind: input, shape index: {}]   ;;  %s15685_s6 = inlined_call_operand.vmem [shape: f32[2,512], index: 6, kind: output, shape index: {0}]   ;;  %s15686_s7 = inlined_call_operand.vmem [shape: f32[2,512], index: 7, kind: output, shape index: {1}]  }
   0x1   :  { %v8312_v0 = vld [vmem:[%s15681_s2 + $0x2a4] ss:$48 sps:$4 sm:$0xff]   ;;  %2599 = vmatprep.mubr.bf16.mxu0 %v10393_v2  ;;  %2640 = vmatprep.mubr.bf16.mxu1 %v10393_v2  ;;  %v8316_v3 = vld [vmem:[%s15681_s2 + $0x2a0] ss:$48 sps:$4 sm:$0xff]  }
   0x2   :  { %v8314_v1 = vld [vmem:[%s15681_s2 + $0x8a4] ss:$48 sps:$4 sm:$0xff]   ;;  %2567 = vmatprep.subr.bf16.mxu0 %v8312_v0  ;;  %v8317_v4 = vld [vmem:[%s15681_s2 + $0x8a0] ss:$48 sps:$4 sm:$0xff]  }
   0x3   :  { %2608 = vmatprep.subr.bf16.mxu1 %v8314_v1  ;;  %v8318_v5 = vld [vmem:[%s15681_s2 + $0x244] ss:$48 sps:$4 sm:$0xff]   ;;  %2568 = vmatpush1.bf16.msra.mxu0 %v8316_v3  ;;  %v8322_v7 = vld [vmem:[%s15681_s2 + $0x240] ss:$48 sps:$4 sm:$0xff]   ;;  %v8410_v1 = vld [vmem:[%s15681_s2 + $0x2ac] ss:$48 sps:$4 sm:$0xff]  }
   0x4   :  { %2609 = vmatpush1.bf16.msra.mxu1 %v8317_v4  ;;  %v8320_v6 = vld [vmem:[%s15681_s2 + $0x844] ss:$48 sps:$4 sm:$0xff]   ;;  %2569 = vmatprep.subr.bf16.mxu0 %v8318_v5  ;;  %v8323_v8 = vld [vmem:[%s15681_s2 + $0x840] ss:$48 sps:$4 sm:$0xff]   ;;  %v8413_v3 = vld [vmem:[%s15681_s2 + $0x8ac] ss:$48 sps:$4 sm:$0xff]  }
   0x5   :  { %2610 = vmatprep.subr.bf16.mxu1 %v8320_v6  ;;  %v8324_v9 = vld [vmem:[%s15681_s2 + $0x1e4] ss:$48 sps:$4 sm:$0xff]   ;;  %v8328_v11 = vld [vmem:[%s15681_s2 + $0x1e0] ss:$48 sps:$4 sm:$0xff]   ;;  %v8408_v4 = vld [vmem:[%s15681_s2 + $0x2a8] ss:$48 sps:$4 sm:$0xff]  }
   0x6   :  { %v8326_v10 = vld [vmem:[%s15681_s2 + $0x7e4] ss:$48 sps:$4 sm:$0xff]   ;;  %v8329_v12 = vld [vmem:[%s15681_s2 + $0x7e0] ss:$48 sps:$4 sm:$0xff]   ;;  %v8411_v5 = vld [vmem:[%s15681_s2 + $0x8a8] ss:$48 sps:$4 sm:$0xff]  }
   0x7   :  { %2570 = vmatpush1.bf16.msra.mxu0 %v8322_v7  ;;  %v8330_v13 = vld [vmem:[%s15681_s2 + $0x184] ss:$48 sps:$4 sm:$0xff]   ;;  %v8334_v15 = vld [vmem:[%s15681_s2 + $0x180] ss:$48 sps:$4 sm:$0xff]   ;;  %v8416_v6 = vld [vmem:[%s15681_s2 + $0x24c] ss:$48 sps:$4 sm:$0xff]  }
   0x8   :  { %2611 = vmatpush1.bf16.msra.mxu1 %v8323_v8  ;;  %2571 = vmatprep.subr.bf16.mxu0 %v8324_v9  ;;  %v8332_v14 = vld [vmem:[%s15681_s2 + $0x784] ss:$48 sps:$4 sm:$0xff]   ;;  %v8335_v16 = vld [vmem:[%s15681_s2 + $0x780] ss:$48 sps:$4 sm:$0xff]   ;;  %v8419_v7 = vld [vmem:[%s15681_s2 + $0x84c] ss:$48 sps:$4 sm:$0xff]  }
   0x9   :  { %2612 = vmatprep.subr.bf16.mxu1 %v8326_v10  ;;  %v8336_v17 = vld [vmem:[%s15681_s2 + $0x124] ss:$48 sps:$4 sm:$0xff]   ;;  %v8340_v19 = vld [vmem:[%s15681_s2 + $0x120] ss:$48 sps:$4 sm:$0xff]   ;;  %v8414_v8 = vld [vmem:[%s15681_s2 + $0x248] ss:$48 sps:$4 sm:$0xff]  }
   0xa   :  { %v8338_v18 = vld [vmem:[%s15681_s2 + $0x724] ss:$48 sps:$4 sm:$0xff]   ;;  %v8341_v20 = vld [vmem:[%s15681_s2 + $0x720] ss:$48 sps:$4 sm:$0xff]   ;;  %v8417_v9 = vld [vmem:[%s15681_s2 + $0x848] ss:$48 sps:$4 sm:$0xff]  }
   0xb   :  { %2572 = vmatpush1.bf16.msra.mxu0 %v8328_v11  ;;  %v8342_v21 = vld [vmem:[%s15681_s2 + $0xc4] ss:$48 sps:$4 sm:$0xff]   ;;  %v8346_v23 = vld [vmem:[%s15681_s2 + $0xc0] ss:$48 sps:$4 sm:$0xff]   ;;  %v8422_v10 = vld [vmem:[%s15681_s2 + $0x1ec] ss:$48 sps:$4 sm:$0xff]  }
   0xc   :  { %2613 = vmatpush1.bf16.msra.mxu1 %v8329_v12  ;;  %2573 = vmatprep.subr.bf16.mxu0 %v8330_v13  ;;  %v8344_v22 = vld [vmem:[%s15681_s2 + $0x6c4] ss:$48 sps:$4 sm:$0xff]   ;;  %v8347_v24 = vld [vmem:[%s15681_s2 + $0x6c0] ss:$48 sps:$4 sm:$0xff]   ;;  %v8425_v11 = vld [vmem:[%s15681_s2 + $0x7ec] ss:$48 sps:$4 sm:$0xff]  }
   0xd   :  { %2614 = vmatprep.subr.bf16.mxu1 %v8332_v14  ;;  %v8348_v25 = vld [vmem:[%s15681_s2 + $0x64] ss:$48 sps:$4 sm:$0xff]   ;;  %v8352_v27 = vld [vmem:[%s15681_s2 + $0x60] ss:$48 sps:$4 sm:$0xff]   ;;  %v8420_v12 = vld [vmem:[%s15681_s2 + $0x1e8] ss:$48 sps:$4 sm:$0xff]  }
   0xe   :  { %v8350_v26 = vld [vmem:[%s15681_s2 + $0x664] ss:$48 sps:$4 sm:$0xff]   ;;  %v8353_v28 = vld [vmem:[%s15681_s2 + $0x660] ss:$48 sps:$4 sm:$0xff]   ;;  %v8423_v13 = vld [vmem:[%s15681_s2 + $0x7e8] ss:$48 sps:$4 sm:$0xff]  }
   0xf   :  { %2574 = vmatpush1.bf16.msra.mxu0 %v8334_v15  ;;  %v8354_v29 = vld [vmem:[%s15681_s2 + $0x4] ss:$48 sps:$4 sm:$0xff]   ;;  %v8358_v31 = vld [vmem:[%s15681_s2] ss:$48 sps:$4 sm:$0xff]   ;;  %v8428_v14 = vld [vmem:[%s15681_s2 + $0x18c] ss:$48 sps:$4 sm:$0xff]  }
  0x10   :  { %2615 = vmatpush1.bf16.msra.mxu1 %v8335_v16  ;;  %2575 = vmatprep.subr.bf16.mxu0 %v8336_v17  ;;  %v8356_v30 = vld [vmem:[%s15681_s2 + $0x604] ss:$48 sps:$4 sm:$0xff]   ;;  %v8359_v32 = vld [vmem:[%s15681_s2 + $0x600] ss:$48 sps:$4 sm:$0xff]   ;;  %v8431_v15 = vld [vmem:[%s15681_s2 + $0x78c] ss:$48 sps:$4 sm:$0xff]  }
  0x11   :  { %2616 = vmatprep.subr.bf16.mxu1 %v8338_v18  ;;  %v8360_v33 = vld [vmem:[%s15681_s2 + $0x5a4] ss:$48 sps:$4 sm:$0xff]   ;;  %v8364_v35 = vld [vmem:[%s15681_s2 + $0x5a0] ss:$48 sps:$4 sm:$0xff]   ;;  %v8426_v16 = vld [vmem:[%s15681_s2 + $0x188] ss:$48 sps:$4 sm:$0xff]  }
  0x12   :  { %v8362_v34 = vld [vmem:[%s15681_s2 + $0xba4] ss:$48 sps:$4 sm:$0xff]   ;;  %v8365_v36 = vld [vmem:[%s15681_s2 + $0xba0] ss:$48 sps:$4 sm:$0xff]   ;;  %v8429_v17 = vld [vmem:[%s15681_s2 + $0x788] ss:$48 sps:$4 sm:$0xff]  }
  0x13   :  { %2576 = vmatpush1.bf16.msra.mxu0 %v8340_v19  ;;  %v8366_v37 = vld [vmem:[%s15681_s2 + $0x544] ss:$48 sps:$4 sm:$0xff]   ;;  %v8370_v39 = vld [vmem:[%s15681_s2 + $0x540] ss:$48 sps:$4 sm:$0xff]   ;;  %v8434_v18 = vld [vmem:[%s15681_s2 + $0x12c] ss:$48 sps:$4 sm:$0xff]  }
  0x14   :  { %2617 = vmatpush1.bf16.msra.mxu1 %v8341_v20  ;;  %2577 = vmatprep.subr.bf16.mxu0 %v8342_v21  ;;  %v8368_v38 = vld [vmem:[%s15681_s2 + $0xb44] ss:$48 sps:$4 sm:$0xff]   ;;  %v8371_v40 = vld [vmem:[%s15681_s2 + $0xb40] ss:$48 sps:$4 sm:$0xff]   ;;  %v8437_v19 = vld [vmem:[%s15681_s2 + $0x72c] ss:$48 sps:$4 sm:$0xff]  }
  0x15   :  { %2618 = vmatprep.subr.bf16.mxu1 %v8344_v22  ;;  %v8372_v41 = vld [vmem:[%s15681_s2 + $0x4e4] ss:$48 sps:$4 sm:$0xff]   ;;  %v8376_v43 = vld [vmem:[%s15681_s2 + $0x4e0] ss:$48 sps:$4 sm:$0xff]   ;;  %v8432_v20 = vld [vmem:[%s15681_s2 + $0x128] ss:$48 sps:$4 sm:$0xff]  }
  0x16   :  { %v8374_v42 = vld [vmem:[%s15681_s2 + $0xae4] ss:$48 sps:$4 sm:$0xff]   ;;  %v8377_v44 = vld [vmem:[%s15681_s2 + $0xae0] ss:$48 sps:$4 sm:$0xff]   ;;  %v8435_v21 = vld [vmem:[%s15681_s2 + $0x728] ss:$48 sps:$4 sm:$0xff]  }
  0x17   :  { %2578 = vmatpush1.bf16.msra.mxu0 %v8346_v23  ;;  %v8378_v45 = vld [vmem:[%s15681_s2 + $0x484] ss:$48 sps:$4 sm:$0xff]   ;;  %v8382_v47 = vld [vmem:[%s15681_s2 + $0x480] ss:$48 sps:$4 sm:$0xff]   ;;  %v8440_v22 = vld [vmem:[%s15681_s2 + $0xcc] ss:$48 sps:$4 sm:$0xff]  }
  0x18   :  { %2619 = vmatpush1.bf16.msra.mxu1 %v8347_v24  ;;  %2579 = vmatprep.subr.bf16.mxu0 %v8348_v25  ;;  %v8380_v46 = vld [vmem:[%s15681_s2 + $0xa84] ss:$48 sps:$4 sm:$0xff]   ;;  %v8383_v48 = vld [vmem:[%s15681_s2 + $0xa80] ss:$48 sps:$4 sm:$0xff]   ;;  %v8443_v23 = vld [vmem:[%s15681_s2 + $0x6cc] ss:$48 sps:$4 sm:$0xff]  }
  0x19   :  { %2620 = vmatprep.subr.bf16.mxu1 %v8350_v26  ;;  %v8384_v49 = vld [vmem:[%s15681_s2 + $0x424] ss:$48 sps:$4 sm:$0xff]   ;;  %v8388_v51 = vld [vmem:[%s15681_s2 + $0x420] ss:$48 sps:$4 sm:$0xff]   ;;  %v8438_v24 = vld [vmem:[%s15681_s2 + $0xc8] ss:$48 sps:$4 sm:$0xff]  }
  0x1a   :  { %v8386_v50 = vld [vmem:[%s15681_s2 + $0xa24] ss:$48 sps:$4 sm:$0xff]   ;;  %v8389_v52 = vld [vmem:[%s15681_s2 + $0xa20] ss:$48 sps:$4 sm:$0xff]   ;;  %v8441_v25 = vld [vmem:[%s15681_s2 + $0x6c8] ss:$48 sps:$4 sm:$0xff]  }
  0x1b   :  { %2580 = vmatpush1.bf16.msra.mxu0 %v8352_v27  ;;  %v8390_v53 = vld [vmem:[%s15681_s2 + $0x3c4] ss:$48 sps:$4 sm:$0xff]   ;;  %v8394_v55 = vld [vmem:[%s15681_s2 + $0x3c0] ss:$48 sps:$4 sm:$0xff]   ;;  %v8446_v26 = vld [vmem:[%s15681_s2 + $0x6c] ss:$48 sps:$4 sm:$0xff]  }
  0x1c   :  { %2621 = vmatpush1.bf16.msra.mxu1 %v8353_v28  ;;  %2581 = vmatprep.subr.bf16.mxu0 %v8354_v29  ;;  %v8392_v54 = vld [vmem:[%s15681_s2 + $0x9c4] ss:$48 sps:$4 sm:$0xff]   ;;  %v8395_v56 = vld [vmem:[%s15681_s2 + $0x9c0] ss:$48 sps:$4 sm:$0xff]   ;;  %v8449_v27 = vld [vmem:[%s15681_s2 + $0x66c] ss:$48 sps:$4 sm:$0xff]  }
  0x1d   :  { %2622 = vmatprep.subr.bf16.mxu1 %v8356_v30  ;;  %v8396_v57 = vld [vmem:[%s15681_s2 + $0x364] ss:$48 sps:$4 sm:$0xff]   ;;  %v8400_v59 = vld [vmem:[%s15681_s2 + $0x360] ss:$48 sps:$4 sm:$0xff]   ;;  %v8444_v28 = vld [vmem:[%s15681_s2 + $0x68] ss:$48 sps:$4 sm:$0xff]  }
  0x1e   :  { %v8398_v58 = vld [vmem:[%s15681_s2 + $0x964] ss:$48 sps:$4 sm:$0xff]   ;;  %v8401_v60 = vld [vmem:[%s15681_s2 + $0x960] ss:$48 sps:$4 sm:$0xff]   ;;  %v8447_v29 = vld [vmem:[%s15681_s2 + $0x668] ss:$48 sps:$4 sm:$0xff]  }
  0x1f   :  { %2582 = vmatpush1.bf16.msra.mxu0 %v8358_v31  ;;  %v8402_v61 = vld [vmem:[%s15681_s2 + $0x304] ss:$48 sps:$4 sm:$0xff]   ;;  %v8406_v63 = vld [vmem:[%s15681_s2 + $0x300] ss:$48 sps:$4 sm:$0xff]   ;;  %v8452_v30 = vld [vmem:[%s15681_s2 + $0xc] ss:$48 sps:$4 sm:$0xff]  }
  0x20   :  { %2623 = vmatpush1.bf16.msra.mxu1 %v8359_v32  ;;  %2583 = vmatprep.subr.bf16.mxu0 %v8360_v33  ;;  %v8404_v62 = vld [vmem:[%s15681_s2 + $0x904] ss:$48 sps:$4 sm:$0xff]   ;;  %v8407_v0 = vld [vmem:[%s15681_s2 + $0x900] ss:$48 sps:$4 sm:$0xff]   ;;  %v8455_v31 = vld [vmem:[%s15681_s2 + $0x60c] ss:$48 sps:$4 sm:$0xff]  }
  0x21   :  { %2624 = vmatprep.subr.bf16.mxu1 %v8362_v34  ;;  %v8450_v32 = vld [vmem:[%s15681_s2 + $0x8] ss:$48 sps:$4 sm:$0xff]   ;;  %v8458_v34 = vld [vmem:[%s15681_s2 + $0x5ac] ss:$48 sps:$4 sm:$0xff]  }
  0x22   :  { %v8453_v33 = vld [vmem:[%s15681_s2 + $0x608] ss:$48 sps:$4 sm:$0xff]  }
  0x23   :  { %2584 = vmatpush2.bf16.msra.mxu0 %v8364_v35  ;;  %v8461_v35 = vld [vmem:[%s15681_s2 + $0xbac] ss:$48 sps:$4 sm:$0xff]  }
  0x24   :  { %2625 = vmatpush2.bf16.msra.mxu1 %v8365_v36  ;;  %2585 = vmatprep.subr.bf16.mxu0 %v8366_v37  ;;  %v8456_v36 = vld [vmem:[%s15681_s2 + $0x5a8] ss:$48 sps:$4 sm:$0xff]  }
  0x25   :  { %2626 = vmatprep.subr.bf16.mxu1 %v8368_v38  ;;  %v8459_v37 = vld [vmem:[%s15681_s2 + $0xba8] ss:$48 sps:$4 sm:$0xff]   ;;  %v8464_v38 = vld [vmem:[%s15681_s2 + $0x54c] ss:$48 sps:$4 sm:$0xff]  }
  0x27   :  { %2586 = vmatpush2.bf16.msra.mxu0 %v8370_v39  ;;  %v8467_v39 = vld [vmem:[%s15681_s2 + $0xb4c] ss:$48 sps:$4 sm:$0xff]  }
  0x28   :  { %2627 = vmatpush2.bf16.msra.mxu1 %v8371_v40  ;;  %2587 = vmatprep.subr.bf16.mxu0 %v8372_v41  ;;  %v8462_v40 = vld [vmem:[%s15681_s2 + $0x548] ss:$48 sps:$4 sm:$0xff]  }
  0x29   :  { %2628 = vmatprep.subr.bf16.mxu1 %v8374_v42  ;;  %v8465_v41 = vld [vmem:[%s15681_s2 + $0xb48] ss:$48 sps:$4 sm:$0xff]   ;;  %v8470_v42 = vld [vmem:[%s15681_s2 + $0x4ec] ss:$48 sps:$4 sm:$0xff]  }
  0x2b   :  { %2588 = vmatpush2.bf16.msra.mxu0 %v8376_v43  ;;  %v8473_v43 = vld [vmem:[%s15681_s2 + $0xaec] ss:$48 sps:$4 sm:$0xff]  }
  0x2c   :  { %2629 = vmatpush2.bf16.msra.mxu1 %v8377_v44  ;;  %2589 = vmatprep.subr.bf16.mxu0 %v8378_v45  ;;  %v8468_v44 = vld [vmem:[%s15681_s2 + $0x4e8] ss:$48 sps:$4 sm:$0xff]  }
  0x2d   :  { %2630 = vmatprep.subr.bf16.mxu1 %v8380_v46  ;;  %v8471_v45 = vld [vmem:[%s15681_s2 + $0xae8] ss:$48 sps:$4 sm:$0xff]   ;;  %v8476_v46 = vld [vmem:[%s15681_s2 + $0x48c] ss:$48 sps:$4 sm:$0xff]  }
  0x2f   :  { %2590 = vmatpush2.bf16.msra.mxu0 %v8382_v47  ;;  %v8479_v47 = vld [vmem:[%s15681_s2 + $0xa8c] ss:$48 sps:$4 sm:$0xff]  }
  0x30   :  { %2631 = vmatpush2.bf16.msra.mxu1 %v8383_v48  ;;  %2591 = vmatprep.subr.bf16.mxu0 %v8384_v49  ;;  %v8474_v48 = vld [vmem:[%s15681_s2 + $0x488] ss:$48 sps:$4 sm:$0xff]  }
  0x31   :  { %2632 = vmatprep.subr.bf16.mxu1 %v8386_v50  ;;  %v8477_v49 = vld [vmem:[%s15681_s2 + $0xa88] ss:$48 sps:$4 sm:$0xff]   ;;  %v8482_v50 = vld [vmem:[%s15681_s2 + $0x42c] ss:$48 sps:$4 sm:$0xff]  }
  0x33   :  { %2592 = vmatpush2.bf16.msra.mxu0 %v8388_v51  ;;  %v8485_v51 = vld [vmem:[%s15681_s2 + $0xa2c] ss:$48 sps:$4 sm:$0xff]  }
  0x34   :  { %2633 = vmatpush2.bf16.msra.mxu1 %v8389_v52  ;;  %2593 = vmatprep.subr.bf16.mxu0 %v8390_v53  ;;  %v8480_v52 = vld [vmem:[%s15681_s2 + $0x428] ss:$48 sps:$4 sm:$0xff]  }
  0x35   :  { %2634 = vmatprep.subr.bf16.mxu1 %v8392_v54  ;;  %v8483_v53 = vld [vmem:[%s15681_s2 + $0xa28] ss:$48 sps:$4 sm:$0xff]   ;;  %v8488_v54 = vld [vmem:[%s15681_s2 + $0x3cc] ss:$48 sps:$4 sm:$0xff]  }
  0x37   :  { %2594 = vmatpush2.bf16.msra.mxu0 %v8394_v55  ;;  %v8491_v55 = vld [vmem:[%s15681_s2 + $0x9cc] ss:$48 sps:$4 sm:$0xff]  }
  0x38   :  { %2635 = vmatpush2.bf16.msra.mxu1 %v8395_v56  ;;  %2595 = vmatprep.subr.bf16.mxu0 %v8396_v57  ;;  %v8486_v56 = vld [vmem:[%s15681_s2 + $0x3c8] ss:$48 sps:$4 sm:$0xff]  }
  0x39   :  { %2636 = vmatprep.subr.bf16.mxu1 %v8398_v58  ;;  %v8489_v57 = vld [vmem:[%s15681_s2 + $0x9c8] ss:$48 sps:$4 sm:$0xff]   ;;  %v8494_v58 = vld [vmem:[%s15681_s2 + $0x36c] ss:$48 sps:$4 sm:$0xff]  }
  0x3b   :  { %2596 = vmatpush2.bf16.msra.mxu0 %v8400_v59  ;;  %v8497_v59 = vld [vmem:[%s15681_s2 + $0x96c] ss:$48 sps:$4 sm:$0xff]  }
  0x3c   :  { %2637 = vmatpush2.bf16.msra.mxu1 %v8401_v60  ;;  %2597 = vmatprep.subr.bf16.mxu0 %v8402_v61  ;;  %v8492_v60 = vld [vmem:[%s15681_s2 + $0x368] ss:$48 sps:$4 sm:$0xff]  }
  0x3d   :  { %2638 = vmatprep.subr.bf16.mxu1 %v8404_v62  ;;  %v8495_v61 = vld [vmem:[%s15681_s2 + $0x968] ss:$48 sps:$4 sm:$0xff]   ;;  %v8500_v62 = vld [vmem:[%s15681_s2 + $0x30c] ss:$48 sps:$4 sm:$0xff]  }
  0x3f   :  { %2598 = vmatpush2.bf16.msra.mxu0 %v8406_v63  ;;  %v8503_v63 = vld [vmem:[%s15681_s2 + $0x90c] ss:$48 sps:$4 sm:$0xff]  }
  0x40   :  { %2639 = vmatpush2.bf16.msra.mxu1 %v8407_v0  ;;  %2649 = vmatprep.subr.bf16.mxu0 %v8410_v1  ;;  %v8498_v0 = vld [vmem:[%s15681_s2 + $0x308] ss:$48 sps:$4 sm:$0xff]  }
  0x41   :  { %2690 = vmatprep.subr.bf16.mxu1 %v8413_v3  ;;  %v8501_v1 = vld [vmem:[%s15681_s2 + $0x908] ss:$48 sps:$4 sm:$0xff]   ;;  %v8506_v3 = vld [vmem:[%s15681_s2 + $0x2b4] ss:$48 sps:$4 sm:$0xff]  }
  0x42   :  { %2600 = vmatmul.mubr.bf16.vlgmr.msra.gmra.mxu0 %v10393_v2 }
  0x43   :  { %2641 = vmatmul.mubr.bf16.vlgmr.msra.gmra.mxu1 %v10393_v2  ;;  %2650 = vmatpush1.bf16.msra.mxu0 %v8408_v4  ;;  %v8509_v4 = vld [vmem:[%s15681_s2 + $0x8b4] ss:$48 sps:$4 sm:$0xff]  }
  0x44   :  { %2691 = vmatpush1.bf16.msra.mxu1 %v8411_v5  ;;  %2651 = vmatprep.subr.bf16.mxu0 %v8416_v6  ;;  %v8504_v5 = vld [vmem:[%s15681_s2 + $0x2b0] ss:$48 sps:$4 sm:$0xff]  }
  0x45   :  { %2692 = vmatprep.subr.bf16.mxu1 %v8419_v7  ;;  %2681 = vmatprep.mubr.bf16.mxu0 %v10393_v2  ;;  %v8507_v6 = vld [vmem:[%s15681_s2 + $0x8b0] ss:$48 sps:$4 sm:$0xff]   ;;  %v8512_v7 = vld [vmem:[%s15681_s2 + $0x254] ss:$48 sps:$4 sm:$0xff]  }
  0x46   :  { %2722 = vmatprep.mubr.bf16.mxu1 %v10393_v2 }
  0x47   :  { %2652 = vmatpush1.bf16.msra.mxu0 %v8414_v8  ;;  %v8515_v8 = vld [vmem:[%s15681_s2 + $0x854] ss:$48 sps:$4 sm:$0xff]  }
  0x48   :  { %2693 = vmatpush1.bf16.msra.mxu1 %v8417_v9  ;;  %2653 = vmatprep.subr.bf16.mxu0 %v8422_v10  ;;  %v8510_v9 = vld [vmem:[%s15681_s2 + $0x250] ss:$48 sps:$4 sm:$0xff]  }
  0x49   :  { %2694 = vmatprep.subr.bf16.mxu1 %v8425_v11  ;;  %v8513_v10 = vld [vmem:[%s15681_s2 + $0x850] ss:$48 sps:$4 sm:$0xff]   ;;  %v8518_v11 = vld [vmem:[%s15681_s2 + $0x1f4] ss:$48 sps:$4 sm:$0xff]  }
  0x4b   :  { %2654 = vmatpush1.bf16.msra.mxu0 %v8420_v12  ;;  %v8521_v12 = vld [vmem:[%s15681_s2 + $0x7f4] ss:$48 sps:$4 sm:$0xff]  }
  0x4c   :  { %2695 = vmatpush1.bf16.msra.mxu1 %v8423_v13  ;;  %2655 = vmatprep.subr.bf16.mxu0 %v8428_v14  ;;  %v8516_v13 = vld [vmem:[%s15681_s2 + $0x1f0] ss:$48 sps:$4 sm:$0xff]  }
  0x4d   :  { %2696 = vmatprep.subr.bf16.mxu1 %v8431_v15  ;;  %v8519_v14 = vld [vmem:[%s15681_s2 + $0x7f0] ss:$48 sps:$4 sm:$0xff]   ;;  %v8524_v15 = vld [vmem:[%s15681_s2 + $0x194] ss:$48 sps:$4 sm:$0xff]  }
  0x4f   :  { %2656 = vmatpush1.bf16.msra.mxu0 %v8426_v16  ;;  %v8527_v16 = vld [vmem:[%s15681_s2 + $0x794] ss:$48 sps:$4 sm:$0xff]  }
  0x50   :  { %2697 = vmatpush1.bf16.msra.mxu1 %v8429_v17  ;;  %2657 = vmatprep.subr.bf16.mxu0 %v8434_v18  ;;  %v8522_v17 = vld [vmem:[%s15681_s2 + $0x190] ss:$48 sps:$4 sm:$0xff]  }
  0x51   :  { %2698 = vmatprep.subr.bf16.mxu1 %v8437_v19  ;;  %v8525_v18 = vld [vmem:[%s15681_s2 + $0x790] ss:$48 sps:$4 sm:$0xff]   ;;  %v8530_v19 = vld [vmem:[%s15681_s2 + $0x134] ss:$48 sps:$4 sm:$0xff]  }
  0x53   :  { %2658 = vmatpush1.bf16.msra.mxu0 %v8432_v20  ;;  %v8533_v20 = vld [vmem:[%s15681_s2 + $0x734] ss:$48 sps:$4 sm:$0xff]  }
  0x54   :  { %2699 = vmatpush1.bf16.msra.mxu1 %v8435_v21  ;;  %2659 = vmatprep.subr.bf16.mxu0 %v8440_v22  ;;  %v8528_v21 = vld [vmem:[%s15681_s2 + $0x130] ss:$48 sps:$4 sm:$0xff]  }
  0x55   :  { %2700 = vmatprep.subr.bf16.mxu1 %v8443_v23  ;;  %v8531_v22 = vld [vmem:[%s15681_s2 + $0x730] ss:$48 sps:$4 sm:$0xff]   ;;  %v8536_v23 = vld [vmem:[%s15681_s2 + $0xd4] ss:$48 sps:$4 sm:$0xff]  }
  0x57   :  { %2660 = vmatpush1.bf16.msra.mxu0 %v8438_v24  ;;  %v8539_v24 = vld [vmem:[%s15681_s2 + $0x6d4] ss:$48 sps:$4 sm:$0xff]  }
  0x58   :  { %2701 = vmatpush1.bf16.msra.mxu1 %v8441_v25  ;;  %2661 = vmatprep.subr.bf16.mxu0 %v8446_v26  ;;  %v8534_v25 = vld [vmem:[%s15681_s2 + $0xd0] ss:$48 sps:$4 sm:$0xff]  }
  0x59   :  { %2702 = vmatprep.subr.bf16.mxu1 %v8449_v27  ;;  %v8537_v26 = vld [vmem:[%s15681_s2 + $0x6d0] ss:$48 sps:$4 sm:$0xff]   ;;  %v8542_v27 = vld [vmem:[%s15681_s2 + $0x74] ss:$48 sps:$4 sm:$0xff]  }
  0x5b   :  { %2662 = vmatpush1.bf16.msra.mxu0 %v8444_v28  ;;  %v8545_v28 = vld [vmem:[%s15681_s2 + $0x674] ss:$48 sps:$4 sm:$0xff]  }
  0x5c   :  { %2703 = vmatpush1.bf16.msra.mxu1 %v8447_v29  ;;  %2663 = vmatprep.subr.bf16.mxu0 %v8452_v30  ;;  %v8540_v29 = vld [vmem:[%s15681_s2 + $0x70] ss:$48 sps:$4 sm:$0xff]  }
  0x5d   :  { %2704 = vmatprep.subr.bf16.mxu1 %v8455_v31  ;;  %v8543_v30 = vld [vmem:[%s15681_s2 + $0x670] ss:$48 sps:$4 sm:$0xff]   ;;  %v8548_v31 = vld [vmem:[%s15681_s2 + $0x14] ss:$48 sps:$4 sm:$0xff]  }
  0x5f   :  { %2664 = vmatpush1.bf16.msra.mxu0 %v8450_v32  ;;  %v8551_v32 = vld [vmem:[%s15681_s2 + $0x614] ss:$48 sps:$4 sm:$0xff]  }
  0x60   :  { %2705 = vmatpush1.bf16.msra.mxu1 %v8453_v33  ;;  %2665 = vmatprep.subr.bf16.mxu0 %v8458_v34  ;;  %v8546_v33 = vld [vmem:[%s15681_s2 + $0x10] ss:$48 sps:$4 sm:$0xff]  }
  0x61   :  { %2706 = vmatprep.subr.bf16.mxu1 %v8461_v35  ;;  %v8549_v34 = vld [vmem:[%s15681_s2 + $0x610] ss:$48 sps:$4 sm:$0xff]   ;;  %v8554_v35 = vld [vmem:[%s15681_s2 + $0x5b4] ss:$48 sps:$4 sm:$0xff]  }
  0x63   :  { %2666 = vmatpush2.bf16.msra.mxu0 %v8456_v36  ;;  %v8557_v36 = vld [vmem:[%s15681_s2 + $0xbb4] ss:$48 sps:$4 sm:$0xff]  }
  0x64   :  { %2707 = vmatpush2.bf16.msra.mxu1 %v8459_v37  ;;  %2667 = vmatprep.subr.bf16.mxu0 %v8464_v38  ;;  %v8552_v37 = vld [vmem:[%s15681_s2 + $0x5b0] ss:$48 sps:$4 sm:$0xff]  }
  0x65   :  { %2708 = vmatprep.subr.bf16.mxu1 %v8467_v39  ;;  %v8555_v38 = vld [vmem:[%s15681_s2 + $0xbb0] ss:$48 sps:$4 sm:$0xff]   ;;  %v8560_v39 = vld [vmem:[%s15681_s2 + $0x554] ss:$48 sps:$4 sm:$0xff]  }
  0x67   :  { %2668 = vmatpush2.bf16.msra.mxu0 %v8462_v40  ;;  %v8563_v40 = vld [vmem:[%s15681_s2 + $0xb54] ss:$48 sps:$4 sm:$0xff]  }
  0x68   :  { %2709 = vmatpush2.bf16.msra.mxu1 %v8465_v41  ;;  %2669 = vmatprep.subr.bf16.mxu0 %v8470_v42  ;;  %v8558_v41 = vld [vmem:[%s15681_s2 + $0x550] ss:$48 sps:$4 sm:$0xff]  }
  0x69   :  { %2710 = vmatprep.subr.bf16.mxu1 %v8473_v43  ;;  %v8561_v42 = vld [vmem:[%s15681_s2 + $0xb50] ss:$48 sps:$4 sm:$0xff]   ;;  %v8566_v43 = vld [vmem:[%s15681_s2 + $0x4f4] ss:$48 sps:$4 sm:$0xff]  }
  0x6b   :  { %2670 = vmatpush2.bf16.msra.mxu0 %v8468_v44  ;;  %v8569_v44 = vld [vmem:[%s15681_s2 + $0xaf4] ss:$48 sps:$4 sm:$0xff]  }
  0x6c   :  { %2711 = vmatpush2.bf16.msra.mxu1 %v8471_v45  ;;  %2671 = vmatprep.subr.bf16.mxu0 %v8476_v46  ;;  %v8564_v45 = vld [vmem:[%s15681_s2 + $0x4f0] ss:$48 sps:$4 sm:$0xff]  }
  0x6d   :  { %2712 = vmatprep.subr.bf16.mxu1 %v8479_v47  ;;  %v8567_v46 = vld [vmem:[%s15681_s2 + $0xaf0] ss:$48 sps:$4 sm:$0xff]   ;;  %v8572_v47 = vld [vmem:[%s15681_s2 + $0x494] ss:$48 sps:$4 sm:$0xff]  }
  0x6f   :  { %2672 = vmatpush2.bf16.msra.mxu0 %v8474_v48  ;;  %v8575_v48 = vld [vmem:[%s15681_s2 + $0xa94] ss:$48 sps:$4 sm:$0xff]  }
  0x70   :  { %2713 = vmatpush2.bf16.msra.mxu1 %v8477_v49  ;;  %2673 = vmatprep.subr.bf16.mxu0 %v8482_v50  ;;  %v8570_v49 = vld [vmem:[%s15681_s2 + $0x490] ss:$48 sps:$4 sm:$0xff]  }
  0x71   :  { %2714 = vmatprep.subr.bf16.mxu1 %v8485_v51  ;;  %v8573_v50 = vld [vmem:[%s15681_s2 + $0xa90] ss:$48 sps:$4 sm:$0xff]   ;;  %v8578_v51 = vld [vmem:[%s15681_s2 + $0x434] ss:$48 sps:$4 sm:$0xff]  }
  0x73   :  { %2674 = vmatpush2.bf16.msra.mxu0 %v8480_v52  ;;  %v8581_v52 = vld [vmem:[%s15681_s2 + $0xa34] ss:$48 sps:$4 sm:$0xff]  }
  0x74   :  { %2715 = vmatpush2.bf16.msra.mxu1 %v8483_v53  ;;  %2675 = vmatprep.subr.bf16.mxu0 %v8488_v54  ;;  %v8576_v53 = vld [vmem:[%s15681_s2 + $0x430] ss:$48 sps:$4 sm:$0xff]  }
  0x75   :  { %2716 = vmatprep.subr.bf16.mxu1 %v8491_v55  ;;  %v8579_v54 = vld [vmem:[%s15681_s2 + $0xa30] ss:$48 sps:$4 sm:$0xff]   ;;  %v8584_v55 = vld [vmem:[%s15681_s2 + $0x3d4] ss:$48 sps:$4 sm:$0xff]  }
  0x77   :  { %2676 = vmatpush2.bf16.msra.mxu0 %v8486_v56  ;;  %v8587_v56 = vld [vmem:[%s15681_s2 + $0x9d4] ss:$48 sps:$4 sm:$0xff]  }
  0x78   :  { %2717 = vmatpush2.bf16.msra.mxu1 %v8489_v57  ;;  %2677 = vmatprep.subr.bf16.mxu0 %v8494_v58  ;;  %v8582_v57 = vld [vmem:[%s15681_s2 + $0x3d0] ss:$48 sps:$4 sm:$0xff]  }
  0x79   :  { %2718 = vmatprep.subr.bf16.mxu1 %v8497_v59  ;;  %v8585_v58 = vld [vmem:[%s15681_s2 + $0x9d0] ss:$48 sps:$4 sm:$0xff]   ;;  %v8590_v59 = vld [vmem:[%s15681_s2 + $0x374] ss:$48 sps:$4 sm:$0xff]  }
  0x7b   :  { %2678 = vmatpush2.bf16.msra.mxu0 %v8492_v60  ;;  %v8593_v60 = vld [vmem:[%s15681_s2 + $0x974] ss:$48 sps:$4 sm:$0xff]  }
  0x7c   :  { %2719 = vmatpush2.bf16.msra.mxu1 %v8495_v61  ;;  %2679 = vmatprep.subr.bf16.mxu0 %v8500_v62  ;;  %v8588_v61 = vld [vmem:[%s15681_s2 + $0x370] ss:$48 sps:$4 sm:$0xff]  }
  0x7d   :  { %2720 = vmatprep.subr.bf16.mxu1 %v8503_v63  ;;  %v8591_v62 = vld [vmem:[%s15681_s2 + $0x970] ss:$48 sps:$4 sm:$0xff]   ;;  %v8596_v63 = vld [vmem:[%s15681_s2 + $0x314] ss:$48 sps:$4 sm:$0xff]  }
  0x7f   :  { %2680 = vmatpush2.bf16.msra.mxu0 %v8498_v0  ;;  %v8599_v0 = vld [vmem:[%s15681_s2 + $0x914] ss:$48 sps:$4 sm:$0xff]  }
  0x80   :  { %2721 = vmatpush2.bf16.msra.mxu1 %v8501_v1  ;;  %2731 = vmatprep.subr.bf16.mxu0 %v8506_v3  ;;  %v8594_v1 = vld [vmem:[%s15681_s2 + $0x310] ss:$48 sps:$4 sm:$0xff]  }
  0x81   :  { %2772 = vmatprep.subr.bf16.mxu1 %v8509_v4  ;;  %v8597_v3 = vld [vmem:[%s15681_s2 + $0x910] ss:$48 sps:$4 sm:$0xff]   ;;  %v8602_v4 = vld [vmem:[%s15681_s2 + $0x2bc] ss:$48 sps:$4 sm:$0xff]  }
  0x82   :  { %2682 = vmatmul.mubr.bf16.vlgmr.msra.gmra.mxu0 %v10393_v2 }
  0x83   :  { %2723 = vmatmul.mubr.bf16.vlgmr.msra.gmra.mxu1 %v10393_v2  ;;  %2732 = vmatpush1.bf16.msra.mxu0 %v8504_v5  ;;  %v8605_v5 = vld [vmem:[%s15681_s2 + $0x8bc] ss:$48 sps:$4 sm:$0xff]  }
  0x84   :  { %2773 = vmatpush1.bf16.msra.mxu1 %v8507_v6  ;;  %2733 = vmatprep.subr.bf16.mxu0 %v8512_v7  ;;  %v8600_v6 = vld [vmem:[%s15681_s2 + $0x2b8] ss:$48 sps:$4 sm:$0xff]  }
  0x85   :  { %2774 = vmatprep.subr.bf16.mxu1 %v8515_v8  ;;  %2763 = vmatprep.mubr.bf16.mxu0 %v10393_v2  ;;  %v8603_v7 = vld [vmem:[%s15681_s2 + $0x8b8] ss:$48 sps:$4 sm:$0xff]   ;;  %v8608_v8 = vld [vmem:[%s15681_s2 + $0x25c] ss:$48 sps:$4 sm:$0xff]  }
  0x86   :  { %2804 = vmatprep.mubr.bf16.mxu1 %v10393_v2 }
  0x87   :  { %2734 = vmatpush1.bf16.msra.mxu0 %v8510_v9  ;;  %v8611_v9 = vld [vmem:[%s15681_s2 + $0x85c] ss:$48 sps:$4 sm:$0xff]  }
  0x88   :  { %2775 = vmatpush1.bf16.msra.mxu1 %v8513_v10  ;;  %2735 = vmatprep.subr.bf16.mxu0 %v8518_v11  ;;  %v8606_v10 = vld [vmem:[%s15681_s2 + $0x258] ss:$48 sps:$4 sm:$0xff]  }
  0x89   :  { %2776 = vmatprep.subr.bf16.mxu1 %v8521_v12  ;;  %v8609_v11 = vld [vmem:[%s15681_s2 + $0x858] ss:$48 sps:$4 sm:$0xff]   ;;  %v8614_v12 = vld [vmem:[%s15681_s2 + $0x1fc] ss:$48 sps:$4 sm:$0xff]  }
  0x8b   :  { %2736 = vmatpush1.bf16.msra.mxu0 %v8516_v13  ;;  %v8617_v13 = vld [vmem:[%s15681_s2 + $0x7fc] ss:$48 sps:$4 sm:$0xff]  }
  0x8c   :  { %2777 = vmatpush1.bf16.msra.mxu1 %v8519_v14  ;;  %2737 = vmatprep.subr.bf16.mxu0 %v8524_v15  ;;  %v8612_v14 = vld [vmem:[%s15681_s2 + $0x1f8] ss:$48 sps:$4 sm:$0xff]  }
  0x8d   :  { %2778 = vmatprep.subr.bf16.mxu1 %v8527_v16  ;;  %v8615_v15 = vld [vmem:[%s15681_s2 + $0x7f8] ss:$48 sps:$4 sm:$0xff]   ;;  %v8620_v16 = vld [vmem:[%s15681_s2 + $0x19c] ss:$48 sps:$4 sm:$0xff]  }
  0x8f   :  { %2738 = vmatpush1.bf16.msra.mxu0 %v8522_v17  ;;  %v8623_v17 = vld [vmem:[%s15681_s2 + $0x79c] ss:$48 sps:$4 sm:$0xff]  }
  0x90   :  { %2779 = vmatpush1.bf16.msra.mxu1 %v8525_v18  ;;  %2739 = vmatprep.subr.bf16.mxu0 %v8530_v19  ;;  %v8618_v18 = vld [vmem:[%s15681_s2 + $0x198] ss:$48 sps:$4 sm:$0xff]  }
  0x91   :  { %2780 = vmatprep.subr.bf16.mxu1 %v8533_v20  ;;  %v8621_v19 = vld [vmem:[%s15681_s2 + $0x798] ss:$48 sps:$4 sm:$0xff]   ;;  %v8626_v20 = vld [vmem:[%s15681_s2 + $0x13c] ss:$48 sps:$4 sm:$0xff]  }
  0x93   :  { %2740 = vmatpush1.bf16.msra.mxu0 %v8528_v21  ;;  %v8629_v21 = vld [vmem:[%s15681_s2 + $0x73c] ss:$48 sps:$4 sm:$0xff]  }
  0x94   :  { %2781 = vmatpush1.bf16.msra.mxu1 %v8531_v22  ;;  %2741 = vmatprep.subr.bf16.mxu0 %v8536_v23  ;;  %v8624_v22 = vld [vmem:[%s15681_s2 + $0x138] ss:$48 sps:$4 sm:$0xff]  }
  0x95   :  { %2782 = vmatprep.subr.bf16.mxu1 %v8539_v24  ;;  %v8627_v23 = vld [vmem:[%s15681_s2 + $0x738] ss:$48 sps:$4 sm:$0xff]   ;;  %v8632_v24 = vld [vmem:[%s15681_s2 + $0xdc] ss:$48 sps:$4 sm:$0xff]  }
  0x97   :  { %2742 = vmatpush1.bf16.msra.mxu0 %v8534_v25  ;;  %v8635_v25 = vld [vmem:[%s15681_s2 + $0x6dc] ss:$48 sps:$4 sm:$0xff]  }
  0x98   :  { %2783 = vmatpush1.bf16.msra.mxu1 %v8537_v26  ;;  %2743 = vmatprep.subr.bf16.mxu0 %v8542_v27  ;;  %v8630_v26 = vld [vmem:[%s15681_s2 + $0xd8] ss:$48 sps:$4 sm:$0xff]  }
  0x99   :  { %2784 = vmatprep.subr.bf16.mxu1 %v8545_v28  ;;  %v8633_v27 = vld [vmem:[%s15681_s2 + $0x6d8] ss:$48 sps:$4 sm:$0xff]   ;;  %v8638_v28 = vld [vmem:[%s15681_s2 + $0x7c] ss:$48 sps:$4 sm:$0xff]  }
  0x9b   :  { %2744 = vmatpush1.bf16.msra.mxu0 %v8540_v29  ;;  %v8641_v29 = vld [vmem:[%s15681_s2 + $0x67c] ss:$48 sps:$4 sm:$0xff]  }
  0x9c   :  { %2785 = vmatpush1.bf16.msra.mxu1 %v8543_v30  ;;  %2745 = vmatprep.subr.bf16.mxu0 %v8548_v31  ;;  %v8636_v30 = vld [vmem:[%s15681_s2 + $0x78] ss:$48 sps:$4 sm:$0xff]  }
  0x9d   :  { %2786 = vmatprep.subr.bf16.mxu1 %v8551_v32  ;;  %v8639_v31 = vld [vmem:[%s15681_s2 + $0x678] ss:$48 sps:$4 sm:$0xff]   ;;  %v8644_v32 = vld [vmem:[%s15681_s2 + $0x1c] ss:$48 sps:$4 sm:$0xff]  }
  0x9f   :  { %2746 = vmatpush1.bf16.msra.mxu0 %v8546_v33  ;;  %v8647_v33 = vld [vmem:[%s15681_s2 + $0x61c] ss:$48 sps:$4 sm:$0xff]  }
  0xa0   :  { %2787 = vmatpush1.bf16.msra.mxu1 %v8549_v34  ;;  %2747 = vmatprep.subr.bf16.mxu0 %v8554_v35  ;;  %v8642_v34 = vld [vmem:[%s15681_s2 + $0x18] ss:$48 sps:$4 sm:$0xff]  }
  0xa1   :  { %2788 = vmatprep.subr.bf16.mxu1 %v8557_v36  ;;  %v8645_v35 = vld [vmem:[%s15681_s2 + $0x618] ss:$48 sps:$4 sm:$0xff]   ;;  %v8650_v36 = vld [vmem:[%s15681_s2 + $0x5bc] ss:$48 sps:$4 sm:$0xff]  }
  0xa3   :  { %2748 = vmatpush2.bf16.msra.mxu0 %v8552_v37  ;;  %v8653_v37 = vld [vmem:[%s15681_s2 + $0xbbc] ss:$48 sps:$4 sm:$0xff]  }
  0xa4   :  { %2789 = vmatpush2.bf16.msra.mxu1 %v8555_v38  ;;  %2749 = vmatprep.subr.bf16.mxu0 %v8560_v39  ;;  %v8648_v38 = vld [vmem:[%s15681_s2 + $0x5b8] ss:$48 sps:$4 sm:$0xff]  }
  0xa5   :  { %2790 = vmatprep.subr.bf16.mxu1 %v8563_v40  ;;  %v8651_v39 = vld [vmem:[%s15681_s2 + $0xbb8] ss:$48 sps:$4 sm:$0xff]   ;;  %v8656_v40 = vld [vmem:[%s15681_s2 + $0x55c] ss:$48 sps:$4 sm:$0xff]  }
  0xa7   :  { %2750 = vmatpush2.bf16.msra.mxu0 %v8558_v41  ;;  %v8659_v41 = vld [vmem:[%s15681_s2 + $0xb5c] ss:$48 sps:$4 sm:$0xff]  }
  0xa8   :  { %2791 = vmatpush2.bf16.msra.mxu1 %v8561_v42  ;;  %2751 = vmatprep.subr.bf16.mxu0 %v8566_v43  ;;  %v8654_v42 = vld [vmem:[%s15681_s2 + $0x558] ss:$48 sps:$4 sm:$0xff]  }
  0xa9   :  { %2792 = vmatprep.subr.bf16.mxu1 %v8569_v44  ;;  %v8657_v43 = vld [vmem:[%s15681_s2 + $0xb58] ss:$48 sps:$4 sm:$0xff]   ;;  %v8662_v44 = vld [vmem:[%s15681_s2 + $0x4fc] ss:$48 sps:$4 sm:$0xff]  }
  0xab   :  { %2752 = vmatpush2.bf16.msra.mxu0 %v8564_v45  ;;  %v8665_v45 = vld [vmem:[%s15681_s2 + $0xafc] ss:$48 sps:$4 sm:$0xff]  }
  0xac   :  { %2793 = vmatpush2.bf16.msra.mxu1 %v8567_v46  ;;  %2753 = vmatprep.subr.bf16.mxu0 %v8572_v47  ;;  %v8660_v46 = vld [vmem:[%s15681_s2 + $0x4f8] ss:$48 sps:$4 sm:$0xff]  }
  0xad   :  { %2794 = vmatprep.subr.bf16.mxu1 %v8575_v48  ;;  %v8663_v47 = vld [vmem:[%s15681_s2 + $0xaf8] ss:$48 sps:$4 sm:$0xff]   ;;  %v8668_v48 = vld [vmem:[%s15681_s2 + $0x49c] ss:$48 sps:$4 sm:$0xff]  }
  0xaf   :  { %2754 = vmatpush2.bf16.msra.mxu0 %v8570_v49  ;;  %v8671_v49 = vld [vmem:[%s15681_s2 + $0xa9c] ss:$48 sps:$4 sm:$0xff]  }
  0xb0   :  { %2795 = vmatpush2.bf16.msra.mxu1 %v8573_v50  ;;  %2755 = vmatprep.subr.bf16.mxu0 %v8578_v51  ;;  %v8666_v50 = vld [vmem:[%s15681_s2 + $0x498] ss:$48 sps:$4 sm:$0xff]  }
  0xb1   :  { %2796 = vmatprep.subr.bf16.mxu1 %v8581_v52  ;;  %v8669_v51 = vld [vmem:[%s15681_s2 + $0xa98] ss:$48 sps:$4 sm:$0xff]   ;;  %v8674_v52 = vld [vmem:[%s15681_s2 + $0x43c] ss:$48 sps:$4 sm:$0xff]  }
  0xb3   :  { %2756 = vmatpush2.bf16.msra.mxu0 %v8576_v53  ;;  %v8677_v53 = vld [vmem:[%s15681_s2 + $0xa3c] ss:$48 sps:$4 sm:$0xff]  }
  0xb4   :  { %2797 = vmatpush2.bf16.msra.mxu1 %v8579_v54  ;;  %2757 = vmatprep.subr.bf16.mxu0 %v8584_v55  ;;  %v8672_v54 = vld [vmem:[%s15681_s2 + $0x438] ss:$48 sps:$4 sm:$0xff]  }
  0xb5   :  { %2798 = vmatprep.subr.bf16.mxu1 %v8587_v56  ;;  %v8675_v55 = vld [vmem:[%s15681_s2 + $0xa38] ss:$48 sps:$4 sm:$0xff]   ;;  %v8680_v56 = vld [vmem:[%s15681_s2 + $0x3dc] ss:$48 sps:$4 sm:$0xff]  }
  0xb7   :  { %2758 = vmatpush2.bf16.msra.mxu0 %v8582_v57  ;;  %v8683_v57 = vld [vmem:[%s15681_s2 + $0x9dc] ss:$48 sps:$4 sm:$0xff]  }
  0xb8   :  { %2799 = vmatpush2.bf16.msra.mxu1 %v8585_v58  ;;  %2759 = vmatprep.subr.bf16.mxu0 %v8590_v59  ;;  %v8678_v58 = vld [vmem:[%s15681_s2 + $0x3d8] ss:$48 sps:$4 sm:$0xff]  }
  0xb9   :  { %2800 = vmatprep.subr.bf16.mxu1 %v8593_v60  ;;  %v8681_v59 = vld [vmem:[%s15681_s2 + $0x9d8] ss:$48 sps:$4 sm:$0xff]   ;;  %v587_v60 = vlaneseq }
  0xbb   :  { %2760 = vmatpush2.bf16.msra.mxu0 %v8588_v61  ;;  %v8686_v61 = vld [vmem:[%s15681_s2 + $0x37c] ss:$48 sps:$4 sm:$0xff]  }
  0xbc   :  { %2801 = vmatpush2.bf16.msra.mxu1 %v8591_v62  ;;  %2761 = vmatprep.subr.bf16.mxu0 %v8596_v63  ;;  %v8689_v62 = vld [vmem:[%s15681_s2 + $0x97c] ss:$48 sps:$4 sm:$0xff]   ;;  %v8684_v63 = vld [vmem:[%s15681_s2 + $0x378] ss:$48 sps:$4 sm:$0xff]  }
  0xbd   :  { %2802 = vmatprep.subr.bf16.mxu1 %v8599_v0  ;;  %v8687_v0 = vld [vmem:[%s15681_s2 + $0x978] ss:$48 sps:$4 sm:$0xff]  }
  0xbf   :  { %2762 = vmatpush2.bf16.msra.mxu0 %v8594_v1  ;;  %v11205_v1 = vshrl.u32 %v587_v60, 7  ;;  %v8752_v60 = vld [vmem:[%s15681_s2 + $0x564] ss:$48 sps:$4 sm:$0xff]  }
  0xc0   :  { %2803 = vmatpush2.bf16.msra.mxu1 %v8597_v3  ;;  %2813 = vmatprep.subr.bf16.mxu0 %v8602_v4  ;;  %v8692_v3 = vld [vmem:[%s15681_s2 + $0x31c] ss:$48 sps:$4 sm:$0xff]  }
  0xc1   :  { %2854 = vmatprep.subr.bf16.mxu1 %v8605_v5  ;;  %v8695_v4 = vld [vmem:[%s15681_s2 + $0x91c] ss:$48 sps:$4 sm:$0xff]   ;;  %v8690_v5 = vld [vmem:[%s15681_s2 + $0x318] ss:$48 sps:$4 sm:$0xff]  }
  0xc2   :  { %2764 = vmatmul.mubr.bf16.vlgmr.msra.gmra.mxu0 %v10393_v2 }
  0xc3   :  { %2805 = vmatmul.mubr.bf16.vlgmr.msra.gmra.mxu1 %v10393_v2  ;;  %2814 = vmatpush1.bf16.msra.mxu0 %v8600_v6  ;;  %v8693_v6 = vld [vmem:[%s15681_s2 + $0x918] ss:$48 sps:$4 sm:$0xff]  }
  0xc4   :  { %2855 = vmatpush1.bf16.msra.mxu1 %v8603_v7  ;;  %2815 = vmatprep.subr.bf16.mxu0 %v8608_v8  ;;  %v11222_v7 = vld [vmem:[%s15682_s3] sm:$0xff]  ;;  %v11225_v8 = vsub.s32 0, %v11205_v1 }
  0xc5   :  { %2856 = vmatprep.subr.bf16.mxu1 %v8611_v9  ;;  %2845 = vmatprep.mubr.bf16.mxu0 %v10393_v2  ;;  %v8698_v9 = vld [vmem:[%s15681_s2 + $0x2c4] ss:$48 sps:$4 sm:$0xff]  }
  0xc6   :  { %2886 = vmatprep.mubr.bf16.mxu1 %v10393_v2 }
  0xc7   :  { %2816 = vmatpush1.bf16.msra.mxu0 %v8606_v10  ;;  %v8701_v10 = vld [vmem:[%s15681_s2 + $0x8c4] ss:$48 sps:$4 sm:$0xff]  }
  0xc8   :  { %2857 = vmatpush1.bf16.msra.mxu1 %v8609_v11  ;;  %2817 = vmatprep.subr.bf16.mxu0 %v8614_v12  ;;  %v11234_v11 = vsub.s32 1, %v11205_v1  ;;  %v8696_v12 = vld [vmem:[%s15681_s2 + $0x2c0] ss:$48 sps:$4 sm:$0xff]  }
  0xc9   :  { %2858 = vmatprep.subr.bf16.mxu1 %v8617_v13  ;;  %v11241_v13 = vrot.slane %v11222_v7, %v11225_v8 }
  0xcb   :  { %2818 = vmatpush1.bf16.msra.mxu0 %v8612_v14  ;;  %v8699_v14 = vld [vmem:[%s15681_s2 + $0x8c0] ss:$48 sps:$4 sm:$0xff]  }
  0xcc   :  { %2859 = vmatpush1.bf16.msra.mxu1 %v8615_v15  ;;  %2819 = vmatprep.subr.bf16.mxu0 %v8620_v16  ;;  %v8704_v15 = vld [vmem:[%s15681_s2 + $0x264] ss:$48 sps:$4 sm:$0xff]  }
  0xcd   :  { %2860 = vmatprep.subr.bf16.mxu1 %v8623_v17  ;;  %v8707_v16 = vld [vmem:[%s15681_s2 + $0x864] ss:$48 sps:$4 sm:$0xff]   ;;  %v11254_v17 = vrot.slane %v11222_v7, %v11234_v11 }
  0xcf   :  { %2820 = vmatpush1.bf16.msra.mxu0 %v8618_v18 }
  0xd0   :  { %2861 = vmatpush1.bf16.msra.mxu1 %v8621_v19  ;;  %2821 = vmatprep.subr.bf16.mxu0 %v8626_v20  ;;  %v8702_v20 = vld [vmem:[%s15681_s2 + $0x260] ss:$48 sps:$4 sm:$0xff]  }
  0xd1   :  { %2862 = vmatprep.subr.bf16.mxu1 %v8629_v21 }
  0xd3   :  { %2822 = vmatpush1.bf16.msra.mxu0 %v8624_v22  ;;  %v8705_v22 = vld [vmem:[%s15681_s2 + $0x860] ss:$48 sps:$4 sm:$0xff]  }
  0xd4   :  { %2863 = vmatpush1.bf16.msra.mxu1 %v8627_v23  ;;  %2823 = vmatprep.subr.bf16.mxu0 %v8632_v24  ;;  %v8710_v23 = vld [vmem:[%s15681_s2 + $0x204] ss:$48 sps:$4 sm:$0xff]  }
  0xd5   :  { %2864 = vmatprep.subr.bf16.mxu1 %v8635_v25 }
  0xd7   :  { %2824 = vmatpush1.bf16.msra.mxu0 %v8630_v26  ;;  %v8713_v26 = vld [vmem:[%s15681_s2 + $0x804] ss:$48 sps:$4 sm:$0xff]  }
  0xd8   :  { %2865 = vmatpush1.bf16.msra.mxu1 %v8633_v27  ;;  %2825 = vmatprep.subr.bf16.mxu0 %v8638_v28 }
  0xd9   :  { %2866 = vmatprep.subr.bf16.mxu1 %v8641_v29  ;;  %v8708_v29 = vld [vmem:[%s15681_s2 + $0x200] ss:$48 sps:$4 sm:$0xff]  }
  0xdb   :  { %2826 = vmatpush1.bf16.msra.mxu0 %v8636_v30 }
  0xdc   :  { %2867 = vmatpush1.bf16.msra.mxu1 %v8639_v31  ;;  %2827 = vmatprep.subr.bf16.mxu0 %v8644_v32  ;;  %v8711_v32 = vld [vmem:[%s15681_s2 + $0x800] ss:$48 sps:$4 sm:$0xff]  }
  0xdd   :  { %2868 = vmatprep.subr.bf16.mxu1 %v8647_v33 }
  0xdf   :  { %2828 = vmatpush1.bf16.msra.mxu0 %v8642_v34 }
  0xe0   :  { %2869 = vmatpush1.bf16.msra.mxu1 %v8645_v35  ;;  %2829 = vmatprep.subr.bf16.mxu0 %v8650_v36  ;;  %v8716_v36 = vld [vmem:[%s15681_s2 + $0x1a4] ss:$48 sps:$4 sm:$0xff]  }
  0xe1   :  { %2870 = vmatprep.subr.bf16.mxu1 %v8653_v37  ;;  %v8719_v37 = vld [vmem:[%s15681_s2 + $0x7a4] ss:$48 sps:$4 sm:$0xff]  }
  0xe3   :  { %2830 = vmatpush2.bf16.msra.mxu0 %v8648_v38  ;;  %v8714_v38 = vld [vmem:[%s15681_s2 + $0x1a0] ss:$48 sps:$4 sm:$0xff]  }
  0xe4   :  { %2871 = vmatpush2.bf16.msra.mxu1 %v8651_v39  ;;  %2831 = vmatprep.subr.bf16.mxu0 %v8656_v40  ;;  %v8717_v39 = vld [vmem:[%s15681_s2 + $0x7a0] ss:$48 sps:$4 sm:$0xff]   ;;  %v8722_v40 = vld [vmem:[%s15681_s2 + $0x144] ss:$48 sps:$4 sm:$0xff]  }
  0xe5   :  { %2872 = vmatprep.subr.bf16.mxu1 %v8659_v41  ;;  %v8725_v41 = vld [vmem:[%s15681_s2 + $0x744] ss:$48 sps:$4 sm:$0xff]  }
  0xe7   :  { %2832 = vmatpush2.bf16.msra.mxu0 %v8654_v42  ;;  %v8720_v42 = vld [vmem:[%s15681_s2 + $0x140] ss:$48 sps:$4 sm:$0xff]  }
  0xe8   :  { %2873 = vmatpush2.bf16.msra.mxu1 %v8657_v43  ;;  %2833 = vmatprep.subr.bf16.mxu0 %v8662_v44  ;;  %v8723_v43 = vld [vmem:[%s15681_s2 + $0x740] ss:$48 sps:$4 sm:$0xff]   ;;  %v8728_v44 = vld [vmem:[%s15681_s2 + $0xe4] ss:$48 sps:$4 sm:$0xff]  }
  0xe9   :  { %2874 = vmatprep.subr.bf16.mxu1 %v8665_v45  ;;  %v8731_v45 = vld [vmem:[%s15681_s2 + $0x6e4] ss:$48 sps:$4 sm:$0xff]  }
  0xeb   :  { %2834 = vmatpush2.bf16.msra.mxu0 %v8660_v46  ;;  %v8726_v46 = vld [vmem:[%s15681_s2 + $0xe0] ss:$48 sps:$4 sm:$0xff]  }
  0xec   :  { %2875 = vmatpush2.bf16.msra.mxu1 %v8663_v47  ;;  %2835 = vmatprep.subr.bf16.mxu0 %v8668_v48  ;;  %v8729_v47 = vld [vmem:[%s15681_s2 + $0x6e0] ss:$48 sps:$4 sm:$0xff]   ;;  %v8734_v48 = vld [vmem:[%s15681_s2 + $0x84] ss:$48 sps:$4 sm:$0xff]  }
  0xed   :  { %2876 = vmatprep.subr.bf16.mxu1 %v8671_v49  ;;  %v8737_v49 = vld [vmem:[%s15681_s2 + $0x684] ss:$48 sps:$4 sm:$0xff]  }
  0xef   :  { %2836 = vmatpush2.bf16.msra.mxu0 %v8666_v50  ;;  %v8732_v50 = vld [vmem:[%s15681_s2 + $0x80] ss:$48 sps:$4 sm:$0xff]  }
  0xf0   :  { %2877 = vmatpush2.bf16.msra.mxu1 %v8669_v51  ;;  %2837 = vmatprep.subr.bf16.mxu0 %v8674_v52  ;;  %v8735_v51 = vld [vmem:[%s15681_s2 + $0x680] ss:$48 sps:$4 sm:$0xff]   ;;  %v8740_v52 = vld [vmem:[%s15681_s2 + $0x24] ss:$48 sps:$4 sm:$0xff]  }
  0xf1   :  { %2878 = vmatprep.subr.bf16.mxu1 %v8677_v53  ;;  %v8743_v53 = vld [vmem:[%s15681_s2 + $0x624] ss:$48 sps:$4 sm:$0xff]  }
  0xf3   :  { %2838 = vmatpush2.bf16.msra.mxu0 %v8672_v54  ;;  %v8738_v54 = vld [vmem:[%s15681_s2 + $0x20] ss:$48 sps:$4 sm:$0xff]  }
  0xf4   :  { %2879 = vmatpush2.bf16.msra.mxu1 %v8675_v55  ;;  %2839 = vmatprep.subr.bf16.mxu0 %v8680_v56  ;;  %v8741_v55 = vld [vmem:[%s15681_s2 + $0x620] ss:$48 sps:$4 sm:$0xff]   ;;  %v8746_v56 = vld [vmem:[%s15681_s2 + $0x5c4] ss:$48 sps:$4 sm:$0xff]  }
  0xf5   :  { %2880 = vmatprep.subr.bf16.mxu1 %v8683_v57  ;;  %v8749_v57 = vld [vmem:[%s15681_s2 + $0xbc4] ss:$48 sps:$4 sm:$0xff]  }
  0xf7   :  { %2840 = vmatpush2.bf16.msra.mxu0 %v8678_v58  ;;  %v8744_v58 = vld [vmem:[%s15681_s2 + $0x5c0] ss:$48 sps:$4 sm:$0xff]  }
  0xf8   :  { %2881 = vmatpush2.bf16.msra.mxu1 %v8681_v59  ;;  %2841 = vmatprep.subr.bf16.mxu0 %v8686_v61  ;;  %v8747_v59 = vld [vmem:[%s15681_s2 + $0xbc0] ss:$48 sps:$4 sm:$0xff]   ;;  %v8755_v61 = vld [vmem:[%s15681_s2 + $0xb64] ss:$48 sps:$4 sm:$0xff]  }
  0xf9   :  { %2882 = vmatprep.subr.bf16.mxu1 %v8689_v62  ;;  %v8750_v62 = vld [vmem:[%s15681_s2 + $0x560] ss:$48 sps:$4 sm:$0xff]  }
  0xfb   :  { %2842 = vmatpush2.bf16.msra.mxu0 %v8684_v63  ;;  %v8753_v63 = vld [vmem:[%s15681_s2 + $0xb60] ss:$48 sps:$4 sm:$0xff]  }
  0xfc   :  { %2883 = vmatpush2.bf16.msra.mxu1 %v8687_v0  ;;  %2843 = vmatprep.subr.bf16.mxu0 %v8692_v3  ;;  %v8758_v0 = vld [vmem:[%s15681_s2 + $0x504] ss:$48 sps:$4 sm:$0xff]  }
  0xfd   :  { %2884 = vmatprep.subr.bf16.mxu1 %v8695_v4  ;;  %v8761_v3 = vld [vmem:[%s15681_s2 + $0xb04] ss:$48 sps:$4 sm:$0xff]   ;;  %v8756_v4 = vld [vmem:[%s15681_s2 + $0x500] ss:$48 sps:$4 sm:$0xff]  }
  0xff   :  { %2844 = vmatpush2.bf16.msra.mxu0 %v8690_v5  ;;  %v8759_v5 = vld [vmem:[%s15681_s2 + $0xb00] ss:$48 sps:$4 sm:$0xff]  }
 0x100   :  { %2885 = vmatpush2.bf16.msra.mxu1 %v8693_v6  ;;  %2895 = vmatprep.subr.bf16.mxu0 %v8698_v9  ;;  %v8764_v6 = vld [vmem:[%s15681_s2 + $0x4a4] ss:$48 sps:$4 sm:$0xff]  }
 0x101   :  { %2936 = vmatprep.subr.bf16.mxu1 %v8701_v10  ;;  %v8767_v9 = vld [vmem:[%s15681_s2 + $0xaa4] ss:$48 sps:$4 sm:$0xff]   ;;  %v8762_v10 = vld [vmem:[%s15681_s2 + $0x4a0] ss:$48 sps:$4 sm:$0xff]  }
 0x102   :  { %v2601_v18 = vpop.f32.mrf.mxu0  ;;  %2846 = vmatmul.mubr.bf16.vlgmr.msra.gmra.mxu0 %v10393_v2 }
 0x103   :  { %v2642_v19 = vpop.f32.mrf.mxu1  ;;  %2887 = vmatmul.mubr.bf16.vlgmr.msra.gmra.mxu1 %v10393_v2  ;;  %v2602_v21 = vadd.f32 %v2601_v18, %v11241_v13  ;;  %2896 = vmatpush1.bf16.msra.mxu0 %v8696_v12  ;;  %v8765_v12 = vld [vmem:[%s15681_s2 + $0xaa0] ss:$48 sps:$4 sm:$0xff]  }
 0x104   :  { %2937 = vmatpush1.bf16.msra.mxu1 %v8699_v14  ;;  %v2603_v24 = vpop.f32.mrf.mxu0  ;;  %2897 = vmatprep.subr.bf16.mxu0 %v8704_v15  ;;  %v8770_v14 = vld [vmem:[%s15681_s2 + $0x444] ss:$48 sps:$4 sm:$0xff]   ;;  %v8771_v18 = vld [vmem:[%s15681_s2 + $0xa40] ss:$48 sps:$4 sm:$0xff]  }
 0x105   :  { %v2644_v25 = vpop.f32.mrf.mxu1  ;;  %2938 = vmatprep.subr.bf16.mxu1 %v8707_v16  ;;  %v11271_v27 = vadd.f32 %v2642_v19, %v2602_v21  ;;  %v2604_v28 = vadd.f32 %v2603_v24, %v11254_v17  ;;  %2927 = vmatprep.mubr.bf16.mxu0 %v10393_v2  ;;  %v8773_v15 = vld [vmem:[%s15681_s2 + $0xa44] ss:$48 sps:$4 sm:$0xff]   ;;  %v8768_v16 = vld [vmem:[%s15681_s2 + $0x440] ss:$48 sps:$4 sm:$0xff]  }
 0x106   :  { %2968 = vmatprep.mubr.bf16.mxu1 %v10393_v2  ;;  %v2605_v30 = vpop.f32.mrf.mxu0  ;;  %v8776_v19 = vld [vmem:[%s15681_s2 + $0x3e4] ss:$48 sps:$4 sm:$0xff]   ;;  %v8774_v21 = vld [vmem:[%s15681_s2 + $0x3e0] ss:$48 sps:$4 sm:$0xff]  }
 0x107   :  { %v2646_v31 = vpop.f32.mrf.mxu1  ;;  %v11282_v33 = vadd.f32 %v2644_v25, %v2604_v28  ;;  %2898 = vmatpush1.bf16.msra.mxu0 %v8702_v20  ;;  %v8779_v20 = vld [vmem:[%s15681_s2 + $0x9e4] ss:$48 sps:$4 sm:$0xff]   ;;  %v8780_v25 = vld [vmem:[%s15681_s2 + $0x380] ss:$48 sps:$4 sm:$0xff]  }
 0x108   :  { %2939 = vmatpush1.bf16.msra.mxu1 %v8705_v22  ;;  %v2606_v34 = vpop.f32.mrf.mxu0  ;;  %2899 = vmatprep.subr.bf16.mxu0 %v8710_v23  ;;  %v8777_v22 = vld [vmem:[%s15681_s2 + $0x9e0] ss:$48 sps:$4 sm:$0xff]   ;;  %v8782_v23 = vld [vmem:[%s15681_s2 + $0x384] ss:$48 sps:$4 sm:$0xff]  }
 0x109   :  { %v2647_v35 = vpop.f32.mrf.mxu1  ;;  %2940 = vmatprep.subr.bf16.mxu1 %v8713_v26  ;;  %v8785_v24 = vld [vmem:[%s15681_s2 + $0x984] ss:$48 sps:$4 sm:$0xff]   ;;  %v8783_v26 = vld [vmem:[%s15681_s2 + $0x980] ss:$48 sps:$4 sm:$0xff]   ;;  %v8794_v34 = vld [vmem:[%s15681_s2 + $0x2cc] ss:$48 sps:$4 sm:$0xff]  }
 0x10a   :  { %v8788_v28 = vld [vmem:[%s15681_s2 + $0x324] ss:$48 sps:$4 sm:$0xff]   ;;  %v8786_v30 = vld [vmem:[%s15681_s2 + $0x320] ss:$48 sps:$4 sm:$0xff]   ;;  %v8797_v35 = vld [vmem:[%s15681_s2 + $0x8cc] ss:$48 sps:$4 sm:$0xff]  }
 0x10b   :  { %2900 = vmatpush1.bf16.msra.mxu0 %v8708_v29  ;;  %v8791_v29 = vld [vmem:[%s15681_s2 + $0x924] ss:$48 sps:$4 sm:$0xff]   ;;  %v8789_v31 = vld [vmem:[%s15681_s2 + $0x920] ss:$48 sps:$4 sm:$0xff]  }
 0x10c   :  { %2941 = vmatpush1.bf16.msra.mxu1 %v8711_v32  ;;  %2901 = vmatprep.subr.bf16.mxu0 %v8716_v36  ;;  %v11441_v32 = vsub.s32 2, %v11205_v1  ;;  %v8792_v36 = vld [vmem:[%s15681_s2 + $0x2c8] ss:$48 sps:$4 sm:$0xff]  }
 0x10d   :  { %2942 = vmatprep.subr.bf16.mxu1 %v8719_v37  ;;  %v8795_v37 = vld [vmem:[%s15681_s2 + $0x8c8] ss:$48 sps:$4 sm:$0xff]  }
 0x10f   :  { %2902 = vmatpush1.bf16.msra.mxu0 %v8714_v38  ;;  %v11456_v38 = vsub.s32 3, %v11205_v1 }
 0x110   :  { %2943 = vmatpush1.bf16.msra.mxu1 %v8717_v39  ;;  %2903 = vmatprep.subr.bf16.mxu0 %v8722_v40  ;;  %v11460_v39 = vrot.slane %v11222_v7, %v11441_v32  ;;  %v8800_v40 = vld [vmem:[%s15681_s2 + $0x26c] ss:$48 sps:$4 sm:$0xff]  }
 0x111   :  { %2944 = vmatprep.subr.bf16.mxu1 %v8725_v41  ;;  %v8803_v41 = vld [vmem:[%s15681_s2 + $0x86c] ss:$48 sps:$4 sm:$0xff]  }
 0x113   :  { %2904 = vmatpush1.bf16.msra.mxu0 %v8720_v42  ;;  %v11470_v42 = vrot.slane %v11222_v7, %v11456_v38 }
 0x114   :  { %2945 = vmatpush1.bf16.msra.mxu1 %v8723_v43  ;;  %2905 = vmatprep.subr.bf16.mxu0 %v8728_v44  ;;  %v8798_v43 = vld [vmem:[%s15681_s2 + $0x268] ss:$48 sps:$4 sm:$0xff]  }
 0x115   :  { %2946 = vmatprep.subr.bf16.mxu1 %v8731_v45 }
 0x117   :  { %2906 = vmatpush1.bf16.msra.mxu0 %v8726_v46 }
 0x118   :  { %2947 = vmatpush1.bf16.msra.mxu1 %v8729_v47  ;;  %2907 = vmatprep.subr.bf16.mxu0 %v8734_v48  ;;  %v8801_v47 = vld [vmem:[%s15681_s2 + $0x868] ss:$48 sps:$4 sm:$0xff]  }
 0x119   :  { %2948 = vmatprep.subr.bf16.mxu1 %v8737_v49  ;;  %v8806_v49 = vld [vmem:[%s15681_s2 + $0x20c] ss:$48 sps:$4 sm:$0xff]  }
 0x11b   :  { %2908 = vmatpush1.bf16.msra.mxu0 %v8732_v50  ;;  %v8809_v50 = vld [vmem:[%s15681_s2 + $0x80c] ss:$48 sps:$4 sm:$0xff]  }
 0x11c   :  { %2949 = vmatpush1.bf16.msra.mxu1 %v8735_v51  ;;  %2909 = vmatprep.subr.bf16.mxu0 %v8740_v52 }
 0x11d   :  { %2950 = vmatprep.subr.bf16.mxu1 %v8743_v53  ;;  %v8804_v53 = vld [vmem:[%s15681_s2 + $0x208] ss:$48 sps:$4 sm:$0xff]  }
 0x11f   :  { %2910 = vmatpush1.bf16.msra.mxu0 %v8738_v54  ;;  %v8807_v54 = vld [vmem:[%s15681_s2 + $0x808] ss:$48 sps:$4 sm:$0xff]  }
 0x120   :  { %2951 = vmatpush1.bf16.msra.mxu1 %v8741_v55  ;;  %2911 = vmatprep.subr.bf16.mxu0 %v8746_v56 }
 0x121   :  { %2952 = vmatprep.subr.bf16.mxu1 %v8749_v57 }
 0x123   :  { %2912 = vmatpush2.bf16.msra.mxu0 %v8744_v58 }
 0x124   :  { %2953 = vmatpush2.bf16.msra.mxu1 %v8747_v59  ;;  %2913 = vmatprep.subr.bf16.mxu0 %v8752_v60  ;;  %v8812_v60 = vld [vmem:[%s15681_s2 + $0x1ac] ss:$48 sps:$4 sm:$0xff]  }
 0x125   :  { %2954 = vmatprep.subr.bf16.mxu1 %v8755_v61  ;;  %v8815_v61 = vld [vmem:[%s15681_s2 + $0x7ac] ss:$48 sps:$4 sm:$0xff]  }
 0x127   :  { %2914 = vmatpush2.bf16.msra.mxu0 %v8750_v62  ;;  %v8810_v62 = vld [vmem:[%s15681_s2 + $0x1a8] ss:$48 sps:$4 sm:$0xff]  }
 0x128   :  { %2955 = vmatpush2.bf16.msra.mxu1 %v8753_v63  ;;  %2915 = vmatprep.subr.bf16.mxu0 %v8758_v0  ;;  %v8813_v63 = vld [vmem:[%s15681_s2 + $0x7a8] ss:$48 sps:$4 sm:$0xff]   ;;  %v8818_v0 = vld [vmem:[%s15681_s2 + $0x14c] ss:$48 sps:$4 sm:$0xff]  }
 0x129   :  { %2956 = vmatprep.subr.bf16.mxu1 %v8761_v3  ;;  %v8821_v3 = vld [vmem:[%s15681_s2 + $0x74c] ss:$48 sps:$4 sm:$0xff]  }
 0x12b   :  { %2916 = vmatpush2.bf16.msra.mxu0 %v8756_v4  ;;  %v8816_v4 = vld [vmem:[%s15681_s2 + $0x148] ss:$48 sps:$4 sm:$0xff]  }
 0x12c   :  { %2957 = vmatpush2.bf16.msra.mxu1 %v8759_v5  ;;  %2917 = vmatprep.subr.bf16.mxu0 %v8764_v6  ;;  %v8819_v5 = vld [vmem:[%s15681_s2 + $0x748] ss:$48 sps:$4 sm:$0xff]   ;;  %v8824_v6 = vld [vmem:[%s15681_s2 + $0xec] ss:$48 sps:$4 sm:$0xff]  }
 0x12d   :  { %2958 = vmatprep.subr.bf16.mxu1 %v8767_v9  ;;  %v8827_v9 = vld [vmem:[%s15681_s2 + $0x6ec] ss:$48 sps:$4 sm:$0xff]  }
 0x12f   :  { %2918 = vmatpush2.bf16.msra.mxu0 %v8762_v10  ;;  %v8822_v10 = vld [vmem:[%s15681_s2 + $0xe8] ss:$48 sps:$4 sm:$0xff]  }
 0x130   :  { %2959 = vmatpush2.bf16.msra.mxu1 %v8765_v12  ;;  %2919 = vmatprep.subr.bf16.mxu0 %v8770_v14  ;;  %v8825_v12 = vld [vmem:[%s15681_s2 + $0x6e8] ss:$48 sps:$4 sm:$0xff]   ;;  %v8830_v14 = vld [vmem:[%s15681_s2 + $0x8c] ss:$48 sps:$4 sm:$0xff]  }
 0x131   :  { %2960 = vmatprep.subr.bf16.mxu1 %v8773_v15  ;;  %v8833_v15 = vld [vmem:[%s15681_s2 + $0x68c] ss:$48 sps:$4 sm:$0xff]  }
 0x133   :  { %2920 = vmatpush2.bf16.msra.mxu0 %v8768_v16  ;;  %v8828_v16 = vld [vmem:[%s15681_s2 + $0x88] ss:$48 sps:$4 sm:$0xff]  }
 0x134   :  { %2961 = vmatpush2.bf16.msra.mxu1 %v8771_v18  ;;  %2921 = vmatprep.subr.bf16.mxu0 %v8776_v19  ;;  %v8831_v18 = vld [vmem:[%s15681_s2 + $0x688] ss:$48 sps:$4 sm:$0xff]   ;;  %v8836_v19 = vld [vmem:[%s15681_s2 + $0x2c] ss:$48 sps:$4 sm:$0xff]  }
 0x135   :  { %2962 = vmatprep.subr.bf16.mxu1 %v8779_v20  ;;  %v8839_v20 = vld [vmem:[%s15681_s2 + $0x62c] ss:$48 sps:$4 sm:$0xff]  }
 0x137   :  { %2922 = vmatpush2.bf16.msra.mxu0 %v8774_v21  ;;  %v8834_v21 = vld [vmem:[%s15681_s2 + $0x28] ss:$48 sps:$4 sm:$0xff]  }
 0x138   :  { %2963 = vmatpush2.bf16.msra.mxu1 %v8777_v22  ;;  %2923 = vmatprep.subr.bf16.mxu0 %v8782_v23  ;;  %v8837_v22 = vld [vmem:[%s15681_s2 + $0x628] ss:$48 sps:$4 sm:$0xff]   ;;  %v8842_v23 = vld [vmem:[%s15681_s2 + $0x5cc] ss:$48 sps:$4 sm:$0xff]  }
 0x139   :  { %2964 = vmatprep.subr.bf16.mxu1 %v8785_v24  ;;  %v8845_v24 = vld [vmem:[%s15681_s2 + $0xbcc] ss:$48 sps:$4 sm:$0xff]  }
 0x13b   :  { %2924 = vmatpush2.bf16.msra.mxu0 %v8780_v25  ;;  %v8840_v25 = vld [vmem:[%s15681_s2 + $0x5c8] ss:$48 sps:$4 sm:$0xff]  }
 0x13c   :  { %2965 = vmatpush2.bf16.msra.mxu1 %v8783_v26  ;;  %2925 = vmatprep.subr.bf16.mxu0 %v8788_v28  ;;  %v8843_v26 = vld [vmem:[%s15681_s2 + $0xbc8] ss:$48 sps:$4 sm:$0xff]   ;;  %v8848_v28 = vld [vmem:[%s15681_s2 + $0x56c] ss:$48 sps:$4 sm:$0xff]  }
 0x13d   :  { %2966 = vmatprep.subr.bf16.mxu1 %v8791_v29  ;;  %v8851_v29 = vld [vmem:[%s15681_s2 + $0xb6c] ss:$48 sps:$4 sm:$0xff]  }
 0x13f   :  { %2926 = vmatpush2.bf16.msra.mxu0 %v8786_v30  ;;  %v8846_v30 = vld [vmem:[%s15681_s2 + $0x568] ss:$48 sps:$4 sm:$0xff]  }
 0x140   :  { %2967 = vmatpush2.bf16.msra.mxu1 %v8789_v31  ;;  %2977 = vmatprep.subr.bf16.mxu0 %v8794_v34  ;;  %v8849_v31 = vld [vmem:[%s15681_s2 + $0xb68] ss:$48 sps:$4 sm:$0xff]   ;;  %v8854_v34 = vld [vmem:[%s15681_s2 + $0x50c] ss:$48 sps:$4 sm:$0xff]  }
 0x141   :  { %3018 = vmatprep.subr.bf16.mxu1 %v8797_v35  ;;  %v8857_v35 = vld [vmem:[%s15681_s2 + $0xb0c] ss:$48 sps:$4 sm:$0xff]  }
 0x142   :  { %v2683_v44 = vpop.f32.mrf.mxu0  ;;  %2928 = vmatmul.mubr.bf16.vlgmr.msra.gmra.mxu0 %v10393_v2 }
 0x143   :  { %v2724_v45 = vpop.f32.mrf.mxu1  ;;  %2969 = vmatmul.mubr.bf16.vlgmr.msra.gmra.mxu1 %v10393_v2  ;;  %v2684_v46 = vadd.f32 %v2683_v44, %v11460_v39  ;;  %2978 = vmatpush1.bf16.msra.mxu0 %v8792_v36  ;;  %v8852_v36 = vld [vmem:[%s15681_s2 + $0x508] ss:$48 sps:$4 sm:$0xff]  }
 0x144   :  { %3019 = vmatpush1.bf16.msra.mxu1 %v8795_v37  ;;  %v2685_v7 = vpop.f32.mrf.mxu0  ;;  %2979 = vmatprep.subr.bf16.mxu0 %v8800_v40  ;;  %v8855_v37 = vld [vmem:[%s15681_s2 + $0xb08] ss:$48 sps:$4 sm:$0xff]   ;;  %v8860_v40 = vld [vmem:[%s15681_s2 + $0x4ac] ss:$48 sps:$4 sm:$0xff]  }
 0x145   :  { %v2726_v48 = vpop.f32.mrf.mxu1  ;;  %3020 = vmatprep.subr.bf16.mxu1 %v8803_v41  ;;  %v11487_v51 = vadd.f32 %v2724_v45, %v2684_v46  ;;  %v2686_v52 = vadd.f32 %v2685_v7, %v11470_v42  ;;  %3009 = vmatprep.mubr.bf16.mxu0 %v10393_v2  ;;  %v8863_v41 = vld [vmem:[%s15681_s2 + $0xaac] ss:$48 sps:$4 sm:$0xff]   ;;  %v8861_v44 = vld [vmem:[%s15681_s2 + $0xaa8] ss:$48 sps:$4 sm:$0xff]  }
 0x146   :  { %3050 = vmatprep.mubr.bf16.mxu1 %v10393_v2  ;;  %v2687_v55 = vpop.f32.mrf.mxu0  ;;  %v8866_v45 = vld [vmem:[%s15681_s2 + $0x44c] ss:$48 sps:$4 sm:$0xff]   ;;  %v8867_v7 = vld [vmem:[%s15681_s2 + $0xa48] ss:$48 sps:$4 sm:$0xff]  }
 0x147   :  { %v2728_v56 = vpop.f32.mrf.mxu1  ;;  %v11498_v57 = vadd.f32 %v2726_v48, %v2686_v52  ;;  %2980 = vmatpush1.bf16.msra.mxu0 %v8798_v43  ;;  %v8858_v43 = vld [vmem:[%s15681_s2 + $0x4a8] ss:$48 sps:$4 sm:$0xff]   ;;  %v8869_v46 = vld [vmem:[%s15681_s2 + $0xa4c] ss:$48 sps:$4 sm:$0xff]  }
 0x148   :  { %3021 = vmatpush1.bf16.msra.mxu1 %v8801_v47  ;;  %v2688_v58 = vpop.f32.mrf.mxu0  ;;  %2981 = vmatprep.subr.bf16.mxu0 %v8806_v49  ;;  %v8864_v47 = vld [vmem:[%s15681_s2 + $0x448] ss:$48 sps:$4 sm:$0xff]   ;;  %v8872_v48 = vld [vmem:[%s15681_s2 + $0x3ec] ss:$48 sps:$4 sm:$0xff]  }
 0x149   :  { %v2729_v59 = vpop.f32.mrf.mxu1  ;;  %3022 = vmatprep.subr.bf16.mxu1 %v8809_v50  ;;  %v8875_v49 = vld [vmem:[%s15681_s2 + $0x9ec] ss:$48 sps:$4 sm:$0xff]   ;;  %v8870_v50 = vld [vmem:[%s15681_s2 + $0x3e8] ss:$48 sps:$4 sm:$0xff]  }
 0x14a   :  { %v8873_v52 = vld [vmem:[%s15681_s2 + $0x9e8] ss:$48 sps:$4 sm:$0xff]   ;;  %v8884_v58 = vld [vmem:[%s15681_s2 + $0x32c] ss:$48 sps:$4 sm:$0xff]  }
 0x14b   :  { %2982 = vmatpush1.bf16.msra.mxu0 %v8804_v53  ;;  %v8878_v53 = vld [vmem:[%s15681_s2 + $0x38c] ss:$48 sps:$4 sm:$0xff]   ;;  %v8876_v55 = vld [vmem:[%s15681_s2 + $0x388] ss:$48 sps:$4 sm:$0xff]  }
 0x14c   :  { %3023 = vmatpush1.bf16.msra.mxu1 %v8807_v54  ;;  %2983 = vmatprep.subr.bf16.mxu0 %v8812_v60  ;;  %v8881_v54 = vld [vmem:[%s15681_s2 + $0x98c] ss:$48 sps:$4 sm:$0xff]   ;;  %v8879_v56 = vld [vmem:[%s15681_s2 + $0x988] ss:$48 sps:$4 sm:$0xff]  }
 0x14d   :  { %3024 = vmatprep.subr.bf16.mxu1 %v8815_v61  ;;  %v8887_v59 = vld [vmem:[%s15681_s2 + $0x92c] ss:$48 sps:$4 sm:$0xff]   ;;  %v8882_v60 = vld [vmem:[%s15681_s2 + $0x328] ss:$48 sps:$4 sm:$0xff]  }
 0x14e   :  { %v8885_v61 = vld [vmem:[%s15681_s2 + $0x928] ss:$48 sps:$4 sm:$0xff]  }
 0x14f   :  { %2984 = vmatpush1.bf16.msra.mxu0 %v8810_v62  ;;  %v605_v62 = vsub.s32 4, %v11205_v1 }
 0x150   :  { %3025 = vmatpush1.bf16.msra.mxu1 %v8813_v63  ;;  %2985 = vmatprep.subr.bf16.mxu0 %v8818_v0  ;;  %v8890_v63 = vld [vmem:[%s15683_s4 + $0x2a4] ss:$48 sps:$4 sm:$0xff]  }
 0x151   :  { %3026 = vmatprep.subr.bf16.mxu1 %v8821_v3  ;;  %v8893_v0 = vld [vmem:[%s15683_s4 + $0x8a4] ss:$48 sps:$4 sm:$0xff]   ;;  %v8888_v3 = vld [vmem:[%s15683_s4 + $0x2a0] ss:$48 sps:$4 sm:$0xff]  }
 0x153   :  { %2986 = vmatpush1.bf16.msra.mxu0 %v8816_v4  ;;  %v609_v4 = vsub.s32 5, %v11205_v1 }
 0x154   :  { %3027 = vmatpush1.bf16.msra.mxu1 %v8819_v5  ;;  %2987 = vmatprep.subr.bf16.mxu0 %v8824_v6  ;;  %v11670_v5 = vld [vmem:[%s15682_s3] sm:$0xff] }
 0x155   :  { %3028 = vmatprep.subr.bf16.mxu1 %v8827_v9  ;;  %v11675_v6 = vrot.slane %v11670_v5, %v605_v62  ;;  %v8891_v9 = vld [vmem:[%s15683_s4 + $0x8a0] ss:$48 sps:$4 sm:$0xff]  }
 0x157   :  { %2988 = vmatpush1.bf16.msra.mxu0 %v8822_v10  ;;  %v8896_v10 = vld [vmem:[%s15683_s4 + $0x244] ss:$48 sps:$4 sm:$0xff]  }
 0x158   :  { %3029 = vmatpush1.bf16.msra.mxu1 %v8825_v12  ;;  %2989 = vmatprep.subr.bf16.mxu0 %v8830_v14  ;;  %v8899_v12 = vld [vmem:[%s15683_s4 + $0x844] ss:$48 sps:$4 sm:$0xff]   ;;  %v11689_v14 = vrot.slane %v11670_v5, %v609_v4 }
 0x159   :  { %3030 = vmatprep.subr.bf16.mxu1 %v8833_v15  ;;  %v8894_v15 = vld [vmem:[%s15683_s4 + $0x240] ss:$48 sps:$4 sm:$0xff]  }
 0x15b   :  { %2990 = vmatpush1.bf16.msra.mxu0 %v8828_v16 }
 0x15c   :  { %3031 = vmatpush1.bf16.msra.mxu1 %v8831_v18  ;;  %2991 = vmatprep.subr.bf16.mxu0 %v8836_v19 }
 0x15d   :  { %3032 = vmatprep.subr.bf16.mxu1 %v8839_v20  ;;  %v8897_v20 = vld [vmem:[%s15683_s4 + $0x840] ss:$48 sps:$4 sm:$0xff]  }
 0x15f   :  { %2992 = vmatpush1.bf16.msra.mxu0 %v8834_v21 }
 0x160   :  { %3033 = vmatpush1.bf16.msra.mxu1 %v8837_v22  ;;  %2993 = vmatprep.subr.bf16.mxu0 %v8842_v23  ;;  %v8902_v23 = vld [vmem:[%s15683_s4 + $0x1e4] ss:$48 sps:$4 sm:$0xff]  }
 0x161   :  { %3034 = vmatprep.subr.bf16.mxu1 %v8845_v24  ;;  %v8905_v24 = vld [vmem:[%s15683_s4 + $0x7e4] ss:$48 sps:$4 sm:$0xff]  }
 0x163   :  { %2994 = vmatpush2.bf16.msra.mxu0 %v8840_v25 }
 0x164   :  { %3035 = vmatpush2.bf16.msra.mxu1 %v8843_v26  ;;  %2995 = vmatprep.subr.bf16.mxu0 %v8848_v28  ;;  %v8900_v28 = vld [vmem:[%s15683_s4 + $0x1e0] ss:$48 sps:$4 sm:$0xff]  }
 0x165   :  { %3036 = vmatprep.subr.bf16.mxu1 %v8851_v29  ;;  %v8903_v29 = vld [vmem:[%s15683_s4 + $0x7e0] ss:$48 sps:$4 sm:$0xff]  }
 0x167   :  { %2996 = vmatpush2.bf16.msra.mxu0 %v8846_v30 }
 0x168   :  { %3037 = vmatpush2.bf16.msra.mxu1 %v8849_v31  ;;  %2997 = vmatprep.subr.bf16.mxu0 %v8854_v34 }
 0x169   :  { %3038 = vmatprep.subr.bf16.mxu1 %v8857_v35 }
 0x16b   :  { %2998 = vmatpush2.bf16.msra.mxu0 %v8852_v36 }
 0x16c   :  { %3039 = vmatpush2.bf16.msra.mxu1 %v8855_v37  ;;  %2999 = vmatprep.subr.bf16.mxu0 %v8860_v40  ;;  %v8908_v37 = vld [vmem:[%s15683_s4 + $0x184] ss:$48 sps:$4 sm:$0xff]  }
 0x16d   :  { %3040 = vmatprep.subr.bf16.mxu1 %v8863_v41  ;;  %v8911_v40 = vld [vmem:[%s15683_s4 + $0x784] ss:$48 sps:$4 sm:$0xff]   ;;  %v8906_v41 = vld [vmem:[%s15683_s4 + $0x180] ss:$48 sps:$4 sm:$0xff]  }
 0x16f   :  { %3000 = vmatpush2.bf16.msra.mxu0 %v8858_v43  ;;  %v8909_v43 = vld [vmem:[%s15683_s4 + $0x780] ss:$48 sps:$4 sm:$0xff]  }
 0x170   :  { %3041 = vmatpush2.bf16.msra.mxu1 %v8861_v44  ;;  %3001 = vmatprep.subr.bf16.mxu0 %v8866_v45  ;;  %v8914_v44 = vld [vmem:[%s15683_s4 + $0x124] ss:$48 sps:$4 sm:$0xff]  }
 0x171   :  { %3042 = vmatprep.subr.bf16.mxu1 %v8869_v46  ;;  %v8917_v45 = vld [vmem:[%s15683_s4 + $0x724] ss:$48 sps:$4 sm:$0xff]   ;;  %v8912_v46 = vld [vmem:[%s15683_s4 + $0x120] ss:$48 sps:$4 sm:$0xff]  }
 0x173   :  { %3002 = vmatpush2.bf16.msra.mxu0 %v8864_v47  ;;  %v8915_v47 = vld [vmem:[%s15683_s4 + $0x720] ss:$48 sps:$4 sm:$0xff]  }
 0x174   :  { %3043 = vmatpush2.bf16.msra.mxu1 %v8867_v7  ;;  %3003 = vmatprep.subr.bf16.mxu0 %v8872_v48  ;;  %v8920_v7 = vld [vmem:[%s15683_s4 + $0xc4] ss:$48 sps:$4 sm:$0xff]  }
 0x175   :  { %3044 = vmatprep.subr.bf16.mxu1 %v8875_v49  ;;  %v8923_v48 = vld [vmem:[%s15683_s4 + $0x6c4] ss:$48 sps:$4 sm:$0xff]   ;;  %v8918_v49 = vld [vmem:[%s15683_s4 + $0xc0] ss:$48 sps:$4 sm:$0xff]  }
 0x177   :  { %3004 = vmatpush2.bf16.msra.mxu0 %v8870_v50  ;;  %v8921_v50 = vld [vmem:[%s15683_s4 + $0x6c0] ss:$48 sps:$4 sm:$0xff]  }
 0x178   :  { %3045 = vmatpush2.bf16.msra.mxu1 %v8873_v52  ;;  %3005 = vmatprep.subr.bf16.mxu0 %v8878_v53  ;;  %v8926_v52 = vld [vmem:[%s15683_s4 + $0x64] ss:$48 sps:$4 sm:$0xff]  }
 0x179   :  { %3046 = vmatprep.subr.bf16.mxu1 %v8881_v54  ;;  %v8929_v53 = vld [vmem:[%s15683_s4 + $0x664] ss:$48 sps:$4 sm:$0xff]   ;;  %v8924_v54 = vld [vmem:[%s15683_s4 + $0x60] ss:$48 sps:$4 sm:$0xff]  }
 0x17b   :  { %3006 = vmatpush2.bf16.msra.mxu0 %v8876_v55  ;;  %v8927_v55 = vld [vmem:[%s15683_s4 + $0x660] ss:$48 sps:$4 sm:$0xff]  }
 0x17c   :  { %3047 = vmatpush2.bf16.msra.mxu1 %v8879_v56  ;;  %3007 = vmatprep.subr.bf16.mxu0 %v8884_v58  ;;  %v8932_v56 = vld [vmem:[%s15683_s4 + $0x4] ss:$48 sps:$4 sm:$0xff]  }
 0x17d   :  { %3048 = vmatprep.subr.bf16.mxu1 %v8887_v59  ;;  %v8935_v58 = vld [vmem:[%s15683_s4 + $0x604] ss:$48 sps:$4 sm:$0xff]   ;;  %v8930_v59 = vld [vmem:[%s15683_s4] ss:$48 sps:$4 sm:$0xff]  }
 0x17f   :  { %3008 = vmatpush2.bf16.msra.mxu0 %v8882_v60  ;;  %v8933_v60 = vld [vmem:[%s15683_s4 + $0x600] ss:$48 sps:$4 sm:$0xff]  }
 0x180   :  { %3049 = vmatpush2.bf16.msra.mxu1 %v8885_v61  ;;  %5528 = vmatprep.subr.bf16.mxu0 %v8890_v63  ;;  %v8938_v61 = vld [vmem:[%s15683_s4 + $0x5a4] ss:$48 sps:$4 sm:$0xff]  }
 0x181   :  { %5569 = vmatprep.subr.bf16.mxu1 %v8893_v0  ;;  %v8941_v63 = vld [vmem:[%s15683_s4 + $0xba4] ss:$48 sps:$4 sm:$0xff]   ;;  %v8936_v0 = vld [vmem:[%s15683_s4 + $0x5a0] ss:$48 sps:$4 sm:$0xff]  }
 0x182   :  { %v2765_v16 = vpop.f32.mrf.mxu0  ;;  %3010 = vmatmul.mubr.bf16.vlgmr.msra.gmra.mxu0 %v10393_v2 }
 0x183   :  { %v2806_v18 = vpop.f32.mrf.mxu1  ;;  %3051 = vmatmul.mubr.bf16.vlgmr.msra.gmra.mxu1 %v10393_v2  ;;  %v2766_v19 = vadd.f32 %v2765_v16, %v11675_v6  ;;  %5529 = vmatpush1.bf16.msra.mxu0 %v8888_v3  ;;  %v8939_v3 = vld [vmem:[%s15683_s4 + $0xba0] ss:$48 sps:$4 sm:$0xff]   ;;  %v8950_v16 = vld [vmem:[%s15683_s4 + $0x4e4] ss:$48 sps:$4 sm:$0xff]  }
 0x184   :  { %5570 = vmatpush1.bf16.msra.mxu1 %v8891_v9  ;;  %v2767_v21 = vpop.f32.mrf.mxu0  ;;  %5530 = vmatprep.subr.bf16.mxu0 %v8896_v10  ;;  %v8944_v9 = vld [vmem:[%s15683_s4 + $0x544] ss:$48 sps:$4 sm:$0xff]  }
 0x185   :  { %v2808_v22 = vpop.f32.mrf.mxu1  ;;  %5571 = vmatprep.subr.bf16.mxu1 %v8899_v12  ;;  %v11706_v25 = vadd.f32 %v2806_v18, %v2766_v19  ;;  %v2768_v26 = vadd.f32 %v2767_v21, %v11689_v14  ;;  %5560 = vmatprep.mubr.bf16.mxu0 %v10393_v2  ;;  %v8947_v10 = vld [vmem:[%s15683_s4 + $0xb44] ss:$48 sps:$4 sm:$0xff]   ;;  %v8942_v12 = vld [vmem:[%s15683_s4 + $0x540] ss:$48 sps:$4 sm:$0xff]  }
 0x186   :  { %5601 = vmatprep.mubr.bf16.mxu1 %v10393_v2  ;;  %v2769_v30 = vpop.f32.mrf.mxu0  ;;  %v8953_v18 = vld [vmem:[%s15683_s4 + $0xae4] ss:$48 sps:$4 sm:$0xff]   ;;  %v8948_v19 = vld [vmem:[%s15683_s4 + $0x4e0] ss:$48 sps:$4 sm:$0xff]  }
 0x187   :  { %v2810_v31 = vpop.f32.mrf.mxu1  ;;  %v11717_v34 = vadd.f32 %v2808_v22, %v2768_v26  ;;  %5531 = vmatpush1.bf16.msra.mxu0 %v8894_v15  ;;  %v8945_v15 = vld [vmem:[%s15683_s4 + $0xb40] ss:$48 sps:$4 sm:$0xff]   ;;  %v8956_v21 = vld [vmem:[%s15683_s4 + $0x484] ss:$48 sps:$4 sm:$0xff]  }
 0x188   :  { %5572 = vmatpush1.bf16.msra.mxu1 %v8897_v20  ;;  %v2770_v35 = vpop.f32.mrf.mxu0  ;;  %5532 = vmatprep.subr.bf16.mxu0 %v8902_v23  ;;  %v8951_v20 = vld [vmem:[%s15683_s4 + $0xae0] ss:$48 sps:$4 sm:$0xff]   ;;  %v8959_v22 = vld [vmem:[%s15683_s4 + $0xa84] ss:$48 sps:$4 sm:$0xff]  }
 0x189   :  { %v2811_v36 = vpop.f32.mrf.mxu1  ;;  %5573 = vmatprep.subr.bf16.mxu1 %v8905_v24  ;;  %v8954_v23 = vld [vmem:[%s15683_s4 + $0x480] ss:$48 sps:$4 sm:$0xff]   ;;  %v8962_v26 = vld [vmem:[%s15683_s4 + $0x424] ss:$48 sps:$4 sm:$0xff]  }
 0x18a   :  { %v8957_v24 = vld [vmem:[%s15683_s4 + $0xa80] ss:$48 sps:$4 sm:$0xff]   ;;  %v8968_v31 = vld [vmem:[%s15683_s4 + $0x3c4] ss:$48 sps:$4 sm:$0xff]  }
 0x18b   :  { %5533 = vmatpush1.bf16.msra.mxu0 %v8900_v28  ;;  %v8965_v28 = vld [vmem:[%s15683_s4 + $0xa24] ss:$48 sps:$4 sm:$0xff]   ;;  %v8963_v30 = vld [vmem:[%s15683_s4 + $0xa20] ss:$48 sps:$4 sm:$0xff]  }
 0x18c   :  { %5574 = vmatpush1.bf16.msra.mxu1 %v8903_v29  ;;  %5534 = vmatprep.subr.bf16.mxu0 %v8908_v37  ;;  %v8960_v29 = vld [vmem:[%s15683_s4 + $0x420] ss:$48 sps:$4 sm:$0xff]   ;;  %v8971_v35 = vld [vmem:[%s15683_s4 + $0x9c4] ss:$48 sps:$4 sm:$0xff]  }
 0x18d   :  { %5575 = vmatprep.subr.bf16.mxu1 %v8911_v40  ;;  %v8966_v36 = vld [vmem:[%s15683_s4 + $0x3c0] ss:$48 sps:$4 sm:$0xff]   ;;  %v8974_v40 = vld [vmem:[%s15683_s4 + $0x364] ss:$48 sps:$4 sm:$0xff]  }
 0x18e   :  { %v8969_v37 = vld [vmem:[%s15683_s4 + $0x9c0] ss:$48 sps:$4 sm:$0xff]  }
 0x18f   :  { %5535 = vmatpush1.bf16.msra.mxu0 %v8906_v41  ;;  %v8977_v41 = vld [vmem:[%s15683_s4 + $0x964] ss:$48 sps:$4 sm:$0xff]  }
 0x190   :  { %5576 = vmatpush1.bf16.msra.mxu1 %v8909_v43  ;;  %5536 = vmatprep.subr.bf16.mxu0 %v8914_v44  ;;  %v8972_v43 = vld [vmem:[%s15683_s4 + $0x360] ss:$48 sps:$4 sm:$0xff]  }
 0x191   :  { %5577 = vmatprep.subr.bf16.mxu1 %v8917_v45  ;;  %v8975_v44 = vld [vmem:[%s15683_s4 + $0x960] ss:$48 sps:$4 sm:$0xff]   ;;  %v8980_v45 = vld [vmem:[%s15683_s4 + $0x304] ss:$48 sps:$4 sm:$0xff]  }
 0x193   :  { %5537 = vmatpush1.bf16.msra.mxu0 %v8912_v46  ;;  %v8983_v46 = vld [vmem:[%s15683_s4 + $0x904] ss:$48 sps:$4 sm:$0xff]  }
 0x194   :  { %5578 = vmatpush1.bf16.msra.mxu1 %v8915_v47  ;;  %5538 = vmatprep.subr.bf16.mxu0 %v8920_v7  ;;  %v8978_v47 = vld [vmem:[%s15683_s4 + $0x300] ss:$48 sps:$4 sm:$0xff]  }
 0x195   :  { %5579 = vmatprep.subr.bf16.mxu1 %v8923_v48  ;;  %v8981_v7 = vld [vmem:[%s15683_s4 + $0x900] ss:$48 sps:$4 sm:$0xff]   ;;  %v613_v48 = vsub.s32 6, %v11205_v1 }
 0x197   :  { %5539 = vmatpush1.bf16.msra.mxu0 %v8918_v49  ;;  %v8986_v49 = vld [vmem:[%s15683_s4 + $0x2ac] ss:$48 sps:$4 sm:$0xff]  }
 0x198   :  { %5580 = vmatpush1.bf16.msra.mxu1 %v8921_v50  ;;  %5540 = vmatprep.subr.bf16.mxu0 %v8926_v52  ;;  %v8989_v50 = vld [vmem:[%s15683_s4 + $0x8ac] ss:$48 sps:$4 sm:$0xff]   ;;  %v8984_v52 = vld [vmem:[%s15683_s4 + $0x2a8] ss:$48 sps:$4 sm:$0xff]  }
 0x199   :  { %5581 = vmatprep.subr.bf16.mxu1 %v8929_v53  ;;  %v8987_v53 = vld [vmem:[%s15683_s4 + $0x8a8] ss:$48 sps:$4 sm:$0xff]  }
 0x19b   :  { %5541 = vmatpush1.bf16.msra.mxu0 %v8924_v54  ;;  %v617_v54 = vsub.s32 7, %v11205_v1 }
 0x19c   :  { %5582 = vmatpush1.bf16.msra.mxu1 %v8927_v55  ;;  %5542 = vmatprep.subr.bf16.mxu0 %v8932_v56  ;;  %v11892_v55 = vrot.slane %v11670_v5, %v613_v48  ;;  %v8992_v56 = vld [vmem:[%s15683_s4 + $0x24c] ss:$48 sps:$4 sm:$0xff]  }
 0x19d   :  { %5583 = vmatprep.subr.bf16.mxu1 %v8935_v58  ;;  %v8995_v58 = vld [vmem:[%s15683_s4 + $0x84c] ss:$48 sps:$4 sm:$0xff]  }
 0x19f   :  { %5543 = vmatpush1.bf16.msra.mxu0 %v8930_v59  ;;  %v11903_v59 = vrot.slane %v11670_v5, %v617_v54 }
 0x1a0   :  { %5584 = vmatpush1.bf16.msra.mxu1 %v8933_v60  ;;  %5544 = vmatprep.subr.bf16.mxu0 %v8938_v61  ;;  %v8990_v60 = vld [vmem:[%s15683_s4 + $0x248] ss:$48 sps:$4 sm:$0xff]  }
 0x1a1   :  { %5585 = vmatprep.subr.bf16.mxu1 %v8941_v63 }
 0x1a3   :  { %5545 = vmatpush2.bf16.msra.mxu0 %v8936_v0 }
 0x1a4   :  { %5586 = vmatpush2.bf16.msra.mxu1 %v8939_v3  ;;  %5546 = vmatprep.subr.bf16.mxu0 %v8944_v9  ;;  %v8993_v3 = vld [vmem:[%s15683_s4 + $0x848] ss:$48 sps:$4 sm:$0xff]  }
 0x1a5   :  { %5587 = vmatprep.subr.bf16.mxu1 %v8947_v10  ;;  %v8998_v10 = vld [vmem:[%s15683_s4 + $0x1ec] ss:$48 sps:$4 sm:$0xff]  }
 0x1a7   :  { %5547 = vmatpush2.bf16.msra.mxu0 %v8942_v12  ;;  %v9001_v12 = vld [vmem:[%s15683_s4 + $0x7ec] ss:$48 sps:$4 sm:$0xff]  }
 0x1a8   :  { %5588 = vmatpush2.bf16.msra.mxu1 %v8945_v15  ;;  %5548 = vmatprep.subr.bf16.mxu0 %v8950_v16 }
 0x1a9   :  { %5589 = vmatprep.subr.bf16.mxu1 %v8953_v18  ;;  %v8996_v18 = vld [vmem:[%s15683_s4 + $0x1e8] ss:$48 sps:$4 sm:$0xff]  }
 0x1ab   :  { %5549 = vmatpush2.bf16.msra.mxu0 %v8948_v19 }
 0x1ac   :  { %5590 = vmatpush2.bf16.msra.mxu1 %v8951_v20  ;;  %5550 = vmatprep.subr.bf16.mxu0 %v8956_v21 }
 0x1ad   :  { %5591 = vmatprep.subr.bf16.mxu1 %v8959_v22  ;;  %v8999_v22 = vld [vmem:[%s15683_s4 + $0x7e8] ss:$48 sps:$4 sm:$0xff]  }
 0x1af   :  { %5551 = vmatpush2.bf16.msra.mxu0 %v8954_v23 }
 0x1b0   :  { %5592 = vmatpush2.bf16.msra.mxu1 %v8957_v24  ;;  %5552 = vmatprep.subr.bf16.mxu0 %v8962_v26  ;;  %v9004_v26 = vld [vmem:[%s15683_s4 + $0x18c] ss:$48 sps:$4 sm:$0xff]  }
 0x1b1   :  { %5593 = vmatprep.subr.bf16.mxu1 %v8965_v28  ;;  %v9007_v28 = vld [vmem:[%s15683_s4 + $0x78c] ss:$48 sps:$4 sm:$0xff]  }
 0x1b3   :  { %5553 = vmatpush2.bf16.msra.mxu0 %v8960_v29  ;;  %v9002_v29 = vld [vmem:[%s15683_s4 + $0x188] ss:$48 sps:$4 sm:$0xff]  }
 0x1b4   :  { %5594 = vmatpush2.bf16.msra.mxu1 %v8963_v30  ;;  %5554 = vmatprep.subr.bf16.mxu0 %v8968_v31  ;;  %v9005_v30 = vld [vmem:[%s15683_s4 + $0x788] ss:$48 sps:$4 sm:$0xff]   ;;  %v9010_v31 = vld [vmem:[%s15683_s4 + $0x12c] ss:$48 sps:$4 sm:$0xff]  }
 0x1b5   :  { %5595 = vmatprep.subr.bf16.mxu1 %v8971_v35  ;;  %v9013_v35 = vld [vmem:[%s15683_s4 + $0x72c] ss:$48 sps:$4 sm:$0xff]  }
 0x1b7   :  { %5555 = vmatpush2.bf16.msra.mxu0 %v8966_v36  ;;  %v9008_v36 = vld [vmem:[%s15683_s4 + $0x128] ss:$48 sps:$4 sm:$0xff]  }
 0x1b8   :  { %5596 = vmatpush2.bf16.msra.mxu1 %v8969_v37  ;;  %5556 = vmatprep.subr.bf16.mxu0 %v8974_v40  ;;  %v9011_v37 = vld [vmem:[%s15683_s4 + $0x728] ss:$48 sps:$4 sm:$0xff]   ;;  %v9016_v40 = vld [vmem:[%s15683_s4 + $0xcc] ss:$48 sps:$4 sm:$0xff]  }
 0x1b9   :  { %5597 = vmatprep.subr.bf16.mxu1 %v8977_v41  ;;  %v9019_v41 = vld [vmem:[%s15683_s4 + $0x6cc] ss:$48 sps:$4 sm:$0xff]  }
 0x1bb   :  { %5557 = vmatpush2.bf16.msra.mxu0 %v8972_v43  ;;  %v9014_v43 = vld [vmem:[%s15683_s4 + $0xc8] ss:$48 sps:$4 sm:$0xff]  }
 0x1bc   :  { %5598 = vmatpush2.bf16.msra.mxu1 %v8975_v44  ;;  %5558 = vmatprep.subr.bf16.mxu0 %v8980_v45  ;;  %v9017_v44 = vld [vmem:[%s15683_s4 + $0x6c8] ss:$48 sps:$4 sm:$0xff]   ;;  %v9022_v45 = vld [vmem:[%s15683_s4 + $0x6c] ss:$48 sps:$4 sm:$0xff]  }
 0x1bd   :  { %5599 = vmatprep.subr.bf16.mxu1 %v8983_v46  ;;  %v9025_v46 = vld [vmem:[%s15683_s4 + $0x66c] ss:$48 sps:$4 sm:$0xff]  }
 0x1bf   :  { %5559 = vmatpush2.bf16.msra.mxu0 %v8978_v47  ;;  %v9020_v47 = vld [vmem:[%s15683_s4 + $0x68] ss:$48 sps:$4 sm:$0xff]  }
 0x1c0   :  { %5600 = vmatpush2.bf16.msra.mxu1 %v8981_v7  ;;  %5610 = vmatprep.subr.bf16.mxu0 %v8986_v49  ;;  %v9023_v7 = vld [vmem:[%s15683_s4 + $0x668] ss:$48 sps:$4 sm:$0xff]   ;;  %v9028_v49 = vld [vmem:[%s15683_s4 + $0xc] ss:$48 sps:$4 sm:$0xff]  }
 0x1c1   :  { %5651 = vmatprep.subr.bf16.mxu1 %v8989_v50  ;;  %v9031_v50 = vld [vmem:[%s15683_s4 + $0x60c] ss:$48 sps:$4 sm:$0xff]  }
 0x1c2   :  { %v2847_v61 = vpop.f32.mrf.mxu0  ;;  %5561 = vmatmul.mubr.bf16.vlgmr.msra.gmra.mxu0 %v10393_v2 }
 0x1c3   :  { %v2888_v63 = vpop.f32.mrf.mxu1  ;;  %5602 = vmatmul.mubr.bf16.vlgmr.msra.gmra.mxu1 %v10393_v2  ;;  %v2848_v0 = vadd.f32 %v2847_v61, %v11892_v55  ;;  %5611 = vmatpush1.bf16.msra.mxu0 %v8984_v52  ;;  %v27_v52 = vld [vmem:[%s15679_s0] sm:$0xff]  ;;  %v9037_v61 = vld [vmem:[%s15683_s4 + $0xbac] ss:$48 sps:$4 sm:$0xff]  }
 0x1c4   :  { %5652 = vmatpush1.bf16.msra.mxu1 %v8987_v53  ;;  %v2849_v5 = vpop.f32.mrf.mxu0  ;;  %5612 = vmatprep.subr.bf16.mxu0 %v8992_v56  ;;  %v9026_v53 = vld [vmem:[%s15683_s4 + $0x8] ss:$48 sps:$4 sm:$0xff]  }
 0x1c5   :  { %v2890_v9 = vpop.f32.mrf.mxu1  ;;  %5653 = vmatprep.subr.bf16.mxu1 %v8995_v58  ;;  %v11920_v15 = vadd.f32 %v2888_v63, %v2848_v0  ;;  %v2850_v16 = vadd.f32 %v2849_v5, %v11903_v59  ;;  %5642 = vmatprep.mubr.bf16.mxu0 %v10393_v2  ;;  %v9029_v56 = vld [vmem:[%s15683_s4 + $0x608] ss:$48 sps:$4 sm:$0xff]   ;;  %v3059_v63 = vadd.f32 %v11271_v27, %v27_v52  ;;  %v9043_v27 = vld [vmem:[%s15683_s4 + $0xb4c] ss:$48 sps:$4 sm:$0xff]  }
 0x1c6   :  { %5683 = vmatprep.mubr.bf16.mxu1 %v10393_v2  ;;  %v2851_v19 = vpop.f32.mrf.mxu0  ;;  %v29_v58 = vld [vmem:[%s15679_s0 + $0x8] sm:$0xff] }
 0x1c7   :  { %v2892_v20 = vpop.f32.mrf.mxu1  ;;  %v11928_v21 = vadd.f32 %v2890_v9, %v2850_v16  ;;  %5613 = vmatpush1.bf16.msra.mxu0 %v8990_v60  ;;  %v9034_v60 = vld [vmem:[%s15683_s4 + $0x5ac] ss:$48 sps:$4 sm:$0xff]   ;;  %v3060_v0 = vadd.f32 %v11282_v33, %v29_v58  ;;  %v9035_v5 = vld [vmem:[%s15683_s4 + $0xba8] ss:$48 sps:$4 sm:$0xff]   ;;  %v7894_v33 = vmul.f32 -1.442695, %v3059_v63 }
 0x1c8   :  { %5654 = vmatpush1.bf16.msra.mxu1 %v8993_v3  ;;  %v2852_v23 = vpop.f32.mrf.mxu0  ;;  %5614 = vmatprep.subr.bf16.mxu0 %v8998_v10  ;;  %v9032_v3 = vld [vmem:[%s15683_s4 + $0x5a8] ss:$48 sps:$4 sm:$0xff]   ;;  %v9040_v9 = vld [vmem:[%s15683_s4 + $0x54c] ss:$48 sps:$4 sm:$0xff]  }
 0x1c9   :  { %v2893_v24 = vpop.f32.mrf.mxu1  ;;  %5655 = vmatprep.subr.bf16.mxu1 %v9001_v12  ;;  %v7895_v10 = vmul.f32 -1.442695, %v3060_v0  ;;  %v9038_v12 = vld [vmem:[%s15683_s4 + $0x548] ss:$48 sps:$4 sm:$0xff]   ;;  %v9049_v19 = vld [vmem:[%s15683_s4 + $0xaec] ss:$48 sps:$4 sm:$0xff]   ;;  %9464 = vpow2.f32 %v7894_v33 }
 0x1ca   :  { %v9041_v16 = vld [vmem:[%s15683_s4 + $0xb48] ss:$48 sps:$4 sm:$0xff]   ;;  %v35_v23 = vld [vmem:[%s15679_s0 + $0x20] sm:$0xff]  ;;  %v9052_v24 = vld [vmem:[%s15683_s4 + $0x48c] ss:$48 sps:$4 sm:$0xff]  }
 0x1cb   :  { %5615 = vmatpush1.bf16.msra.mxu0 %v8996_v18  ;;  %v9046_v18 = vld [vmem:[%s15683_s4 + $0x4ec] ss:$48 sps:$4 sm:$0xff]   ;;  %9466 = vpow2.f32 %v7895_v10  ;;  %v9044_v20 = vld [vmem:[%s15683_s4 + $0x4e8] ss:$48 sps:$4 sm:$0xff]   ;;  %v9080_v33 = vld [vmem:[%s15683_s4 + $0x2b0] ss:$48 sps:$4 sm:$0xff]  }
 0x1cc   :  { %5656 = vmatpush1.bf16.msra.mxu1 %v8999_v22  ;;  %5616 = vmatprep.subr.bf16.mxu0 %v9004_v26  ;;  %v9047_v22 = vld [vmem:[%s15683_s4 + $0xae8] ss:$48 sps:$4 sm:$0xff]   ;;  %v9055_v26 = vld [vmem:[%s15683_s4 + $0xa8c] ss:$48 sps:$4 sm:$0xff]   ;;  %v9083_v10 = vld [vmem:[%s15683_s4 + $0x8b0] ss:$48 sps:$4 sm:$0xff]  }
 0x1cd   :  { %5657 = vmatprep.subr.bf16.mxu1 %v9007_v28  ;;  %v37_v28 = vld [vmem:[%s15679_s0 + $0x28] sm:$0xff] }
 0x1ce   :  { %v9071_v58 = vld [vmem:[%s15683_s4 + $0x968] ss:$48 sps:$4 sm:$0xff]  }
 0x1cf   :  { %5617 = vmatpush1.bf16.msra.mxu0 %v9002_v29  ;;  %v3087_v29 = vadd.f32 %v11706_v25, %v35_v23  ;;  %v9061_v25 = vld [vmem:[%s15683_s4 + $0xa2c] ss:$48 sps:$4 sm:$0xff]   ;;  %v9074_v63 = vld [vmem:[%s15683_s4 + $0x308] ss:$48 sps:$4 sm:$0xff]  }
 0x1d0   :  { %5658 = vmatpush1.bf16.msra.mxu1 %v9005_v30  ;;  %5618 = vmatprep.subr.bf16.mxu0 %v9010_v31  ;;  %v9050_v30 = vld [vmem:[%s15683_s4 + $0x488] ss:$48 sps:$4 sm:$0xff]  }
 0x1d1   :  { %5659 = vmatprep.subr.bf16.mxu1 %v9013_v35  ;;  %v9053_v31 = vld [vmem:[%s15683_s4 + $0xa88] ss:$48 sps:$4 sm:$0xff]   ;;  %v9058_v35 = vld [vmem:[%s15683_s4 + $0x42c] ss:$48 sps:$4 sm:$0xff]  }
 0x1d2   :  { %v9077_v0 = vld [vmem:[%s15683_s4 + $0x908] ss:$48 sps:$4 sm:$0xff]  }
 0x1d3   :  { %5619 = vmatpush1.bf16.msra.mxu0 %v9008_v36  ;;  %v3088_v36 = vadd.f32 %v11717_v34, %v37_v28  ;;  %v9067_v34 = vld [vmem:[%s15683_s4 + $0x9cc] ss:$48 sps:$4 sm:$0xff]   ;;  %v9086_v28 = vld [vmem:[%s15683_s4 + $0x250] ss:$48 sps:$4 sm:$0xff]  }
 0x1d4   :  { %5660 = vmatpush1.bf16.msra.mxu1 %v9011_v37  ;;  %5620 = vmatprep.subr.bf16.mxu0 %v9016_v40  ;;  %v7898_v37 = vmul.f32 -1.442695, %v3087_v29  ;;  %v9056_v40 = vld [vmem:[%s15683_s4 + $0x428] ss:$48 sps:$4 sm:$0xff]   ;;  %v9089_v29 = vld [vmem:[%s15683_s4 + $0x850] ss:$48 sps:$4 sm:$0xff]  }
 0x1d5   :  { %5661 = vmatprep.subr.bf16.mxu1 %v9019_v41  ;;  %v9059_v41 = vld [vmem:[%s15683_s4 + $0xa28] ss:$48 sps:$4 sm:$0xff]  }
 0x1d6   :  { %9468 = vpow2.f32 %v7898_v37 }
 0x1d7   :  { %5621 = vmatpush1.bf16.msra.mxu0 %v9014_v43  ;;  %v9064_v43 = vld [vmem:[%s15683_s4 + $0x3cc] ss:$48 sps:$4 sm:$0xff]  }
 0x1d8   :  { %5662 = vmatpush1.bf16.msra.mxu1 %v9017_v44  ;;  %5622 = vmatprep.subr.bf16.mxu0 %v9022_v45  ;;  %v7899_v44 = vmul.f32 -1.442695, %v3088_v36  ;;  %v9465_v45 = vpop.eup %9464 }
 0x1d9   :  { %5663 = vmatprep.subr.bf16.mxu1 %v9025_v46  ;;  %v9062_v46 = vld [vmem:[%s15683_s4 + $0x3c8] ss:$48 sps:$4 sm:$0xff]   ;;  %v3075_v52 = vadd.f32 1.0, %v9465_v45 }
 0x1da   :  { %9470 = vpow2.f32 %v7899_v44 }
 0x1db   :  { %5623 = vmatpush1.bf16.msra.mxu0 %v9020_v47  ;;  %v9065_v47 = vld [vmem:[%s15683_s4 + $0x9c8] ss:$48 sps:$4 sm:$0xff]   ;;  %9472 = vrcp.f32 %v3075_v52 }
 0x1dc   :  { %5664 = vmatpush1.bf16.msra.mxu1 %v9023_v7  ;;  %5624 = vmatprep.subr.bf16.mxu0 %v9028_v49  ;;  %v9467_v7 = vpop.eup %9466  ;;  %v9070_v49 = vld [vmem:[%s15683_s4 + $0x36c] ss:$48 sps:$4 sm:$0xff]  }
 0x1dd   :  { %5665 = vmatprep.subr.bf16.mxu1 %v9031_v50  ;;  %v9073_v50 = vld [vmem:[%s15683_s4 + $0x96c] ss:$48 sps:$4 sm:$0xff]  }
 0x1df   :  { %5625 = vmatpush1.bf16.msra.mxu0 %v9026_v53  ;;  %v3076_v53 = vadd.f32 1.0, %v9467_v7  ;;  %v9095_v7 = vld [vmem:[%s15683_s4 + $0x7f0] ss:$48 sps:$4 sm:$0xff]  }
 0x1e0   :  { %5666 = vmatpush1.bf16.msra.mxu1 %v9029_v56  ;;  %5626 = vmatprep.subr.bf16.mxu0 %v9034_v60  ;;  %v9068_v56 = vld [vmem:[%s15683_s4 + $0x368] ss:$48 sps:$4 sm:$0xff]   ;;  %v9076_v60 = vld [vmem:[%s15683_s4 + $0x30c] ss:$48 sps:$4 sm:$0xff]  }
 0x1e1   :  { %5667 = vmatprep.subr.bf16.mxu1 %v9037_v61  ;;  %v9079_v61 = vld [vmem:[%s15683_s4 + $0x90c] ss:$48 sps:$4 sm:$0xff]   ;;  %9474 = vrcp.f32 %v3076_v53 }
 0x1e3   :  { %5627 = vmatpush2.bf16.msra.mxu0 %v9032_v3  ;;  %v12108_v3 = vld [vmem:[%s15682_s3 + $0x8] sm:$0xf] }
 0x1e4   :  { %5668 = vmatpush2.bf16.msra.mxu1 %v9035_v5  ;;  %5628 = vmatprep.subr.bf16.mxu0 %v9040_v9  ;;  %v9082_v5 = vld [vmem:[%s15683_s4 + $0x2b4] ss:$48 sps:$4 sm:$0xff]  }
 0x1e5   :  { %5669 = vmatprep.subr.bf16.mxu1 %v9043_v27  ;;  %v9085_v9 = vld [vmem:[%s15683_s4 + $0x8b4] ss:$48 sps:$4 sm:$0xff]   ;;  %v12118_v27 = vrot.slane %v12108_v3, %v11225_v8 }
 0x1e7   :  { %5629 = vmatpush2.bf16.msra.mxu0 %v9038_v12  ;;  %v9469_v12 = vpop.eup %9468 }
 0x1e8   :  { %5670 = vmatpush2.bf16.msra.mxu1 %v9041_v16  ;;  %5630 = vmatprep.subr.bf16.mxu0 %v9046_v18  ;;  %v9088_v16 = vld [vmem:[%s15683_s4 + $0x254] ss:$48 sps:$4 sm:$0xff]  }
 0x1e9   :  { %5671 = vmatprep.subr.bf16.mxu1 %v9049_v19  ;;  %v9091_v18 = vld [vmem:[%s15683_s4 + $0x854] ss:$48 sps:$4 sm:$0xff]   ;;  %v12134_v19 = vrot.slane %v12108_v3, %v11234_v11 }
 0x1eb   :  { %5631 = vmatpush2.bf16.msra.mxu0 %v9044_v20  ;;  %v9471_v20 = vpop.eup %9470 }
 0x1ec   :  { %5672 = vmatpush2.bf16.msra.mxu1 %v9047_v22  ;;  %5632 = vmatprep.subr.bf16.mxu0 %v9052_v24  ;;  %v3103_v24 = vadd.f32 1.0, %v9469_v12  ;;  %v3104_v36 = vadd.f32 1.0, %v9471_v20  ;;  %v9107_v12 = vld [vmem:[%s15683_s4 + $0x730] ss:$48 sps:$4 sm:$0xff]  }
 0x1ed   :  { %5673 = vmatprep.subr.bf16.mxu1 %v9055_v26  ;;  %v9110_v20 = vld [vmem:[%s15683_s4 + $0xd0] ss:$48 sps:$4 sm:$0xff]  }
 0x1ee   :  { %9476 = vrcp.f32 %v3103_v24  ;;  %v9118_v24 = vld [vmem:[%s15683_s4 + $0x74] ss:$48 sps:$4 sm:$0xff]  }
 0x1ef   :  { %5633 = vmatpush2.bf16.msra.mxu0 %v9050_v30  ;;  %9478 = vrcp.f32 %v3104_v36  ;;  %v9127_v36 = vld [vmem:[%s15683_s4 + $0x614] ss:$48 sps:$4 sm:$0xff]  }
 0x1f0   :  { %5674 = vmatpush2.bf16.msra.mxu1 %v9053_v31  ;;  %5634 = vmatprep.subr.bf16.mxu0 %v9058_v35  ;;  %v9094_v35 = vld [vmem:[%s15683_s4 + $0x1f4] ss:$48 sps:$4 sm:$0xff]  }
 0x1f1   :  { %5675 = vmatprep.subr.bf16.mxu1 %v9061_v25  ;;  %v9097_v25 = vld [vmem:[%s15683_s4 + $0x7f4] ss:$48 sps:$4 sm:$0xff]  }
 0x1f3   :  { %5635 = vmatpush2.bf16.msra.mxu0 %v9056_v40 }
 0x1f4   :  { %5676 = vmatpush2.bf16.msra.mxu1 %v9059_v41  ;;  %5636 = vmatprep.subr.bf16.mxu0 %v9064_v43  ;;  %v9473_v41 = vpop.eup %9472  ;;  %v43_v43 = vld [vmem:[%s15679_s0 + $0x40] sm:$0xff] }
 0x1f5   :  { %5677 = vmatprep.subr.bf16.mxu1 %v9067_v34 }
 0x1f7   :  { %5637 = vmatpush2.bf16.msra.mxu0 %v9062_v46 }
 0x1f8   :  { %5678 = vmatpush2.bf16.msra.mxu1 %v9065_v47  ;;  %5638 = vmatprep.subr.bf16.mxu0 %v9070_v49  ;;  %v9092_v47 = vld [vmem:[%s15683_s4 + $0x1f0] ss:$48 sps:$4 sm:$0xff]   ;;  %v9475_v49 = vpop.eup %9474 }
 0x1f9   :  { %5679 = vmatprep.subr.bf16.mxu1 %v9073_v50  ;;  %v45_v50 = vld [vmem:[%s15679_s0 + $0x48] sm:$0xff] }
 0x1fb   :  { %5639 = vmatpush2.bf16.msra.mxu0 %v9068_v56  ;;  %v9100_v56 = vld [vmem:[%s15683_s4 + $0x194] ss:$48 sps:$4 sm:$0xff]  }
 0x1fc   :  { %5680 = vmatpush2.bf16.msra.mxu1 %v9071_v58  ;;  %5640 = vmatprep.subr.bf16.mxu0 %v9076_v60  ;;  %v9103_v58 = vld [vmem:[%s15683_s4 + $0x794] ss:$48 sps:$4 sm:$0xff]  }
 0x1fd   :  { %5681 = vmatprep.subr.bf16.mxu1 %v9079_v61 }
 0x1ff   :  { %5641 = vmatpush2.bf16.msra.mxu0 %v9074_v63 }
 0x200   :  { %5682 = vmatpush2.bf16.msra.mxu1 %v9077_v0  ;;  %5692 = vmatprep.subr.bf16.mxu0 %v9082_v5  ;;  %v9098_v0 = vld [vmem:[%s15683_s4 + $0x190] ss:$48 sps:$4 sm:$0xff]  }
 0x201   :  { %5733 = vmatprep.subr.bf16.mxu1 %v9085_v9  ;;  %v9101_v5 = vld [vmem:[%s15683_s4 + $0x790] ss:$48 sps:$4 sm:$0xff]   ;;  %v9106_v9 = vld [vmem:[%s15683_s4 + $0x134] ss:$48 sps:$4 sm:$0xff]  }
 0x202   :  { %v2929_v22 = vpop.f32.mrf.mxu0  ;;  %5643 = vmatmul.mubr.bf16.vlgmr.msra.gmra.mxu0 %v10393_v2 }
 0x203   :  { %v2970_v23 = vpop.f32.mrf.mxu1  ;;  %5684 = vmatmul.mubr.bf16.vlgmr.msra.gmra.mxu1 %v10393_v2  ;;  %v2930_v26 = vadd.f32 %v2929_v22, %v12118_v27  ;;  %5693 = vmatpush1.bf16.msra.mxu0 %v9080_v33  ;;  %v9109_v33 = vld [vmem:[%s15683_s4 + $0x734] ss:$48 sps:$4 sm:$0xff]   ;;  %v9113_v22 = vld [vmem:[%s15683_s4 + $0x6d0] ss:$48 sps:$4 sm:$0xff]  }
 0x204   :  { %5734 = vmatpush1.bf16.msra.mxu1 %v9083_v10  ;;  %v2931_v30 = vpop.f32.mrf.mxu0  ;;  %5694 = vmatprep.subr.bf16.mxu0 %v9088_v16  ;;  %v9104_v10 = vld [vmem:[%s15683_s4 + $0x130] ss:$48 sps:$4 sm:$0xff]   ;;  %v9112_v16 = vld [vmem:[%s15683_s4 + $0xd4] ss:$48 sps:$4 sm:$0xff]  }
 0x205   :  { %v2972_v31 = vpop.f32.mrf.mxu1  ;;  %5735 = vmatprep.subr.bf16.mxu1 %v9091_v18  ;;  %v2971_v37 = vadd.f32 %v2970_v23, %v2930_v26  ;;  %v2932_v40 = vadd.f32 %v2931_v30, %v12134_v19  ;;  %5724 = vmatprep.mubr.bf16.mxu0 %v10393_v2  ;;  %v9115_v18 = vld [vmem:[%s15683_s4 + $0x6d4] ss:$48 sps:$4 sm:$0xff]   ;;  %v9477_v23 = vpop.eup %9476  ;;  %v9116_v30 = vld [vmem:[%s15683_s4 + $0x70] ss:$48 sps:$4 sm:$0xff]  }
 0x206   :  { %5765 = vmatprep.mubr.bf16.mxu1 %v10393_v2  ;;  %v2933_v34 = vpop.f32.mrf.mxu0  ;;  %v9121_v26 = vld [vmem:[%s15683_s4 + $0x674] ss:$48 sps:$4 sm:$0xff]  }
 0x207   :  { %v2974_v44 = vpop.f32.mrf.mxu1  ;;  %v3115_v45 = vmul.f32 %v9473_v41, %v2971_v37  ;;  %v2973_v46 = vadd.f32 %v2972_v31, %v2932_v40  ;;  %5695 = vmatpush1.bf16.msra.mxu0 %v9086_v28  ;;  %v9479_v28 = vpop.eup %9478  ;;  %v9119_v31 = vld [vmem:[%s15683_s4 + $0x670] ss:$48 sps:$4 sm:$0xff]   ;;  %v3135_v37 = vmul.f32 0.0, %v9477_v23 }
 0x208   :  { %5736 = vmatpush1.bf16.msra.mxu1 %v9089_v29  ;;  %v2934_v52 = vpop.f32.mrf.mxu0  ;;  %5696 = vmatprep.subr.bf16.mxu0 %v9094_v35  ;;  %v3127_v29 = vsub.f32 1.0, %v9477_v23  ;;  %v3128_v41 = vsub.f32 1.0, %v9479_v28  ;;  %v31_v34 = vld [vmem:[%s15679_s0 + $0x10] sm:$0xff]  ;;  %v3136_v44 = vmul.f32 0.0, %v9479_v28  ;;  %v41_v23 = vld [vmem:[%s15679_s0 + $0x38] sm:$0xff] }
 0x209   :  { %v2975_v53 = vpop.f32.mrf.mxu1  ;;  %5737 = vmatprep.subr.bf16.mxu1 %v9097_v25  ;;  %v3119_v60 = vadd.f32 %v3115_v45, %v43_v43  ;;  %v3116_v61 = vmul.f32 %v9475_v49, %v2973_v46  ;;  %v9124_v25 = vld [vmem:[%s15683_s4 + $0x14] ss:$48 sps:$4 sm:$0xff]   ;;  %v33_v49 = vld [vmem:[%s15679_s0 + $0x18] sm:$0xff]  ;;  %v9149_v28 = vld [vmem:[%s15683_s4 + $0xa90] ss:$48 sps:$4 sm:$0xff]  }
 0x20a   :  { %v9133_v52 = vld [vmem:[%s15683_s4 + $0xbb4] ss:$48 sps:$4 sm:$0xff]   ;;  %v3061_v53 = vadd.f32 %v11487_v51, %v31_v34 }
 0x20b   :  { %9480 = vtanh.f32 %v3119_v60  ;;  %v3120_v63 = vadd.f32 %v3116_v61, %v45_v50  ;;  %5697 = vmatpush1.bf16.msra.mxu0 %v9092_v47  ;;  %v9122_v47 = vld [vmem:[%s15683_s4 + $0x10] ss:$48 sps:$4 sm:$0xff]   ;;  %v9130_v50 = vld [vmem:[%s15683_s4 + $0x5b4] ss:$48 sps:$4 sm:$0xff]  }
 0x20c   :  { %5738 = vmatpush1.bf16.msra.mxu1 %v9095_v7  ;;  %5698 = vmatprep.subr.bf16.mxu0 %v9100_v56  ;;  %v9125_v7 = vld [vmem:[%s15683_s4 + $0x610] ss:$48 sps:$4 sm:$0xff]   ;;  %v9136_v51 = vld [vmem:[%s15683_s4 + $0x554] ss:$48 sps:$4 sm:$0xff]  }
 0x20d   :  { %5739 = vmatprep.subr.bf16.mxu1 %v9103_v58  ;;  %9482 = vtanh.f32 %v3120_v63  ;;  %v3062_v58 = vadd.f32 %v11498_v57, %v33_v49  ;;  %v9128_v60 = vld [vmem:[%s15683_s4 + $0x5b0] ss:$48 sps:$4 sm:$0xff]   ;;  %v9139_v57 = vld [vmem:[%s15683_s4 + $0xb54] ss:$48 sps:$4 sm:$0xff]   ;;  %v7896_v63 = vmul.f32 -1.442695, %v3061_v53 }
 0x20e   :  { %v9131_v61 = vld [vmem:[%s15683_s4 + $0xbb0] ss:$48 sps:$4 sm:$0xff]   ;;  %v9175_v53 = vld [vmem:[%s15683_s4 + $0x914] ss:$48 sps:$4 sm:$0xff]  }
 0x20f   :  { %5699 = vmatpush1.bf16.msra.mxu0 %v9098_v0  ;;  %v7897_v0 = vmul.f32 -1.442695, %v3062_v58  ;;  %9484 = vpow2.f32 %v7896_v63  ;;  %v9164_v49 = vld [vmem:[%s15683_s4 + $0x370] ss:$48 sps:$4 sm:$0xff]   ;;  %v9176_v63 = vld [vmem:[%s15683_s4 + $0x2b8] ss:$48 sps:$4 sm:$0xff]  }
 0x210   :  { %5740 = vmatpush1.bf16.msra.mxu1 %v9101_v5  ;;  %5700 = vmatprep.subr.bf16.mxu0 %v9106_v9  ;;  %v9134_v5 = vld [vmem:[%s15683_s4 + $0x550] ss:$48 sps:$4 sm:$0xff]  }
 0x211   :  { %5741 = vmatprep.subr.bf16.mxu1 %v9109_v33  ;;  %v9137_v9 = vld [vmem:[%s15683_s4 + $0xb50] ss:$48 sps:$4 sm:$0xff]   ;;  %v9142_v33 = vld [vmem:[%s15683_s4 + $0x4f4] ss:$48 sps:$4 sm:$0xff]   ;;  %9486 = vpow2.f32 %v7897_v0  ;;  %v9179_v0 = vld [vmem:[%s15683_s4 + $0x8b8] ss:$48 sps:$4 sm:$0xff]  }
 0x212   :  { %v9170_v58 = vld [vmem:[%s15683_s4 + $0x310] ss:$48 sps:$4 sm:$0xff]  }
 0x213   :  { %5701 = vmatpush1.bf16.msra.mxu0 %v9104_v10  ;;  %v9145_v10 = vld [vmem:[%s15683_s4 + $0xaf4] ss:$48 sps:$4 sm:$0xff]  }
 0x214   :  { %5742 = vmatpush1.bf16.msra.mxu1 %v9107_v12  ;;  %5702 = vmatprep.subr.bf16.mxu0 %v9112_v16  ;;  %v9140_v12 = vld [vmem:[%s15683_s4 + $0x4f0] ss:$48 sps:$4 sm:$0xff]  }
 0x215   :  { %5743 = vmatprep.subr.bf16.mxu1 %v9115_v18  ;;  %v9143_v16 = vld [vmem:[%s15683_s4 + $0xaf0] ss:$48 sps:$4 sm:$0xff]  }
 0x216   :  { %v39_v18 = vld [vmem:[%s15679_s0 + $0x30] sm:$0xff] }
 0x217   :  { %5703 = vmatpush1.bf16.msra.mxu0 %v9110_v20  ;;  %v9148_v20 = vld [vmem:[%s15683_s4 + $0x494] ss:$48 sps:$4 sm:$0xff]  }
 0x218   :  { %5744 = vmatpush1.bf16.msra.mxu1 %v9113_v22  ;;  %v9481_v35 = vpop.eup %9480  ;;  %5704 = vmatprep.subr.bf16.mxu0 %v9118_v24  ;;  %v9151_v22 = vld [vmem:[%s15683_s4 + $0xa94] ss:$48 sps:$4 sm:$0xff]   ;;  %v3089_v24 = vadd.f32 %v11920_v15, %v39_v18 }
 0x219   :  { %5745 = vmatprep.subr.bf16.mxu1 %v9121_v26  ;;  %v3131_v40 = vmul.f32 %v9481_v35, %v3127_v29  ;;  %v9146_v26 = vld [vmem:[%s15683_s4 + $0x490] ss:$48 sps:$4 sm:$0xff]   ;;  %v9154_v29 = vld [vmem:[%s15683_s4 + $0x434] ss:$48 sps:$4 sm:$0xff]  }
 0x21a   :  { %v9483_v43 = vpop.eup %9482  ;;  %v9157_v15 = vld [vmem:[%s15683_s4 + $0xa34] ss:$48 sps:$4 sm:$0xff]   ;;  %v9152_v35 = vld [vmem:[%s15683_s4 + $0x430] ss:$48 sps:$4 sm:$0xff]  }
 0x21b   :  { %v12223_v45 = vadd.f32 %v3135_v37, %v3131_v40  ;;  %v3132_v46 = vmul.f32 %v9483_v43, %v3128_v41  ;;  %5705 = vmatpush1.bf16.msra.mxu0 %v9116_v30  ;;  %v3090_v30 = vadd.f32 %v11928_v21, %v41_v23  ;;  %v9163_v21 = vld [vmem:[%s15683_s4 + $0x9d4] ss:$48 sps:$4 sm:$0xff]   ;;  %v9158_v41 = vld [vmem:[%s15683_s4 + $0x3d0] ss:$48 sps:$4 sm:$0xff]   ;;  %v9182_v23 = vld [vmem:[%s15683_s4 + $0x258] ss:$48 sps:$4 sm:$0xff]  }
 0x21c   :  { %5746 = vmatpush1.bf16.msra.mxu1 %v9119_v31  ;;  %5706 = vmatprep.subr.bf16.mxu0 %v9124_v25  ;;  %v7900_v31 = vmul.f32 -1.442695, %v3089_v24  ;;  %v9155_v25 = vld [vmem:[%s15683_s4 + $0xa30] ss:$48 sps:$4 sm:$0xff]   ;;  %v9485_v40 = vpop.eup %9484 }
 0x21d   :  { %5747 = vmatprep.subr.bf16.mxu1 %v9127_v36  ;;  %v12241_v56 = vadd.f32 %v3136_v44, %v3132_v46  ;;  %v9160_v36 = vld [vmem:[%s15683_s4 + $0x3d4] ss:$48 sps:$4 sm:$0xff]   ;;  %v7901_v37 = vmul.f32 -1.442695, %v3090_v30  ;;  %v9161_v43 = vld [vmem:[%s15683_s4 + $0x9d0] ss:$48 sps:$4 sm:$0xff]  }
 0x21e   :  { %9488 = vpow2.f32 %v7900_v31  ;;  %v9487_v34 = vpop.eup %9486  ;;  %v9166_v44 = vld [vmem:[%s15683_s4 + $0x374] ss:$48 sps:$4 sm:$0xff]  }
 0x21f   :  { %5707 = vmatpush1.bf16.msra.mxu0 %v9122_v47  ;;  %v9169_v46 = vld [vmem:[%s15683_s4 + $0x974] ss:$48 sps:$4 sm:$0xff]   ;;  %v3077_v47 = vadd.f32 1.0, %v9485_v40  ;;  %9490 = vpow2.f32 %v7901_v37 }
 0x220   :  { %5748 = vmatpush1.bf16.msra.mxu1 %v9125_v7  ;;  %5708 = vmatprep.subr.bf16.mxu0 %v9130_v50  ;;  %v3078_v7 = vadd.f32 1.0, %v9487_v34  ;;  %v9167_v50 = vld [vmem:[%s15683_s4 + $0x970] ss:$48 sps:$4 sm:$0xff]  }
 0x221   :  { %5749 = vmatprep.subr.bf16.mxu1 %v9133_v52  ;;  %v9172_v52 = vld [vmem:[%s15683_s4 + $0x314] ss:$48 sps:$4 sm:$0xff]   ;;  %9492 = vrcp.f32 %v3077_v47 }
 0x222   :  { %9494 = vrcp.f32 %v3078_v7  ;;  %v9196_v7 = vld [vmem:[%s15683_s4 + $0x19c] ss:$48 sps:$4 sm:$0xff]  }
 0x223   :  { %5709 = vmatpush2.bf16.msra.mxu0 %v9128_v60  ;;  %v9173_v60 = vld [vmem:[%s15683_s4 + $0x910] ss:$48 sps:$4 sm:$0xff]  }
 0x224   :  { %5750 = vmatpush2.bf16.msra.mxu1 %v9131_v61  ;;  %5710 = vmatprep.subr.bf16.mxu0 %v9136_v51  ;;  %v9178_v61 = vld [vmem:[%s15683_s4 + $0x2bc] ss:$48 sps:$4 sm:$0xff]  }
 0x225   :  { %5751 = vmatprep.subr.bf16.mxu1 %v9139_v57  ;;  %v9181_v51 = vld [vmem:[%s15683_s4 + $0x8bc] ss:$48 sps:$4 sm:$0xff]   ;;  %v12350_v57 = vrot.slane %v12108_v3, %v11441_v32 }
 0x227   :  { %5711 = vmatpush2.bf16.msra.mxu0 %v9134_v5 }
 0x228   :  { %5752 = vmatpush2.bf16.msra.mxu1 %v9137_v9  ;;  %5712 = vmatprep.subr.bf16.mxu0 %v9142_v33  ;;  %v9184_v9 = vld [vmem:[%s15683_s4 + $0x25c] ss:$48 sps:$4 sm:$0xff]  }
 0x229   :  { %5753 = vmatprep.subr.bf16.mxu1 %v9145_v10  ;;  %v9187_v33 = vld [vmem:[%s15683_s4 + $0x85c] ss:$48 sps:$4 sm:$0xff]   ;;  %v12366_v10 = vrot.slane %v12108_v3, %v11456_v38  ;;  %v9185_v3 = vld [vmem:[%s15683_s4 + $0x858] ss:$48 sps:$4 sm:$0xff]  }
 0x22b   :  { %5713 = vmatpush2.bf16.msra.mxu0 %v9140_v12  ;;  %v9489_v5 = vpop.eup %9488 }
 0x22c   :  { %5754 = vmatpush2.bf16.msra.mxu1 %v9143_v16  ;;  %5714 = vmatprep.subr.bf16.mxu0 %v9148_v20  ;;  %v9491_v12 = vpop.eup %9490  ;;  %v3105_v20 = vadd.f32 1.0, %v9489_v5  ;;  %v9208_v5 = vld [vmem:[%s15683_s4 + $0xdc] ss:$48 sps:$4 sm:$0xff]  }
 0x22d   :  { %5755 = vmatprep.subr.bf16.mxu1 %v9151_v22 }
 0x22e   :  { %9496 = vrcp.f32 %v3105_v20  ;;  %v9217_v20 = vld [vmem:[%s15683_s4 + $0x67c] ss:$48 sps:$4 sm:$0xff]  }
 0x22f   :  { %5715 = vmatpush2.bf16.msra.mxu0 %v9146_v26 }
 0x230   :  { %5756 = vmatpush2.bf16.msra.mxu1 %v9149_v28  ;;  %5716 = vmatprep.subr.bf16.mxu0 %v9154_v29  ;;  %v9190_v28 = vld [vmem:[%s15683_s4 + $0x1fc] ss:$48 sps:$4 sm:$0xff]  }
 0x231   :  { %5757 = vmatprep.subr.bf16.mxu1 %v9157_v15  ;;  %v9193_v29 = vld [vmem:[%s15683_s4 + $0x7fc] ss:$48 sps:$4 sm:$0xff]   ;;  %v3106_v15 = vadd.f32 1.0, %v9491_v12  ;;  %v9209_v12 = vld [vmem:[%s15683_s4 + $0x6d8] ss:$48 sps:$4 sm:$0xff]  }
 0x233   :  { %5717 = vmatpush2.bf16.msra.mxu0 %v9152_v35  ;;  %v9493_v35 = vpop.eup %9492  ;;  %9498 = vrcp.f32 %v3106_v15 }
 0x234   :  { %5758 = vmatpush2.bf16.msra.mxu1 %v9155_v25  ;;  %5718 = vmatprep.subr.bf16.mxu0 %v9160_v36  ;;  %v47_v25 = vld [vmem:[%s15679_s0 + $0x50] sm:$0xff]  ;;  %v9495_v34 = vpop.eup %9494 }
 0x235   :  { %5759 = vmatprep.subr.bf16.mxu1 %v9163_v21 }
 0x237   :  { %5719 = vmatpush2.bf16.msra.mxu0 %v9158_v41  ;;  %v9188_v41 = vld [vmem:[%s15683_s4 + $0x1f8] ss:$48 sps:$4 sm:$0xff]  }
 0x238   :  { %5760 = vmatpush2.bf16.msra.mxu1 %v9161_v43  ;;  %5720 = vmatprep.subr.bf16.mxu0 %v9166_v44  ;;  %v9191_v43 = vld [vmem:[%s15683_s4 + $0x7f8] ss:$48 sps:$4 sm:$0xff]  }
 0x239   :  { %5761 = vmatprep.subr.bf16.mxu1 %v9169_v46  ;;  %v49_v44 = vld [vmem:[%s15679_s0 + $0x58] sm:$0xff] }
 0x23b   :  { %5721 = vmatpush2.bf16.msra.mxu0 %v9164_v49  ;;  %v9199_v49 = vld [vmem:[%s15683_s4 + $0x79c] ss:$48 sps:$4 sm:$0xff]  }
 0x23c   :  { %5762 = vmatpush2.bf16.msra.mxu1 %v9167_v50  ;;  %5722 = vmatprep.subr.bf16.mxu0 %v9172_v52 }
 0x23d   :  { %5763 = vmatprep.subr.bf16.mxu1 %v9175_v53 }
 0x23f   :  { %5723 = vmatpush2.bf16.msra.mxu0 %v9170_v58  ;;  %v9194_v58 = vld [vmem:[%s15683_s4 + $0x198] ss:$48 sps:$4 sm:$0xff]  }
 0x240   :  { %5764 = vmatpush2.bf16.msra.mxu1 %v9173_v60  ;;  %5774 = vmatprep.subr.bf16.mxu0 %v9178_v61  ;;  %v9197_v60 = vld [vmem:[%s15683_s4 + $0x798] ss:$48 sps:$4 sm:$0xff]   ;;  %v9202_v61 = vld [vmem:[%s15683_s4 + $0x13c] ss:$48 sps:$4 sm:$0xff]  }
 0x241   :  { %5815 = vmatprep.subr.bf16.mxu1 %v9181_v51  ;;  %v9205_v51 = vld [vmem:[%s15683_s4 + $0x73c] ss:$48 sps:$4 sm:$0xff]  }
 0x242   :  { %v3011_v16 = vpop.f32.mrf.mxu0  ;;  %5725 = vmatmul.mubr.bf16.vlgmr.msra.gmra.mxu0 %v10393_v2 }
 0x243   :  { %v3052_v18 = vpop.f32.mrf.mxu1  ;;  %5766 = vmatmul.mubr.bf16.vlgmr.msra.gmra.mxu1 %v10393_v2  ;;  %v3012_v22 = vadd.f32 %v3011_v16, %v12350_v57  ;;  %5775 = vmatpush1.bf16.msra.mxu0 %v9176_v63  ;;  %v9200_v63 = vld [vmem:[%s15683_s4 + $0x138] ss:$48 sps:$4 sm:$0xff]   ;;  %v9497_v16 = vpop.eup %9496 }
 0x244   :  { %5816 = vmatpush1.bf16.msra.mxu1 %v9179_v0  ;;  %v3013_v24 = vpop.f32.mrf.mxu0  ;;  %5776 = vmatprep.subr.bf16.mxu0 %v9184_v9  ;;  %v9203_v0 = vld [vmem:[%s15683_s4 + $0x738] ss:$48 sps:$4 sm:$0xff]   ;;  %v9211_v9 = vld [vmem:[%s15683_s4 + $0x6dc] ss:$48 sps:$4 sm:$0xff]   ;;  %v3137_v15 = vmul.f32 0.0, %v9497_v16 }
 0x245   :  { %v3054_v26 = vpop.f32.mrf.mxu1  ;;  %5817 = vmatprep.subr.bf16.mxu1 %v9187_v33  ;;  %v3053_v30 = vadd.f32 %v3052_v18, %v3012_v22  ;;  %v3014_v31 = vadd.f32 %v3013_v24, %v12366_v10  ;;  %5806 = vmatprep.mubr.bf16.mxu0 %v10393_v2  ;;  %v9206_v33 = vld [vmem:[%s15683_s4 + $0xd8] ss:$48 sps:$4 sm:$0xff]   ;;  %v9214_v18 = vld [vmem:[%s15683_s4 + $0x7c] ss:$48 sps:$4 sm:$0xff]   ;;  %v9499_v22 = vpop.eup %9498 }
 0x246   :  { %5847 = vmatprep.mubr.bf16.mxu1 %v10393_v2  ;;  %v3015_v36 = vpop.f32.mrf.mxu0  ;;  %v9215_v24 = vld [vmem:[%s15683_s4 + $0x678] ss:$48 sps:$4 sm:$0xff]  }
 0x247   :  { %v3056_v21 = vpop.f32.mrf.mxu1  ;;  %v3117_v37 = vmul.f32 %v9493_v35, %v3053_v30  ;;  %v3055_v40 = vadd.f32 %v3054_v26, %v3014_v31  ;;  %5777 = vmatpush1.bf16.msra.mxu0 %v9182_v23  ;;  %v3129_v23 = vsub.f32 1.0, %v9497_v16  ;;  %v3130_v31 = vsub.f32 1.0, %v9499_v22  ;;  %v9256_v16 = vld [vmem:[%s15683_s4 + $0x3dc] ss:$48 sps:$4 sm:$0xff]  }
 0x248   :  { %5818 = vmatpush1.bf16.msra.mxu1 %v9185_v3  ;;  %v3016_v46 = vpop.f32.mrf.mxu0  ;;  %5778 = vmatprep.subr.bf16.mxu0 %v9190_v28  ;;  %v9212_v3 = vld [vmem:[%s15683_s4 + $0x78] ss:$48 sps:$4 sm:$0xff]   ;;  %v9220_v28 = vld [vmem:[%s15683_s4 + $0x1c] ss:$48 sps:$4 sm:$0xff]  }
 0x249   :  { %v3057_v47 = vpop.f32.mrf.mxu1  ;;  %5819 = vmatprep.subr.bf16.mxu1 %v9193_v29  ;;  %v3121_v50 = vadd.f32 %v3117_v37, %v47_v25  ;;  %v3118_v52 = vmul.f32 %v9495_v34, %v3055_v40  ;;  %v9223_v29 = vld [vmem:[%s15683_s4 + $0x61c] ss:$48 sps:$4 sm:$0xff]   ;;  %v3138_v25 = vmul.f32 0.0, %v9499_v22  ;;  %v9218_v37 = vld [vmem:[%s15683_s4 + $0x18] ss:$48 sps:$4 sm:$0xff]  }
 0x24a   :  { %v9221_v40 = vld [vmem:[%s15683_s4 + $0x618] ss:$48 sps:$4 sm:$0xff]   ;;  %v9232_v47 = vld [vmem:[%s15683_s4 + $0x55c] ss:$48 sps:$4 sm:$0xff]  }
 0x24b   :  { %9500 = vtanh.f32 %v3121_v50  ;;  %v3122_v53 = vadd.f32 %v3118_v52, %v49_v44  ;;  %5779 = vmatpush1.bf16.msra.mxu0 %v9188_v41  ;;  %v9226_v41 = vld [vmem:[%s15683_s4 + $0x5bc] ss:$48 sps:$4 sm:$0xff]   ;;  %v9224_v44 = vld [vmem:[%s15683_s4 + $0x5b8] ss:$48 sps:$4 sm:$0xff]  }
 0x24c   :  { %5820 = vmatpush1.bf16.msra.mxu1 %v9191_v43  ;;  %5780 = vmatprep.subr.bf16.mxu0 %v9196_v7  ;;  %v9229_v43 = vld [vmem:[%s15683_s4 + $0xbbc] ss:$48 sps:$4 sm:$0xff]   ;;  %v9227_v46 = vld [vmem:[%s15683_s4 + $0xbb8] ss:$48 sps:$4 sm:$0xff]  }
 0x24d   :  { %5821 = vmatprep.subr.bf16.mxu1 %v9199_v49  ;;  %9502 = vtanh.f32 %v3122_v53  ;;  %v9235_v7 = vld [vmem:[%s15683_s4 + $0xb5c] ss:$48 sps:$4 sm:$0xff]   ;;  %v9230_v49 = vld [vmem:[%s15683_s4 + $0x558] ss:$48 sps:$4 sm:$0xff]  }
 0x24e   :  { %v9233_v50 = vld [vmem:[%s15683_s4 + $0xb58] ss:$48 sps:$4 sm:$0xff]   ;;  %v9238_v52 = vld [vmem:[%s15683_s4 + $0x4fc] ss:$48 sps:$4 sm:$0xff]  }
 0x24f   :  { %5781 = vmatpush1.bf16.msra.mxu0 %v9194_v58  ;;  %v9241_v53 = vld [vmem:[%s15683_s4 + $0xafc] ss:$48 sps:$4 sm:$0xff]   ;;  %v9236_v58 = vld [vmem:[%s15683_s4 + $0x4f8] ss:$48 sps:$4 sm:$0xff]  }
 0x250   :  { %5822 = vmatpush1.bf16.msra.mxu1 %v9197_v60  ;;  %5782 = vmatprep.subr.bf16.mxu0 %v9202_v61  ;;  %v9239_v60 = vld [vmem:[%s15683_s4 + $0xaf8] ss:$48 sps:$4 sm:$0xff]   ;;  %v9244_v61 = vld [vmem:[%s15683_s4 + $0x49c] ss:$48 sps:$4 sm:$0xff]  }
 0x251   :  { %5823 = vmatprep.subr.bf16.mxu1 %v9205_v51  ;;  %v9247_v51 = vld [vmem:[%s15683_s4 + $0xa9c] ss:$48 sps:$4 sm:$0xff]   ;;  %v9257_v22 = vld [vmem:[%s15683_s4 + $0x9d8] ss:$48 sps:$4 sm:$0xff]  }
 0x253   :  { %5783 = vmatpush1.bf16.msra.mxu0 %v9200_v63  ;;  %v9242_v63 = vld [vmem:[%s15683_s4 + $0x498] ss:$48 sps:$4 sm:$0xff]  }
 0x254   :  { %5824 = vmatpush1.bf16.msra.mxu1 %v9203_v0  ;;  %5784 = vmatprep.subr.bf16.mxu0 %v9208_v5  ;;  %v9245_v0 = vld [vmem:[%s15683_s4 + $0xa98] ss:$48 sps:$4 sm:$0xff]   ;;  %v9250_v5 = vld [vmem:[%s15683_s4 + $0x43c] ss:$48 sps:$4 sm:$0xff]  }
 0x255   :  { %5825 = vmatprep.subr.bf16.mxu1 %v9211_v9  ;;  %v9253_v9 = vld [vmem:[%s15683_s4 + $0xa3c] ss:$48 sps:$4 sm:$0xff]  }
 0x257   :  { %5785 = vmatpush1.bf16.msra.mxu0 %v9206_v33  ;;  %v9248_v33 = vld [vmem:[%s15683_s4 + $0x438] ss:$48 sps:$4 sm:$0xff]  }
 0x258   :  { %5826 = vmatpush1.bf16.msra.mxu1 %v9209_v12  ;;  %v9501_v26 = vpop.eup %9500  ;;  %5786 = vmatprep.subr.bf16.mxu0 %v9214_v18  ;;  %v9251_v12 = vld [vmem:[%s15683_s4 + $0xa38] ss:$48 sps:$4 sm:$0xff]   ;;  %v9259_v18 = vld [vmem:[%s15683_s4 + $0x9dc] ss:$48 sps:$4 sm:$0xff]  }
 0x259   :  { %5827 = vmatprep.subr.bf16.mxu1 %v9217_v20  ;;  %v3133_v30 = vmul.f32 %v9501_v26, %v3129_v23  ;;  %v9254_v20 = vld [vmem:[%s15683_s4 + $0x3d8] ss:$48 sps:$4 sm:$0xff]   ;;  %v9262_v23 = vld [vmem:[%s15683_s4 + $0x37c] ss:$48 sps:$4 sm:$0xff]  }
 0x25a   :  { %v9503_v35 = vpop.eup %9502  ;;  %v9263_v26 = vld [vmem:[%s15683_s4 + $0x978] ss:$48 sps:$4 sm:$0xff]  }
 0x25b   :  { %v12452_v36 = vadd.f32 %v3137_v15, %v3133_v30  ;;  %v3134_v21 = vmul.f32 %v9503_v35, %v3130_v31  ;;  %5787 = vmatpush1.bf16.msra.mxu0 %v9212_v3  ;;  %v9265_v3 = vld [vmem:[%s15683_s4 + $0x97c] ss:$48 sps:$4 sm:$0xff]   ;;  %v9266_v15 = vld [vmem:[%s15683_s4 + $0x318] ss:$48 sps:$4 sm:$0xff]   ;;  %v12561_v31 = vld [vmem:[%s15684_s5] sm:$0xff] }
 0x25c   :  { %5828 = vmatpush1.bf16.msra.mxu1 %v9215_v24  ;;  %5788 = vmatprep.subr.bf16.mxu0 %v9220_v28  ;;  %v9260_v24 = vld [vmem:[%s15683_s4 + $0x378] ss:$48 sps:$4 sm:$0xff]   ;;  %v9268_v28 = vld [vmem:[%s15683_s4 + $0x31c] ss:$48 sps:$4 sm:$0xff]   ;;  %v9274_v35 = vld [vmem:[%s15683_s4 + $0x2c4] ss:$48 sps:$4 sm:$0xff]  }
 0x25d   :  { %5829 = vmatprep.subr.bf16.mxu1 %v9223_v29  ;;  %v12466_v34 = vadd.f32 %v3138_v25, %v3134_v21  ;;  %v9271_v29 = vld [vmem:[%s15683_s4 + $0x91c] ss:$48 sps:$4 sm:$0xff]   ;;  %v9269_v30 = vld [vmem:[%s15683_s4 + $0x918] ss:$48 sps:$4 sm:$0xff]   ;;  %v9277_v25 = vld [vmem:[%s15683_s4 + $0x8c4] ss:$48 sps:$4 sm:$0xff]   ;;  %v12571_v21 = vrot.slane %v12561_v31, %v11225_v8 }
 0x25f   :  { %5789 = vmatpush1.bf16.msra.mxu0 %v9218_v37  ;;  %v9272_v37 = vld [vmem:[%s15683_s4 + $0x2c0] ss:$48 sps:$4 sm:$0xff]  }
 0x260   :  { %5830 = vmatpush1.bf16.msra.mxu1 %v9221_v40  ;;  %5790 = vmatprep.subr.bf16.mxu0 %v9226_v41  ;;  %v9275_v40 = vld [vmem:[%s15683_s4 + $0x8c0] ss:$48 sps:$4 sm:$0xff]   ;;  %v9280_v41 = vld [vmem:[%s15683_s4 + $0x264] ss:$48 sps:$4 sm:$0xff]  }
 0x261   :  { %5831 = vmatprep.subr.bf16.mxu1 %v9229_v43  ;;  %v9283_v43 = vld [vmem:[%s15683_s4 + $0x864] ss:$48 sps:$4 sm:$0xff]  }
 0x263   :  { %5791 = vmatpush2.bf16.msra.mxu0 %v9224_v44  ;;  %v12587_v44 = vrot.slane %v12561_v31, %v11234_v11 }
 0x264   :  { %5832 = vmatpush2.bf16.msra.mxu1 %v9227_v46  ;;  %5792 = vmatprep.subr.bf16.mxu0 %v9232_v47 }
 0x265   :  { %5833 = vmatprep.subr.bf16.mxu1 %v9235_v7 }
 0x267   :  { %5793 = vmatpush2.bf16.msra.mxu0 %v9230_v49  ;;  %v9278_v49 = vld [vmem:[%s15683_s4 + $0x260] ss:$48 sps:$4 sm:$0xff]  }
 0x268   :  { %5834 = vmatpush2.bf16.msra.mxu1 %v9233_v50  ;;  %5794 = vmatprep.subr.bf16.mxu0 %v9238_v52  ;;  %v9281_v50 = vld [vmem:[%s15683_s4 + $0x860] ss:$48 sps:$4 sm:$0xff]  }
 0x269   :  { %5835 = vmatprep.subr.bf16.mxu1 %v9241_v53 }
 0x26b   :  { %5795 = vmatpush2.bf16.msra.mxu0 %v9236_v58  ;;  %v9286_v58 = vld [vmem:[%s15683_s4 + $0x204] ss:$48 sps:$4 sm:$0xff]  }
 0x26c   :  { %5836 = vmatpush2.bf16.msra.mxu1 %v9239_v60  ;;  %5796 = vmatprep.subr.bf16.mxu0 %v9244_v61  ;;  %v9289_v60 = vld [vmem:[%s15683_s4 + $0x804] ss:$48 sps:$4 sm:$0xff]  }
 0x26d   :  { %5837 = vmatprep.subr.bf16.mxu1 %v9247_v51 }
 0x26f   :  { %5797 = vmatpush2.bf16.msra.mxu0 %v9242_v63 }
 0x270   :  { %5838 = vmatpush2.bf16.msra.mxu1 %v9245_v0  ;;  %5798 = vmatprep.subr.bf16.mxu0 %v9250_v5 }
 0x271   :  { %5839 = vmatprep.subr.bf16.mxu1 %v9253_v9  ;;  %v9284_v9 = vld [vmem:[%s15683_s4 + $0x200] ss:$48 sps:$4 sm:$0xff]  }
 0x273   :  { %5799 = vmatpush2.bf16.msra.mxu0 %v9248_v33  ;;  %v9287_v33 = vld [vmem:[%s15683_s4 + $0x800] ss:$48 sps:$4 sm:$0xff]  }
 0x274   :  { %5840 = vmatpush2.bf16.msra.mxu1 %v9251_v12  ;;  %5800 = vmatprep.subr.bf16.mxu0 %v9256_v16 }
 0x275   :  { %5841 = vmatprep.subr.bf16.mxu1 %v9259_v18  ;;  %v9292_v18 = vld [vmem:[%s15683_s4 + $0x1a4] ss:$48 sps:$4 sm:$0xff]  }
 0x277   :  { %5801 = vmatpush2.bf16.msra.mxu0 %v9254_v20  ;;  %v9295_v20 = vld [vmem:[%s15683_s4 + $0x7a4] ss:$48 sps:$4 sm:$0xff]  }
 0x278   :  { %5842 = vmatpush2.bf16.msra.mxu1 %v9257_v22  ;;  %5802 = vmatprep.subr.bf16.mxu0 %v9262_v23  ;;  %v9290_v22 = vld [vmem:[%s15683_s4 + $0x1a0] ss:$48 sps:$4 sm:$0xff]  }
 0x279   :  { %5843 = vmatprep.subr.bf16.mxu1 %v9265_v3  ;;  %v9293_v23 = vld [vmem:[%s15683_s4 + $0x7a0] ss:$48 sps:$4 sm:$0xff]   ;;  %v9298_v3 = vld [vmem:[%s15683_s4 + $0x144] ss:$48 sps:$4 sm:$0xff]  }
 0x27b   :  { %5803 = vmatpush2.bf16.msra.mxu0 %v9260_v24  ;;  %v9301_v24 = vld [vmem:[%s15683_s4 + $0x744] ss:$48 sps:$4 sm:$0xff]  }
 0x27c   :  { %5844 = vmatpush2.bf16.msra.mxu1 %v9263_v26  ;;  %5804 = vmatprep.subr.bf16.mxu0 %v9268_v28  ;;  %v9296_v26 = vld [vmem:[%s15683_s4 + $0x140] ss:$48 sps:$4 sm:$0xff]  }
 0x27d   :  { %5845 = vmatprep.subr.bf16.mxu1 %v9271_v29  ;;  %v9299_v28 = vld [vmem:[%s15683_s4 + $0x740] ss:$48 sps:$4 sm:$0xff]   ;;  %v9304_v29 = vld [vmem:[%s15683_s4 + $0xe4] ss:$48 sps:$4 sm:$0xff]  }
 0x27f   :  { %5805 = vmatpush2.bf16.msra.mxu0 %v9266_v15  ;;  %v9307_v15 = vld [vmem:[%s15683_s4 + $0x6e4] ss:$48 sps:$4 sm:$0xff]  }
 0x280   :  { %5846 = vmatpush2.bf16.msra.mxu1 %v9269_v30  ;;  %5856 = vmatprep.subr.bf16.mxu0 %v9274_v35  ;;  %v9302_v30 = vld [vmem:[%s15683_s4 + $0xe0] ss:$48 sps:$4 sm:$0xff]  }
 0x281   :  { %5897 = vmatprep.subr.bf16.mxu1 %v9277_v25  ;;  %v9305_v35 = vld [vmem:[%s15683_s4 + $0x6e0] ss:$48 sps:$4 sm:$0xff]   ;;  %v9310_v25 = vld [vmem:[%s15683_s4 + $0x84] ss:$48 sps:$4 sm:$0xff]  }
 0x282   :  { %v5562_v46 = vpop.f32.mrf.mxu0  ;;  %5807 = vmatmul.mubr.bf16.vlgmr.msra.gmra.mxu0 %v10393_v2 }
 0x283   :  { %v5603_v47 = vpop.f32.mrf.mxu1  ;;  %5848 = vmatmul.mubr.bf16.vlgmr.msra.gmra.mxu1 %v10393_v2  ;;  %v5563_v7 = vadd.f32 %v5562_v46, %v12571_v21  ;;  %5857 = vmatpush1.bf16.msra.mxu0 %v9272_v37  ;;  %v9313_v37 = vld [vmem:[%s15683_s4 + $0x684] ss:$48 sps:$4 sm:$0xff]  }
 0x284   :  { %5898 = vmatpush1.bf16.msra.mxu1 %v9275_v40  ;;  %v5564_v52 = vpop.f32.mrf.mxu0  ;;  %5858 = vmatprep.subr.bf16.mxu0 %v9280_v41  ;;  %v9308_v40 = vld [vmem:[%s15683_s4 + $0x80] ss:$48 sps:$4 sm:$0xff]   ;;  %v9319_v46 = vld [vmem:[%s15683_s4 + $0x624] ss:$48 sps:$4 sm:$0xff]  }
 0x285   :  { %v5605_v53 = vpop.f32.mrf.mxu1  ;;  %5899 = vmatprep.subr.bf16.mxu1 %v9283_v43  ;;  %v12604_v61 = vadd.f32 %v5603_v47, %v5563_v7  ;;  %v5565_v51 = vadd.f32 %v5564_v52, %v12587_v44  ;;  %5888 = vmatprep.mubr.bf16.mxu0 %v10393_v2  ;;  %v9311_v41 = vld [vmem:[%s15683_s4 + $0x680] ss:$48 sps:$4 sm:$0xff]   ;;  %v9316_v43 = vld [vmem:[%s15683_s4 + $0x24] ss:$48 sps:$4 sm:$0xff]  }
 0x286   :  { %5929 = vmatprep.mubr.bf16.mxu1 %v10393_v2  ;;  %v5566_v63 = vpop.f32.mrf.mxu0  ;;  %v9314_v47 = vld [vmem:[%s15683_s4 + $0x20] ss:$48 sps:$4 sm:$0xff]  }
 0x287   :  { %v5607_v0 = vpop.f32.mrf.mxu1  ;;  %v12609_v5 = vadd.f32 %v5605_v53, %v5565_v51  ;;  %5859 = vmatpush1.bf16.msra.mxu0 %v9278_v49  ;;  %v9317_v7 = vld [vmem:[%s15683_s4 + $0x620] ss:$48 sps:$4 sm:$0xff]   ;;  %v9322_v49 = vld [vmem:[%s15683_s4 + $0x5c4] ss:$48 sps:$4 sm:$0xff]  }
 0x288   :  { %5900 = vmatpush1.bf16.msra.mxu1 %v9281_v50  ;;  %v5567_v12 = vpop.f32.mrf.mxu0  ;;  %5860 = vmatprep.subr.bf16.mxu0 %v9286_v58  ;;  %v9325_v50 = vld [vmem:[%s15683_s4 + $0xbc4] ss:$48 sps:$4 sm:$0xff]   ;;  %v9320_v52 = vld [vmem:[%s15683_s4 + $0x5c0] ss:$48 sps:$4 sm:$0xff]  }
 0x289   :  { %v5608_v16 = vpop.f32.mrf.mxu1  ;;  %5901 = vmatprep.subr.bf16.mxu1 %v9289_v60  ;;  %v9323_v53 = vld [vmem:[%s15683_s4 + $0xbc0] ss:$48 sps:$4 sm:$0xff]   ;;  %v9328_v58 = vld [vmem:[%s15683_s4 + $0x564] ss:$48 sps:$4 sm:$0xff]  }
 0x28a   :  { %v9331_v60 = vld [vmem:[%s15683_s4 + $0xb64] ss:$48 sps:$4 sm:$0xff]   ;;  %v9326_v51 = vld [vmem:[%s15683_s4 + $0x560] ss:$48 sps:$4 sm:$0xff]  }
 0x28b   :  { %5861 = vmatpush1.bf16.msra.mxu0 %v9284_v9  ;;  %v9329_v63 = vld [vmem:[%s15683_s4 + $0xb60] ss:$48 sps:$4 sm:$0xff]   ;;  %v9334_v0 = vld [vmem:[%s15683_s4 + $0x504] ss:$48 sps:$4 sm:$0xff]  }
 0x28c   :  { %5902 = vmatpush1.bf16.msra.mxu1 %v9287_v33  ;;  %5862 = vmatprep.subr.bf16.mxu0 %v9292_v18  ;;  %v9337_v9 = vld [vmem:[%s15683_s4 + $0xb04] ss:$48 sps:$4 sm:$0xff]   ;;  %v9332_v33 = vld [vmem:[%s15683_s4 + $0x500] ss:$48 sps:$4 sm:$0xff]  }
 0x28d   :  { %5903 = vmatprep.subr.bf16.mxu1 %v9295_v20  ;;  %v9335_v12 = vld [vmem:[%s15683_s4 + $0xb00] ss:$48 sps:$4 sm:$0xff]   ;;  %v9340_v16 = vld [vmem:[%s15683_s4 + $0x4a4] ss:$48 sps:$4 sm:$0xff]  }
 0x28e   :  { %v9343_v18 = vld [vmem:[%s15683_s4 + $0xaa4] ss:$48 sps:$4 sm:$0xff]   ;;  %v9338_v20 = vld [vmem:[%s15683_s4 + $0x4a0] ss:$48 sps:$4 sm:$0xff]  }
 0x28f   :  { %5863 = vmatpush1.bf16.msra.mxu0 %v9290_v22  ;;  %v9341_v22 = vld [vmem:[%s15683_s4 + $0xaa0] ss:$48 sps:$4 sm:$0xff]  }
 0x290   :  { %5904 = vmatpush1.bf16.msra.mxu1 %v9293_v23  ;;  %5864 = vmatprep.subr.bf16.mxu0 %v9298_v3  ;;  %v9346_v23 = vld [vmem:[%s15683_s4 + $0x444] ss:$48 sps:$4 sm:$0xff]  }
 0x291   :  { %5905 = vmatprep.subr.bf16.mxu1 %v9301_v24  ;;  %v9349_v3 = vld [vmem:[%s15683_s4 + $0xa44] ss:$48 sps:$4 sm:$0xff]   ;;  %v9344_v24 = vld [vmem:[%s15683_s4 + $0x440] ss:$48 sps:$4 sm:$0xff]  }
 0x293   :  { %5865 = vmatpush1.bf16.msra.mxu0 %v9296_v26  ;;  %v9347_v26 = vld [vmem:[%s15683_s4 + $0xa40] ss:$48 sps:$4 sm:$0xff]  }
 0x294   :  { %5906 = vmatpush1.bf16.msra.mxu1 %v9299_v28  ;;  %5866 = vmatprep.subr.bf16.mxu0 %v9304_v29  ;;  %v9352_v28 = vld [vmem:[%s15683_s4 + $0x3e4] ss:$48 sps:$4 sm:$0xff]  }
 0x295   :  { %5907 = vmatprep.subr.bf16.mxu1 %v9307_v15  ;;  %v9355_v29 = vld [vmem:[%s15683_s4 + $0x9e4] ss:$48 sps:$4 sm:$0xff]   ;;  %v9350_v15 = vld [vmem:[%s15683_s4 + $0x3e0] ss:$48 sps:$4 sm:$0xff]  }
 0x297   :  { %5867 = vmatpush1.bf16.msra.mxu0 %v9302_v30  ;;  %v9353_v30 = vld [vmem:[%s15683_s4 + $0x9e0] ss:$48 sps:$4 sm:$0xff]  }
 0x298   :  { %5908 = vmatpush1.bf16.msra.mxu1 %v9305_v35  ;;  %5868 = vmatprep.subr.bf16.mxu0 %v9310_v25  ;;  %v9358_v35 = vld [vmem:[%s15683_s4 + $0x384] ss:$48 sps:$4 sm:$0xff]  }
 0x299   :  { %5909 = vmatprep.subr.bf16.mxu1 %v9313_v37  ;;  %v9361_v25 = vld [vmem:[%s15683_s4 + $0x984] ss:$48 sps:$4 sm:$0xff]   ;;  %v9356_v37 = vld [vmem:[%s15683_s4 + $0x380] ss:$48 sps:$4 sm:$0xff]  }
 0x29b   :  { %5869 = vmatpush1.bf16.msra.mxu0 %v9308_v40  ;;  %v9359_v40 = vld [vmem:[%s15683_s4 + $0x980] ss:$48 sps:$4 sm:$0xff]  }
 0x29c   :  { %5910 = vmatpush1.bf16.msra.mxu1 %v9311_v41  ;;  %5870 = vmatprep.subr.bf16.mxu0 %v9316_v43  ;;  %v9364_v41 = vld [vmem:[%s15683_s4 + $0x324] ss:$48 sps:$4 sm:$0xff]  }
 0x29d   :  { %5911 = vmatprep.subr.bf16.mxu1 %v9319_v46  ;;  %v9367_v43 = vld [vmem:[%s15683_s4 + $0x924] ss:$48 sps:$4 sm:$0xff]   ;;  %v9362_v46 = vld [vmem:[%s15683_s4 + $0x320] ss:$48 sps:$4 sm:$0xff]  }
 0x29f   :  { %5871 = vmatpush1.bf16.msra.mxu0 %v9314_v47  ;;  %v9365_v47 = vld [vmem:[%s15683_s4 + $0x920] ss:$48 sps:$4 sm:$0xff]  }
 0x2a0   :  { %5912 = vmatpush1.bf16.msra.mxu1 %v9317_v7  ;;  %5872 = vmatprep.subr.bf16.mxu0 %v9322_v49  ;;  %v9370_v7 = vld [vmem:[%s15683_s4 + $0x2cc] ss:$48 sps:$4 sm:$0xff]  }
 0x2a1   :  { %5913 = vmatprep.subr.bf16.mxu1 %v9325_v50  ;;  %v9373_v49 = vld [vmem:[%s15683_s4 + $0x8cc] ss:$48 sps:$4 sm:$0xff]   ;;  %v12781_v50 = vrot.slane %v12561_v31, %v11441_v32 }
 0x2a3   :  { %5873 = vmatpush2.bf16.msra.mxu0 %v9320_v52  ;;  %v9368_v52 = vld [vmem:[%s15683_s4 + $0x2c8] ss:$48 sps:$4 sm:$0xff]  }
 0x2a4   :  { %5914 = vmatpush2.bf16.msra.mxu1 %v9323_v53  ;;  %5874 = vmatprep.subr.bf16.mxu0 %v9328_v58  ;;  %v9371_v53 = vld [vmem:[%s15683_s4 + $0x8c8] ss:$48 sps:$4 sm:$0xff]   ;;  %v9376_v58 = vld [vmem:[%s15683_s4 + $0x26c] ss:$48 sps:$4 sm:$0xff]  }
 0x2a5   :  { %5915 = vmatprep.subr.bf16.mxu1 %v9331_v60  ;;  %v9379_v60 = vld [vmem:[%s15683_s4 + $0x86c] ss:$48 sps:$4 sm:$0xff]  }
 0x2a7   :  { %5875 = vmatpush2.bf16.msra.mxu0 %v9326_v51  ;;  %v12797_v51 = vrot.slane %v12561_v31, %v11456_v38 }
 0x2a8   :  { %5916 = vmatpush2.bf16.msra.mxu1 %v9329_v63  ;;  %5876 = vmatprep.subr.bf16.mxu0 %v9334_v0 }
 0x2a9   :  { %5917 = vmatprep.subr.bf16.mxu1 %v9337_v9 }
 0x2ab   :  { %5877 = vmatpush2.bf16.msra.mxu0 %v9332_v33  ;;  %v9374_v33 = vld [vmem:[%s15683_s4 + $0x268] ss:$48 sps:$4 sm:$0xff]  }
 0x2ac   :  { %5918 = vmatpush2.bf16.msra.mxu1 %v9335_v12  ;;  %5878 = vmatprep.subr.bf16.mxu0 %v9340_v16  ;;  %v9377_v12 = vld [vmem:[%s15683_s4 + $0x868] ss:$48 sps:$4 sm:$0xff]  }
 0x2ad   :  { %5919 = vmatprep.subr.bf16.mxu1 %v9343_v18 }
 0x2af   :  { %5879 = vmatpush2.bf16.msra.mxu0 %v9338_v20  ;;  %v9382_v20 = vld [vmem:[%s15683_s4 + $0x20c] ss:$48 sps:$4 sm:$0xff]  }
 0x2b0   :  { %5920 = vmatpush2.bf16.msra.mxu1 %v9341_v22  ;;  %5880 = vmatprep.subr.bf16.mxu0 %v9346_v23  ;;  %v9385_v22 = vld [vmem:[%s15683_s4 + $0x80c] ss:$48 sps:$4 sm:$0xff]  }
 0x2b1   :  { %5921 = vmatprep.subr.bf16.mxu1 %v9349_v3 }
 0x2b3   :  { %5881 = vmatpush2.bf16.msra.mxu0 %v9344_v24 }
 0x2b4   :  { %5922 = vmatpush2.bf16.msra.mxu1 %v9347_v26  ;;  %5882 = vmatprep.subr.bf16.mxu0 %v9352_v28 }
 0x2b5   :  { %5923 = vmatprep.subr.bf16.mxu1 %v9355_v29  ;;  %v9380_v29 = vld [vmem:[%s15683_s4 + $0x208] ss:$48 sps:$4 sm:$0xff]  }
 0x2b7   :  { %5883 = vmatpush2.bf16.msra.mxu0 %v9350_v15  ;;  %v9383_v15 = vld [vmem:[%s15683_s4 + $0x808] ss:$48 sps:$4 sm:$0xff]  }
 0x2b8   :  { %5924 = vmatpush2.bf16.msra.mxu1 %v9353_v30  ;;  %5884 = vmatprep.subr.bf16.mxu0 %v9358_v35 }
 0x2b9   :  { %5925 = vmatprep.subr.bf16.mxu1 %v9361_v25  ;;  %v9388_v25 = vld [vmem:[%s15683_s4 + $0x1ac] ss:$48 sps:$4 sm:$0xff]  }
 0x2bb   :  { %5885 = vmatpush2.bf16.msra.mxu0 %v9356_v37  ;;  %v9391_v37 = vld [vmem:[%s15683_s4 + $0x7ac] ss:$48 sps:$4 sm:$0xff]  }
 0x2bc   :  { %5926 = vmatpush2.bf16.msra.mxu1 %v9359_v40  ;;  %5886 = vmatprep.subr.bf16.mxu0 %v9364_v41  ;;  %v9386_v40 = vld [vmem:[%s15683_s4 + $0x1a8] ss:$48 sps:$4 sm:$0xff]  }
 0x2bd   :  { %5927 = vmatprep.subr.bf16.mxu1 %v9367_v43  ;;  %v9389_v41 = vld [vmem:[%s15683_s4 + $0x7a8] ss:$48 sps:$4 sm:$0xff]   ;;  %v9394_v43 = vld [vmem:[%s15683_s4 + $0x14c] ss:$48 sps:$4 sm:$0xff]  }
 0x2bf   :  { %5887 = vmatpush2.bf16.msra.mxu0 %v9362_v46  ;;  %v9397_v46 = vld [vmem:[%s15683_s4 + $0x74c] ss:$48 sps:$4 sm:$0xff]  }
 0x2c0   :  { %5928 = vmatpush2.bf16.msra.mxu1 %v9365_v47  ;;  %5938 = vmatprep.subr.bf16.mxu0 %v9370_v7  ;;  %v9392_v47 = vld [vmem:[%s15683_s4 + $0x148] ss:$48 sps:$4 sm:$0xff]  }
 0x2c1   :  { %5979 = vmatprep.subr.bf16.mxu1 %v9373_v49  ;;  %v9395_v7 = vld [vmem:[%s15683_s4 + $0x748] ss:$48 sps:$4 sm:$0xff]   ;;  %v9400_v49 = vld [vmem:[%s15683_s4 + $0xec] ss:$48 sps:$4 sm:$0xff]  }
 0x2c2   :  { %v5644_v63 = vpop.f32.mrf.mxu0  ;;  %5889 = vmatmul.mubr.bf16.vlgmr.msra.gmra.mxu0 %v10393_v2 }
 0x2c3   :  { %v5685_v0 = vpop.f32.mrf.mxu1  ;;  %5930 = vmatmul.mubr.bf16.vlgmr.msra.gmra.mxu1 %v10393_v2  ;;  %v5645_v9 = vadd.f32 %v5644_v63, %v12781_v50  ;;  %5939 = vmatpush1.bf16.msra.mxu0 %v9368_v52  ;;  %v9403_v52 = vld [vmem:[%s15683_s4 + $0x6ec] ss:$48 sps:$4 sm:$0xff]  }
 0x2c4   :  { %5980 = vmatpush1.bf16.msra.mxu1 %v9371_v53  ;;  %v5646_v16 = vpop.f32.mrf.mxu0  ;;  %5940 = vmatprep.subr.bf16.mxu0 %v9376_v58  ;;  %v9398_v53 = vld [vmem:[%s15683_s4 + $0xe8] ss:$48 sps:$4 sm:$0xff]   ;;  %v9409_v63 = vld [vmem:[%s15683_s4 + $0x68c] ss:$48 sps:$4 sm:$0xff]  }
 0x2c5   :  { %v5687_v18 = vpop.f32.mrf.mxu1  ;;  %5981 = vmatprep.subr.bf16.mxu1 %v9379_v60  ;;  %v12814_v23 = vadd.f32 %v5685_v0, %v5645_v9  ;;  %v5647_v3 = vadd.f32 %v5646_v16, %v12797_v51  ;;  %5970 = vmatprep.mubr.bf16.mxu0 %v10393_v2  ;;  %v9401_v58 = vld [vmem:[%s15683_s4 + $0x6e8] ss:$48 sps:$4 sm:$0xff]   ;;  %v9406_v60 = vld [vmem:[%s15683_s4 + $0x8c] ss:$48 sps:$4 sm:$0xff]  }
 0x2c6   :  { %6011 = vmatprep.mubr.bf16.mxu1 %v10393_v2  ;;  %v5648_v24 = vpop.f32.mrf.mxu0  ;;  %v9404_v0 = vld [vmem:[%s15683_s4 + $0x88] ss:$48 sps:$4 sm:$0xff]  }
 0x2c7   :  { %v5689_v26 = vpop.f32.mrf.mxu1  ;;  %v12819_v28 = vadd.f32 %v5687_v18, %v5647_v3  ;;  %5941 = vmatpush1.bf16.msra.mxu0 %v9374_v33  ;;  %v9407_v9 = vld [vmem:[%s15683_s4 + $0x688] ss:$48 sps:$4 sm:$0xff]   ;;  %v9412_v33 = vld [vmem:[%s15683_s4 + $0x2c] ss:$48 sps:$4 sm:$0xff]  }
 0x2c8   :  { %5982 = vmatpush1.bf16.msra.mxu1 %v9377_v12  ;;  %v5649_v30 = vpop.f32.mrf.mxu0  ;;  %5942 = vmatprep.subr.bf16.mxu0 %v9382_v20  ;;  %v9415_v12 = vld [vmem:[%s15683_s4 + $0x62c] ss:$48 sps:$4 sm:$0xff]   ;;  %v9410_v16 = vld [vmem:[%s15683_s4 + $0x28] ss:$48 sps:$4 sm:$0xff]  }
 0x2c9   :  { %v5690_v35 = vpop.f32.mrf.mxu1  ;;  %5983 = vmatprep.subr.bf16.mxu1 %v9385_v22  ;;  %v9413_v18 = vld [vmem:[%s15683_s4 + $0x628] ss:$48 sps:$4 sm:$0xff]   ;;  %v9418_v20 = vld [vmem:[%s15683_s4 + $0x5cc] ss:$48 sps:$4 sm:$0xff]  }
 0x2ca   :  { %v9421_v22 = vld [vmem:[%s15683_s4 + $0xbcc] ss:$48 sps:$4 sm:$0xff]   ;;  %v9416_v3 = vld [vmem:[%s15683_s4 + $0x5c8] ss:$48 sps:$4 sm:$0xff]  }
 0x2cb   :  { %5943 = vmatpush1.bf16.msra.mxu0 %v9380_v29  ;;  %v9419_v24 = vld [vmem:[%s15683_s4 + $0xbc8] ss:$48 sps:$4 sm:$0xff]   ;;  %v9424_v26 = vld [vmem:[%s15683_s4 + $0x56c] ss:$48 sps:$4 sm:$0xff]  }
 0x2cc   :  { %5984 = vmatpush1.bf16.msra.mxu1 %v9383_v15  ;;  %5944 = vmatprep.subr.bf16.mxu0 %v9388_v25  ;;  %v9427_v29 = vld [vmem:[%s15683_s4 + $0xb6c] ss:$48 sps:$4 sm:$0xff]   ;;  %v9422_v15 = vld [vmem:[%s15683_s4 + $0x568] ss:$48 sps:$4 sm:$0xff]  }
 0x2cd   :  { %5985 = vmatprep.subr.bf16.mxu1 %v9391_v37  ;;  %v9425_v30 = vld [vmem:[%s15683_s4 + $0xb68] ss:$48 sps:$4 sm:$0xff]   ;;  %v9430_v35 = vld [vmem:[%s15683_s4 + $0x50c] ss:$48 sps:$4 sm:$0xff]  }
 0x2ce   :  { %v9433_v25 = vld [vmem:[%s15683_s4 + $0xb0c] ss:$48 sps:$4 sm:$0xff]   ;;  %v9428_v37 = vld [vmem:[%s15683_s4 + $0x508] ss:$48 sps:$4 sm:$0xff]  }
 0x2cf   :  { %5945 = vmatpush1.bf16.msra.mxu0 %v9386_v40  ;;  %v9431_v40 = vld [vmem:[%s15683_s4 + $0xb08] ss:$48 sps:$4 sm:$0xff]  }
 0x2d0   :  { %5986 = vmatpush1.bf16.msra.mxu1 %v9389_v41  ;;  %5946 = vmatprep.subr.bf16.mxu0 %v9394_v43  ;;  %v9436_v41 = vld [vmem:[%s15683_s4 + $0x4ac] ss:$48 sps:$4 sm:$0xff]  }
 0x2d1   :  { %5987 = vmatprep.subr.bf16.mxu1 %v9397_v46  ;;  %v9439_v43 = vld [vmem:[%s15683_s4 + $0xaac] ss:$48 sps:$4 sm:$0xff]   ;;  %v9434_v46 = vld [vmem:[%s15683_s4 + $0x4a8] ss:$48 sps:$4 sm:$0xff]  }
 0x2d3   :  { %5947 = vmatpush1.bf16.msra.mxu0 %v9392_v47  ;;  %v9437_v47 = vld [vmem:[%s15683_s4 + $0xaa8] ss:$48 sps:$4 sm:$0xff]  }
 0x2d4   :  { %5988 = vmatpush1.bf16.msra.mxu1 %v9395_v7  ;;  %5948 = vmatprep.subr.bf16.mxu0 %v9400_v49  ;;  %v9442_v7 = vld [vmem:[%s15683_s4 + $0x44c] ss:$48 sps:$4 sm:$0xff]  }
 0x2d5   :  { %5989 = vmatprep.subr.bf16.mxu1 %v9403_v52  ;;  %v9445_v49 = vld [vmem:[%s15683_s4 + $0xa4c] ss:$48 sps:$4 sm:$0xff]   ;;  %v9440_v52 = vld [vmem:[%s15683_s4 + $0x448] ss:$48 sps:$4 sm:$0xff]  }
 0x2d7   :  { %5949 = vmatpush1.bf16.msra.mxu0 %v9398_v53  ;;  %v9443_v53 = vld [vmem:[%s15683_s4 + $0xa48] ss:$48 sps:$4 sm:$0xff]  }
 0x2d8   :  { %5990 = vmatpush1.bf16.msra.mxu1 %v9401_v58  ;;  %5950 = vmatprep.subr.bf16.mxu0 %v9406_v60  ;;  %v9448_v58 = vld [vmem:[%s15683_s4 + $0x3ec] ss:$48 sps:$4 sm:$0xff]  }
 0x2d9   :  { %5991 = vmatprep.subr.bf16.mxu1 %v9409_v63  ;;  %v9451_v60 = vld [vmem:[%s15683_s4 + $0x9ec] ss:$48 sps:$4 sm:$0xff]   ;;  %v9446_v63 = vld [vmem:[%s15683_s4 + $0x3e8] ss:$48 sps:$4 sm:$0xff]  }
 0x2db   :  { %5951 = vmatpush1.bf16.msra.mxu0 %v9404_v0  ;;  %v9449_v0 = vld [vmem:[%s15683_s4 + $0x9e8] ss:$48 sps:$4 sm:$0xff]  }
 0x2dc   :  { %5992 = vmatpush1.bf16.msra.mxu1 %v9407_v9  ;;  %5952 = vmatprep.subr.bf16.mxu0 %v9412_v33  ;;  %v9454_v9 = vld [vmem:[%s15683_s4 + $0x38c] ss:$48 sps:$4 sm:$0xff]  }
 0x2dd   :  { %5993 = vmatprep.subr.bf16.mxu1 %v9415_v12  ;;  %v9457_v33 = vld [vmem:[%s15683_s4 + $0x98c] ss:$48 sps:$4 sm:$0xff]   ;;  %v9452_v12 = vld [vmem:[%s15683_s4 + $0x388] ss:$48 sps:$4 sm:$0xff]  }
 0x2df   :  { %5953 = vmatpush1.bf16.msra.mxu0 %v9410_v16  ;;  %v9455_v16 = vld [vmem:[%s15683_s4 + $0x988] ss:$48 sps:$4 sm:$0xff]  }
 0x2e0   :  { %5994 = vmatpush1.bf16.msra.mxu1 %v9413_v18  ;;  %5954 = vmatprep.subr.bf16.mxu0 %v9418_v20  ;;  %v9460_v18 = vld [vmem:[%s15683_s4 + $0x32c] ss:$48 sps:$4 sm:$0xff]  }
 0x2e1   :  { %5995 = vmatprep.subr.bf16.mxu1 %v9421_v22  ;;  %v9463_v20 = vld [vmem:[%s15683_s4 + $0x92c] ss:$48 sps:$4 sm:$0xff]   ;;  %v9458_v22 = vld [vmem:[%s15683_s4 + $0x328] ss:$48 sps:$4 sm:$0xff]  }
 0x2e3   :  { %5955 = vmatpush2.bf16.msra.mxu0 %v9416_v3  ;;  %v9461_v3 = vld [vmem:[%s15683_s4 + $0x928] ss:$48 sps:$4 sm:$0xff]  }
 0x2e4   :  { %5996 = vmatpush2.bf16.msra.mxu1 %v9419_v24  ;;  %5956 = vmatprep.subr.bf16.mxu0 %v9424_v26  ;;  %v12986_v24 = vrot.slane %v12561_v31, %v605_v62  ;;  %v9625_v26 = vld [vmem:[%s15681_s2 + $0x2a4] ss:$48 sps:$4 sm:$0xff]  }
 0x2e5   :  { %5997 = vmatprep.subr.bf16.mxu1 %v9427_v29  ;;  %v9626_v29 = vld [vmem:[%s15681_s2 + $0x8a4] ss:$48 sps:$4 sm:$0xff]  }
 0x2e7   :  { %5957 = vmatpush2.bf16.msra.mxu0 %v9422_v15  ;;  %v12996_v15 = vpack.c.bf16 %v12241_v56, %v12241_v56 }
 0x2e8   :  { %5998 = vmatpush2.bf16.msra.mxu1 %v9425_v30  ;;  %5958 = vmatprep.subr.bf16.mxu0 %v9430_v35  ;;  %v13001_v30 = vrot.slane %v12561_v31, %v609_v4  ;;  %v9628_v4 = vld [vmem:[%s15681_s2 + $0x8a0] ss:$48 sps:$4 sm:$0xff]  }
 0x2e9   :  { %5999 = vmatprep.subr.bf16.mxu1 %v9433_v25  ;;  %v13007_v25 = vpack.c.bf16 %v12466_v34, %v12466_v34 }
 0x2eb   :  { %5959 = vmatpush2.bf16.msra.mxu0 %v9428_v37 }
 0x2ec   :  { %6000 = vmatpush2.bf16.msra.mxu1 %v9431_v40  ;;  %5960 = vmatprep.subr.bf16.mxu0 %v9436_v41  ;;  %v9627_v40 = vld [vmem:[%s15681_s2 + $0x2a0] ss:$48 sps:$4 sm:$0xff]  }
 0x2ed   :  { %6001 = vmatprep.subr.bf16.mxu1 %v9439_v43 }
 0x2ef   :  { %5961 = vmatpush2.bf16.msra.mxu0 %v9434_v46 }
 0x2f0   :  { %6002 = vmatpush2.bf16.msra.mxu1 %v9437_v47  ;;  %5962 = vmatprep.subr.bf16.mxu0 %v9442_v7  ;;  %v9629_v47 = vld [vmem:[%s15681_s2 + $0x244] ss:$48 sps:$4 sm:$0xff]  }
 0x2f1   :  { %6003 = vmatprep.subr.bf16.mxu1 %v9445_v49  ;;  %v9630_v7 = vld [vmem:[%s15681_s2 + $0x844] ss:$48 sps:$4 sm:$0xff]  }
 0x2f3   :  { %5963 = vmatpush2.bf16.msra.mxu0 %v9440_v52 }
 0x2f4   :  { %6004 = vmatpush2.bf16.msra.mxu1 %v9443_v53  ;;  %5964 = vmatprep.subr.bf16.mxu0 %v9448_v58  ;;  %v9631_v58 = vld [vmem:[%s15681_s2 + $0x240] ss:$48 sps:$4 sm:$0xff]  }
 0x2f5   :  { %6005 = vmatprep.subr.bf16.mxu1 %v9451_v60  ;;  %v9632_v60 = vld [vmem:[%s15681_s2 + $0x840] ss:$48 sps:$4 sm:$0xff]  }
 0x2f7   :  { %5965 = vmatpush2.bf16.msra.mxu0 %v9446_v63 }
 0x2f8   :  { %6006 = vmatpush2.bf16.msra.mxu1 %v9449_v0  ;;  %5966 = vmatprep.subr.bf16.mxu0 %v9454_v9  ;;  %v9633_v9 = vld [vmem:[%s15681_s2 + $0x1e4] ss:$48 sps:$4 sm:$0xff]  }
 0x2f9   :  { %6007 = vmatprep.subr.bf16.mxu1 %v9457_v33  ;;  %v9634_v33 = vld [vmem:[%s15681_s2 + $0x7e4] ss:$48 sps:$4 sm:$0xff]  }
 0x2fb   :  { %5967 = vmatpush2.bf16.msra.mxu0 %v9452_v12  ;;  %v9635_v12 = vld [vmem:[%s15681_s2 + $0x1e0] ss:$48 sps:$4 sm:$0xff]  }
 0x2fc   :  { %6008 = vmatpush2.bf16.msra.mxu1 %v9455_v16  ;;  %5968 = vmatprep.subr.bf16.mxu0 %v9460_v18  ;;  %v9636_v16 = vld [vmem:[%s15681_s2 + $0x7e0] ss:$48 sps:$4 sm:$0xff]   ;;  %v9637_v18 = vld [vmem:[%s15681_s2 + $0x184] ss:$48 sps:$4 sm:$0xff]  }
 0x2fd   :  { %6009 = vmatprep.subr.bf16.mxu1 %v9463_v20  ;;  %v9638_v20 = vld [vmem:[%s15681_s2 + $0x784] ss:$48 sps:$4 sm:$0xff]  }
 0x2ff   :  { %5969 = vmatpush2.bf16.msra.mxu0 %v9458_v22  ;;  %v9639_v22 = vld [vmem:[%s15681_s2 + $0x180] ss:$48 sps:$4 sm:$0xff]  }
 0x300   :  { %6010 = vmatpush2.bf16.msra.mxu1 %v9461_v3  ;;  %6169 = vmatprep.subr.bf16.mxu0 %v9625_v26  ;;  %v9640_v3 = vld [vmem:[%s15681_s2 + $0x780] ss:$48 sps:$4 sm:$0xff]   ;;  %v9641_v26 = vld [vmem:[%s15681_s2 + $0x124] ss:$48 sps:$4 sm:$0xff]  }
 0x301   :  { %6210 = vmatprep.subr.bf16.mxu1 %v9626_v29  ;;  %v9642_v29 = vld [vmem:[%s15681_s2 + $0x724] ss:$48 sps:$4 sm:$0xff]  }
 0x302   :  { %v5726_v62 = vpop.f32.mrf.mxu0  ;;  %5971 = vmatmul.mubr.bf16.vlgmr.msra.gmra.mxu0 %v10393_v2 }
 0x303   :  { %v5767_v35 = vpop.f32.mrf.mxu1  ;;  %6012 = vmatmul.mubr.bf16.vlgmr.msra.gmra.mxu1 %v10393_v2  ;;  %v5727_v37 = vadd.f32 %v5726_v62, %v12986_v24  ;;  %6170 = vmatpush1.bf16.msra.mxu0 %v9627_v40  ;;  %v9643_v62 = vld [vmem:[%s15681_s2 + $0x120] ss:$48 sps:$4 sm:$0xff]   ;;  %v9646_v40 = vld [vmem:[%s15681_s2 + $0x6c4] ss:$48 sps:$4 sm:$0xff]  }
 0x304   :  { %6201 = vmatprep.mubr.bf16.mxu0 %v12996_v15  ;;  %6211 = vmatpush1.bf16.msra.mxu1 %v9628_v4  ;;  %v5728_v2 = vpop.f32.mrf.mxu0  ;;  %v9647_v4 = vld [vmem:[%s15681_s2 + $0xc0] ss:$48 sps:$4 sm:$0xff]  }
 0x305   :  { %6242 = vmatprep.mubr.bf16.mxu1 %v13007_v25  ;;  %v5769_v41 = vpop.f32.mrf.mxu1  ;;  %v13018_v43 = vadd.f32 %v5767_v35, %v5727_v37  ;;  %v5729_v46 = vadd.f32 %v5728_v2, %v13001_v30  ;;  %6171 = vmatprep.subr.bf16.mxu0 %v9629_v47  ;;  %v9644_v35 = vld [vmem:[%s15681_s2 + $0x720] ss:$48 sps:$4 sm:$0xff]   ;;  %v9645_v37 = vld [vmem:[%s15681_s2 + $0xc4] ss:$48 sps:$4 sm:$0xff]  }
 0x306   :  { %6212 = vmatprep.subr.bf16.mxu1 %v9630_v7  ;;  %v5730_v49 = vpop.f32.mrf.mxu0  ;;  %v9648_v2 = vld [vmem:[%s15681_s2 + $0x6c0] ss:$48 sps:$4 sm:$0xff]  }
 0x307   :  { %v5771_v52 = vpop.f32.mrf.mxu1  ;;  %v13027_v53 = vadd.f32 %v5769_v41, %v5729_v46  ;;  %6172 = vmatpush1.bf16.msra.mxu0 %v9631_v58  ;;  %v9649_v41 = vld [vmem:[%s15681_s2 + $0x64] ss:$48 sps:$4 sm:$0xff]   ;;  %v9651_v47 = vld [vmem:[%s15681_s2 + $0x60] ss:$48 sps:$4 sm:$0xff]  }
 0x308   :  { %6213 = vmatpush1.bf16.msra.mxu1 %v9632_v60  ;;  %v5731_v63 = vpop.f32.mrf.mxu0  ;;  %6173 = vmatprep.subr.bf16.mxu0 %v9633_v9  ;;  %v9650_v46 = vld [vmem:[%s15681_s2 + $0x664] ss:$48 sps:$4 sm:$0xff]   ;;  %v9652_v7 = vld [vmem:[%s15681_s2 + $0x660] ss:$48 sps:$4 sm:$0xff]  }
 0x309   :  { %v5772_v0 = vpop.f32.mrf.mxu1  ;;  %6214 = vmatprep.subr.bf16.mxu1 %v9634_v33  ;;  %v9653_v49 = vld [vmem:[%s15681_s2 + $0x4] ss:$48 sps:$4 sm:$0xff]   ;;  %v9655_v58 = vld [vmem:[%s15681_s2] ss:$48 sps:$4 sm:$0xff]  }
 0x30a   :  { %v9654_v52 = vld [vmem:[%s15681_s2 + $0x604] ss:$48 sps:$4 sm:$0xff]   ;;  %v9656_v60 = vld [vmem:[%s15681_s2 + $0x600] ss:$48 sps:$4 sm:$0xff]  }
 0x30b   :  { %6174 = vmatpush1.bf16.msra.mxu0 %v9635_v12  ;;  %v9657_v63 = vld [vmem:[%s15681_s2 + $0x5a4] ss:$48 sps:$4 sm:$0xff]   ;;  %v9659_v9 = vld [vmem:[%s15681_s2 + $0x5a0] ss:$48 sps:$4 sm:$0xff]  }
 0x30c   :  { %6215 = vmatpush1.bf16.msra.mxu1 %v9636_v16  ;;  %6175 = vmatprep.subr.bf16.mxu0 %v9637_v18  ;;  %v9658_v0 = vld [vmem:[%s15681_s2 + $0xba4] ss:$48 sps:$4 sm:$0xff]   ;;  %v9660_v33 = vld [vmem:[%s15681_s2 + $0xba0] ss:$48 sps:$4 sm:$0xff]  }
 0x30d   :  { %6216 = vmatprep.subr.bf16.mxu1 %v9638_v20  ;;  %v9661_v12 = vld [vmem:[%s15681_s2 + $0x544] ss:$48 sps:$4 sm:$0xff]   ;;  %v9663_v18 = vld [vmem:[%s15681_s2 + $0x540] ss:$48 sps:$4 sm:$0xff]  }
 0x30e   :  { %v9662_v16 = vld [vmem:[%s15681_s2 + $0xb44] ss:$48 sps:$4 sm:$0xff]   ;;  %v9664_v20 = vld [vmem:[%s15681_s2 + $0xb40] ss:$48 sps:$4 sm:$0xff]  }
 0x30f   :  { %6176 = vmatpush1.bf16.msra.mxu0 %v9639_v22  ;;  %v9665_v22 = vld [vmem:[%s15681_s2 + $0x4e4] ss:$48 sps:$4 sm:$0xff]  }
 0x310   :  { %6217 = vmatpush1.bf16.msra.mxu1 %v9640_v3  ;;  %6177 = vmatprep.subr.bf16.mxu0 %v9641_v26  ;;  %v9666_v3 = vld [vmem:[%s15681_s2 + $0xae4] ss:$48 sps:$4 sm:$0xff]   ;;  %v9667_v26 = vld [vmem:[%s15681_s2 + $0x4e0] ss:$48 sps:$4 sm:$0xff]  }
 0x311   :  { %6218 = vmatprep.subr.bf16.mxu1 %v9642_v29  ;;  %v9668_v29 = vld [vmem:[%s15681_s2 + $0xae0] ss:$48 sps:$4 sm:$0xff]  }
 0x313   :  { %6178 = vmatpush1.bf16.msra.mxu0 %v9643_v62  ;;  %v9669_v62 = vld [vmem:[%s15681_s2 + $0x484] ss:$48 sps:$4 sm:$0xff]  }
 0x314   :  { %6219 = vmatpush1.bf16.msra.mxu1 %v9644_v35  ;;  %6179 = vmatprep.subr.bf16.mxu0 %v9645_v37  ;;  %v9670_v35 = vld [vmem:[%s15681_s2 + $0xa84] ss:$48 sps:$4 sm:$0xff]   ;;  %v9671_v37 = vld [vmem:[%s15681_s2 + $0x480] ss:$48 sps:$4 sm:$0xff]  }
 0x315   :  { %6220 = vmatprep.subr.bf16.mxu1 %v9646_v40  ;;  %v9672_v40 = vld [vmem:[%s15681_s2 + $0xa80] ss:$48 sps:$4 sm:$0xff]  }
 0x317   :  { %6180 = vmatpush1.bf16.msra.mxu0 %v9647_v4  ;;  %v9673_v4 = vld [vmem:[%s15681_s2 + $0x424] ss:$48 sps:$4 sm:$0xff]  }
 0x318   :  { %6221 = vmatpush1.bf16.msra.mxu1 %v9648_v2  ;;  %6181 = vmatprep.subr.bf16.mxu0 %v9649_v41  ;;  %v9674_v2 = vld [vmem:[%s15681_s2 + $0xa24] ss:$48 sps:$4 sm:$0xff]   ;;  %v9675_v41 = vld [vmem:[%s15681_s2 + $0x420] ss:$48 sps:$4 sm:$0xff]  }
 0x319   :  { %6222 = vmatprep.subr.bf16.mxu1 %v9650_v46  ;;  %v9676_v46 = vld [vmem:[%s15681_s2 + $0xa20] ss:$48 sps:$4 sm:$0xff]  }
 0x31b   :  { %6182 = vmatpush1.bf16.msra.mxu0 %v9651_v47  ;;  %v9677_v47 = vld [vmem:[%s15681_s2 + $0x3c4] ss:$48 sps:$4 sm:$0xff]  }
 0x31c   :  { %6223 = vmatpush1.bf16.msra.mxu1 %v9652_v7  ;;  %6183 = vmatprep.subr.bf16.mxu0 %v9653_v49  ;;  %v9678_v7 = vld [vmem:[%s15681_s2 + $0x9c4] ss:$48 sps:$4 sm:$0xff]   ;;  %v9679_v49 = vld [vmem:[%s15681_s2 + $0x3c0] ss:$48 sps:$4 sm:$0xff]  }
 0x31d   :  { %6224 = vmatprep.subr.bf16.mxu1 %v9654_v52  ;;  %v9680_v52 = vld [vmem:[%s15681_s2 + $0x9c0] ss:$48 sps:$4 sm:$0xff]  }
 0x31f   :  { %6184 = vmatpush1.bf16.msra.mxu0 %v9655_v58  ;;  %v9681_v58 = vld [vmem:[%s15681_s2 + $0x364] ss:$48 sps:$4 sm:$0xff]  }
 0x320   :  { %6225 = vmatpush1.bf16.msra.mxu1 %v9656_v60  ;;  %6185 = vmatprep.subr.bf16.mxu0 %v9657_v63  ;;  %v9682_v60 = vld [vmem:[%s15681_s2 + $0x964] ss:$48 sps:$4 sm:$0xff]   ;;  %v9683_v63 = vld [vmem:[%s15681_s2 + $0x360] ss:$48 sps:$4 sm:$0xff]  }
 0x321   :  { %6226 = vmatprep.subr.bf16.mxu1 %v9658_v0  ;;  %v9684_v0 = vld [vmem:[%s15681_s2 + $0x960] ss:$48 sps:$4 sm:$0xff]  }
 0x323   :  { %6186 = vmatpush2.bf16.msra.mxu0 %v9659_v9  ;;  %v9685_v9 = vld [vmem:[%s15681_s2 + $0x304] ss:$48 sps:$4 sm:$0xff]  }
 0x324   :  { %6227 = vmatpush2.bf16.msra.mxu1 %v9660_v33  ;;  %6187 = vmatprep.subr.bf16.mxu0 %v9661_v12  ;;  %v9686_v33 = vld [vmem:[%s15681_s2 + $0x904] ss:$48 sps:$4 sm:$0xff]   ;;  %v9687_v12 = vld [vmem:[%s15681_s2 + $0x300] ss:$48 sps:$4 sm:$0xff]  }
 0x325   :  { %6228 = vmatprep.subr.bf16.mxu1 %v9662_v16  ;;  %v13203_v16 = vrot.slane %v12561_v31, %v613_v48  ;;  %v9690_v48 = vld [vmem:[%s15681_s2 + $0x8ac] ss:$48 sps:$4 sm:$0xff]  }
 0x327   :  { %6188 = vmatpush2.bf16.msra.mxu0 %v9663_v18  ;;  %v9688_v18 = vld [vmem:[%s15681_s2 + $0x900] ss:$48 sps:$4 sm:$0xff]  }
 0x328   :  { %6229 = vmatpush2.bf16.msra.mxu1 %v9664_v20  ;;  %6189 = vmatprep.subr.bf16.mxu0 %v9665_v22  ;;  %v13210_v20 = vpack.c.bf16 %v12223_v45, %v12223_v45  ;;  %v9689_v22 = vld [vmem:[%s15681_s2 + $0x2ac] ss:$48 sps:$4 sm:$0xff]  }
 0x329   :  { %6230 = vmatprep.subr.bf16.mxu1 %v9666_v3  ;;  %v13217_v3 = vpack.c.bf16 %v12452_v36, %v12452_v36 }
 0x32b   :  { %6190 = vmatpush2.bf16.msra.mxu0 %v9667_v26  ;;  %v13225_v26 = vrot.slane %v12561_v31, %v617_v54  ;;  %v9692_v54 = vld [vmem:[%s15681_s2 + $0x8a8] ss:$48 sps:$4 sm:$0xff]  }
 0x32c   :  { %6231 = vmatpush2.bf16.msra.mxu1 %v9668_v29  ;;  %6191 = vmatprep.subr.bf16.mxu0 %v9669_v62 }
 0x32d   :  { %6232 = vmatprep.subr.bf16.mxu1 %v9670_v35 }
 0x32f   :  { %6192 = vmatpush2.bf16.msra.mxu0 %v9671_v37  ;;  %v9691_v37 = vld [vmem:[%s15681_s2 + $0x2a8] ss:$48 sps:$4 sm:$0xff]  }
 0x330   :  { %6233 = vmatpush2.bf16.msra.mxu1 %v9672_v40  ;;  %6193 = vmatprep.subr.bf16.mxu0 %v9673_v4 }
 0x331   :  { %6234 = vmatprep.subr.bf16.mxu1 %v9674_v2 }
 0x333   :  { %6194 = vmatpush2.bf16.msra.mxu0 %v9675_v41  ;;  %v9693_v41 = vld [vmem:[%s15681_s2 + $0x24c] ss:$48 sps:$4 sm:$0xff]  }
 0x334   :  { %6235 = vmatpush2.bf16.msra.mxu1 %v9676_v46  ;;  %6195 = vmatprep.subr.bf16.mxu0 %v9677_v47 }
 0x335   :  { %6236 = vmatprep.subr.bf16.mxu1 %v9678_v7  ;;  %v9694_v7 = vld [vmem:[%s15681_s2 + $0x84c] ss:$48 sps:$4 sm:$0xff]  }
 0x337   :  { %6196 = vmatpush2.bf16.msra.mxu0 %v9679_v49 }
 0x338   :  { %6237 = vmatpush2.bf16.msra.mxu1 %v9680_v52  ;;  %6197 = vmatprep.subr.bf16.mxu0 %v9681_v58  ;;  %v9695_v52 = vld [vmem:[%s15681_s2 + $0x248] ss:$48 sps:$4 sm:$0xff]  }
 0x339   :  { %6238 = vmatprep.subr.bf16.mxu1 %v9682_v60  ;;  %v9696_v58 = vld [vmem:[%s15681_s2 + $0x848] ss:$48 sps:$4 sm:$0xff]  }
 0x33b   :  { %6198 = vmatpush2.bf16.msra.mxu0 %v9683_v63 }
 0x33c   :  { %6239 = vmatpush2.bf16.msra.mxu1 %v9684_v0  ;;  %6199 = vmatprep.subr.bf16.mxu0 %v9685_v9  ;;  %v9697_v0 = vld [vmem:[%s15681_s2 + $0x1ec] ss:$48 sps:$4 sm:$0xff]  }
 0x33d   :  { %6240 = vmatprep.subr.bf16.mxu1 %v9686_v33  ;;  %v9698_v9 = vld [vmem:[%s15681_s2 + $0x7ec] ss:$48 sps:$4 sm:$0xff]   ;;  %v9699_v33 = vld [vmem:[%s15681_s2 + $0x1e8] ss:$48 sps:$4 sm:$0xff]  }
 0x33f   :  { %6200 = vmatpush2.bf16.msra.mxu0 %v9687_v12  ;;  %v9700_v12 = vld [vmem:[%s15681_s2 + $0x7e8] ss:$48 sps:$4 sm:$0xff]  }
 0x340   :  { %6241 = vmatpush2.bf16.msra.mxu1 %v9688_v18  ;;  %6251 = vmatprep.subr.bf16.mxu0 %v9689_v22  ;;  %v9701_v18 = vld [vmem:[%s15681_s2 + $0x18c] ss:$48 sps:$4 sm:$0xff]  }
 0x341   :  { %6292 = vmatprep.subr.bf16.mxu1 %v9690_v48  ;;  %v9702_v22 = vld [vmem:[%s15681_s2 + $0x78c] ss:$48 sps:$4 sm:$0xff]   ;;  %v9703_v48 = vld [vmem:[%s15681_s2 + $0x188] ss:$48 sps:$4 sm:$0xff]  }
 0x342   :  { %v5808_v29 = vpop.f32.mrf.mxu0  ;;  %6202 = vmatmul.mubr.bf16.vlgmr.msra.gmra.mxu0 %v13210_v20 }
 0x343   :  { %v5849_v62 = vpop.f32.mrf.mxu1  ;;  %v5809_v35 = vadd.f32 %v5808_v29, %v13203_v16  ;;  %6243 = vmatmul.mubr.bf16.vlgmr.msra.gmra.mxu1 %v13217_v3  ;;  %6252 = vmatpush1.bf16.msra.mxu0 %v9691_v37  ;;  %v9704_v29 = vld [vmem:[%s15681_s2 + $0x788] ss:$48 sps:$4 sm:$0xff]  }
 0x344   :  { %6283 = vmatprep.mubr.bf16.mxu0 %v12996_v15  ;;  %6293 = vmatpush1.bf16.msra.mxu1 %v9692_v54  ;;  %v5810_v31 = vpop.f32.mrf.mxu0  ;;  %v9707_v37 = vld [vmem:[%s15681_s2 + $0x128] ss:$48 sps:$4 sm:$0xff]  }
 0x345   :  { %v5851_v40 = vpop.f32.mrf.mxu1  ;;  %v13237_v4 = vadd.f32 %v5849_v62, %v5809_v35  ;;  %6324 = vmatprep.mubr.bf16.mxu1 %v13007_v25  ;;  %v5811_v2 = vadd.f32 %v5810_v31, %v13225_v26  ;;  %6253 = vmatprep.subr.bf16.mxu0 %v9693_v41  ;;  %v9705_v62 = vld [vmem:[%s15681_s2 + $0x12c] ss:$48 sps:$4 sm:$0xff]   ;;  %v9708_v54 = vld [vmem:[%s15681_s2 + $0x728] ss:$48 sps:$4 sm:$0xff]  }
 0x346   :  { %v5812_v46 = vpop.f32.mrf.mxu0  ;;  %6294 = vmatprep.subr.bf16.mxu1 %v9694_v7  ;;  %v9706_v35 = vld [vmem:[%s15681_s2 + $0x72c] ss:$48 sps:$4 sm:$0xff]   ;;  %v9712_v41 = vld [vmem:[%s15681_s2 + $0x6c8] ss:$48 sps:$4 sm:$0xff]   ;;  %v7498_v7 = vld [vmem:[%s15680_s1 + $0x120] sm:$0xff] }
 0x347   :  { %v5853_v47 = vpop.f32.mrf.mxu1  ;;  %v13247_v49 = vadd.f32 %v5851_v40, %v5811_v2  ;;  %6254 = vmatpush1.bf16.msra.mxu0 %v9695_v52  ;;  %v9709_v31 = vld [vmem:[%s15681_s2 + $0xcc] ss:$48 sps:$4 sm:$0xff]   ;;  %v9711_v2 = vld [vmem:[%s15681_s2 + $0xc8] ss:$48 sps:$4 sm:$0xff]  }
 0x348   :  { %6295 = vmatpush1.bf16.msra.mxu1 %v9696_v58  ;;  %v5813_v60 = vpop.f32.mrf.mxu0  ;;  %6255 = vmatprep.subr.bf16.mxu0 %v9697_v0  ;;  %v9710_v40 = vld [vmem:[%s15681_s2 + $0x6cc] ss:$48 sps:$4 sm:$0xff]   ;;  %v9715_v52 = vld [vmem:[%s15681_s2 + $0x68] ss:$48 sps:$4 sm:$0xff]   ;;  %v6020_v0 = vadd.f32 %v7498_v7, %v12604_v61 }
 0x349   :  { %v5854_v63 = vpop.f32.mrf.mxu1  ;;  %6296 = vmatprep.subr.bf16.mxu1 %v9698_v9  ;;  %v9713_v46 = vld [vmem:[%s15681_s2 + $0x6c] ss:$48 sps:$4 sm:$0xff]   ;;  %v9716_v60 = vld [vmem:[%s15681_s2 + $0x668] ss:$48 sps:$4 sm:$0xff]  }
 0x34a   :  { %v9714_v47 = vld [vmem:[%s15681_s2 + $0x66c] ss:$48 sps:$4 sm:$0xff]   ;;  %v9731_v7 = vld [vmem:[%s15681_s2 + $0x4e8] ss:$48 sps:$4 sm:$0xff]  }
 0x34b   :  { %6256 = vmatpush1.bf16.msra.mxu0 %v9699_v33  ;;  %v7499_v58 = vld [vmem:[%s15680_s1 + $0x128] sm:$0xff] }
 0x34c   :  { %6297 = vmatpush1.bf16.msra.mxu1 %v9700_v12  ;;  %6257 = vmatprep.subr.bf16.mxu0 %v9701_v18  ;;  %v9717_v63 = vld [vmem:[%s15681_s2 + $0xc] ss:$48 sps:$4 sm:$0xff]   ;;  %v6021_v33 = vadd.f32 %v7499_v58, %v12609_v5  ;;  %v9719_v12 = vld [vmem:[%s15681_s2 + $0x8] ss:$48 sps:$4 sm:$0xff]  }
 0x34d   :  { %6298 = vmatprep.subr.bf16.mxu1 %v9702_v22  ;;  %v9718_v9 = vld [vmem:[%s15681_s2 + $0x60c] ss:$48 sps:$4 sm:$0xff]   ;;  %v9720_v18 = vld [vmem:[%s15681_s2 + $0x608] ss:$48 sps:$4 sm:$0xff]   ;;  %v8286_v22 = vmul.f32 -1.442695, %v6020_v0 }
 0x34e   :  { %v9721_v61 = vld [vmem:[%s15681_s2 + $0x5ac] ss:$48 sps:$4 sm:$0xff]   ;;  %v9735_v0 = vld [vmem:[%s15681_s2 + $0x488] ss:$48 sps:$4 sm:$0xff]  }
 0x34f   :  { %6258 = vmatpush1.bf16.msra.mxu0 %v9703_v48  ;;  %v9722_v5 = vld [vmem:[%s15681_s2 + $0xbac] ss:$48 sps:$4 sm:$0xff]   ;;  %v8287_v48 = vmul.f32 -1.442695, %v6021_v33  ;;  %9504 = vpow2.f32 %v8286_v22 }
 0x350   :  { %6299 = vmatpush1.bf16.msra.mxu1 %v9704_v29  ;;  %6259 = vmatprep.subr.bf16.mxu0 %v9705_v62  ;;  %v9723_v29 = vld [vmem:[%s15681_s2 + $0x5a8] ss:$48 sps:$4 sm:$0xff]   ;;  %v9733_v58 = vld [vmem:[%s15681_s2 + $0x48c] ss:$48 sps:$4 sm:$0xff]  }
 0x351   :  { %6300 = vmatprep.subr.bf16.mxu1 %v9706_v35  ;;  %v9724_v62 = vld [vmem:[%s15681_s2 + $0xba8] ss:$48 sps:$4 sm:$0xff]   ;;  %v9725_v35 = vld [vmem:[%s15681_s2 + $0x54c] ss:$48 sps:$4 sm:$0xff]   ;;  %9506 = vpow2.f32 %v8287_v48 }
 0x352   :  { %v9741_v48 = vld [vmem:[%s15681_s2 + $0x3cc] ss:$48 sps:$4 sm:$0xff]  }
 0x353   :  { %6260 = vmatpush1.bf16.msra.mxu0 %v9707_v37  ;;  %v9726_v37 = vld [vmem:[%s15681_s2 + $0xb4c] ss:$48 sps:$4 sm:$0xff]  }
 0x354   :  { %6301 = vmatpush1.bf16.msra.mxu1 %v9708_v54  ;;  %6261 = vmatprep.subr.bf16.mxu0 %v9709_v31  ;;  %v9727_v54 = vld [vmem:[%s15681_s2 + $0x548] ss:$48 sps:$4 sm:$0xff]   ;;  %v7502_v31 = vld [vmem:[%s15680_s1 + $0x140] sm:$0xff] }
 0x355   :  { %6302 = vmatprep.subr.bf16.mxu1 %v9710_v40  ;;  %v9728_v40 = vld [vmem:[%s15681_s2 + $0xb48] ss:$48 sps:$4 sm:$0xff]  }
 0x357   :  { %6262 = vmatpush1.bf16.msra.mxu0 %v9711_v2  ;;  %v9729_v2 = vld [vmem:[%s15681_s2 + $0x4ec] ss:$48 sps:$4 sm:$0xff]  }
 0x358   :  { %6303 = vmatpush1.bf16.msra.mxu1 %v9712_v41  ;;  %6263 = vmatprep.subr.bf16.mxu0 %v9713_v46  ;;  %v9730_v41 = vld [vmem:[%s15681_s2 + $0xaec] ss:$48 sps:$4 sm:$0xff]  }
 0x359   :  { %6304 = vmatprep.subr.bf16.mxu1 %v9714_v47  ;;  %v7503_v46 = vld [vmem:[%s15680_s1 + $0x148] sm:$0xff]  ;;  %v6048_v47 = vadd.f32 %v7502_v31, %v13018_v43 }
 0x35a   :  { %v9734_v43 = vld [vmem:[%s15681_s2 + $0xa8c] ss:$48 sps:$4 sm:$0xff]  }
 0x35b   :  { %6264 = vmatpush1.bf16.msra.mxu0 %v9715_v52  ;;  %v9732_v52 = vld [vmem:[%s15681_s2 + $0xae8] ss:$48 sps:$4 sm:$0xff]   ;;  %v9745_v31 = vld [vmem:[%s15681_s2 + $0x36c] ss:$48 sps:$4 sm:$0xff]  }
 0x35c   :  { %6305 = vmatpush1.bf16.msra.mxu1 %v9716_v60  ;;  %6265 = vmatprep.subr.bf16.mxu0 %v9717_v63  ;;  %v6049_v60 = vadd.f32 %v7503_v46, %v13027_v53  ;;  %v8290_v63 = vmul.f32 -1.442695, %v6048_v47  ;;  %v9737_v53 = vld [vmem:[%s15681_s2 + $0x42c] ss:$48 sps:$4 sm:$0xff]   ;;  %v13433_v47 = vld [vmem:[%s15684_s5 + $0x8] sm:$0xf] }
 0x35d   :  { %6306 = vmatprep.subr.bf16.mxu1 %v9718_v9  ;;  %v9736_v9 = vld [vmem:[%s15681_s2 + $0xa88] ss:$48 sps:$4 sm:$0xff]   ;;  %v9749_v46 = vld [vmem:[%s15681_s2 + $0x30c] ss:$48 sps:$4 sm:$0xff]  }
 0x35e   :  { %v8291_v33 = vmul.f32 -1.442695, %v6049_v60  ;;  %9508 = vpow2.f32 %v8290_v63  ;;  %v9753_v63 = vld [vmem:[%s15681_s2 + $0x2b4] ss:$48 sps:$4 sm:$0xff]  }
 0x35f   :  { %6266 = vmatpush1.bf16.msra.mxu0 %v9719_v12  ;;  %v9738_v12 = vld [vmem:[%s15681_s2 + $0xa2c] ss:$48 sps:$4 sm:$0xff]  }
 0x360   :  { %6307 = vmatpush1.bf16.msra.mxu1 %v9720_v18  ;;  %6267 = vmatprep.subr.bf16.mxu0 %v9721_v61  ;;  %v9505_v18 = vpop.eup %9504  ;;  %v9739_v61 = vld [vmem:[%s15681_s2 + $0x428] ss:$48 sps:$4 sm:$0xff]   ;;  %9510 = vpow2.f32 %v8291_v33 }
 0x361   :  { %6308 = vmatprep.subr.bf16.mxu1 %v9722_v5  ;;  %v9507_v22 = vpop.eup %9506  ;;  %v9740_v5 = vld [vmem:[%s15681_s2 + $0xa28] ss:$48 sps:$4 sm:$0xff]  }
 0x363   :  { %6268 = vmatpush2.bf16.msra.mxu0 %v9723_v29  ;;  %v6036_v29 = vadd.f32 1.0, %v9505_v18 }
 0x364   :  { %6309 = vmatpush2.bf16.msra.mxu1 %v9724_v62  ;;  %6269 = vmatprep.subr.bf16.mxu0 %v9725_v35  ;;  %v9742_v62 = vld [vmem:[%s15681_s2 + $0x9cc] ss:$48 sps:$4 sm:$0xff]   ;;  %v6037_v35 = vadd.f32 1.0, %v9507_v22 }
 0x365   :  { %6310 = vmatprep.subr.bf16.mxu1 %v9726_v37  ;;  %v9743_v37 = vld [vmem:[%s15681_s2 + $0x3c8] ss:$48 sps:$4 sm:$0xff]   ;;  %9512 = vrcp.f32 %v6036_v29 }
 0x366   :  { %9514 = vrcp.f32 %v6037_v35  ;;  %v9757_v35 = vld [vmem:[%s15681_s2 + $0x254] ss:$48 sps:$4 sm:$0xff]  }
 0x367   :  { %6270 = vmatpush2.bf16.msra.mxu0 %v9727_v54  ;;  %v9744_v54 = vld [vmem:[%s15681_s2 + $0x9c8] ss:$48 sps:$4 sm:$0xff]  }
 0x368   :  { %6311 = vmatpush2.bf16.msra.mxu1 %v9728_v40  ;;  %6271 = vmatprep.subr.bf16.mxu0 %v9729_v2  ;;  %v9746_v40 = vld [vmem:[%s15681_s2 + $0x96c] ss:$48 sps:$4 sm:$0xff]   ;;  %v9747_v2 = vld [vmem:[%s15681_s2 + $0x368] ss:$48 sps:$4 sm:$0xff]  }
 0x369   :  { %6312 = vmatprep.subr.bf16.mxu1 %v9730_v41  ;;  %v9748_v41 = vld [vmem:[%s15681_s2 + $0x968] ss:$48 sps:$4 sm:$0xff]  }
 0x36b   :  { %6272 = vmatpush2.bf16.msra.mxu0 %v9731_v7  ;;  %v9750_v7 = vld [vmem:[%s15681_s2 + $0x90c] ss:$48 sps:$4 sm:$0xff]   ;;  %v9509_v60 = vpop.eup %9508 }
 0x36c   :  { %6313 = vmatpush2.bf16.msra.mxu1 %v9732_v52  ;;  %6273 = vmatprep.subr.bf16.mxu0 %v9733_v58  ;;  %v9751_v52 = vld [vmem:[%s15681_s2 + $0x308] ss:$48 sps:$4 sm:$0xff]   ;;  %v13443_v58 = vrot.slane %v13433_v47, %v11225_v8  ;;  %v13456_v8 = vrot.slane %v13433_v47, %v11234_v11  ;;  %v9756_v11 = vld [vmem:[%s15681_s2 + $0x8b0] ss:$48 sps:$4 sm:$0xff]  }
 0x36d   :  { %6314 = vmatprep.subr.bf16.mxu1 %v9734_v43  ;;  %v9752_v43 = vld [vmem:[%s15681_s2 + $0x908] ss:$48 sps:$4 sm:$0xff]  }
 0x36f   :  { %6274 = vmatpush2.bf16.msra.mxu0 %v9735_v0  ;;  %v9754_v0 = vld [vmem:[%s15681_s2 + $0x8b4] ss:$48 sps:$4 sm:$0xff]  }
 0x370   :  { %6315 = vmatpush2.bf16.msra.mxu1 %v9736_v9  ;;  %6275 = vmatprep.subr.bf16.mxu0 %v9737_v53  ;;  %v9511_v9 = vpop.eup %9510 }
 0x371   :  { %6316 = vmatprep.subr.bf16.mxu1 %v9738_v12  ;;  %v6064_v12 = vadd.f32 1.0, %v9509_v60  ;;  %v7507_v60 = vld [vmem:[%s15680_s1 + $0x168] sm:$0xff] }
 0x373   :  { %6276 = vmatpush2.bf16.msra.mxu0 %v9739_v61  ;;  %v9755_v61 = vld [vmem:[%s15681_s2 + $0x2b0] ss:$48 sps:$4 sm:$0xff]   ;;  %9516 = vrcp.f32 %v6064_v12  ;;  %v9762_v12 = vld [vmem:[%s15681_s2 + $0x7f4] ss:$48 sps:$4 sm:$0xff]  }
 0x374   :  { %6317 = vmatpush2.bf16.msra.mxu1 %v9740_v5  ;;  %6277 = vmatprep.subr.bf16.mxu0 %v9741_v48  ;;  %v6065_v48 = vadd.f32 1.0, %v9511_v9  ;;  %v9761_v9 = vld [vmem:[%s15681_s2 + $0x1f4] ss:$48 sps:$4 sm:$0xff]  }
 0x375   :  { %6318 = vmatprep.subr.bf16.mxu1 %v9742_v62 }
 0x376   :  { %9518 = vrcp.f32 %v6065_v48  ;;  %v9767_v48 = vld [vmem:[%s15681_s2 + $0x190] ss:$48 sps:$4 sm:$0xff]  }
 0x377   :  { %6278 = vmatpush2.bf16.msra.mxu0 %v9743_v37  ;;  %v9513_v37 = vpop.eup %9512 }
 0x378   :  { %6319 = vmatpush2.bf16.msra.mxu1 %v9744_v54  ;;  %6279 = vmatprep.subr.bf16.mxu0 %v9745_v31  ;;  %v7506_v54 = vld [vmem:[%s15680_s1 + $0x160] sm:$0xff] }
 0x379   :  { %6320 = vmatprep.subr.bf16.mxu1 %v9746_v40 }
 0x37b   :  { %6280 = vmatpush2.bf16.msra.mxu0 %v9747_v2  ;;  %v9758_v2 = vld [vmem:[%s15681_s2 + $0x854] ss:$48 sps:$4 sm:$0xff]  }
 0x37c   :  { %6321 = vmatpush2.bf16.msra.mxu1 %v9748_v41  ;;  %6281 = vmatprep.subr.bf16.mxu0 %v9749_v46 }
 0x37d   :  { %6322 = vmatprep.subr.bf16.mxu1 %v9750_v7  ;;  %v9759_v7 = vld [vmem:[%s15681_s2 + $0x250] ss:$48 sps:$4 sm:$0xff]  }
 0x37f   :  { %6282 = vmatpush2.bf16.msra.mxu0 %v9751_v52  ;;  %v9515_v52 = vpop.eup %9514 }
 0x380   :  { %6323 = vmatpush2.bf16.msra.mxu1 %v9752_v43  ;;  %6333 = vmatprep.subr.bf16.mxu0 %v9753_v63  ;;  %v9760_v43 = vld [vmem:[%s15681_s2 + $0x850] ss:$48 sps:$4 sm:$0xff]  }
 0x381   :  { %6374 = vmatprep.subr.bf16.mxu1 %v9754_v0 }
 0x382   :  { %v5890_v53 = vpop.f32.mrf.mxu0  ;;  %6284 = vmatmul.mubr.bf16.vlgmr.msra.gmra.mxu0 %v13210_v20 }
 0x383   :  { %v5931_v33 = vpop.f32.mrf.mxu1  ;;  %v5891_v18 = vadd.f32 %v5890_v53, %v13443_v58  ;;  %6325 = vmatmul.mubr.bf16.vlgmr.msra.gmra.mxu1 %v13217_v3  ;;  %6334 = vmatpush1.bf16.msra.mxu0 %v9755_v61  ;;  %v9763_v61 = vld [vmem:[%s15681_s2 + $0x1f0] ss:$48 sps:$4 sm:$0xff]  }
 0x384   :  { %6365 = vmatprep.mubr.bf16.mxu0 %v12996_v15  ;;  %6375 = vmatpush1.bf16.msra.mxu1 %v9756_v11  ;;  %v5892_v22 = vpop.f32.mrf.mxu0  ;;  %v9764_v11 = vld [vmem:[%s15681_s2 + $0x7f0] ss:$48 sps:$4 sm:$0xff]  }
 0x385   :  { %v5933_v5 = vpop.f32.mrf.mxu1  ;;  %v5932_v29 = vadd.f32 %v5931_v33, %v5891_v18  ;;  %6406 = vmatprep.mubr.bf16.mxu1 %v13007_v25  ;;  %v5893_v62 = vadd.f32 %v5892_v22, %v13456_v8  ;;  %6335 = vmatprep.subr.bf16.mxu0 %v9757_v35  ;;  %v9765_v22 = vld [vmem:[%s15681_s2 + $0x194] ss:$48 sps:$4 sm:$0xff]  }
 0x386   :  { %v5894_v31 = vpop.f32.mrf.mxu0  ;;  %6376 = vmatprep.subr.bf16.mxu1 %v9758_v2  ;;  %v9770_v35 = vld [vmem:[%s15681_s2 + $0x734] ss:$48 sps:$4 sm:$0xff]  }
 0x387   :  { %v5935_v40 = vpop.f32.mrf.mxu1  ;;  %v6076_v41 = vmul.f32 %v9513_v37, %v5932_v29  ;;  %v5934_v46 = vadd.f32 %v5933_v5, %v5893_v62  ;;  %6336 = vmatpush1.bf16.msra.mxu0 %v9759_v7  ;;  %v9766_v5 = vld [vmem:[%s15681_s2 + $0x794] ss:$48 sps:$4 sm:$0xff]   ;;  %v9768_v29 = vld [vmem:[%s15681_s2 + $0x790] ss:$48 sps:$4 sm:$0xff]  }
 0x388   :  { %6377 = vmatpush1.bf16.msra.mxu1 %v9760_v43  ;;  %v5895_v63 = vpop.f32.mrf.mxu0  ;;  %6337 = vmatprep.subr.bf16.mxu0 %v9761_v9  ;;  %v9769_v62 = vld [vmem:[%s15681_s2 + $0x134] ss:$48 sps:$4 sm:$0xff]   ;;  %v9771_v37 = vld [vmem:[%s15681_s2 + $0x130] ss:$48 sps:$4 sm:$0xff]  }
 0x389   :  { %v5936_v0 = vpop.f32.mrf.mxu1  ;;  %v6080_v53 = vadd.f32 %v7506_v54, %v6076_v41  ;;  %v6077_v33 = vmul.f32 %v9515_v52, %v5934_v46  ;;  %6378 = vmatprep.subr.bf16.mxu1 %v9762_v12  ;;  %v9517_v54 = vpop.eup %9516  ;;  %v9772_v31 = vld [vmem:[%s15681_s2 + $0x730] ss:$48 sps:$4 sm:$0xff]   ;;  %v9773_v40 = vld [vmem:[%s15681_s2 + $0xd4] ss:$48 sps:$4 sm:$0xff]  }
 0x38a   :  { %v9774_v2 = vld [vmem:[%s15681_s2 + $0x6d4] ss:$48 sps:$4 sm:$0xff]   ;;  %v9519_v41 = vpop.eup %9518  ;;  %v6088_v46 = vsub.f32 1.0, %v9517_v54  ;;  %v9775_v7 = vld [vmem:[%s15681_s2 + $0xd0] ss:$48 sps:$4 sm:$0xff]   ;;  %v6096_v63 = vmul.f32 0.0, %v9517_v54 }
 0x38b   :  { %9520 = vtanh.f32 %v6080_v53  ;;  %v6081_v18 = vadd.f32 %v7507_v60, %v6077_v33  ;;  %6338 = vmatpush1.bf16.msra.mxu0 %v9763_v61  ;;  %v9776_v60 = vld [vmem:[%s15681_s2 + $0x6d0] ss:$48 sps:$4 sm:$0xff]   ;;  %v9777_v43 = vld [vmem:[%s15681_s2 + $0x74] ss:$48 sps:$4 sm:$0xff]   ;;  %v6089_v9 = vsub.f32 1.0, %v9519_v41 }
 0x38c   :  { %6379 = vmatpush1.bf16.msra.mxu1 %v9764_v11  ;;  %6339 = vmatprep.subr.bf16.mxu0 %v9765_v22  ;;  %v9778_v53 = vld [vmem:[%s15681_s2 + $0x674] ss:$48 sps:$4 sm:$0xff]   ;;  %v9779_v22 = vld [vmem:[%s15681_s2 + $0x70] ss:$48 sps:$4 sm:$0xff]  }
 0x38d   :  { %9522 = vtanh.f32 %v6081_v18  ;;  %6380 = vmatprep.subr.bf16.mxu1 %v9766_v5  ;;  %v7500_v12 = vld [vmem:[%s15680_s1 + $0x130] sm:$0xff]  ;;  %v6097_v18 = vmul.f32 0.0, %v9519_v41  ;;  %v7501_v5 = vld [vmem:[%s15680_s1 + $0x138] sm:$0xff] }
 0x38e   :  { %v6023_v54 = vadd.f32 %v7501_v5, %v12819_v28  ;;  %v9786_v28 = vld [vmem:[%s15681_s2 + $0xbb4] ss:$48 sps:$4 sm:$0xff]  }
 0x38f   :  { %6340 = vmatpush1.bf16.msra.mxu0 %v9767_v48  ;;  %v9780_v48 = vld [vmem:[%s15681_s2 + $0x670] ss:$48 sps:$4 sm:$0xff]  }
 0x390   :  { %6381 = vmatpush1.bf16.msra.mxu1 %v9768_v29  ;;  %6341 = vmatprep.subr.bf16.mxu0 %v9769_v62  ;;  %v9781_v29 = vld [vmem:[%s15681_s2 + $0x14] ss:$48 sps:$4 sm:$0xff]   ;;  %v6022_v62 = vadd.f32 %v7500_v12, %v12814_v23  ;;  %v8289_v41 = vmul.f32 -1.442695, %v6023_v54 }
 0x391   :  { %6382 = vmatprep.subr.bf16.mxu1 %v9770_v35  ;;  %v9785_v23 = vld [vmem:[%s15681_s2 + $0x5b4] ss:$48 sps:$4 sm:$0xff]  }
 0x392   :  { %v9802_v54 = vld [vmem:[%s15681_s2 + $0xa34] ss:$48 sps:$4 sm:$0xff]  }
 0x393   :  { %6342 = vmatpush1.bf16.msra.mxu0 %v9771_v37  ;;  %v9782_v37 = vld [vmem:[%s15681_s2 + $0x614] ss:$48 sps:$4 sm:$0xff]  }
 0x394   :  { %6383 = vmatpush1.bf16.msra.mxu1 %v9772_v31  ;;  %6343 = vmatprep.subr.bf16.mxu0 %v9773_v40  ;;  %v9783_v31 = vld [vmem:[%s15681_s2 + $0x10] ss:$48 sps:$4 sm:$0xff]  }
 0x395   :  { %6384 = vmatprep.subr.bf16.mxu1 %v9774_v2  ;;  %v9784_v40 = vld [vmem:[%s15681_s2 + $0x610] ss:$48 sps:$4 sm:$0xff]   ;;  %v8288_v2 = vmul.f32 -1.442695, %v6022_v62 }
 0x396   :  { %v9800_v62 = vld [vmem:[%s15681_s2 + $0xa90] ss:$48 sps:$4 sm:$0xff]  }
 0x397   :  { %6344 = vmatpush1.bf16.msra.mxu0 %v9775_v7  ;;  %v9788_v7 = vld [vmem:[%s15681_s2 + $0xbb0] ss:$48 sps:$4 sm:$0xff]   ;;  %9524 = vpow2.f32 %v8288_v2 }
 0x398   :  { %v9521_v52 = vpop.eup %9520  ;;  %6385 = vmatpush1.bf16.msra.mxu1 %v9776_v60  ;;  %6345 = vmatprep.subr.bf16.mxu0 %v9777_v43  ;;  %v9790_v60 = vld [vmem:[%s15681_s2 + $0xb54] ss:$48 sps:$4 sm:$0xff]   ;;  %9526 = vpow2.f32 %v8289_v41  ;;  %v9791_v43 = vld [vmem:[%s15681_s2 + $0x550] ss:$48 sps:$4 sm:$0xff]  }
 0x399   :  { %v6092_v0 = vmul.f32 %v9521_v52, %v6088_v46  ;;  %6386 = vmatprep.subr.bf16.mxu1 %v9778_v53  ;;  %v9787_v46 = vld [vmem:[%s15681_s2 + $0x5b0] ss:$48 sps:$4 sm:$0xff]   ;;  %v9789_v52 = vld [vmem:[%s15681_s2 + $0x554] ss:$48 sps:$4 sm:$0xff]  }
 0x39a   :  { %v9523_v33 = vpop.eup %9522  ;;  %v9794_v53 = vld [vmem:[%s15681_s2 + $0xaf4] ss:$48 sps:$4 sm:$0xff]   ;;  %v9804_v2 = vld [vmem:[%s15681_s2 + $0xa30] ss:$48 sps:$4 sm:$0xff]  }
 0x39b   :  { %v13545_v61 = vadd.f32 %v6096_v63, %v6092_v0  ;;  %v6093_v11 = vmul.f32 %v9523_v33, %v6089_v9  ;;  %6346 = vmatpush1.bf16.msra.mxu0 %v9779_v22  ;;  %v7504_v63 = vld [vmem:[%s15680_s1 + $0x150] sm:$0xff]  ;;  %v7505_v33 = vld [vmem:[%s15680_s1 + $0x158] sm:$0xff] }
 0x39c   :  { %6387 = vmatpush1.bf16.msra.mxu1 %v9780_v48  ;;  %6347 = vmatprep.subr.bf16.mxu0 %v9781_v29  ;;  %v9792_v0 = vld [vmem:[%s15681_s2 + $0xb50] ss:$48 sps:$4 sm:$0xff]   ;;  %v9793_v9 = vld [vmem:[%s15681_s2 + $0x4f4] ss:$48 sps:$4 sm:$0xff]   ;;  %v6050_v12 = vadd.f32 %v7504_v63, %v13237_v4  ;;  %v6051_v5 = vadd.f32 %v7505_v33, %v13247_v49 }
 0x39d   :  { %v13560_v35 = vadd.f32 %v6097_v18, %v6093_v11  ;;  %6388 = vmatprep.subr.bf16.mxu1 %v9782_v37  ;;  %v9795_v18 = vld [vmem:[%s15681_s2 + $0x4f0] ss:$48 sps:$4 sm:$0xff]   ;;  %v9797_v22 = vld [vmem:[%s15681_s2 + $0x494] ss:$48 sps:$4 sm:$0xff]  }
 0x39e   :  { %v9796_v11 = vld [vmem:[%s15681_s2 + $0xaf0] ss:$48 sps:$4 sm:$0xff]   ;;  %v9798_v4 = vld [vmem:[%s15681_s2 + $0xa94] ss:$48 sps:$4 sm:$0xff]   ;;  %v8292_v48 = vmul.f32 -1.442695, %v6050_v12 }
 0x39f   :  { %6348 = vmatpush1.bf16.msra.mxu0 %v9783_v31  ;;  %v9799_v29 = vld [vmem:[%s15681_s2 + $0x490] ss:$48 sps:$4 sm:$0xff]   ;;  %v9801_v49 = vld [vmem:[%s15681_s2 + $0x434] ss:$48 sps:$4 sm:$0xff]   ;;  %v8293_v37 = vmul.f32 -1.442695, %v6051_v5 }
 0x3a0   :  { %6389 = vmatpush1.bf16.msra.mxu1 %v9784_v40  ;;  %6349 = vmatprep.subr.bf16.mxu0 %v9785_v23  ;;  %9528 = vpow2.f32 %v8292_v48  ;;  %v9803_v40 = vld [vmem:[%s15681_s2 + $0x430] ss:$48 sps:$4 sm:$0xff]   ;;  %v9810_v63 = vld [vmem:[%s15681_s2 + $0x974] ss:$48 sps:$4 sm:$0xff]   ;;  %v9817_v5 = vld [vmem:[%s15681_s2 + $0x2bc] ss:$48 sps:$4 sm:$0xff]  }
 0x3a1   :  { %6390 = vmatprep.subr.bf16.mxu1 %v9786_v28  ;;  %v9805_v28 = vld [vmem:[%s15681_s2 + $0x3d4] ss:$48 sps:$4 sm:$0xff]   ;;  %9530 = vpow2.f32 %v8293_v37  ;;  %v9815_v12 = vld [vmem:[%s15681_s2 + $0x310] ss:$48 sps:$4 sm:$0xff]  }
 0x3a2   :  { %v9814_v33 = vld [vmem:[%s15681_s2 + $0x914] ss:$48 sps:$4 sm:$0xff]  }
 0x3a3   :  { %6350 = vmatpush2.bf16.msra.mxu0 %v9787_v46  ;;  %v9806_v46 = vld [vmem:[%s15681_s2 + $0x9d4] ss:$48 sps:$4 sm:$0xff]  }
 0x3a4   :  { %6391 = vmatpush2.bf16.msra.mxu1 %v9788_v7  ;;  %6351 = vmatprep.subr.bf16.mxu0 %v9789_v52  ;;  %v9525_v31 = vpop.eup %9524  ;;  %v9807_v52 = vld [vmem:[%s15681_s2 + $0x3d0] ss:$48 sps:$4 sm:$0xff]  }
 0x3a5   :  { %6392 = vmatprep.subr.bf16.mxu1 %v9790_v60  ;;  %v9527_v23 = vpop.eup %9526  ;;  %v6038_v41 = vadd.f32 1.0, %v9525_v31  ;;  %v9808_v60 = vld [vmem:[%s15681_s2 + $0x9d0] ss:$48 sps:$4 sm:$0xff]  }
 0x3a6   :  { %v6039_v7 = vadd.f32 1.0, %v9527_v23 }
 0x3a7   :  { %6352 = vmatpush2.bf16.msra.mxu0 %v9791_v43  ;;  %v9809_v43 = vld [vmem:[%s15681_s2 + $0x374] ss:$48 sps:$4 sm:$0xff]   ;;  %9532 = vrcp.f32 %v6038_v41 }
 0x3a8   :  { %6393 = vmatpush2.bf16.msra.mxu1 %v9792_v0  ;;  %6353 = vmatprep.subr.bf16.mxu0 %v9793_v9  ;;  %9534 = vrcp.f32 %v6039_v7  ;;  %v9811_v0 = vld [vmem:[%s15681_s2 + $0x370] ss:$48 sps:$4 sm:$0xff]  }
 0x3a9   :  { %6394 = vmatprep.subr.bf16.mxu1 %v9794_v53  ;;  %v9812_v9 = vld [vmem:[%s15681_s2 + $0x970] ss:$48 sps:$4 sm:$0xff]   ;;  %v9813_v53 = vld [vmem:[%s15681_s2 + $0x314] ss:$48 sps:$4 sm:$0xff]  }
 0x3ab   :  { %6354 = vmatpush2.bf16.msra.mxu0 %v9795_v18  ;;  %v13675_v18 = vrot.slane %v13433_v47, %v11441_v32  ;;  %v13688_v32 = vrot.slane %v13433_v47, %v11456_v38  ;;  %v9820_v38 = vld [vmem:[%s15681_s2 + $0x8b8] ss:$48 sps:$4 sm:$0xff]  }
 0x3ac   :  { %6395 = vmatpush2.bf16.msra.mxu1 %v9796_v11  ;;  %6355 = vmatprep.subr.bf16.mxu0 %v9797_v22  ;;  %v9816_v22 = vld [vmem:[%s15681_s2 + $0x910] ss:$48 sps:$4 sm:$0xff]  }
 0x3ad   :  { %6396 = vmatprep.subr.bf16.mxu1 %v9798_v4  ;;  %v9529_v11 = vpop.eup %9528  ;;  %v9818_v4 = vld [vmem:[%s15681_s2 + $0x8bc] ss:$48 sps:$4 sm:$0xff]  }
 0x3ae   :  { %v9531_v48 = vpop.eup %9530 }
 0x3af   :  { %6356 = vmatpush2.bf16.msra.mxu0 %v9799_v29 }
 0x3b0   :  { %6397 = vmatpush2.bf16.msra.mxu1 %v9800_v62  ;;  %6357 = vmatprep.subr.bf16.mxu0 %v9801_v49  ;;  %v6066_v49 = vadd.f32 1.0, %v9529_v11 }
 0x3b1   :  { %6398 = vmatprep.subr.bf16.mxu1 %v9802_v54  ;;  %v9819_v54 = vld [vmem:[%s15681_s2 + $0x2b8] ss:$48 sps:$4 sm:$0xff]  }
 0x3b2   :  { %9536 = vrcp.f32 %v6066_v49  ;;  %v9828_v49 = vld [vmem:[%s15681_s2 + $0x7f8] ss:$48 sps:$4 sm:$0xff]  }
 0x3b3   :  { %6358 = vmatpush2.bf16.msra.mxu0 %v9803_v40  ;;  %v6067_v40 = vadd.f32 1.0, %v9531_v48  ;;  %v9826_v48 = vld [vmem:[%s15681_s2 + $0x7fc] ss:$48 sps:$4 sm:$0xff]  }
 0x3b4   :  { %6399 = vmatpush2.bf16.msra.mxu1 %v9804_v2  ;;  %6359 = vmatprep.subr.bf16.mxu0 %v9805_v28  ;;  %v9821_v28 = vld [vmem:[%s15681_s2 + $0x25c] ss:$48 sps:$4 sm:$0xff]   ;;  %v9533_v41 = vpop.eup %9532 }
 0x3b5   :  { %6400 = vmatprep.subr.bf16.mxu1 %v9806_v46  ;;  %v7508_v46 = vld [vmem:[%s15680_s1 + $0x170] sm:$0xff]  ;;  %9538 = vrcp.f32 %v6067_v40  ;;  %v9834_v40 = vld [vmem:[%s15681_s2 + $0x73c] ss:$48 sps:$4 sm:$0xff]  }
 0x3b7   :  { %6360 = vmatpush2.bf16.msra.mxu0 %v9807_v52 }
 0x3b8   :  { %6401 = vmatpush2.bf16.msra.mxu1 %v9808_v60  ;;  %6361 = vmatprep.subr.bf16.mxu0 %v9809_v43  ;;  %v9822_v60 = vld [vmem:[%s15681_s2 + $0x85c] ss:$48 sps:$4 sm:$0xff]  }
 0x3b9   :  { %6402 = vmatprep.subr.bf16.mxu1 %v9810_v63 }
 0x3bb   :  { %6362 = vmatpush2.bf16.msra.mxu0 %v9811_v0  ;;  %v9823_v0 = vld [vmem:[%s15681_s2 + $0x258] ss:$48 sps:$4 sm:$0xff]  }
 0x3bc   :  { %6403 = vmatpush2.bf16.msra.mxu1 %v9812_v9  ;;  %6363 = vmatprep.subr.bf16.mxu0 %v9813_v53  ;;  %v9535_v9 = vpop.eup %9534  ;;  %v7509_v53 = vld [vmem:[%s15680_s1 + $0x178] sm:$0xff] }
 0x3bd   :  { %6404 = vmatprep.subr.bf16.mxu1 %v9814_v33  ;;  %v9824_v33 = vld [vmem:[%s15681_s2 + $0x858] ss:$48 sps:$4 sm:$0xff]  }
 0x3bf   :  { %6364 = vmatpush2.bf16.msra.mxu0 %v9815_v12 }
 0x3c0   :  { %6405 = vmatpush2.bf16.msra.mxu1 %v9816_v22  ;;  %6415 = vmatprep.subr.bf16.mxu0 %v9817_v5  ;;  %v9825_v22 = vld [vmem:[%s15681_s2 + $0x1fc] ss:$48 sps:$4 sm:$0xff]  }
 0x3c1   :  { %6456 = vmatprep.subr.bf16.mxu1 %v9818_v4 }
 0x3c2   :  { %v5972_v29 = vpop.f32.mrf.mxu0  ;;  %6366 = vmatmul.mubr.bf16.vlgmr.msra.gmra.mxu0 %v13210_v20 }
 0x3c3   :  { %v6013_v62 = vpop.f32.mrf.mxu1  ;;  %v5973_v37 = vadd.f32 %v5972_v29, %v13675_v18  ;;  %6407 = vmatmul.mubr.bf16.vlgmr.msra.gmra.mxu1 %v13217_v3  ;;  %6416 = vmatpush1.bf16.msra.mxu0 %v9819_v54  ;;  %v9830_v54 = vld [vmem:[%s15681_s2 + $0x79c] ss:$48 sps:$4 sm:$0xff]  }
 0x3c4   :  { %6447 = vmatprep.mubr.bf16.mxu0 %v12996_v15  ;;  %6457 = vmatpush1.bf16.msra.mxu1 %v9820_v38  ;;  %v5974_v47 = vpop.f32.mrf.mxu0  ;;  %v9831_v38 = vld [vmem:[%s15681_s2 + $0x198] ss:$48 sps:$4 sm:$0xff]  }
 0x3c5   :  { %v6015_v31 = vpop.f32.mrf.mxu1  ;;  %v6014_v23 = vadd.f32 %v6013_v62, %v5973_v37  ;;  %6488 = vmatprep.mubr.bf16.mxu1 %v13007_v25  ;;  %v5975_v2 = vadd.f32 %v5974_v47, %v13688_v32  ;;  %6417 = vmatprep.subr.bf16.mxu0 %v9821_v28  ;;  %v9827_v62 = vld [vmem:[%s15681_s2 + $0x1f8] ss:$48 sps:$4 sm:$0xff]   ;;  %v9829_v37 = vld [vmem:[%s15681_s2 + $0x19c] ss:$48 sps:$4 sm:$0xff]  }
 0x3c6   :  { %v5976_v7 = vpop.f32.mrf.mxu0  ;;  %6458 = vmatprep.subr.bf16.mxu1 %v9822_v60  ;;  %v9832_v47 = vld [vmem:[%s15681_s2 + $0x798] ss:$48 sps:$4 sm:$0xff]  }
 0x3c7   :  { %v6017_v52 = vpop.f32.mrf.mxu1  ;;  %v6078_v43 = vmul.f32 %v9533_v41, %v6014_v23  ;;  %v6016_v63 = vadd.f32 %v6015_v31, %v5975_v2  ;;  %6418 = vmatpush1.bf16.msra.mxu0 %v9823_v0  ;;  %v9833_v31 = vld [vmem:[%s15681_s2 + $0x13c] ss:$48 sps:$4 sm:$0xff]   ;;  %v9835_v23 = vld [vmem:[%s15681_s2 + $0x138] ss:$48 sps:$4 sm:$0xff]   ;;  %v9537_v2 = vpop.eup %9536 }
 0x3c8   :  { %6459 = vmatpush1.bf16.msra.mxu1 %v9824_v33  ;;  %v5977_v12 = vpop.f32.mrf.mxu0  ;;  %6419 = vmatprep.subr.bf16.mxu0 %v9825_v22  ;;  %v9836_v28 = vld [vmem:[%s15681_s2 + $0x738] ss:$48 sps:$4 sm:$0xff]   ;;  %v9837_v41 = vld [vmem:[%s15681_s2 + $0xdc] ss:$48 sps:$4 sm:$0xff]   ;;  %v9539_v7 = vpop.eup %9538  ;;  %v6090_v52 = vsub.f32 1.0, %v9537_v2 }
 0x3c9   :  { %v6018_v11 = vpop.f32.mrf.mxu1  ;;  %v6082_v5 = vadd.f32 %v7508_v46, %v6078_v43  ;;  %v6079_v4 = vmul.f32 %v9535_v9, %v6016_v63  ;;  %6460 = vmatprep.subr.bf16.mxu1 %v9826_v48  ;;  %v9838_v46 = vld [vmem:[%s15681_s2 + $0x6dc] ss:$48 sps:$4 sm:$0xff]   ;;  %v9839_v60 = vld [vmem:[%s15681_s2 + $0xd8] ss:$48 sps:$4 sm:$0xff]   ;;  %v6098_v9 = vmul.f32 0.0, %v9537_v2  ;;  %v6091_v33 = vsub.f32 1.0, %v9539_v7 }
 0x3ca   :  { %v9840_v63 = vld [vmem:[%s15681_s2 + $0x6d8] ss:$48 sps:$4 sm:$0xff]   ;;  %v9841_v0 = vld [vmem:[%s15681_s2 + $0x7c] ss:$48 sps:$4 sm:$0xff]   ;;  %v6099_v22 = vmul.f32 0.0, %v9539_v7 }
 0x3cb   :  { %9540 = vtanh.f32 %v6082_v5  ;;  %v6083_v29 = vadd.f32 %v7509_v53, %v6079_v4  ;;  %6420 = vmatpush1.bf16.msra.mxu0 %v9827_v62  ;;  %v9842_v12 = vld [vmem:[%s15681_s2 + $0x67c] ss:$48 sps:$4 sm:$0xff]   ;;  %v9843_v48 = vld [vmem:[%s15681_s2 + $0x78] ss:$48 sps:$4 sm:$0xff]  }
 0x3cc   :  { %6461 = vmatpush1.bf16.msra.mxu1 %v9828_v49  ;;  %6421 = vmatprep.subr.bf16.mxu0 %v9829_v37  ;;  %v9845_v62 = vld [vmem:[%s15681_s2 + $0x1c] ss:$48 sps:$4 sm:$0xff]  }
 0x3cd   :  { %9542 = vtanh.f32 %v6083_v29  ;;  %6462 = vmatprep.subr.bf16.mxu1 %v9830_v54  ;;  %v9844_v29 = vld [vmem:[%s15681_s2 + $0x678] ss:$48 sps:$4 sm:$0xff]   ;;  %v9846_v37 = vld [vmem:[%s15681_s2 + $0x61c] ss:$48 sps:$4 sm:$0xff]  }
 0x3ce   :  { %v9847_v54 = vld [vmem:[%s15681_s2 + $0x18] ss:$48 sps:$4 sm:$0xff]   ;;  %v9853_v2 = vld [vmem:[%s15681_s2 + $0x55c] ss:$48 sps:$4 sm:$0xff]  }
 0x3cf   :  { %6422 = vmatpush1.bf16.msra.mxu0 %v9831_v38  ;;  %v9848_v38 = vld [vmem:[%s15681_s2 + $0x618] ss:$48 sps:$4 sm:$0xff]   ;;  %v9857_v7 = vld [vmem:[%s15681_s2 + $0x4fc] ss:$48 sps:$4 sm:$0xff]  }
 0x3d0   :  { %6463 = vmatpush1.bf16.msra.mxu1 %v9832_v47  ;;  %6423 = vmatprep.subr.bf16.mxu0 %v9833_v31  ;;  %v9849_v47 = vld [vmem:[%s15681_s2 + $0x5bc] ss:$48 sps:$4 sm:$0xff]  }
 0x3d1   :  { %6464 = vmatprep.subr.bf16.mxu1 %v9834_v40  ;;  %v9850_v31 = vld [vmem:[%s15681_s2 + $0xbbc] ss:$48 sps:$4 sm:$0xff]   ;;  %v9851_v40 = vld [vmem:[%s15681_s2 + $0x5b8] ss:$48 sps:$4 sm:$0xff]  }
 0x3d3   :  { %6424 = vmatpush1.bf16.msra.mxu0 %v9835_v23  ;;  %v9852_v23 = vld [vmem:[%s15681_s2 + $0xbb8] ss:$48 sps:$4 sm:$0xff]  }
 0x3d4   :  { %6465 = vmatpush1.bf16.msra.mxu1 %v9836_v28  ;;  %6425 = vmatprep.subr.bf16.mxu0 %v9837_v41  ;;  %v9854_v28 = vld [vmem:[%s15681_s2 + $0xb5c] ss:$48 sps:$4 sm:$0xff]   ;;  %v9855_v41 = vld [vmem:[%s15681_s2 + $0x558] ss:$48 sps:$4 sm:$0xff]  }
 0x3d5   :  { %6466 = vmatprep.subr.bf16.mxu1 %v9838_v46  ;;  %v9856_v46 = vld [vmem:[%s15681_s2 + $0xb58] ss:$48 sps:$4 sm:$0xff]  }
 0x3d7   :  { %6426 = vmatpush1.bf16.msra.mxu0 %v9839_v60  ;;  %v9859_v60 = vld [vmem:[%s15681_s2 + $0x4f8] ss:$48 sps:$4 sm:$0xff]  }
 0x3d8   :  { %v9541_v43 = vpop.eup %9540  ;;  %6467 = vmatpush1.bf16.msra.mxu1 %v9840_v63  ;;  %6427 = vmatprep.subr.bf16.mxu0 %v9841_v0  ;;  %v9861_v63 = vld [vmem:[%s15681_s2 + $0x49c] ss:$48 sps:$4 sm:$0xff]  }
 0x3d9   :  { %v6094_v53 = vmul.f32 %v9541_v43, %v6090_v52  ;;  %6468 = vmatprep.subr.bf16.mxu1 %v9842_v12  ;;  %v9858_v52 = vld [vmem:[%s15681_s2 + $0xafc] ss:$48 sps:$4 sm:$0xff]   ;;  %v9860_v43 = vld [vmem:[%s15681_s2 + $0xaf8] ss:$48 sps:$4 sm:$0xff]  }
 0x3da   :  { %v9543_v11 = vpop.eup %9542  ;;  %v9862_v0 = vld [vmem:[%s15681_s2 + $0xa9c] ss:$48 sps:$4 sm:$0xff]  }
 0x3db   :  { %v13774_v5 = vadd.f32 %v6098_v9, %v6094_v53  ;;  %v6095_v4 = vmul.f32 %v9543_v11, %v6091_v33  ;;  %6428 = vmatpush1.bf16.msra.mxu0 %v9843_v48  ;;  %v9863_v9 = vld [vmem:[%s15681_s2 + $0x498] ss:$48 sps:$4 sm:$0xff]   ;;  %v9865_v33 = vld [vmem:[%s15681_s2 + $0x43c] ss:$48 sps:$4 sm:$0xff]  }
 0x3dc   :  { %6469 = vmatpush1.bf16.msra.mxu1 %v9844_v29  ;;  %6429 = vmatprep.subr.bf16.mxu0 %v9845_v62  ;;  %v9864_v53 = vld [vmem:[%s15681_s2 + $0xa98] ss:$48 sps:$4 sm:$0xff]   ;;  %v9866_v12 = vld [vmem:[%s15681_s2 + $0xa3c] ss:$48 sps:$4 sm:$0xff]  }
 0x3dd   :  { %v13785_v49 = vadd.f32 %v6099_v22, %v6095_v4  ;;  %6470 = vmatprep.subr.bf16.mxu1 %v9846_v37  ;;  %v9867_v11 = vld [vmem:[%s15681_s2 + $0x438] ss:$48 sps:$4 sm:$0xff]   ;;  %v9869_v4 = vld [vmem:[%s15681_s2 + $0x3dc] ss:$48 sps:$4 sm:$0xff]  }
 0x3de   :  { %v9868_v22 = vld [vmem:[%s15681_s2 + $0xa38] ss:$48 sps:$4 sm:$0xff]   ;;  %v9870_v48 = vld [vmem:[%s15681_s2 + $0x9dc] ss:$48 sps:$4 sm:$0xff]  }
 0x3df   :  { %6430 = vmatpush1.bf16.msra.mxu0 %v9847_v54  ;;  %v9871_v29 = vld [vmem:[%s15681_s2 + $0x3d8] ss:$48 sps:$4 sm:$0xff]   ;;  %v9873_v37 = vld [vmem:[%s15681_s2 + $0x37c] ss:$48 sps:$4 sm:$0xff]  }
 0x3e0   :  { %6471 = vmatpush1.bf16.msra.mxu1 %v9848_v38  ;;  %6431 = vmatprep.subr.bf16.mxu0 %v9849_v47  ;;  %v9872_v62 = vld [vmem:[%s15681_s2 + $0x9d8] ss:$48 sps:$4 sm:$0xff]   ;;  %v9874_v54 = vld [vmem:[%s15681_s2 + $0x97c] ss:$48 sps:$4 sm:$0xff]  }
 0x3e1   :  { %6472 = vmatprep.subr.bf16.mxu1 %v9850_v31  ;;  %v9875_v38 = vld [vmem:[%s15681_s2 + $0x378] ss:$48 sps:$4 sm:$0xff]   ;;  %v9877_v31 = vld [vmem:[%s15681_s2 + $0x31c] ss:$48 sps:$4 sm:$0xff]  }
 0x3e2   :  { %v9876_v47 = vld [vmem:[%s15681_s2 + $0x978] ss:$48 sps:$4 sm:$0xff]  }
 0x3e3   :  { %6432 = vmatpush2.bf16.msra.mxu0 %v9851_v40  ;;  %v9878_v40 = vld [vmem:[%s15681_s2 + $0x91c] ss:$48 sps:$4 sm:$0xff]  }
 0x3e4   :  { %6473 = vmatpush2.bf16.msra.mxu1 %v9852_v23  ;;  %6433 = vmatprep.subr.bf16.mxu0 %v9853_v2  ;;  %v9879_v23 = vld [vmem:[%s15681_s2 + $0x318] ss:$48 sps:$4 sm:$0xff]  }
 0x3e5   :  { %6474 = vmatprep.subr.bf16.mxu1 %v9854_v28  ;;  %v9880_v2 = vld [vmem:[%s15681_s2 + $0x918] ss:$48 sps:$4 sm:$0xff]   ;;  %v9881_v28 = vld [vmem:[%s15681_s2 + $0x2c4] ss:$48 sps:$4 sm:$0xff]  }
 0x3e7   :  { %6434 = vmatpush2.bf16.msra.mxu0 %v9855_v41  ;;  %v9882_v41 = vld [vmem:[%s15681_s2 + $0x8c4] ss:$48 sps:$4 sm:$0xff]  }
 0x3e8   :  { %6475 = vmatpush2.bf16.msra.mxu1 %v9856_v46  ;;  %6435 = vmatprep.subr.bf16.mxu0 %v9857_v7 }
 0x3e9   :  { %6476 = vmatprep.subr.bf16.mxu1 %v9858_v52 }
 0x3eb   :  { %6436 = vmatpush2.bf16.msra.mxu0 %v9859_v60  ;;  %v9883_v60 = vld [vmem:[%s15681_s2 + $0x2c0] ss:$48 sps:$4 sm:$0xff]  }
 0x3ec   :  { %6477 = vmatpush2.bf16.msra.mxu1 %v9860_v43  ;;  %6437 = vmatprep.subr.bf16.mxu0 %v9861_v63  ;;  %v9884_v43 = vld [vmem:[%s15681_s2 + $0x8c0] ss:$48 sps:$4 sm:$0xff]  }
 0x3ed   :  { %6478 = vmatprep.subr.bf16.mxu1 %v9862_v0 }
 0x3ef   :  { %6438 = vmatpush2.bf16.msra.mxu0 %v9863_v9 }
 0x3f0   :  { %6479 = vmatpush2.bf16.msra.mxu1 %v9864_v53  ;;  %6439 = vmatprep.subr.bf16.mxu0 %v9865_v33  ;;  %v9885_v53 = vld [vmem:[%s15681_s2 + $0x264] ss:$48 sps:$4 sm:$0xff]  }
 0x3f1   :  { %6480 = vmatprep.subr.bf16.mxu1 %v9866_v12  ;;  %v9886_v12 = vld [vmem:[%s15681_s2 + $0x864] ss:$48 sps:$4 sm:$0xff]  }
 0x3f3   :  { %6440 = vmatpush2.bf16.msra.mxu0 %v9867_v11 }
 0x3f4   :  { %6481 = vmatpush2.bf16.msra.mxu1 %v9868_v22  ;;  %6441 = vmatprep.subr.bf16.mxu0 %v9869_v4  ;;  %v9887_v4 = vld [vmem:[%s15681_s2 + $0x260] ss:$48 sps:$4 sm:$0xff]  }
 0x3f5   :  { %6482 = vmatprep.subr.bf16.mxu1 %v9870_v48 }
 0x3f7   :  { %6442 = vmatpush2.bf16.msra.mxu0 %v9871_v29  ;;  %v9889_v29 = vld [vmem:[%s15681_s2 + $0x204] ss:$48 sps:$4 sm:$0xff]  }
 0x3f8   :  { %6483 = vmatpush2.bf16.msra.mxu1 %v9872_v62  ;;  %6443 = vmatprep.subr.bf16.mxu0 %v9873_v37  ;;  %v9890_v37 = vld [vmem:[%s15681_s2 + $0x804] ss:$48 sps:$4 sm:$0xff]  }
 0x3f9   :  { %6484 = vmatprep.subr.bf16.mxu1 %v9874_v54  ;;  %v9891_v54 = vld [vmem:[%s15681_s2 + $0x200] ss:$48 sps:$4 sm:$0xff]  }
 0x3fb   :  { %6444 = vmatpush2.bf16.msra.mxu0 %v9875_v38  ;;  %v9892_v38 = vld [vmem:[%s15681_s2 + $0x800] ss:$48 sps:$4 sm:$0xff]  }
 0x3fc   :  { %6485 = vmatpush2.bf16.msra.mxu1 %v9876_v47  ;;  %6445 = vmatprep.subr.bf16.mxu0 %v9877_v31  ;;  %v9893_v47 = vld [vmem:[%s15681_s2 + $0x1a4] ss:$48 sps:$4 sm:$0xff]  }
 0x3fd   :  { %6486 = vmatprep.subr.bf16.mxu1 %v9878_v40  ;;  %v9894_v31 = vld [vmem:[%s15681_s2 + $0x7a4] ss:$48 sps:$4 sm:$0xff]   ;;  %v9895_v40 = vld [vmem:[%s15681_s2 + $0x1a0] ss:$48 sps:$4 sm:$0xff]  }
 0x3ff   :  { %6446 = vmatpush2.bf16.msra.mxu0 %v9879_v23  ;;  %v9896_v23 = vld [vmem:[%s15681_s2 + $0x7a0] ss:$48 sps:$4 sm:$0xff]  }
 0x400   :  { %6487 = vmatpush2.bf16.msra.mxu1 %v9880_v2  ;;  %6497 = vmatprep.subr.bf16.mxu0 %v9881_v28  ;;  %v9897_v2 = vld [vmem:[%s15681_s2 + $0x144] ss:$48 sps:$4 sm:$0xff]  }
 0x401   :  { %6538 = vmatprep.subr.bf16.mxu1 %v9882_v41  ;;  %v9898_v28 = vld [vmem:[%s15681_s2 + $0x744] ss:$48 sps:$4 sm:$0xff]   ;;  %v9899_v41 = vld [vmem:[%s15681_s2 + $0x140] ss:$48 sps:$4 sm:$0xff]  }
 0x402   :  { %v6203_v46 = vpop.f32.mrf.mxu0  ;;  %6448 = vmatmul.mubr.bf16.vlgmr.msra.gmra.mxu0 %v13210_v20 }
 0x403   :  { %v6204_v7 = vadd.f32 %v6203_v46, %v11241_v13  ;;  %v6244_v52 = vpop.f32.mrf.mxu1  ;;  %6489 = vmatmul.mubr.bf16.vlgmr.msra.gmra.mxu1 %v13217_v3  ;;  %6498 = vmatpush1.bf16.msra.mxu0 %v9883_v60  ;;  %v9900_v46 = vld [vmem:[%s15681_s2 + $0x740] ss:$48 sps:$4 sm:$0xff]  }
 0x404   :  { %6529 = vmatprep.mubr.bf16.mxu0 %v12996_v15  ;;  %6539 = vmatpush1.bf16.msra.mxu1 %v9884_v43  ;;  %v6205_v63 = vpop.f32.mrf.mxu0  ;;  %v9903_v60 = vld [vmem:[%s15681_s2 + $0xe0] ss:$48 sps:$4 sm:$0xff]  }
 0x405   :  { %v13908_v0 = vadd.f32 %v6244_v52, %v6204_v7  ;;  %6570 = vmatprep.mubr.bf16.mxu1 %v13007_v25  ;;  %v6206_v13 = vadd.f32 %v6205_v63, %v11254_v17  ;;  %v6246_v9 = vpop.f32.mrf.mxu1  ;;  %6499 = vmatprep.subr.bf16.mxu0 %v9885_v53  ;;  %v9888_v17 = vld [vmem:[%s15681_s2 + $0x860] ss:$48 sps:$4 sm:$0xff]   ;;  %v9901_v7 = vld [vmem:[%s15681_s2 + $0xe4] ss:$48 sps:$4 sm:$0xff]  }
 0x406   :  { %v6207_v33 = vpop.f32.mrf.mxu0  ;;  %6540 = vmatprep.subr.bf16.mxu1 %v9886_v12  ;;  %v9902_v52 = vld [vmem:[%s15681_s2 + $0x6e4] ss:$48 sps:$4 sm:$0xff]   ;;  %v9904_v43 = vld [vmem:[%s15681_s2 + $0x6e0] ss:$48 sps:$4 sm:$0xff]  }
 0x407   :  { %v13918_v11 = vadd.f32 %v6246_v9, %v6206_v13  ;;  %v6248_v22 = vpop.f32.mrf.mxu1  ;;  %6500 = vmatpush1.bf16.msra.mxu0 %v9887_v4  ;;  %v9905_v63 = vld [vmem:[%s15681_s2 + $0x84] ss:$48 sps:$4 sm:$0xff]   ;;  %v9907_v9 = vld [vmem:[%s15681_s2 + $0x80] ss:$48 sps:$4 sm:$0xff]  }
 0x408   :  { %6541 = vmatpush1.bf16.msra.mxu1 %v9888_v17  ;;  %v6208_v48 = vpop.f32.mrf.mxu0  ;;  %6501 = vmatprep.subr.bf16.mxu0 %v9889_v29  ;;  %v9906_v13 = vld [vmem:[%s15681_s2 + $0x684] ss:$48 sps:$4 sm:$0xff]   ;;  %v9908_v53 = vld [vmem:[%s15681_s2 + $0x680] ss:$48 sps:$4 sm:$0xff]  }
 0x409   :  { %v6249_v62 = vpop.f32.mrf.mxu1  ;;  %6542 = vmatprep.subr.bf16.mxu1 %v9890_v37  ;;  %v9909_v33 = vld [vmem:[%s15681_s2 + $0x24] ss:$48 sps:$4 sm:$0xff]   ;;  %v9911_v22 = vld [vmem:[%s15681_s2 + $0x20] ss:$48 sps:$4 sm:$0xff]  }
 0x40a   :  { %v9910_v12 = vld [vmem:[%s15681_s2 + $0x624] ss:$48 sps:$4 sm:$0xff]   ;;  %v9912_v4 = vld [vmem:[%s15681_s2 + $0x620] ss:$48 sps:$4 sm:$0xff]  }
 0x40b   :  { %6502 = vmatpush1.bf16.msra.mxu0 %v9891_v54  ;;  %v9913_v17 = vld [vmem:[%s15681_s2 + $0x5c4] ss:$48 sps:$4 sm:$0xff]   ;;  %v9915_v29 = vld [vmem:[%s15681_s2 + $0x5c0] ss:$48 sps:$4 sm:$0xff]  }
 0x40c   :  { %6543 = vmatpush1.bf16.msra.mxu1 %v9892_v38  ;;  %6503 = vmatprep.subr.bf16.mxu0 %v9893_v47  ;;  %v9914_v48 = vld [vmem:[%s15681_s2 + $0xbc4] ss:$48 sps:$4 sm:$0xff]   ;;  %v9916_v62 = vld [vmem:[%s15681_s2 + $0xbc0] ss:$48 sps:$4 sm:$0xff]  }
 0x40d   :  { %6544 = vmatprep.subr.bf16.mxu1 %v9894_v31  ;;  %v9917_v37 = vld [vmem:[%s15681_s2 + $0x564] ss:$48 sps:$4 sm:$0xff]   ;;  %v9919_v38 = vld [vmem:[%s15681_s2 + $0x560] ss:$48 sps:$4 sm:$0xff]  }
 0x40e   :  { %v9918_v54 = vld [vmem:[%s15681_s2 + $0xb64] ss:$48 sps:$4 sm:$0xff]   ;;  %v9920_v47 = vld [vmem:[%s15681_s2 + $0xb60] ss:$48 sps:$4 sm:$0xff]  }
 0x40f   :  { %6504 = vmatpush1.bf16.msra.mxu0 %v9895_v40  ;;  %v9921_v31 = vld [vmem:[%s15681_s2 + $0x504] ss:$48 sps:$4 sm:$0xff]  }
 0x410   :  { %6545 = vmatpush1.bf16.msra.mxu1 %v9896_v23  ;;  %6505 = vmatprep.subr.bf16.mxu0 %v9897_v2  ;;  %v9922_v40 = vld [vmem:[%s15681_s2 + $0xb04] ss:$48 sps:$4 sm:$0xff]   ;;  %v9923_v23 = vld [vmem:[%s15681_s2 + $0x500] ss:$48 sps:$4 sm:$0xff]  }
 0x411   :  { %6546 = vmatprep.subr.bf16.mxu1 %v9898_v28  ;;  %v9924_v2 = vld [vmem:[%s15681_s2 + $0xb00] ss:$48 sps:$4 sm:$0xff]   ;;  %v9925_v28 = vld [vmem:[%s15681_s2 + $0x4a4] ss:$48 sps:$4 sm:$0xff]  }
 0x413   :  { %6506 = vmatpush1.bf16.msra.mxu0 %v9899_v41  ;;  %v9926_v41 = vld [vmem:[%s15681_s2 + $0xaa4] ss:$48 sps:$4 sm:$0xff]  }
 0x414   :  { %6547 = vmatpush1.bf16.msra.mxu1 %v9900_v46  ;;  %6507 = vmatprep.subr.bf16.mxu0 %v9901_v7  ;;  %v9927_v46 = vld [vmem:[%s15681_s2 + $0x4a0] ss:$48 sps:$4 sm:$0xff]  }
 0x415   :  { %6548 = vmatprep.subr.bf16.mxu1 %v9902_v52  ;;  %v9928_v7 = vld [vmem:[%s15681_s2 + $0xaa0] ss:$48 sps:$4 sm:$0xff]   ;;  %v9929_v52 = vld [vmem:[%s15681_s2 + $0x444] ss:$48 sps:$4 sm:$0xff]  }
 0x417   :  { %6508 = vmatpush1.bf16.msra.mxu0 %v9903_v60  ;;  %v9930_v60 = vld [vmem:[%s15681_s2 + $0xa44] ss:$48 sps:$4 sm:$0xff]  }
 0x418   :  { %6549 = vmatpush1.bf16.msra.mxu1 %v9904_v43  ;;  %6509 = vmatprep.subr.bf16.mxu0 %v9905_v63  ;;  %v9931_v43 = vld [vmem:[%s15681_s2 + $0x440] ss:$48 sps:$4 sm:$0xff]  }
 0x419   :  { %6550 = vmatprep.subr.bf16.mxu1 %v9906_v13  ;;  %v9932_v63 = vld [vmem:[%s15681_s2 + $0xa40] ss:$48 sps:$4 sm:$0xff]   ;;  %v9933_v13 = vld [vmem:[%s15681_s2 + $0x3e4] ss:$48 sps:$4 sm:$0xff]  }
 0x41b   :  { %6510 = vmatpush1.bf16.msra.mxu0 %v9907_v9  ;;  %v9934_v9 = vld [vmem:[%s15681_s2 + $0x9e4] ss:$48 sps:$4 sm:$0xff]  }
 0x41c   :  { %6551 = vmatpush1.bf16.msra.mxu1 %v9908_v53  ;;  %6511 = vmatprep.subr.bf16.mxu0 %v9909_v33  ;;  %v9935_v53 = vld [vmem:[%s15681_s2 + $0x3e0] ss:$48 sps:$4 sm:$0xff]  }
 0x41d   :  { %6552 = vmatprep.subr.bf16.mxu1 %v9910_v12  ;;  %v9936_v33 = vld [vmem:[%s15681_s2 + $0x9e0] ss:$48 sps:$4 sm:$0xff]   ;;  %v9937_v12 = vld [vmem:[%s15681_s2 + $0x384] ss:$48 sps:$4 sm:$0xff]  }
 0x41f   :  { %6512 = vmatpush1.bf16.msra.mxu0 %v9911_v22  ;;  %v9938_v22 = vld [vmem:[%s15681_s2 + $0x984] ss:$48 sps:$4 sm:$0xff]  }
 0x420   :  { %6553 = vmatpush1.bf16.msra.mxu1 %v9912_v4  ;;  %6513 = vmatprep.subr.bf16.mxu0 %v9913_v17  ;;  %v9939_v4 = vld [vmem:[%s15681_s2 + $0x380] ss:$48 sps:$4 sm:$0xff]  }
 0x421   :  { %6554 = vmatprep.subr.bf16.mxu1 %v9914_v48  ;;  %v9940_v17 = vld [vmem:[%s15681_s2 + $0x980] ss:$48 sps:$4 sm:$0xff]   ;;  %v9941_v48 = vld [vmem:[%s15681_s2 + $0x324] ss:$48 sps:$4 sm:$0xff]  }
 0x423   :  { %6514 = vmatpush2.bf16.msra.mxu0 %v9915_v29  ;;  %v9942_v29 = vld [vmem:[%s15681_s2 + $0x924] ss:$48 sps:$4 sm:$0xff]  }
 0x424   :  { %6555 = vmatpush2.bf16.msra.mxu1 %v9916_v62  ;;  %6515 = vmatprep.subr.bf16.mxu0 %v9917_v37  ;;  %v9943_v62 = vld [vmem:[%s15681_s2 + $0x320] ss:$48 sps:$4 sm:$0xff]  }
 0x425   :  { %6556 = vmatprep.subr.bf16.mxu1 %v9918_v54  ;;  %v9944_v37 = vld [vmem:[%s15681_s2 + $0x920] ss:$48 sps:$4 sm:$0xff]   ;;  %v9945_v54 = vld [vmem:[%s15681_s2 + $0x2cc] ss:$48 sps:$4 sm:$0xff]  }
 0x427   :  { %6516 = vmatpush2.bf16.msra.mxu0 %v9919_v38  ;;  %v9946_v38 = vld [vmem:[%s15681_s2 + $0x8cc] ss:$48 sps:$4 sm:$0xff]  }
 0x428   :  { %6557 = vmatpush2.bf16.msra.mxu1 %v9920_v47  ;;  %6517 = vmatprep.subr.bf16.mxu0 %v9921_v31 }
 0x429   :  { %6558 = vmatprep.subr.bf16.mxu1 %v9922_v40 }
 0x42b   :  { %6518 = vmatpush2.bf16.msra.mxu0 %v9923_v23  ;;  %v9947_v23 = vld [vmem:[%s15681_s2 + $0x2c8] ss:$48 sps:$4 sm:$0xff]  }
 0x42c   :  { %6559 = vmatpush2.bf16.msra.mxu1 %v9924_v2  ;;  %6519 = vmatprep.subr.bf16.mxu0 %v9925_v28  ;;  %v9948_v2 = vld [vmem:[%s15681_s2 + $0x8c8] ss:$48 sps:$4 sm:$0xff]  }
 0x42d   :  { %6560 = vmatprep.subr.bf16.mxu1 %v9926_v41 }
 0x42f   :  { %6520 = vmatpush2.bf16.msra.mxu0 %v9927_v46 }
 0x430   :  { %6561 = vmatpush2.bf16.msra.mxu1 %v9928_v7  ;;  %6521 = vmatprep.subr.bf16.mxu0 %v9929_v52  ;;  %v9949_v7 = vld [vmem:[%s15681_s2 + $0x26c] ss:$48 sps:$4 sm:$0xff]  }
 0x431   :  { %6562 = vmatprep.subr.bf16.mxu1 %v9930_v60 }
 0x433   :  { %6522 = vmatpush2.bf16.msra.mxu0 %v9931_v43 }
 0x434   :  { %6563 = vmatpush2.bf16.msra.mxu1 %v9932_v63  ;;  %6523 = vmatprep.subr.bf16.mxu0 %v9933_v13  ;;  %v9953_v13 = vld [vmem:[%s15681_s2 + $0x20c] ss:$48 sps:$4 sm:$0xff]  }
 0x435   :  { %6564 = vmatprep.subr.bf16.mxu1 %v9934_v9 }
 0x437   :  { %6524 = vmatpush2.bf16.msra.mxu0 %v9935_v53  ;;  %v9954_v53 = vld [vmem:[%s15681_s2 + $0x80c] ss:$48 sps:$4 sm:$0xff]  }
 0x438   :  { %6565 = vmatpush2.bf16.msra.mxu1 %v9936_v33  ;;  %6525 = vmatprep.subr.bf16.mxu0 %v9937_v12  ;;  %v9955_v33 = vld [vmem:[%s15681_s2 + $0x208] ss:$48 sps:$4 sm:$0xff]  }
 0x439   :  { %6566 = vmatprep.subr.bf16.mxu1 %v9938_v22  ;;  %v9956_v12 = vld [vmem:[%s15681_s2 + $0x808] ss:$48 sps:$4 sm:$0xff]   ;;  %v9957_v22 = vld [vmem:[%s15681_s2 + $0x1ac] ss:$48 sps:$4 sm:$0xff]  }
 0x43b   :  { %6526 = vmatpush2.bf16.msra.mxu0 %v9939_v4  ;;  %v9958_v4 = vld [vmem:[%s15681_s2 + $0x7ac] ss:$48 sps:$4 sm:$0xff]  }
 0x43c   :  { %6567 = vmatpush2.bf16.msra.mxu1 %v9940_v17  ;;  %6527 = vmatprep.subr.bf16.mxu0 %v9941_v48  ;;  %v9959_v17 = vld [vmem:[%s15681_s2 + $0x1a8] ss:$48 sps:$4 sm:$0xff]  }
 0x43d   :  { %6568 = vmatprep.subr.bf16.mxu1 %v9942_v29  ;;  %v9960_v48 = vld [vmem:[%s15681_s2 + $0x7a8] ss:$48 sps:$4 sm:$0xff]   ;;  %v9961_v29 = vld [vmem:[%s15681_s2 + $0x14c] ss:$48 sps:$4 sm:$0xff]  }
 0x43f   :  { %6528 = vmatpush2.bf16.msra.mxu0 %v9943_v62  ;;  %v9962_v62 = vld [vmem:[%s15681_s2 + $0x74c] ss:$48 sps:$4 sm:$0xff]  }
 0x440   :  { %6569 = vmatpush2.bf16.msra.mxu1 %v9944_v37  ;;  %6579 = vmatprep.subr.bf16.mxu0 %v9945_v54  ;;  %v9963_v37 = vld [vmem:[%s15681_s2 + $0x148] ss:$48 sps:$4 sm:$0xff]  }
 0x441   :  { %6620 = vmatprep.subr.bf16.mxu1 %v9946_v38  ;;  %v9964_v54 = vld [vmem:[%s15681_s2 + $0x748] ss:$48 sps:$4 sm:$0xff]   ;;  %v9965_v38 = vld [vmem:[%s15681_s2 + $0xec] ss:$48 sps:$4 sm:$0xff]  }
 0x442   :  { %v6285_v47 = vpop.f32.mrf.mxu0  ;;  %6530 = vmatmul.mubr.bf16.vlgmr.msra.gmra.mxu0 %v13210_v20 }
 0x443   :  { %v6286_v31 = vadd.f32 %v6285_v47, %v11460_v39  ;;  %v6326_v40 = vpop.f32.mrf.mxu1  ;;  %6571 = vmatmul.mubr.bf16.vlgmr.msra.gmra.mxu1 %v13217_v3  ;;  %6580 = vmatpush1.bf16.msra.mxu0 %v9947_v23  ;;  %v9966_v47 = vld [vmem:[%s15681_s2 + $0x6ec] ss:$48 sps:$4 sm:$0xff]  }
 0x444   :  { %6611 = vmatprep.mubr.bf16.mxu0 %v12996_v15  ;;  %6621 = vmatpush1.bf16.msra.mxu1 %v9948_v2  ;;  %v6287_v28 = vpop.f32.mrf.mxu0  ;;  %v9950_v15 = vld [vmem:[%s15681_s2 + $0x86c] ss:$48 sps:$4 sm:$0xff]  }
 0x445   :  { %v14110_v41 = vadd.f32 %v6326_v40, %v6286_v31  ;;  %6652 = vmatprep.mubr.bf16.mxu1 %v13007_v25  ;;  %v6288_v39 = vadd.f32 %v6287_v28, %v11470_v42  ;;  %v6328_v46 = vpop.f32.mrf.mxu1  ;;  %6581 = vmatprep.subr.bf16.mxu0 %v9949_v7  ;;  %v9951_v25 = vld [vmem:[%s15681_s2 + $0x268] ss:$48 sps:$4 sm:$0xff]   ;;  %v9969_v23 = vld [vmem:[%s15681_s2 + $0x8c] ss:$48 sps:$4 sm:$0xff]  }
 0x446   :  { %v6289_v52 = vpop.f32.mrf.mxu0  ;;  %6622 = vmatprep.subr.bf16.mxu1 %v9950_v15  ;;  %v9952_v42 = vld [vmem:[%s15681_s2 + $0x868] ss:$48 sps:$4 sm:$0xff]   ;;  %v9970_v2 = vld [vmem:[%s15681_s2 + $0x68c] ss:$48 sps:$4 sm:$0xff]  }
 0x447   :  { %v14120_v60 = vadd.f32 %v6328_v46, %v6288_v39  ;;  %v6330_v43 = vpop.f32.mrf.mxu1  ;;  %6582 = vmatpush1.bf16.msra.mxu0 %v9951_v25  ;;  %v9967_v31 = vld [vmem:[%s15681_s2 + $0xe8] ss:$48 sps:$4 sm:$0xff]   ;;  %v9973_v46 = vld [vmem:[%s15681_s2 + $0x2c] ss:$48 sps:$4 sm:$0xff]  }
 0x448   :  { %6623 = vmatpush1.bf16.msra.mxu1 %v9952_v42  ;;  %v6290_v63 = vpop.f32.mrf.mxu0  ;;  %6583 = vmatprep.subr.bf16.mxu0 %v9953_v13  ;;  %v9968_v40 = vld [vmem:[%s15681_s2 + $0x6e8] ss:$48 sps:$4 sm:$0xff]   ;;  %v9974_v7 = vld [vmem:[%s15681_s2 + $0x62c] ss:$48 sps:$4 sm:$0xff]  }
 0x449   :  { %v6331_v9 = vpop.f32.mrf.mxu1  ;;  %6624 = vmatprep.subr.bf16.mxu1 %v9954_v53  ;;  %v9971_v28 = vld [vmem:[%s15681_s2 + $0x88] ss:$48 sps:$4 sm:$0xff]   ;;  %v9977_v43 = vld [vmem:[%s15681_s2 + $0x5cc] ss:$48 sps:$4 sm:$0xff]  }
 0x44a   :  { %v9972_v39 = vld [vmem:[%s15681_s2 + $0x688] ss:$48 sps:$4 sm:$0xff]   ;;  %v9978_v25 = vld [vmem:[%s15681_s2 + $0xbcc] ss:$48 sps:$4 sm:$0xff]  }
 0x44b   :  { %6584 = vmatpush1.bf16.msra.mxu0 %v9955_v33  ;;  %v9975_v52 = vld [vmem:[%s15681_s2 + $0x28] ss:$48 sps:$4 sm:$0xff]   ;;  %v9981_v13 = vld [vmem:[%s15681_s2 + $0x56c] ss:$48 sps:$4 sm:$0xff]  }
 0x44c   :  { %6625 = vmatpush1.bf16.msra.mxu1 %v9956_v12  ;;  %6585 = vmatprep.subr.bf16.mxu0 %v9957_v22  ;;  %v9976_v15 = vld [vmem:[%s15681_s2 + $0x628] ss:$48 sps:$4 sm:$0xff]   ;;  %v9982_v9 = vld [vmem:[%s15681_s2 + $0xb6c] ss:$48 sps:$4 sm:$0xff]  }
 0x44d   :  { %6626 = vmatprep.subr.bf16.mxu1 %v9958_v4  ;;  %v9979_v42 = vld [vmem:[%s15681_s2 + $0x5c8] ss:$48 sps:$4 sm:$0xff]   ;;  %v9985_v12 = vld [vmem:[%s15681_s2 + $0x50c] ss:$48 sps:$4 sm:$0xff]  }
 0x44e   :  { %v9980_v63 = vld [vmem:[%s15681_s2 + $0xbc8] ss:$48 sps:$4 sm:$0xff]   ;;  %v9986_v22 = vld [vmem:[%s15681_s2 + $0xb0c] ss:$48 sps:$4 sm:$0xff]  }
 0x44f   :  { %6586 = vmatpush1.bf16.msra.mxu0 %v9959_v17  ;;  %v9983_v53 = vld [vmem:[%s15681_s2 + $0x568] ss:$48 sps:$4 sm:$0xff]  }
 0x450   :  { %6627 = vmatpush1.bf16.msra.mxu1 %v9960_v48  ;;  %6587 = vmatprep.subr.bf16.mxu0 %v9961_v29  ;;  %v9984_v33 = vld [vmem:[%s15681_s2 + $0xb68] ss:$48 sps:$4 sm:$0xff]   ;;  %v9989_v48 = vld [vmem:[%s15681_s2 + $0x4ac] ss:$48 sps:$4 sm:$0xff]  }
 0x451   :  { %6628 = vmatprep.subr.bf16.mxu1 %v9962_v62  ;;  %v9987_v4 = vld [vmem:[%s15681_s2 + $0x508] ss:$48 sps:$4 sm:$0xff]   ;;  %v9990_v29 = vld [vmem:[%s15681_s2 + $0xaac] ss:$48 sps:$4 sm:$0xff]  }
 0x452   :  { %v9988_v17 = vld [vmem:[%s15681_s2 + $0xb08] ss:$48 sps:$4 sm:$0xff]  }
 0x453   :  { %6588 = vmatpush1.bf16.msra.mxu0 %v9963_v37  ;;  %v9991_v62 = vld [vmem:[%s15681_s2 + $0x4a8] ss:$48 sps:$4 sm:$0xff]  }
 0x454   :  { %6629 = vmatpush1.bf16.msra.mxu1 %v9964_v54  ;;  %6589 = vmatprep.subr.bf16.mxu0 %v9965_v38  ;;  %v9992_v37 = vld [vmem:[%s15681_s2 + $0xaa8] ss:$48 sps:$4 sm:$0xff]   ;;  %v9993_v54 = vld [vmem:[%s15681_s2 + $0x44c] ss:$48 sps:$4 sm:$0xff]  }
 0x455   :  { %6630 = vmatprep.subr.bf16.mxu1 %v9966_v47  ;;  %v9994_v38 = vld [vmem:[%s15681_s2 + $0xa4c] ss:$48 sps:$4 sm:$0xff]   ;;  %v9995_v47 = vld [vmem:[%s15681_s2 + $0x448] ss:$48 sps:$4 sm:$0xff]  }
 0x457   :  { %6590 = vmatpush1.bf16.msra.mxu0 %v9967_v31  ;;  %v9996_v31 = vld [vmem:[%s15681_s2 + $0xa48] ss:$48 sps:$4 sm:$0xff]  }
 0x458   :  { %6631 = vmatpush1.bf16.msra.mxu1 %v9968_v40  ;;  %6591 = vmatprep.subr.bf16.mxu0 %v9969_v23  ;;  %v9997_v40 = vld [vmem:[%s15681_s2 + $0x3ec] ss:$48 sps:$4 sm:$0xff]  }
 0x459   :  { %6632 = vmatprep.subr.bf16.mxu1 %v9970_v2  ;;  %v9998_v23 = vld [vmem:[%s15681_s2 + $0x9ec] ss:$48 sps:$4 sm:$0xff]   ;;  %v9999_v2 = vld [vmem:[%s15681_s2 + $0x3e8] ss:$48 sps:$4 sm:$0xff]  }
 0x45b   :  { %6592 = vmatpush1.bf16.msra.mxu0 %v9971_v28  ;;  %v10000_v28 = vld [vmem:[%s15681_s2 + $0x9e8] ss:$48 sps:$4 sm:$0xff]  }
 0x45c   :  { %6633 = vmatpush1.bf16.msra.mxu1 %v9972_v39  ;;  %6593 = vmatprep.subr.bf16.mxu0 %v9973_v46  ;;  %v10001_v39 = vld [vmem:[%s15681_s2 + $0x38c] ss:$48 sps:$4 sm:$0xff]  }
 0x45d   :  { %6634 = vmatprep.subr.bf16.mxu1 %v9974_v7  ;;  %v10002_v46 = vld [vmem:[%s15681_s2 + $0x98c] ss:$48 sps:$4 sm:$0xff]   ;;  %v10003_v7 = vld [vmem:[%s15681_s2 + $0x388] ss:$48 sps:$4 sm:$0xff]  }
 0x45f   :  { %6594 = vmatpush1.bf16.msra.mxu0 %v9975_v52  ;;  %v10004_v52 = vld [vmem:[%s15681_s2 + $0x988] ss:$48 sps:$4 sm:$0xff]  }
 0x460   :  { %6635 = vmatpush1.bf16.msra.mxu1 %v9976_v15  ;;  %6595 = vmatprep.subr.bf16.mxu0 %v9977_v43  ;;  %v10005_v15 = vld [vmem:[%s15681_s2 + $0x32c] ss:$48 sps:$4 sm:$0xff]  }
 0x461   :  { %6636 = vmatprep.subr.bf16.mxu1 %v9978_v25  ;;  %v10006_v43 = vld [vmem:[%s15681_s2 + $0x92c] ss:$48 sps:$4 sm:$0xff]   ;;  %v10007_v25 = vld [vmem:[%s15681_s2 + $0x328] ss:$48 sps:$4 sm:$0xff]  }
 0x463   :  { %6596 = vmatpush2.bf16.msra.mxu0 %v9979_v42  ;;  %v10008_v42 = vld [vmem:[%s15681_s2 + $0x928] ss:$48 sps:$4 sm:$0xff]  }
 0x464   :  { %6637 = vmatpush2.bf16.msra.mxu1 %v9980_v63  ;;  %6597 = vmatprep.subr.bf16.mxu0 %v9981_v13  ;;  %v10009_v63 = vld [vmem:[%s15683_s4 + $0x2a4] ss:$48 sps:$4 sm:$0xff]  }
 0x465   :  { %6638 = vmatprep.subr.bf16.mxu1 %v9982_v9  ;;  %v10010_v13 = vld [vmem:[%s15683_s4 + $0x8a4] ss:$48 sps:$4 sm:$0xff]  }
 0x467   :  { %6598 = vmatpush2.bf16.msra.mxu0 %v9983_v53  ;;  %v14305_v53 = vpack.c.bf16 %v13560_v35, %v13560_v35 }
 0x468   :  { %6639 = vmatpush2.bf16.msra.mxu1 %v9984_v33  ;;  %6599 = vmatprep.subr.bf16.mxu0 %v9985_v12 }
 0x469   :  { %6640 = vmatprep.subr.bf16.mxu1 %v9986_v22  ;;  %v10011_v22 = vld [vmem:[%s15683_s4 + $0x2a0] ss:$48 sps:$4 sm:$0xff]  }
 0x46b   :  { %6600 = vmatpush2.bf16.msra.mxu0 %v9987_v4  ;;  %v14314_v4 = vpack.c.bf16 %v13785_v49, %v13785_v49 }
 0x46c   :  { %6641 = vmatpush2.bf16.msra.mxu1 %v9988_v17  ;;  %6601 = vmatprep.subr.bf16.mxu0 %v9989_v48 }
 0x46d   :  { %6642 = vmatprep.subr.bf16.mxu1 %v9990_v29  ;;  %v10013_v29 = vld [vmem:[%s15683_s4 + $0x244] ss:$48 sps:$4 sm:$0xff]  }
 0x46f   :  { %6602 = vmatpush2.bf16.msra.mxu0 %v9991_v62 }
 0x470   :  { %6643 = vmatpush2.bf16.msra.mxu1 %v9992_v37  ;;  %6603 = vmatprep.subr.bf16.mxu0 %v9993_v54  ;;  %v10014_v37 = vld [vmem:[%s15683_s4 + $0x844] ss:$48 sps:$4 sm:$0xff]  }
 0x471   :  { %6644 = vmatprep.subr.bf16.mxu1 %v9994_v38 }
 0x473   :  { %6604 = vmatpush2.bf16.msra.mxu0 %v9995_v47  ;;  %v10015_v47 = vld [vmem:[%s15683_s4 + $0x240] ss:$48 sps:$4 sm:$0xff]  }
 0x474   :  { %6645 = vmatpush2.bf16.msra.mxu1 %v9996_v31  ;;  %6605 = vmatprep.subr.bf16.mxu0 %v9997_v40  ;;  %v10017_v40 = vld [vmem:[%s15683_s4 + $0x1e4] ss:$48 sps:$4 sm:$0xff]  }
 0x475   :  { %6646 = vmatprep.subr.bf16.mxu1 %v9998_v23 }
 0x477   :  { %6606 = vmatpush2.bf16.msra.mxu0 %v9999_v2  ;;  %v10018_v2 = vld [vmem:[%s15683_s4 + $0x7e4] ss:$48 sps:$4 sm:$0xff]  }
 0x478   :  { %6647 = vmatpush2.bf16.msra.mxu1 %v10000_v28  ;;  %6607 = vmatprep.subr.bf16.mxu0 %v10001_v39  ;;  %v10019_v28 = vld [vmem:[%s15683_s4 + $0x1e0] ss:$48 sps:$4 sm:$0xff]  }
 0x479   :  { %6648 = vmatprep.subr.bf16.mxu1 %v10002_v46  ;;  %v10020_v39 = vld [vmem:[%s15683_s4 + $0x7e0] ss:$48 sps:$4 sm:$0xff]   ;;  %v10021_v46 = vld [vmem:[%s15683_s4 + $0x184] ss:$48 sps:$4 sm:$0xff]  }
 0x47b   :  { %6608 = vmatpush2.bf16.msra.mxu0 %v10003_v7  ;;  %v10022_v7 = vld [vmem:[%s15683_s4 + $0x784] ss:$48 sps:$4 sm:$0xff]  }
 0x47c   :  { %6649 = vmatpush2.bf16.msra.mxu1 %v10004_v52  ;;  %6609 = vmatprep.subr.bf16.mxu0 %v10005_v15  ;;  %v10023_v52 = vld [vmem:[%s15683_s4 + $0x180] ss:$48 sps:$4 sm:$0xff]  }
 0x47d   :  { %6650 = vmatprep.subr.bf16.mxu1 %v10006_v43  ;;  %v10024_v15 = vld [vmem:[%s15683_s4 + $0x780] ss:$48 sps:$4 sm:$0xff]   ;;  %v10025_v43 = vld [vmem:[%s15683_s4 + $0x124] ss:$48 sps:$4 sm:$0xff]  }
 0x47f   :  { %6610 = vmatpush2.bf16.msra.mxu0 %v10007_v25  ;;  %v10026_v25 = vld [vmem:[%s15683_s4 + $0x724] ss:$48 sps:$4 sm:$0xff]  }
 0x480   :  { %6651 = vmatpush2.bf16.msra.mxu1 %v10008_v42  ;;  %6761 = vmatprep.subr.bf16.mxu0 %v10009_v63  ;;  %v10027_v42 = vld [vmem:[%s15683_s4 + $0x120] ss:$48 sps:$4 sm:$0xff]  }
 0x481   :  { %6802 = vmatprep.subr.bf16.mxu1 %v10010_v13  ;;  %v10028_v63 = vld [vmem:[%s15683_s4 + $0x720] ss:$48 sps:$4 sm:$0xff]   ;;  %v10029_v13 = vld [vmem:[%s15683_s4 + $0xc4] ss:$48 sps:$4 sm:$0xff]  }
 0x482   :  { %v6367_v9 = vpop.f32.mrf.mxu0  ;;  %6612 = vmatmul.mubr.bf16.vlgmr.msra.gmra.mxu0 %v13210_v20  ;;  %v10012_v20 = vld [vmem:[%s15683_s4 + $0x8a0] ss:$48 sps:$4 sm:$0xff]  }
 0x483   :  { %v6368_v33 = vadd.f32 %v6367_v9, %v11675_v6  ;;  %v6408_v12 = vpop.f32.mrf.mxu1  ;;  %6653 = vmatmul.mubr.bf16.vlgmr.msra.gmra.mxu1 %v13217_v3  ;;  %6762 = vmatpush1.bf16.msra.mxu0 %v10011_v22  ;;  %v10030_v9 = vld [vmem:[%s15683_s4 + $0x6c4] ss:$48 sps:$4 sm:$0xff]  }
 0x484   :  { %6793 = vmatprep.mubr.bf16.mxu0 %v14305_v53  ;;  %6803 = vmatpush1.bf16.msra.mxu1 %v10012_v20  ;;  %v6369_v6 = vpop.f32.mrf.mxu0  ;;  %v10033_v22 = vld [vmem:[%s15683_s4 + $0x64] ss:$48 sps:$4 sm:$0xff]  }
 0x485   :  { %v14320_v17 = vadd.f32 %v6408_v12, %v6368_v33  ;;  %6834 = vmatprep.mubr.bf16.mxu1 %v14314_v4  ;;  %v6370_v3 = vadd.f32 %v6369_v6, %v11689_v14  ;;  %v6410_v48 = vpop.f32.mrf.mxu1  ;;  %6763 = vmatprep.subr.bf16.mxu0 %v10013_v29  ;;  %v10016_v14 = vld [vmem:[%s15683_s4 + $0x840] ss:$48 sps:$4 sm:$0xff]   ;;  %v10034_v20 = vld [vmem:[%s15683_s4 + $0x664] ss:$48 sps:$4 sm:$0xff]  }
 0x486   :  { %v6371_v62 = vpop.f32.mrf.mxu0  ;;  %6804 = vmatprep.subr.bf16.mxu1 %v10014_v37  ;;  %v10031_v33 = vld [vmem:[%s15683_s4 + $0xc0] ss:$48 sps:$4 sm:$0xff]   ;;  %v10038_v29 = vld [vmem:[%s15683_s4 + $0x604] ss:$48 sps:$4 sm:$0xff]  }
 0x487   :  { %v14330_v54 = vadd.f32 %v6410_v48, %v6370_v3  ;;  %v6412_v38 = vpop.f32.mrf.mxu1  ;;  %6764 = vmatpush1.bf16.msra.mxu0 %v10015_v47  ;;  %v10032_v12 = vld [vmem:[%s15683_s4 + $0x6c0] ss:$48 sps:$4 sm:$0xff]   ;;  %v10037_v48 = vld [vmem:[%s15683_s4 + $0x4] ss:$48 sps:$4 sm:$0xff]  }
 0x488   :  { %6805 = vmatpush1.bf16.msra.mxu1 %v10016_v14  ;;  %v6372_v31 = vpop.f32.mrf.mxu0  ;;  %6765 = vmatprep.subr.bf16.mxu0 %v10017_v40  ;;  %v10035_v6 = vld [vmem:[%s15683_s4 + $0x60] ss:$48 sps:$4 sm:$0xff]   ;;  %v10041_v38 = vld [vmem:[%s15683_s4 + $0x5a4] ss:$48 sps:$4 sm:$0xff]  }
 0x489   :  { %v6413_v23 = vpop.f32.mrf.mxu1  ;;  %6806 = vmatprep.subr.bf16.mxu1 %v10018_v2  ;;  %v10036_v3 = vld [vmem:[%s15683_s4 + $0x660] ss:$48 sps:$4 sm:$0xff]   ;;  %v10042_v47 = vld [vmem:[%s15683_s4 + $0xba4] ss:$48 sps:$4 sm:$0xff]  }
 0x48a   :  { %v10039_v62 = vld [vmem:[%s15683_s4] ss:$48 sps:$4 sm:$0xff]   ;;  %v10045_v40 = vld [vmem:[%s15683_s4 + $0x544] ss:$48 sps:$4 sm:$0xff]  }
 0x48b   :  { %6766 = vmatpush1.bf16.msra.mxu0 %v10019_v28  ;;  %v10040_v37 = vld [vmem:[%s15683_s4 + $0x600] ss:$48 sps:$4 sm:$0xff]   ;;  %v10046_v23 = vld [vmem:[%s15683_s4 + $0xb44] ss:$48 sps:$4 sm:$0xff]  }
 0x48c   :  { %6807 = vmatpush1.bf16.msra.mxu1 %v10020_v39  ;;  %6767 = vmatprep.subr.bf16.mxu0 %v10021_v46  ;;  %v10043_v14 = vld [vmem:[%s15683_s4 + $0x5a0] ss:$48 sps:$4 sm:$0xff]   ;;  %v10049_v39 = vld [vmem:[%s15683_s4 + $0x4e4] ss:$48 sps:$4 sm:$0xff]  }
 0x48d   :  { %6808 = vmatprep.subr.bf16.mxu1 %v10022_v7  ;;  %v10044_v31 = vld [vmem:[%s15683_s4 + $0xba0] ss:$48 sps:$4 sm:$0xff]   ;;  %v10050_v46 = vld [vmem:[%s15683_s4 + $0xae4] ss:$48 sps:$4 sm:$0xff]  }
 0x48e   :  { %v10047_v2 = vld [vmem:[%s15683_s4 + $0x540] ss:$48 sps:$4 sm:$0xff]  }
 0x48f   :  { %6768 = vmatpush1.bf16.msra.mxu0 %v10023_v52  ;;  %v10048_v28 = vld [vmem:[%s15683_s4 + $0xb40] ss:$48 sps:$4 sm:$0xff]  }
 0x490   :  { %6809 = vmatpush1.bf16.msra.mxu1 %v10024_v15  ;;  %6769 = vmatprep.subr.bf16.mxu0 %v10025_v43  ;;  %v10051_v7 = vld [vmem:[%s15683_s4 + $0x4e0] ss:$48 sps:$4 sm:$0xff]   ;;  %v10053_v15 = vld [vmem:[%s15683_s4 + $0x484] ss:$48 sps:$4 sm:$0xff]  }
 0x491   :  { %6810 = vmatprep.subr.bf16.mxu1 %v10026_v25  ;;  %v10052_v52 = vld [vmem:[%s15683_s4 + $0xae0] ss:$48 sps:$4 sm:$0xff]   ;;  %v10054_v43 = vld [vmem:[%s15683_s4 + $0xa84] ss:$48 sps:$4 sm:$0xff]  }
 0x492   :  { %v10055_v25 = vld [vmem:[%s15683_s4 + $0x480] ss:$48 sps:$4 sm:$0xff]  }
 0x493   :  { %6770 = vmatpush1.bf16.msra.mxu0 %v10027_v42  ;;  %v10056_v42 = vld [vmem:[%s15683_s4 + $0xa80] ss:$48 sps:$4 sm:$0xff]  }
 0x494   :  { %6811 = vmatpush1.bf16.msra.mxu1 %v10028_v63  ;;  %6771 = vmatprep.subr.bf16.mxu0 %v10029_v13  ;;  %v10057_v63 = vld [vmem:[%s15683_s4 + $0x424] ss:$48 sps:$4 sm:$0xff]  }
 0x495   :  { %6812 = vmatprep.subr.bf16.mxu1 %v10030_v9  ;;  %v10058_v13 = vld [vmem:[%s15683_s4 + $0xa24] ss:$48 sps:$4 sm:$0xff]   ;;  %v10059_v9 = vld [vmem:[%s15683_s4 + $0x420] ss:$48 sps:$4 sm:$0xff]  }
 0x497   :  { %6772 = vmatpush1.bf16.msra.mxu0 %v10031_v33  ;;  %v10060_v33 = vld [vmem:[%s15683_s4 + $0xa20] ss:$48 sps:$4 sm:$0xff]  }
 0x498   :  { %6813 = vmatpush1.bf16.msra.mxu1 %v10032_v12  ;;  %6773 = vmatprep.subr.bf16.mxu0 %v10033_v22  ;;  %v10061_v12 = vld [vmem:[%s15683_s4 + $0x3c4] ss:$48 sps:$4 sm:$0xff]  }
 0x499   :  { %6814 = vmatprep.subr.bf16.mxu1 %v10034_v20  ;;  %v10062_v22 = vld [vmem:[%s15683_s4 + $0x9c4] ss:$48 sps:$4 sm:$0xff]   ;;  %v10063_v20 = vld [vmem:[%s15683_s4 + $0x3c0] ss:$48 sps:$4 sm:$0xff]  }
 0x49b   :  { %6774 = vmatpush1.bf16.msra.mxu0 %v10035_v6  ;;  %v10064_v6 = vld [vmem:[%s15683_s4 + $0x9c0] ss:$48 sps:$4 sm:$0xff]  }
 0x49c   :  { %6815 = vmatpush1.bf16.msra.mxu1 %v10036_v3  ;;  %6775 = vmatprep.subr.bf16.mxu0 %v10037_v48  ;;  %v10065_v3 = vld [vmem:[%s15683_s4 + $0x364] ss:$48 sps:$4 sm:$0xff]  }
 0x49d   :  { %6816 = vmatprep.subr.bf16.mxu1 %v10038_v29  ;;  %v10066_v48 = vld [vmem:[%s15683_s4 + $0x964] ss:$48 sps:$4 sm:$0xff]   ;;  %v10067_v29 = vld [vmem:[%s15683_s4 + $0x360] ss:$48 sps:$4 sm:$0xff]  }
 0x49f   :  { %6776 = vmatpush1.bf16.msra.mxu0 %v10039_v62  ;;  %v10068_v62 = vld [vmem:[%s15683_s4 + $0x960] ss:$48 sps:$4 sm:$0xff]  }
 0x4a0   :  { %6817 = vmatpush1.bf16.msra.mxu1 %v10040_v37  ;;  %6777 = vmatprep.subr.bf16.mxu0 %v10041_v38  ;;  %v10069_v37 = vld [vmem:[%s15683_s4 + $0x304] ss:$48 sps:$4 sm:$0xff]  }
 0x4a1   :  { %6818 = vmatprep.subr.bf16.mxu1 %v10042_v47  ;;  %v10070_v38 = vld [vmem:[%s15683_s4 + $0x904] ss:$48 sps:$4 sm:$0xff]   ;;  %v10071_v47 = vld [vmem:[%s15683_s4 + $0x300] ss:$48 sps:$4 sm:$0xff]  }
 0x4a3   :  { %6778 = vmatpush2.bf16.msra.mxu0 %v10043_v14  ;;  %v10072_v14 = vld [vmem:[%s15683_s4 + $0x900] ss:$48 sps:$4 sm:$0xff]  }
 0x4a4   :  { %6819 = vmatpush2.bf16.msra.mxu1 %v10044_v31  ;;  %6779 = vmatprep.subr.bf16.mxu0 %v10045_v40  ;;  %v14508_v31 = vpack.c.bf16 %v13545_v61, %v13545_v61  ;;  %v10073_v40 = vld [vmem:[%s15683_s4 + $0x2ac] ss:$48 sps:$4 sm:$0xff]  }
 0x4a5   :  { %6820 = vmatprep.subr.bf16.mxu1 %v10046_v23  ;;  %v14515_v23 = vpack.c.bf16 %v13774_v5, %v13774_v5 }
 0x4a7   :  { %6780 = vmatpush2.bf16.msra.mxu0 %v10047_v2  ;;  %v10074_v2 = vld [vmem:[%s15683_s4 + $0x8ac] ss:$48 sps:$4 sm:$0xff]  }
 0x4a8   :  { %6821 = vmatpush2.bf16.msra.mxu1 %v10048_v28  ;;  %6781 = vmatprep.subr.bf16.mxu0 %v10049_v39 }
 0x4a9   :  { %6822 = vmatprep.subr.bf16.mxu1 %v10050_v46 }
 0x4ab   :  { %6782 = vmatpush2.bf16.msra.mxu0 %v10051_v7  ;;  %v10075_v7 = vld [vmem:[%s15683_s4 + $0x2a8] ss:$48 sps:$4 sm:$0xff]  }
 0x4ac   :  { %6823 = vmatpush2.bf16.msra.mxu1 %v10052_v52  ;;  %6783 = vmatprep.subr.bf16.mxu0 %v10053_v15  ;;  %v10076_v52 = vld [vmem:[%s15683_s4 + $0x8a8] ss:$48 sps:$4 sm:$0xff]  }
 0x4ad   :  { %6824 = vmatprep.subr.bf16.mxu1 %v10054_v43 }
 0x4af   :  { %6784 = vmatpush2.bf16.msra.mxu0 %v10055_v25 }
 0x4b0   :  { %6825 = vmatpush2.bf16.msra.mxu1 %v10056_v42  ;;  %6785 = vmatprep.subr.bf16.mxu0 %v10057_v63  ;;  %v10077_v42 = vld [vmem:[%s15683_s4 + $0x24c] ss:$48 sps:$4 sm:$0xff]  }
 0x4b1   :  { %6826 = vmatprep.subr.bf16.mxu1 %v10058_v13  ;;  %v10078_v13 = vld [vmem:[%s15683_s4 + $0x84c] ss:$48 sps:$4 sm:$0xff]  }
 0x4b3   :  { %6786 = vmatpush2.bf16.msra.mxu0 %v10059_v9 }
 0x4b4   :  { %6827 = vmatpush2.bf16.msra.mxu1 %v10060_v33  ;;  %6787 = vmatprep.subr.bf16.mxu0 %v10061_v12  ;;  %v10079_v12 = vld [vmem:[%s15683_s4 + $0x248] ss:$48 sps:$4 sm:$0xff]  }
 0x4b5   :  { %6828 = vmatprep.subr.bf16.mxu1 %v10062_v22 }
 0x4b7   :  { %6788 = vmatpush2.bf16.msra.mxu0 %v10063_v20  ;;  %v10081_v20 = vld [vmem:[%s15683_s4 + $0x1ec] ss:$48 sps:$4 sm:$0xff]  }
 0x4b8   :  { %6829 = vmatpush2.bf16.msra.mxu1 %v10064_v6  ;;  %6789 = vmatprep.subr.bf16.mxu0 %v10065_v3  ;;  %v10082_v3 = vld [vmem:[%s15683_s4 + $0x7ec] ss:$48 sps:$4 sm:$0xff]  }
 0x4b9   :  { %6830 = vmatprep.subr.bf16.mxu1 %v10066_v48  ;;  %v10083_v48 = vld [vmem:[%s15683_s4 + $0x1e8] ss:$48 sps:$4 sm:$0xff]  }
 0x4bb   :  { %6790 = vmatpush2.bf16.msra.mxu0 %v10067_v29  ;;  %v10084_v29 = vld [vmem:[%s15683_s4 + $0x7e8] ss:$48 sps:$4 sm:$0xff]  }
 0x4bc   :  { %6831 = vmatpush2.bf16.msra.mxu1 %v10068_v62  ;;  %6791 = vmatprep.subr.bf16.mxu0 %v10069_v37  ;;  %v10085_v62 = vld [vmem:[%s15683_s4 + $0x18c] ss:$48 sps:$4 sm:$0xff]  }
 0x4bd   :  { %6832 = vmatprep.subr.bf16.mxu1 %v10070_v38  ;;  %v10086_v37 = vld [vmem:[%s15683_s4 + $0x78c] ss:$48 sps:$4 sm:$0xff]   ;;  %v10087_v38 = vld [vmem:[%s15683_s4 + $0x188] ss:$48 sps:$4 sm:$0xff]  }
 0x4bf   :  { %6792 = vmatpush2.bf16.msra.mxu0 %v10071_v47  ;;  %v10088_v47 = vld [vmem:[%s15683_s4 + $0x788] ss:$48 sps:$4 sm:$0xff]  }
 0x4c0   :  { %6833 = vmatpush2.bf16.msra.mxu1 %v10072_v14  ;;  %6843 = vmatprep.subr.bf16.mxu0 %v10073_v40  ;;  %v10089_v14 = vld [vmem:[%s15683_s4 + $0x12c] ss:$48 sps:$4 sm:$0xff]  }
 0x4c1   :  { %6884 = vmatprep.subr.bf16.mxu1 %v10074_v2  ;;  %v10090_v40 = vld [vmem:[%s15683_s4 + $0x72c] ss:$48 sps:$4 sm:$0xff]   ;;  %v10091_v2 = vld [vmem:[%s15683_s4 + $0x128] ss:$48 sps:$4 sm:$0xff]  }
 0x4c2   :  { %v6449_v28 = vpop.f32.mrf.mxu0  ;;  %6794 = vmatmul.mubr.bf16.vlgmr.msra.gmra.mxu0 %v14508_v31 }
 0x4c3   :  { %v6450_v39 = vadd.f32 %v6449_v28, %v11892_v55  ;;  %v6490_v46 = vpop.f32.mrf.mxu1  ;;  %6835 = vmatmul.mubr.bf16.vlgmr.msra.gmra.mxu1 %v14515_v23  ;;  %6844 = vmatpush1.bf16.msra.mxu0 %v10075_v7  ;;  %v10092_v28 = vld [vmem:[%s15683_s4 + $0x728] ss:$48 sps:$4 sm:$0xff]  }
 0x4c4   :  { %6875 = vmatprep.mubr.bf16.mxu0 %v14305_v53  ;;  %6885 = vmatpush1.bf16.msra.mxu1 %v10076_v52  ;;  %v6451_v15 = vpop.f32.mrf.mxu0  ;;  %v10095_v7 = vld [vmem:[%s15683_s4 + $0xc8] ss:$48 sps:$4 sm:$0xff]  }
 0x4c5   :  { %v14530_v43 = vadd.f32 %v6490_v46, %v6450_v39  ;;  %6916 = vmatprep.mubr.bf16.mxu1 %v14314_v4  ;;  %v6452_v55 = vadd.f32 %v6451_v15, %v11903_v59  ;;  %v6492_v25 = vpop.f32.mrf.mxu1  ;;  %6845 = vmatprep.subr.bf16.mxu0 %v10077_v42  ;;  %v10080_v59 = vld [vmem:[%s15683_s4 + $0x848] ss:$48 sps:$4 sm:$0xff]   ;;  %v10093_v39 = vld [vmem:[%s15683_s4 + $0xcc] ss:$48 sps:$4 sm:$0xff]  }
 0x4c6   :  { %v6453_v63 = vpop.f32.mrf.mxu0  ;;  %6886 = vmatprep.subr.bf16.mxu1 %v10078_v13  ;;  %v10094_v46 = vld [vmem:[%s15683_s4 + $0x6cc] ss:$48 sps:$4 sm:$0xff]   ;;  %v10096_v52 = vld [vmem:[%s15683_s4 + $0x6c8] ss:$48 sps:$4 sm:$0xff]  }
 0x4c7   :  { %v14540_v9 = vadd.f32 %v6492_v25, %v6452_v55  ;;  %v6494_v33 = vpop.f32.mrf.mxu1  ;;  %6846 = vmatpush1.bf16.msra.mxu0 %v10079_v12  ;;  %v10097_v15 = vld [vmem:[%s15683_s4 + $0x6c] ss:$48 sps:$4 sm:$0xff]   ;;  %v51_v25 = vld [vmem:[%s15679_s0 + $0xc0] sm:$0xff]  ;;  %v10099_v42 = vld [vmem:[%s15683_s4 + $0x68] ss:$48 sps:$4 sm:$0xff]  }
 0x4c8   :  { %6887 = vmatpush1.bf16.msra.mxu1 %v10080_v59  ;;  %v6454_v22 = vpop.f32.mrf.mxu0  ;;  %6847 = vmatprep.subr.bf16.mxu0 %v10081_v20  ;;  %v10098_v55 = vld [vmem:[%s15683_s4 + $0x66c] ss:$48 sps:$4 sm:$0xff]   ;;  %v10100_v13 = vld [vmem:[%s15683_s4 + $0x668] ss:$48 sps:$4 sm:$0xff]   ;;  %v6661_v12 = vadd.f32 %v13908_v0, %v51_v25 }
 0x4c9   :  { %v6495_v6 = vpop.f32.mrf.mxu1  ;;  %6888 = vmatprep.subr.bf16.mxu1 %v10082_v3  ;;  %v53_v63 = vld [vmem:[%s15679_s0 + $0xc8] sm:$0xff] }
 0x4ca   :  { %v10101_v33 = vld [vmem:[%s15683_s4 + $0xc] ss:$48 sps:$4 sm:$0xff]   ;;  %v6662_v22 = vadd.f32 %v13918_v11, %v53_v63  ;;  %v10103_v20 = vld [vmem:[%s15683_s4 + $0x8] ss:$48 sps:$4 sm:$0xff]   ;;  %v8294_v3 = vmul.f32 -1.442695, %v6661_v12 }
 0x4cb   :  { %6848 = vmatpush1.bf16.msra.mxu0 %v10083_v48  ;;  %v10102_v59 = vld [vmem:[%s15683_s4 + $0x60c] ss:$48 sps:$4 sm:$0xff]   ;;  %v10104_v6 = vld [vmem:[%s15683_s4 + $0x608] ss:$48 sps:$4 sm:$0xff]  }
 0x4cc   :  { %6889 = vmatpush1.bf16.msra.mxu1 %v10084_v29  ;;  %6849 = vmatprep.subr.bf16.mxu0 %v10085_v62  ;;  %v10105_v0 = vld [vmem:[%s15683_s4 + $0x5ac] ss:$48 sps:$4 sm:$0xff]   ;;  %v8295_v48 = vmul.f32 -1.442695, %v6662_v22  ;;  %v10107_v29 = vld [vmem:[%s15683_s4 + $0x5a8] ss:$48 sps:$4 sm:$0xff]   ;;  %9544 = vpow2.f32 %v8294_v3 }
 0x4cd   :  { %6890 = vmatprep.subr.bf16.mxu1 %v10086_v37  ;;  %v10106_v11 = vld [vmem:[%s15683_s4 + $0xbac] ss:$48 sps:$4 sm:$0xff]   ;;  %v10108_v62 = vld [vmem:[%s15683_s4 + $0xba8] ss:$48 sps:$4 sm:$0xff]  }
 0x4ce   :  { %v10109_v37 = vld [vmem:[%s15683_s4 + $0x54c] ss:$48 sps:$4 sm:$0xff]   ;;  %9546 = vpow2.f32 %v8295_v48  ;;  %v10120_v63 = vld [vmem:[%s15683_s4 + $0xa88] ss:$48 sps:$4 sm:$0xff]  }
 0x4cf   :  { %6850 = vmatpush1.bf16.msra.mxu0 %v10087_v38  ;;  %v10110_v38 = vld [vmem:[%s15683_s4 + $0xb4c] ss:$48 sps:$4 sm:$0xff]   ;;  %v10127_v48 = vld [vmem:[%s15683_s4 + $0x3c8] ss:$48 sps:$4 sm:$0xff]  }
 0x4d0   :  { %6891 = vmatpush1.bf16.msra.mxu1 %v10088_v47  ;;  %6851 = vmatprep.subr.bf16.mxu0 %v10089_v14  ;;  %v10111_v47 = vld [vmem:[%s15683_s4 + $0x548] ss:$48 sps:$4 sm:$0xff]   ;;  %v59_v14 = vld [vmem:[%s15679_s0 + $0xe0] sm:$0xff]  ;;  %v10126_v3 = vld [vmem:[%s15683_s4 + $0x9cc] ss:$48 sps:$4 sm:$0xff]  }
 0x4d1   :  { %6892 = vmatprep.subr.bf16.mxu1 %v10090_v40  ;;  %v10112_v40 = vld [vmem:[%s15683_s4 + $0xb48] ss:$48 sps:$4 sm:$0xff]  }
 0x4d3   :  { %6852 = vmatpush1.bf16.msra.mxu0 %v10091_v2  ;;  %v10113_v2 = vld [vmem:[%s15683_s4 + $0x4ec] ss:$48 sps:$4 sm:$0xff]  }
 0x4d4   :  { %6893 = vmatpush1.bf16.msra.mxu1 %v10092_v28  ;;  %6853 = vmatprep.subr.bf16.mxu0 %v10093_v39  ;;  %v10114_v28 = vld [vmem:[%s15683_s4 + $0xaec] ss:$48 sps:$4 sm:$0xff]  }
 0x4d5   :  { %6894 = vmatprep.subr.bf16.mxu1 %v10094_v46  ;;  %v61_v39 = vld [vmem:[%s15679_s0 + $0xe8] sm:$0xff]  ;;  %v6689_v46 = vadd.f32 %v14320_v17, %v59_v14 }
 0x4d6   :  { %v10118_v17 = vld [vmem:[%s15683_s4 + $0xa8c] ss:$48 sps:$4 sm:$0xff]  }
 0x4d7   :  { %6854 = vmatpush1.bf16.msra.mxu0 %v10095_v7  ;;  %v10115_v7 = vld [vmem:[%s15683_s4 + $0x4e8] ss:$48 sps:$4 sm:$0xff]   ;;  %v8298_v25 = vmul.f32 -1.442695, %v6689_v46  ;;  %v10133_v14 = vld [vmem:[%s15683_s4 + $0x30c] ss:$48 sps:$4 sm:$0xff]  }
 0x4d8   :  { %6895 = vmatpush1.bf16.msra.mxu1 %v10096_v52  ;;  %6855 = vmatprep.subr.bf16.mxu0 %v10097_v15  ;;  %v10116_v52 = vld [vmem:[%s15683_s4 + $0xae8] ss:$48 sps:$4 sm:$0xff]   ;;  %v10117_v15 = vld [vmem:[%s15683_s4 + $0x48c] ss:$48 sps:$4 sm:$0xff]   ;;  %v10137_v46 = vld [vmem:[%s15683_s4 + $0x2b4] ss:$48 sps:$4 sm:$0xff]  }
 0x4d9   :  { %6896 = vmatprep.subr.bf16.mxu1 %v10098_v55  ;;  %v6690_v55 = vadd.f32 %v14330_v54, %v61_v39  ;;  %v10121_v54 = vld [vmem:[%s15683_s4 + $0x42c] ss:$48 sps:$4 sm:$0xff]   ;;  %v9545_v12 = vpop.eup %9544  ;;  %9548 = vpow2.f32 %v8298_v25  ;;  %v10136_v39 = vld [vmem:[%s15683_s4 + $0x908] ss:$48 sps:$4 sm:$0xff]  }
 0x4db   :  { %6856 = vmatpush1.bf16.msra.mxu0 %v10099_v42  ;;  %v10119_v42 = vld [vmem:[%s15683_s4 + $0x488] ss:$48 sps:$4 sm:$0xff]   ;;  %v9547_v22 = vpop.eup %9546 }
 0x4dc   :  { %6897 = vmatpush1.bf16.msra.mxu1 %v10100_v13  ;;  %6857 = vmatprep.subr.bf16.mxu0 %v10101_v33  ;;  %v8299_v13 = vmul.f32 -1.442695, %v6690_v55  ;;  %v10122_v33 = vld [vmem:[%s15683_s4 + $0xa2c] ss:$48 sps:$4 sm:$0xff]  }
 0x4dd   :  { %6898 = vmatprep.subr.bf16.mxu1 %v10102_v59  ;;  %v10123_v59 = vld [vmem:[%s15683_s4 + $0x428] ss:$48 sps:$4 sm:$0xff]  }
 0x4de   :  { %9550 = vpow2.f32 %v8299_v13 }
 0x4df   :  { %6858 = vmatpush1.bf16.msra.mxu0 %v10103_v20  ;;  %v10124_v20 = vld [vmem:[%s15683_s4 + $0xa28] ss:$48 sps:$4 sm:$0xff]  }
 0x4e0   :  { %6899 = vmatpush1.bf16.msra.mxu1 %v10104_v6  ;;  %6859 = vmatprep.subr.bf16.mxu0 %v10105_v0  ;;  %v10125_v6 = vld [vmem:[%s15683_s4 + $0x3cc] ss:$48 sps:$4 sm:$0xff]   ;;  %v6677_v0 = vadd.f32 1.0, %v9545_v12 }
 0x4e1   :  { %6900 = vmatprep.subr.bf16.mxu1 %v10106_v11  ;;  %v6678_v11 = vadd.f32 1.0, %v9547_v22 }
 0x4e2   :  { %9552 = vrcp.f32 %v6677_v0  ;;  %v10142_v0 = vld [vmem:[%s15683_s4 + $0x854] ss:$48 sps:$4 sm:$0xff]  }
 0x4e3   :  { %6860 = vmatpush2.bf16.msra.mxu0 %v10107_v29  ;;  %v10128_v29 = vld [vmem:[%s15683_s4 + $0x9c8] ss:$48 sps:$4 sm:$0xff]   ;;  %9554 = vrcp.f32 %v6678_v11 }
 0x4e4   :  { %6901 = vmatpush2.bf16.msra.mxu1 %v10108_v62  ;;  %6861 = vmatprep.subr.bf16.mxu0 %v10109_v37  ;;  %v10129_v62 = vld [vmem:[%s15683_s4 + $0x36c] ss:$48 sps:$4 sm:$0xff]  }
 0x4e5   :  { %6902 = vmatprep.subr.bf16.mxu1 %v10110_v38  ;;  %v10130_v37 = vld [vmem:[%s15683_s4 + $0x96c] ss:$48 sps:$4 sm:$0xff]   ;;  %v10131_v38 = vld [vmem:[%s15683_s4 + $0x368] ss:$48 sps:$4 sm:$0xff]  }
 0x4e7   :  { %6862 = vmatpush2.bf16.msra.mxu0 %v10111_v47  ;;  %v10132_v47 = vld [vmem:[%s15683_s4 + $0x968] ss:$48 sps:$4 sm:$0xff]  }
 0x4e8   :  { %6903 = vmatpush2.bf16.msra.mxu1 %v10112_v40  ;;  %6863 = vmatprep.subr.bf16.mxu0 %v10113_v2  ;;  %v10134_v40 = vld [vmem:[%s15683_s4 + $0x90c] ss:$48 sps:$4 sm:$0xff]   ;;  %v10135_v2 = vld [vmem:[%s15683_s4 + $0x308] ss:$48 sps:$4 sm:$0xff]  }
 0x4e9   :  { %6904 = vmatprep.subr.bf16.mxu1 %v10114_v28  ;;  %v9549_v28 = vpop.eup %9548 }
 0x4ea   :  { %v6705_v55 = vadd.f32 1.0, %v9549_v28  ;;  %v10146_v28 = vld [vmem:[%s15683_s4 + $0x7f4] ss:$48 sps:$4 sm:$0xff]  }
 0x4eb   :  { %6864 = vmatpush2.bf16.msra.mxu0 %v10115_v7  ;;  %v10138_v7 = vld [vmem:[%s15683_s4 + $0x8b4] ss:$48 sps:$4 sm:$0xff]  }
 0x4ec   :  { %6905 = vmatpush2.bf16.msra.mxu1 %v10116_v52  ;;  %6865 = vmatprep.subr.bf16.mxu0 %v10117_v15  ;;  %v9551_v52 = vpop.eup %9550  ;;  %9556 = vrcp.f32 %v6705_v55  ;;  %v10151_v55 = vld [vmem:[%s15683_s4 + $0x190] ss:$48 sps:$4 sm:$0xff]  }
 0x4ed   :  { %6906 = vmatprep.subr.bf16.mxu1 %v10118_v17  ;;  %v6706_v13 = vadd.f32 1.0, %v9551_v52  ;;  %v10149_v52 = vld [vmem:[%s15683_s4 + $0x194] ss:$48 sps:$4 sm:$0xff]  }
 0x4ef   :  { %6866 = vmatpush2.bf16.msra.mxu0 %v10119_v42  ;;  %v10139_v42 = vld [vmem:[%s15683_s4 + $0x2b0] ss:$48 sps:$4 sm:$0xff]   ;;  %v9553_v22 = vpop.eup %9552  ;;  %9558 = vrcp.f32 %v6706_v13  ;;  %v6104_v13 = vrot.slane %v12223_v45, 4 }
 0x4f0   :  { %6907 = vmatpush2.bf16.msra.mxu1 %v10120_v63  ;;  %6867 = vmatprep.subr.bf16.mxu0 %v10121_v54  ;;  %v10140_v63 = vld [vmem:[%s15683_s4 + $0x8b0] ss:$48 sps:$4 sm:$0xff]  }
 0x4f1   :  { %6908 = vmatprep.subr.bf16.mxu1 %v10122_v33 }
 0x4f3   :  { %6868 = vmatpush2.bf16.msra.mxu0 %v10123_v59  ;;  %v10141_v59 = vld [vmem:[%s15683_s4 + $0x254] ss:$48 sps:$4 sm:$0xff]  }
 0x4f4   :  { %6909 = vmatpush2.bf16.msra.mxu1 %v10124_v20  ;;  %6869 = vmatprep.subr.bf16.mxu0 %v10125_v6  ;;  %v67_v20 = vld [vmem:[%s15679_s0 + $0x100] sm:$0xff] }
 0x4f5   :  { %6910 = vmatprep.subr.bf16.mxu1 %v10126_v3 }
 0x4f7   :  { %6870 = vmatpush2.bf16.msra.mxu0 %v10127_v48  ;;  %v10143_v48 = vld [vmem:[%s15683_s4 + $0x250] ss:$48 sps:$4 sm:$0xff]  }
 0x4f8   :  { %6911 = vmatpush2.bf16.msra.mxu1 %v10128_v29  ;;  %6871 = vmatprep.subr.bf16.mxu0 %v10129_v62  ;;  %v9555_v29 = vpop.eup %9554  ;;  %v69_v62 = vld [vmem:[%s15679_s0 + $0x108] sm:$0xff] }
 0x4f9   :  { %6912 = vmatprep.subr.bf16.mxu1 %v10130_v37  ;;  %v10144_v37 = vld [vmem:[%s15683_s4 + $0x850] ss:$48 sps:$4 sm:$0xff]  }
 0x4fb   :  { %6872 = vmatpush2.bf16.msra.mxu0 %v10131_v38 }
 0x4fc   :  { %6913 = vmatpush2.bf16.msra.mxu1 %v10132_v47  ;;  %6873 = vmatprep.subr.bf16.mxu0 %v10133_v14  ;;  %v10145_v47 = vld [vmem:[%s15683_s4 + $0x1f4] ss:$48 sps:$4 sm:$0xff]  }
 0x4fd   :  { %6914 = vmatprep.subr.bf16.mxu1 %v10134_v40 }
 0x4ff   :  { %6874 = vmatpush2.bf16.msra.mxu0 %v10135_v2 }
 0x500   :  { %6915 = vmatpush2.bf16.msra.mxu1 %v10136_v39  ;;  %6925 = vmatprep.subr.bf16.mxu0 %v10137_v46  ;;  %v10147_v46 = vld [vmem:[%s15683_s4 + $0x1f0] ss:$48 sps:$4 sm:$0xff]  }
 0x501   :  { %6966 = vmatprep.subr.bf16.mxu1 %v10138_v7  ;;  %v10148_v7 = vld [vmem:[%s15683_s4 + $0x7f0] ss:$48 sps:$4 sm:$0xff]  }
 0x502   :  { %v6531_v15 = vpop.f32.mrf.mxu0  ;;  %6876 = vmatmul.mubr.bf16.vlgmr.msra.gmra.mxu0 %v14508_v31 }
 0x503   :  { %v6532_v17 = vadd.f32 %v6531_v15, %v12118_v27  ;;  %v6572_v25 = vpop.f32.mrf.mxu1  ;;  %6917 = vmatmul.mubr.bf16.vlgmr.msra.gmra.mxu1 %v14515_v23  ;;  %6926 = vmatpush1.bf16.msra.mxu0 %v10139_v42  ;;  %v10150_v15 = vld [vmem:[%s15683_s4 + $0x794] ss:$48 sps:$4 sm:$0xff]  }
 0x504   :  { %6957 = vmatprep.mubr.bf16.mxu0 %v14305_v53  ;;  %6967 = vmatpush1.bf16.msra.mxu1 %v10140_v63  ;;  %v6533_v54 = vpop.f32.mrf.mxu0  ;;  %v10154_v42 = vld [vmem:[%s15683_s4 + $0x734] ss:$48 sps:$4 sm:$0xff]   ;;  %v10155_v63 = vld [vmem:[%s15683_s4 + $0x130] ss:$48 sps:$4 sm:$0xff]  }
 0x505   :  { %v6573_v33 = vadd.f32 %v6572_v25, %v6532_v17  ;;  %6998 = vmatprep.mubr.bf16.mxu1 %v14314_v4  ;;  %v6534_v27 = vadd.f32 %v6533_v54, %v12134_v19  ;;  %v6574_v12 = vpop.f32.mrf.mxu1  ;;  %6927 = vmatprep.subr.bf16.mxu0 %v10141_v59  ;;  %v10152_v17 = vld [vmem:[%s15683_s4 + $0x790] ss:$48 sps:$4 sm:$0xff]   ;;  %v10153_v25 = vld [vmem:[%s15683_s4 + $0x134] ss:$48 sps:$4 sm:$0xff]   ;;  %v9557_v54 = vpop.eup %9556 }
 0x506   :  { %v6535_v6 = vpop.f32.mrf.mxu0  ;;  %6968 = vmatprep.subr.bf16.mxu1 %v10142_v0  ;;  %v10158_v59 = vld [vmem:[%s15683_s4 + $0x6d4] ss:$48 sps:$4 sm:$0xff]  }
 0x507   :  { %v6717_v3 = vmul.f32 %v9553_v22, %v6573_v33  ;;  %v6575_v19 = vadd.f32 %v6574_v12, %v6534_v27  ;;  %v6576_v11 = vpop.f32.mrf.mxu1  ;;  %6928 = vmatpush1.bf16.msra.mxu0 %v10143_v48  ;;  %v10156_v33 = vld [vmem:[%s15683_s4 + $0x730] ss:$48 sps:$4 sm:$0xff]   ;;  %v10157_v27 = vld [vmem:[%s15683_s4 + $0xd4] ss:$48 sps:$4 sm:$0xff]   ;;  %v6110_v12 = vrot.slane %v12241_v56, 4  ;;  %v9559_v22 = vpop.eup %9558 }
 0x508   :  { %6969 = vmatpush1.bf16.msra.mxu1 %v10144_v37  ;;  %v6536_v38 = vpop.f32.mrf.mxu0  ;;  %6929 = vmatprep.subr.bf16.mxu0 %v10145_v47  ;;  %v10159_v6 = vld [vmem:[%s15683_s4 + $0xd0] ss:$48 sps:$4 sm:$0xff]   ;;  %v10161_v11 = vld [vmem:[%s15683_s4 + $0x74] ss:$48 sps:$4 sm:$0xff]   ;;  %v6730_v37 = vsub.f32 1.0, %v9559_v22 }
 0x509   :  { %v6721_v14 = vadd.f32 %v6717_v3, %v67_v20  ;;  %v6718_v40 = vmul.f32 %v9555_v29, %v6575_v19  ;;  %v6577_v2 = vpop.f32.mrf.mxu1  ;;  %6970 = vmatprep.subr.bf16.mxu1 %v10146_v28  ;;  %v6729_v20 = vsub.f32 1.0, %v9557_v54  ;;  %v6105_v3 = vadd.f32 %v6104_v13, %v12223_v45  ;;  %v10160_v19 = vld [vmem:[%s15683_s4 + $0x6d0] ss:$48 sps:$4 sm:$0xff]   ;;  %v10162_v38 = vld [vmem:[%s15683_s4 + $0x674] ss:$48 sps:$4 sm:$0xff]  }
 0x50a   :  { %v6111_v48 = vadd.f32 %v6110_v12, %v12241_v56  ;;  %v6737_v29 = vmul.f32 %v9557_v54, %v12223_v45  ;;  %v10163_v45 = vld [vmem:[%s15683_s4 + $0x70] ss:$48 sps:$4 sm:$0xff]  }
 0x50b   :  { %9560 = vtanh.f32 %v6721_v14  ;;  %v6722_v39 = vadd.f32 %v6718_v40, %v69_v62  ;;  %6930 = vmatpush1.bf16.msra.mxu0 %v10147_v46  ;;  %v55_v14 = vld [vmem:[%s15679_s0 + $0xd0] sm:$0xff]  ;;  %v6738_v40 = vmul.f32 %v9559_v22, %v12241_v56  ;;  %v57_v46 = vld [vmem:[%s15679_s0 + $0xd8] sm:$0xff] }
 0x50c   :  { %6971 = vmatpush1.bf16.msra.mxu1 %v10148_v7  ;;  %6931 = vmatprep.subr.bf16.mxu0 %v10149_v52  ;;  %v10164_v7 = vld [vmem:[%s15683_s4 + $0x670] ss:$48 sps:$4 sm:$0xff]   ;;  %v10165_v56 = vld [vmem:[%s15683_s4 + $0x14] ss:$48 sps:$4 sm:$0xff]   ;;  %v6112_v52 = vrot.slane %v6111_v48, 2 }
 0x50d   :  { %9562 = vtanh.f32 %v6722_v39  ;;  %6972 = vmatprep.subr.bf16.mxu1 %v10150_v15  ;;  %v6106_v39 = vrot.slane %v6105_v3, 2  ;;  %v6663_v15 = vadd.f32 %v14110_v41, %v55_v14  ;;  %v10167_v13 = vld [vmem:[%s15683_s4 + $0x10] ss:$48 sps:$4 sm:$0xff]  }
 0x50e   :  { %v10168_v41 = vld [vmem:[%s15683_s4 + $0x610] ss:$48 sps:$4 sm:$0xff]   ;;  %v6113_v12 = vadd.f32 %v6112_v52, %v6111_v48  ;;  %v10178_v52 = vld [vmem:[%s15683_s4 + $0xaf4] ss:$48 sps:$4 sm:$0xff]  }
 0x50f   :  { %6932 = vmatpush1.bf16.msra.mxu0 %v10151_v55  ;;  %v10172_v48 = vld [vmem:[%s15683_s4 + $0xbb0] ss:$48 sps:$4 sm:$0xff]  }
 0x510   :  { %6973 = vmatpush1.bf16.msra.mxu1 %v10152_v17  ;;  %6933 = vmatprep.subr.bf16.mxu0 %v10153_v25  ;;  %v10166_v25 = vld [vmem:[%s15683_s4 + $0x614] ss:$48 sps:$4 sm:$0xff]  }
 0x511   :  { %6974 = vmatprep.subr.bf16.mxu1 %v10154_v42  ;;  %v6664_v42 = vadd.f32 %v14120_v60, %v57_v46  ;;  %v8296_v60 = vmul.f32 -1.442695, %v6663_v15  ;;  %v65_v15 = vld [vmem:[%s15679_s0 + $0xf8] sm:$0xff] }
 0x513   :  { %6934 = vmatpush1.bf16.msra.mxu0 %v10155_v63  ;;  %9564 = vpow2.f32 %v8296_v60 }
 0x514   :  { %6975 = vmatpush1.bf16.msra.mxu1 %v10156_v33  ;;  %6935 = vmatprep.subr.bf16.mxu0 %v10157_v27  ;;  %v6107_v33 = vadd.f32 %v6106_v39, %v6105_v3  ;;  %v10169_v27 = vld [vmem:[%s15683_s4 + $0x5b4] ss:$48 sps:$4 sm:$0xff]  }
 0x515   :  { %6976 = vmatprep.subr.bf16.mxu1 %v10158_v59  ;;  %v10177_v39 = vld [vmem:[%s15683_s4 + $0x4f4] ss:$48 sps:$4 sm:$0xff]  }
 0x517   :  { %6936 = vmatpush1.bf16.msra.mxu0 %v10159_v6  ;;  %v8297_v6 = vmul.f32 -1.442695, %v6664_v42  ;;  %v10179_v42 = vld [vmem:[%s15683_s4 + $0x4f0] ss:$48 sps:$4 sm:$0xff]  }
 0x518   :  { %v9561_v0 = vpop.eup %9560  ;;  %6977 = vmatpush1.bf16.msra.mxu1 %v10160_v19  ;;  %6937 = vmatprep.subr.bf16.mxu0 %v10161_v11  ;;  %v10171_v19 = vld [vmem:[%s15683_s4 + $0x5b0] ss:$48 sps:$4 sm:$0xff]   ;;  %v6108_v11 = vrot.slane %v6107_v33, 1 }
 0x519   :  { %v6733_v62 = vmul.f32 %v9561_v0, %v6729_v20  ;;  %6978 = vmatprep.subr.bf16.mxu1 %v10162_v38  ;;  %v10170_v20 = vld [vmem:[%s15683_s4 + $0xbb4] ss:$48 sps:$4 sm:$0xff]   ;;  %9566 = vpow2.f32 %v8297_v6 }
 0x51a   :  { %v9563_v47 = vpop.eup %9562  ;;  %v6109_v46 = vadd.f32 %v6108_v11, %v6107_v33  ;;  %v10182_v33 = vld [vmem:[%s15683_s4 + $0xa94] ss:$48 sps:$4 sm:$0xff]  }
 0x51b   :  { %v6741_v2 = vadd.f32 %v6737_v29, %v6733_v62  ;;  %v6734_v28 = vmul.f32 %v9563_v47, %v6730_v37  ;;  %6938 = vmatpush1.bf16.msra.mxu0 %v10163_v45  ;;  %v10173_v29 = vld [vmem:[%s15683_s4 + $0x554] ss:$48 sps:$4 sm:$0xff]   ;;  %v6114_v62 = vrot.slane %v6113_v12, 1  ;;  %v10176_v45 = vld [vmem:[%s15683_s4 + $0xb50] ss:$48 sps:$4 sm:$0xff]  }
 0x51c   :  { %6979 = vmatpush1.bf16.msra.mxu1 %v10164_v7  ;;  %6939 = vmatprep.subr.bf16.mxu0 %v10165_v56  ;;  %v10174_v47 = vld [vmem:[%s15683_s4 + $0xb54] ss:$48 sps:$4 sm:$0xff]  }
 0x51d   :  { %v7337_v55 = vrot.slane %v6741_v2, 4  ;;  %v6742_v17 = vadd.f32 %v6738_v40, %v6734_v28  ;;  %6980 = vmatprep.subr.bf16.mxu1 %v10166_v25  ;;  %v63_v28 = vld [vmem:[%s15679_s0 + $0xf0] sm:$0xff]  ;;  %v6115_v7 = vadd.f32 %v6114_v62, %v6113_v12 }
 0x51e   :  { %v10184_v12 = vld [vmem:[%s15683_s4 + $0xa90] ss:$48 sps:$4 sm:$0xff]   ;;  %v10190_v11 = vld [vmem:[%s15683_s4 + $0x9d4] ss:$48 sps:$4 sm:$0xff]  }
 0x51f   :  { %v7338_v63 = vadd.f32 %v7337_v55, %v6741_v2  ;;  %v7343_v54 = vrot.slane %v6742_v17, 4  ;;  %6940 = vmatpush1.bf16.msra.mxu0 %v10167_v13  ;;  %v10175_v2 = vld [vmem:[%s15683_s4 + $0x550] ss:$48 sps:$4 sm:$0xff]   ;;  %v6691_v55 = vadd.f32 %v14530_v43, %v63_v28  ;;  %v10181_v43 = vld [vmem:[%s15683_s4 + $0x494] ss:$48 sps:$4 sm:$0xff]   ;;  %v6692_v13 = vadd.f32 %v14540_v9, %v65_v15 }
 0x520   :  { %6981 = vmatpush1.bf16.msra.mxu1 %v10168_v41  ;;  %6941 = vmatprep.subr.bf16.mxu0 %v10169_v27  ;;  %v10183_v27 = vld [vmem:[%s15683_s4 + $0x490] ss:$48 sps:$4 sm:$0xff]   ;;  %v10185_v9 = vld [vmem:[%s15683_s4 + $0x434] ss:$48 sps:$4 sm:$0xff]  }
 0x521   :  { %v7339_v59 = vrot.slane %v7338_v63, 2  ;;  %v7344_v22 = vadd.f32 %v7343_v54, %v6742_v17  ;;  %6982 = vmatprep.subr.bf16.mxu1 %v10170_v20  ;;  %v10180_v54 = vld [vmem:[%s15683_s4 + $0xaf0] ss:$48 sps:$4 sm:$0xff]   ;;  %v8300_v41 = vmul.f32 -1.442695, %v6691_v55 }
 0x522   :  { %v8301_v60 = vmul.f32 -1.442695, %v6692_v13  ;;  %v10187_v20 = vld [vmem:[%s15683_s4 + $0x430] ss:$48 sps:$4 sm:$0xff]  }
 0x523   :  { %v7340_v0 = vadd.f32 %v7339_v59, %v7338_v63  ;;  %v7345_v3 = vrot.slane %v7344_v22, 2  ;;  %6942 = vmatpush2.bf16.msra.mxu0 %v10171_v19  ;;  %v10186_v59 = vld [vmem:[%s15683_s4 + $0xa34] ss:$48 sps:$4 sm:$0xff]   ;;  %9568 = vpow2.f32 %v8300_v41  ;;  %v10192_v62 = vld [vmem:[%s15683_s4 + $0x9d0] ss:$48 sps:$4 sm:$0xff]  }
 0x524   :  { %6983 = vmatpush2.bf16.msra.mxu1 %v10172_v48  ;;  %6943 = vmatprep.subr.bf16.mxu0 %v10173_v29  ;;  %9570 = vpow2.f32 %v8301_v60  ;;  %v10191_v29 = vld [vmem:[%s15683_s4 + $0x3d0] ss:$48 sps:$4 sm:$0xff]  }
 0x525   :  { %v7341_v37 = vrot.slane %v7340_v0, 1  ;;  %v7346_v38 = vadd.f32 %v7345_v3, %v7344_v22  ;;  %6984 = vmatprep.subr.bf16.mxu1 %v10174_v47  ;;  %v9565_v22 = vpop.eup %9564  ;;  %v10189_v3 = vld [vmem:[%s15683_s4 + $0x3d4] ss:$48 sps:$4 sm:$0xff]   ;;  %v10195_v47 = vld [vmem:[%s15683_s4 + $0x370] ss:$48 sps:$4 sm:$0xff]  }
 0x526   :  { %v9567_v6 = vpop.eup %9566  ;;  %v6679_v19 = vadd.f32 1.0, %v9565_v22  ;;  %v10199_v28 = vld [vmem:[%s15683_s4 + $0x310] ss:$48 sps:$4 sm:$0xff]   ;;  %v10206_v22 = vld [vmem:[%s15683_s4 + $0x85c] ss:$48 sps:$4 sm:$0xff]  }
 0x527   :  { %v7342_v14 = vadd.f32 %v7341_v37, %v7340_v0  ;;  %v7347_v40 = vrot.slane %v7346_v38, 1  ;;  %6944 = vmatpush2.bf16.msra.mxu0 %v10175_v2  ;;  %v10188_v0 = vld [vmem:[%s15683_s4 + $0xa30] ss:$48 sps:$4 sm:$0xff]   ;;  %v6680_v48 = vadd.f32 1.0, %v9567_v6  ;;  %v10193_v37 = vld [vmem:[%s15683_s4 + $0x374] ss:$48 sps:$4 sm:$0xff]  }
 0x528   :  { %6985 = vmatpush2.bf16.msra.mxu1 %v10176_v45  ;;  %6945 = vmatprep.subr.bf16.mxu0 %v10177_v39  ;;  %9572 = vrcp.f32 %v6679_v19  ;;  %v10198_v2 = vld [vmem:[%s15683_s4 + $0x914] ss:$48 sps:$4 sm:$0xff]   ;;  %v10200_v39 = vld [vmem:[%s15683_s4 + $0x910] ss:$48 sps:$4 sm:$0xff]   ;;  %v73_v19 = vld [vmem:[%s15679_s0 + $0x118] sm:$0xff] }
 0x529   :  { %v7348_v56 = vadd.f32 %v7347_v40, %v7346_v38  ;;  %6986 = vmatprep.subr.bf16.mxu1 %v10178_v52  ;;  %v14892_v17 = vsel %vm7393_vm0, %v6109_v46, %v7342_v14  ;;  %v10194_v38 = vld [vmem:[%s15683_s4 + $0x974] ss:$48 sps:$4 sm:$0xff]   ;;  %9574 = vrcp.f32 %v6680_v48  ;;  %v10196_v14 = vld [vmem:[%s15683_s4 + $0x970] ss:$48 sps:$4 sm:$0xff]   ;;  %v10201_v46 = vld [vmem:[%s15683_s4 + $0x2bc] ss:$48 sps:$4 sm:$0xff]  }
 0x52a   :  { %v10197_v40 = vld [vmem:[%s15683_s4 + $0x314] ss:$48 sps:$4 sm:$0xff]  }
 0x52b   :  { %v14895_v25 = vsel %vm7393_vm0, %v6115_v7, %v7348_v56  ;;  %6946 = vmatpush2.bf16.msra.mxu0 %v10179_v42  ;;  %v10202_v7 = vld [vmem:[%s15683_s4 + $0x8bc] ss:$48 sps:$4 sm:$0xff]   ;;  %v71_v60 = vld [vmem:[%s15679_s0 + $0x110] sm:$0xff] }
 0x52c   :  { %v7403_v63 = vcombine.low %v14892_v17, %v14895_v25  ;;  %6987 = vmatpush2.bf16.msra.mxu1 %v10180_v54  ;;  %6947 = vmatprep.subr.bf16.mxu0 %v10181_v43  ;;  %v10203_v54 = vld [vmem:[%s15683_s4 + $0x2b8] ss:$48 sps:$4 sm:$0xff]   ;;  %v10250_v17 = vld [vmem:[%s15683_s4 + $0xa3c] ss:$48 sps:$4 sm:$0xff]  }
 0x52d   :  { %6988 = vmatprep.subr.bf16.mxu1 %v10182_v33  ;;  %v10204_v43 = vld [vmem:[%s15683_s4 + $0x8b8] ss:$48 sps:$4 sm:$0xff]  }
 0x52e   :  { %v10251_v25 = vld [vmem:[%s15683_s4 + $0x438] ss:$48 sps:$4 sm:$0xff]  }
 0x52f   :  { %6948 = vmatpush2.bf16.msra.mxu0 %v10183_v27 }
 0x530   :  { %6989 = vmatpush2.bf16.msra.mxu1 %v10184_v12  ;;  %6949 = vmatprep.subr.bf16.mxu0 %v10185_v9  ;;  %v9569_v45 = vpop.eup %9568  ;;  %v10205_v12 = vld [vmem:[%s15683_s4 + $0x25c] ss:$48 sps:$4 sm:$0xff]  }
 0x531   :  { %6990 = vmatprep.subr.bf16.mxu1 %v10186_v59  ;;  %v9571_v56 = vpop.eup %9570  ;;  %v6707_v15 = vadd.f32 1.0, %v9569_v45  ;;  %v10214_v45 = vld [vmem:[%s15683_s4 + $0x79c] ss:$48 sps:$4 sm:$0xff]  }
 0x532   :  { %v6708_v33 = vadd.f32 1.0, %v9571_v56  ;;  %v10218_v56 = vld [vmem:[%s15683_s4 + $0x73c] ss:$48 sps:$4 sm:$0xff]  }
 0x533   :  { %6950 = vmatpush2.bf16.msra.mxu0 %v10187_v20  ;;  %9576 = vrcp.f32 %v6707_v15 }
 0x534   :  { %6991 = vmatpush2.bf16.msra.mxu1 %v10188_v0  ;;  %6951 = vmatprep.subr.bf16.mxu0 %v10189_v3  ;;  %v10207_v0 = vld [vmem:[%s15683_s4 + $0x258] ss:$48 sps:$4 sm:$0xff]   ;;  %9578 = vrcp.f32 %v6708_v33 }
 0x535   :  { %6992 = vmatprep.subr.bf16.mxu1 %v10190_v11  ;;  %v9573_v9 = vpop.eup %9572  ;;  %v10208_v11 = vld [vmem:[%s15683_s4 + $0x858] ss:$48 sps:$4 sm:$0xff]  }
 0x536   :  { %v9575_v3 = vpop.eup %9574 }
 0x537   :  { %6952 = vmatpush2.bf16.msra.mxu0 %v10191_v29  ;;  %v10209_v29 = vld [vmem:[%s15683_s4 + $0x1fc] ss:$48 sps:$4 sm:$0xff]  }
 0x538   :  { %6993 = vmatpush2.bf16.msra.mxu1 %v10192_v62  ;;  %6953 = vmatprep.subr.bf16.mxu0 %v10193_v37 }
 0x539   :  { %6994 = vmatprep.subr.bf16.mxu1 %v10194_v38 }
 0x53b   :  { %6954 = vmatpush2.bf16.msra.mxu0 %v10195_v47  ;;  %v10210_v47 = vld [vmem:[%s15683_s4 + $0x7fc] ss:$48 sps:$4 sm:$0xff]  }
 0x53c   :  { %6995 = vmatpush2.bf16.msra.mxu1 %v10196_v14  ;;  %6955 = vmatprep.subr.bf16.mxu0 %v10197_v40  ;;  %v10211_v40 = vld [vmem:[%s15683_s4 + $0x1f8] ss:$48 sps:$4 sm:$0xff]  }
 0x53d   :  { %6996 = vmatprep.subr.bf16.mxu1 %v10198_v2  ;;  %v10212_v2 = vld [vmem:[%s15683_s4 + $0x7f8] ss:$48 sps:$4 sm:$0xff]  }
 0x53f   :  { %6956 = vmatpush2.bf16.msra.mxu0 %v10199_v28  ;;  %v10213_v28 = vld [vmem:[%s15683_s4 + $0x19c] ss:$48 sps:$4 sm:$0xff]  }
 0x540   :  { %6997 = vmatpush2.bf16.msra.mxu1 %v10200_v39  ;;  %7007 = vmatprep.subr.bf16.mxu0 %v10201_v46  ;;  %v10215_v39 = vld [vmem:[%s15683_s4 + $0x198] ss:$48 sps:$4 sm:$0xff]   ;;  %v9577_v15 = vpop.eup %9576 }
 0x541   :  { %7048 = vmatprep.subr.bf16.mxu1 %v10202_v7  ;;  %v10216_v46 = vld [vmem:[%s15683_s4 + $0x798] ss:$48 sps:$4 sm:$0xff]   ;;  %v10217_v7 = vld [vmem:[%s15683_s4 + $0x13c] ss:$48 sps:$4 sm:$0xff]   ;;  %v9579_v33 = vpop.eup %9578 }
 0x542   :  { %v6613_v52 = vpop.f32.mrf.mxu0  ;;  %6958 = vmatmul.mubr.bf16.vlgmr.msra.gmra.mxu0 %v14508_v31 }
 0x543   :  { %v6614_v55 = vadd.f32 %v6613_v52, %v12350_v57  ;;  %v6654_v42 = vpop.f32.mrf.mxu1  ;;  %6999 = vmatmul.mubr.bf16.vlgmr.msra.gmra.mxu1 %v14515_v23  ;;  %7008 = vmatpush1.bf16.msra.mxu0 %v10203_v54  ;;  %v10219_v52 = vld [vmem:[%s15683_s4 + $0x138] ss:$48 sps:$4 sm:$0xff]   ;;  %v10221_v54 = vld [vmem:[%s15683_s4 + $0xdc] ss:$48 sps:$4 sm:$0xff]  }
 0x544   :  { %7039 = vmatprep.mubr.bf16.mxu0 %v14305_v53  ;;  %7049 = vmatpush1.bf16.msra.mxu1 %v10204_v43  ;;  %v6615_v13 = vpop.f32.mrf.mxu0  ;;  %v6122_v43 = vrot.slane %v12466_v34, 4 }
 0x545   :  { %v6655_v41 = vadd.f32 %v6654_v42, %v6614_v55  ;;  %7080 = vmatprep.mubr.bf16.mxu1 %v14314_v4  ;;  %v6616_v57 = vadd.f32 %v6615_v13, %v12366_v10  ;;  %v6656_v27 = vpop.f32.mrf.mxu1  ;;  %7009 = vmatprep.subr.bf16.mxu0 %v10205_v12  ;;  %v6116_v55 = vrot.slane %v12452_v36, 4  ;;  %v10220_v42 = vld [vmem:[%s15683_s4 + $0x738] ss:$48 sps:$4 sm:$0xff]   ;;  %v10222_v13 = vld [vmem:[%s15683_s4 + $0x6dc] ss:$48 sps:$4 sm:$0xff]  }
 0x546   :  { %v6617_v59 = vpop.f32.mrf.mxu0  ;;  %7050 = vmatprep.subr.bf16.mxu1 %v10206_v22  ;;  %v6739_v22 = vmul.f32 %v9577_v15, %v12452_v36 }
 0x547   :  { %v6719_v20 = vmul.f32 %v9573_v9, %v6655_v41  ;;  %v6657_v10 = vadd.f32 %v6656_v27, %v6616_v57  ;;  %v6658_v6 = vpop.f32.mrf.mxu1  ;;  %7010 = vmatpush1.bf16.msra.mxu0 %v10207_v0  ;;  %v6731_v41 = vsub.f32 1.0, %v9577_v15  ;;  %v10223_v57 = vld [vmem:[%s15683_s4 + $0xd8] ss:$48 sps:$4 sm:$0xff]   ;;  %v6117_v12 = vadd.f32 %v6116_v55, %v12452_v36 }
 0x548   :  { %7051 = vmatpush1.bf16.msra.mxu1 %v10208_v11  ;;  %v6618_v48 = vpop.f32.mrf.mxu0  ;;  %7011 = vmatprep.subr.bf16.mxu0 %v10209_v29  ;;  %v10224_v9 = vld [vmem:[%s15683_s4 + $0x6d8] ss:$48 sps:$4 sm:$0xff]   ;;  %v6123_v59 = vadd.f32 %v6122_v43, %v12466_v34  ;;  %v10226_v6 = vld [vmem:[%s15683_s4 + $0x67c] ss:$48 sps:$4 sm:$0xff]   ;;  %v10394_v15 = vmov 1983009808  }
 0x549   :  { %v6723_v62 = vadd.f32 %v6719_v20, %v71_v60  ;;  %v6720_v37 = vmul.f32 %v9575_v3, %v6657_v10  ;;  %v6659_v38 = vpop.f32.mrf.mxu1  ;;  %7052 = vmatprep.subr.bf16.mxu1 %v10210_v47  ;;  %v10225_v60 = vld [vmem:[%s15683_s4 + $0x7c] ss:$48 sps:$4 sm:$0xff]   ;;  %v6732_v10 = vsub.f32 1.0, %v9579_v33  ;;  %v6740_v3 = vmul.f32 %v9579_v33, %v12466_v34  ;;  %v10227_v48 = vld [vmem:[%s15683_s4 + $0x78] ss:$48 sps:$4 sm:$0xff]  }
 0x54a   :  { %v10228_v36 = vld [vmem:[%s15683_s4 + $0x678] ss:$48 sps:$4 sm:$0xff]   ;;  %v10229_v29 = vld [vmem:[%s15683_s4 + $0x1c] ss:$48 sps:$4 sm:$0xff]   ;;  %v7406_v55 = vunpack.c.l.s4 %v10394_v15 }
 0x54b   :  { %9580 = vtanh.f32 %v6723_v62  ;;  %v6724_v14 = vadd.f32 %v6720_v37, %v73_v19  ;;  %7012 = vmatpush1.bf16.msra.mxu0 %v10211_v40  ;;  %v6118_v62 = vrot.slane %v6117_v12, 2  ;;  %v6124_v37 = vrot.slane %v6123_v59, 2  ;;  %v10230_v47 = vld [vmem:[%s15683_s4 + $0x61c] ss:$48 sps:$4 sm:$0xff]   ;;  %v10235_v43 = vld [vmem:[%s15683_s4 + $0x5b8] ss:$48 sps:$4 sm:$0xff]  }
 0x54c   :  { %7053 = vmatpush1.bf16.msra.mxu1 %v10212_v2  ;;  %7013 = vmatprep.subr.bf16.mxu0 %v10213_v28  ;;  %v10231_v2 = vld [vmem:[%s15683_s4 + $0x18] ss:$48 sps:$4 sm:$0xff]   ;;  %v10237_v33 = vld [vmem:[%s15683_s4 + $0x55c] ss:$48 sps:$4 sm:$0xff]  }
 0x54d   :  { %9582 = vtanh.f32 %v6724_v14  ;;  %7054 = vmatprep.subr.bf16.mxu1 %v10214_v45  ;;  %v10232_v28 = vld [vmem:[%s15683_s4 + $0x618] ss:$48 sps:$4 sm:$0xff]   ;;  %v10233_v45 = vld [vmem:[%s15683_s4 + $0x5bc] ss:$48 sps:$4 sm:$0xff]  }
 0x54e   :  { %v10258_v15 = vld [vmem:[%s15683_s4 + $0x97c] ss:$48 sps:$4 sm:$0xff]  }
 0x54f   :  { %7014 = vmatpush1.bf16.msra.mxu0 %v10215_v39  ;;  %v6119_v39 = vadd.f32 %v6118_v62, %v6117_v12  ;;  %v10243_v62 = vld [vmem:[%s15683_s4 + $0x4f8] ss:$48 sps:$4 sm:$0xff]  }
 0x550   :  { %7055 = vmatpush1.bf16.msra.mxu1 %v10216_v46  ;;  %7015 = vmatprep.subr.bf16.mxu0 %v10217_v7  ;;  %v6125_v46 = vadd.f32 %v6124_v37, %v6123_v59 }
 0x551   :  { %7056 = vmatprep.subr.bf16.mxu1 %v10218_v56 }
 0x553   :  { %7016 = vmatpush1.bf16.msra.mxu0 %v10219_v52  ;;  %v10234_v52 = vld [vmem:[%s15683_s4 + $0xbbc] ss:$48 sps:$4 sm:$0xff]  }
 0x554   :  { %7057 = vmatpush1.bf16.msra.mxu1 %v10220_v42  ;;  %7017 = vmatprep.subr.bf16.mxu0 %v10221_v54 }
 0x555   :  { %7058 = vmatprep.subr.bf16.mxu1 %v10222_v13  ;;  %v10236_v13 = vld [vmem:[%s15683_s4 + $0xbb8] ss:$48 sps:$4 sm:$0xff]  }
 0x557   :  { %7018 = vmatpush1.bf16.msra.mxu0 %v10223_v57  ;;  %v6126_v57 = vrot.slane %v6125_v46, 1 }
 0x558   :  { %v9581_v27 = vpop.eup %9580  ;;  %7059 = vmatpush1.bf16.msra.mxu1 %v10224_v9  ;;  %7019 = vmatprep.subr.bf16.mxu0 %v10225_v60  ;;  %v10238_v9 = vld [vmem:[%s15683_s4 + $0xb5c] ss:$48 sps:$4 sm:$0xff]   ;;  %v7407_v60 = vunpack.c.0.s8 %v7406_v55  ;;  %v10259_v55 = vld [vmem:[%s15683_s4 + $0x378] ss:$48 sps:$4 sm:$0xff]  }
 0x559   :  { %v6735_v20 = vmul.f32 %v9581_v27, %v6731_v41  ;;  %7060 = vmatprep.subr.bf16.mxu1 %v10226_v6  ;;  %v6120_v41 = vrot.slane %v6119_v39, 1  ;;  %v10241_v6 = vld [vmem:[%s15683_s4 + $0x4fc] ss:$48 sps:$4 sm:$0xff]  }
 0x55a   :  { %v9583_v0 = vpop.eup %9582 }
 0x55b   :  { %v6743_v19 = vadd.f32 %v6739_v22, %v6735_v20  ;;  %v6736_v11 = vmul.f32 %v9583_v0, %v6732_v10  ;;  %7020 = vmatpush1.bf16.msra.mxu0 %v10227_v48  ;;  %v10239_v20 = vld [vmem:[%s15683_s4 + $0x558] ss:$48 sps:$4 sm:$0xff]   ;;  %v6121_v0 = vadd.f32 %v6120_v41, %v6119_v39  ;;  %v15111_v48 = vsub.s32 %v7407_v60, %v11205_v1  ;;  %v10245_v1 = vld [vmem:[%s15683_s4 + $0x49c] ss:$48 sps:$4 sm:$0xff]   ;;  %v10265_v41 = vld [vmem:[%s15683_s4 + $0x2c4] ss:$48 sps:$4 sm:$0xff]  }
 0x55c   :  { %7061 = vmatpush1.bf16.msra.mxu1 %v10228_v36  ;;  %7021 = vmatprep.subr.bf16.mxu0 %v10229_v29  ;;  %v10240_v10 = vld [vmem:[%s15683_s4 + $0xb58] ss:$48 sps:$4 sm:$0xff]   ;;  %v10253_v39 = vld [vmem:[%s15683_s4 + $0x3dc] ss:$48 sps:$4 sm:$0xff]   ;;  %v10267_v60 = vld [vmem:[%s15683_s4 + $0x2c0] ss:$48 sps:$4 sm:$0xff]  }
 0x55d   :  { %v7349_v34 = vrot.slane %v6743_v19, 4  ;;  %v6744_v38 = vadd.f32 %v6740_v3, %v6736_v11  ;;  %7062 = vmatprep.subr.bf16.mxu1 %v10230_v47  ;;  %v6127_v3 = vadd.f32 %v6126_v57, %v6125_v46  ;;  %v10242_v11 = vld [vmem:[%s15683_s4 + $0xafc] ss:$48 sps:$4 sm:$0xff]   ;;  %v7411_v47 = vrot.slane %v7403_v63, %v15111_v48  ;;  %v10252_v63 = vld [vmem:[%s15683_s4 + $0xa38] ss:$48 sps:$4 sm:$0xff]  }
 0x55e   :  { %v10254_v46 = vld [vmem:[%s15683_s4 + $0x9dc] ss:$48 sps:$4 sm:$0xff]   ;;  %v10266_v57 = vld [vmem:[%s15683_s4 + $0x8c4] ss:$48 sps:$4 sm:$0xff]  }
 0x55f   :  { %v7350_v14 = vadd.f32 %v7349_v34, %v6743_v19  ;;  %v7355_v40 = vrot.slane %v6744_v38, 4  ;;  %7022 = vmatpush1.bf16.msra.mxu0 %v10231_v2  ;;  %v10244_v34 = vld [vmem:[%s15683_s4 + $0xaf8] ss:$48 sps:$4 sm:$0xff]  }
 0x560   :  { %7063 = vmatpush1.bf16.msra.mxu1 %v10232_v28  ;;  %7023 = vmatprep.subr.bf16.mxu0 %v10233_v45  ;;  %v10248_v28 = vld [vmem:[%s15683_s4 + $0xa98] ss:$48 sps:$4 sm:$0xff]   ;;  %v10249_v45 = vld [vmem:[%s15683_s4 + $0x43c] ss:$48 sps:$4 sm:$0xff]  }
 0x561   :  { %v7351_v7 = vrot.slane %v7350_v14, 2  ;;  %v7356_v56 = vadd.f32 %v7355_v40, %v6744_v38  ;;  %7064 = vmatprep.subr.bf16.mxu1 %v10234_v52  ;;  %v10246_v38 = vld [vmem:[%s15683_s4 + $0xa9c] ss:$48 sps:$4 sm:$0xff]   ;;  %v10247_v40 = vld [vmem:[%s15683_s4 + $0x498] ss:$48 sps:$4 sm:$0xff]  }
 0x562   :  { %v10257_v52 = vld [vmem:[%s15683_s4 + $0x37c] ss:$48 sps:$4 sm:$0xff]  }
 0x563   :  { %v7352_v42 = vadd.f32 %v7351_v7, %v7350_v14  ;;  %v7357_v54 = vrot.slane %v7356_v56, 2  ;;  %7024 = vmatpush2.bf16.msra.mxu0 %v10235_v43  ;;  %v10255_v7 = vld [vmem:[%s15683_s4 + $0x3d8] ss:$48 sps:$4 sm:$0xff]   ;;  %v10262_v43 = vld [vmem:[%s15683_s4 + $0x91c] ss:$48 sps:$4 sm:$0xff]  }
 0x564   :  { %7065 = vmatpush2.bf16.msra.mxu1 %v10236_v13  ;;  %7025 = vmatprep.subr.bf16.mxu0 %v10237_v33  ;;  %v10263_v13 = vld [vmem:[%s15683_s4 + $0x318] ss:$48 sps:$4 sm:$0xff]  }
 0x565   :  { %v7353_v27 = vrot.slane %v7352_v42, 1  ;;  %v7358_v12 = vadd.f32 %v7357_v54, %v7356_v56  ;;  %7066 = vmatprep.subr.bf16.mxu1 %v10238_v9  ;;  %v10256_v56 = vld [vmem:[%s15683_s4 + $0x9d8] ss:$48 sps:$4 sm:$0xff]   ;;  %v10261_v54 = vld [vmem:[%s15683_s4 + $0x31c] ss:$48 sps:$4 sm:$0xff]  }
 0x566   :  { %v10264_v33 = vld [vmem:[%s15683_s4 + $0x918] ss:$48 sps:$4 sm:$0xff]  }
 0x567   :  { %v7354_v59 = vadd.f32 %v7353_v27, %v7352_v42  ;;  %v7359_v22 = vrot.slane %v7358_v12, 1  ;;  %7026 = vmatpush2.bf16.msra.mxu0 %v10239_v20  ;;  %v10260_v42 = vld [vmem:[%s15683_s4 + $0x978] ss:$48 sps:$4 sm:$0xff]  }
 0x568   :  { %7067 = vmatpush2.bf16.msra.mxu1 %v10240_v10  ;;  %7027 = vmatprep.subr.bf16.mxu0 %v10241_v6  ;;  %v10269_v6 = vld [vmem:[%s15683_s4 + $0x264] ss:$48 sps:$4 sm:$0xff]  }
 0x569   :  { %v7360_v19 = vadd.f32 %v7359_v22, %v7358_v12  ;;  %7068 = vmatprep.subr.bf16.mxu1 %v10242_v11  ;;  %v7396_v36 = vsel %vm7393_vm0, %v6121_v0, %v7354_v59  ;;  %v10268_v59 = vld [vmem:[%s15683_s4 + $0x8c0] ss:$48 sps:$4 sm:$0xff]  }
 0x56b   :  { %v7397_v29 = vsel %vm7393_vm0, %v6127_v3, %v7360_v19  ;;  %7028 = vmatpush2.bf16.msra.mxu0 %v10243_v62  ;;  %v10270_v3 = vld [vmem:[%s15683_s4 + $0x864] ss:$48 sps:$4 sm:$0xff]  }
 0x56c   :  { %v7404_v37 = vcombine.low %v7396_v36, %v7397_v29  ;;  %7069 = vmatpush2.bf16.msra.mxu1 %v10244_v34  ;;  %7029 = vmatprep.subr.bf16.mxu0 %v10245_v1  ;;  %v10271_v36 = vld [vmem:[%s15683_s4 + $0x260] ss:$48 sps:$4 sm:$0xff]   ;;  %v10273_v62 = vld [vmem:[%s15683_s4 + $0x204] ss:$48 sps:$4 sm:$0xff]  }
 0x56d   :  { %7070 = vmatprep.subr.bf16.mxu1 %v10246_v38  ;;  %v10274_v34 = vld [vmem:[%s15683_s4 + $0x804] ss:$48 sps:$4 sm:$0xff]   ;;  %v10275_v1 = vld [vmem:[%s15683_s4 + $0x200] ss:$48 sps:$4 sm:$0xff]  }
 0x56e   :  { %v7418_v14 = vrot.slane %v7404_v37, %v15111_v48  ;;  %v10276_v38 = vld [vmem:[%s15683_s4 + $0x800] ss:$48 sps:$4 sm:$0xff]  }
 0x56f   :  { %7030 = vmatpush2.bf16.msra.mxu0 %v10247_v40  ;;  %v10279_v40 = vld [vmem:[%s15683_s4 + $0x1a0] ss:$48 sps:$4 sm:$0xff]  }
 0x570   :  { %v7419_v2 = vcombine.low %v7411_v47, %v7418_v14  ;;  %7071 = vmatpush2.bf16.msra.mxu1 %v10248_v28  ;;  %7031 = vmatprep.subr.bf16.mxu0 %v10249_v45  ;;  %v10277_v47 = vld [vmem:[%s15683_s4 + $0x1a4] ss:$48 sps:$4 sm:$0xff]  }
 0x571   :  { %7072 = vmatprep.subr.bf16.mxu1 %v10250_v17  ;;  %v10278_v14 = vld [vmem:[%s15683_s4 + $0x7a4] ss:$48 sps:$4 sm:$0xff]   ;;  %v10283_v17 = vld [vmem:[%s15683_s4 + $0x140] ss:$48 sps:$4 sm:$0xff]  }
 0x572   :  { %7426 = vst [vmem:[%s15685_s6] sm:$0xff] %v7419_v2  ;;  %v10280_v2 = vld [vmem:[%s15683_s4 + $0x7a0] ss:$48 sps:$4 sm:$0xff]   ;;  %v10281_v28 = vld [vmem:[%s15683_s4 + $0x144] ss:$48 sps:$4 sm:$0xff]  }
 0x573   :  { %7032 = vmatpush2.bf16.msra.mxu0 %v10251_v25  ;;  %v10282_v45 = vld [vmem:[%s15683_s4 + $0x744] ss:$48 sps:$4 sm:$0xff]   ;;  %v10284_v25 = vld [vmem:[%s15683_s4 + $0x740] ss:$48 sps:$4 sm:$0xff]  }
 0x574   :  { %7073 = vmatpush2.bf16.msra.mxu1 %v10252_v63  ;;  %7033 = vmatprep.subr.bf16.mxu0 %v10253_v39  ;;  %v10285_v63 = vld [vmem:[%s15683_s4 + $0xe4] ss:$48 sps:$4 sm:$0xff]  }
 0x575   :  { %7074 = vmatprep.subr.bf16.mxu1 %v10254_v46  ;;  %v10286_v39 = vld [vmem:[%s15683_s4 + $0x6e4] ss:$48 sps:$4 sm:$0xff]   ;;  %v10287_v46 = vld [vmem:[%s15683_s4 + $0xe0] ss:$48 sps:$4 sm:$0xff]  }
 0x577   :  { %7034 = vmatpush2.bf16.msra.mxu0 %v10255_v7  ;;  %v10288_v7 = vld [vmem:[%s15683_s4 + $0x6e0] ss:$48 sps:$4 sm:$0xff]  }
 0x578   :  { %7075 = vmatpush2.bf16.msra.mxu1 %v10256_v56  ;;  %7035 = vmatprep.subr.bf16.mxu0 %v10257_v52  ;;  %v10289_v56 = vld [vmem:[%s15683_s4 + $0x84] ss:$48 sps:$4 sm:$0xff]  }
 0x579   :  { %7076 = vmatprep.subr.bf16.mxu1 %v10258_v15  ;;  %v10290_v52 = vld [vmem:[%s15683_s4 + $0x684] ss:$48 sps:$4 sm:$0xff]   ;;  %v10291_v15 = vld [vmem:[%s15683_s4 + $0x80] ss:$48 sps:$4 sm:$0xff]  }
 0x57b   :  { %7036 = vmatpush2.bf16.msra.mxu0 %v10259_v55  ;;  %v10292_v55 = vld [vmem:[%s15683_s4 + $0x680] ss:$48 sps:$4 sm:$0xff]  }
 0x57c   :  { %7077 = vmatpush2.bf16.msra.mxu1 %v10260_v42  ;;  %7037 = vmatprep.subr.bf16.mxu0 %v10261_v54  ;;  %v10293_v42 = vld [vmem:[%s15683_s4 + $0x24] ss:$48 sps:$4 sm:$0xff]  }
 0x57d   :  { %7078 = vmatprep.subr.bf16.mxu1 %v10262_v43  ;;  %v10294_v54 = vld [vmem:[%s15683_s4 + $0x624] ss:$48 sps:$4 sm:$0xff]   ;;  %v10295_v43 = vld [vmem:[%s15683_s4 + $0x20] ss:$48 sps:$4 sm:$0xff]  }
 0x57f   :  { %7038 = vmatpush2.bf16.msra.mxu0 %v10263_v13  ;;  %v10296_v13 = vld [vmem:[%s15683_s4 + $0x620] ss:$48 sps:$4 sm:$0xff]  }
 0x580   :  { %7079 = vmatpush2.bf16.msra.mxu1 %v10264_v33  ;;  %7089 = vmatprep.subr.bf16.mxu0 %v10265_v41  ;;  %v10297_v33 = vld [vmem:[%s15683_s4 + $0x5c4] ss:$48 sps:$4 sm:$0xff]  }
 0x581   :  { %7130 = vmatprep.subr.bf16.mxu1 %v10266_v57  ;;  %v10298_v41 = vld [vmem:[%s15683_s4 + $0xbc4] ss:$48 sps:$4 sm:$0xff]   ;;  %v10299_v57 = vld [vmem:[%s15683_s4 + $0x5c0] ss:$48 sps:$4 sm:$0xff]  }
 0x582   :  { %v6795_v27 = vpop.f32.mrf.mxu0  ;;  %7040 = vmatmul.mubr.bf16.vlgmr.msra.gmra.mxu0 %v14508_v31 }
 0x583   :  { %v6796_v12 = vadd.f32 %v6795_v27, %v12571_v21  ;;  %v6836_v9 = vpop.f32.mrf.mxu1  ;;  %7081 = vmatmul.mubr.bf16.vlgmr.msra.gmra.mxu1 %v14515_v23  ;;  %7090 = vmatpush1.bf16.msra.mxu0 %v10267_v60  ;;  %v10300_v27 = vld [vmem:[%s15683_s4 + $0xbc0] ss:$48 sps:$4 sm:$0xff]  }
 0x584   :  { %7121 = vmatprep.mubr.bf16.mxu0 %v14305_v53  ;;  %7131 = vmatpush1.bf16.msra.mxu1 %v10268_v59  ;;  %v6797_v22 = vpop.f32.mrf.mxu0  ;;  %v10303_v60 = vld [vmem:[%s15683_s4 + $0x560] ss:$48 sps:$4 sm:$0xff]  }
 0x585   :  { %v15205_v20 = vadd.f32 %v6836_v9, %v6796_v12  ;;  %7162 = vmatprep.mubr.bf16.mxu1 %v14314_v4  ;;  %v6798_v21 = vadd.f32 %v6797_v22, %v12587_v44  ;;  %v6838_v10 = vpop.f32.mrf.mxu1  ;;  %7091 = vmatprep.subr.bf16.mxu0 %v10269_v6  ;;  %v10272_v44 = vld [vmem:[%s15683_s4 + $0x860] ss:$48 sps:$4 sm:$0xff]   ;;  %v10301_v12 = vld [vmem:[%s15683_s4 + $0x564] ss:$48 sps:$4 sm:$0xff]  }
 0x586   :  { %v6799_v0 = vpop.f32.mrf.mxu0  ;;  %7132 = vmatprep.subr.bf16.mxu1 %v10270_v3  ;;  %v10302_v9 = vld [vmem:[%s15683_s4 + $0xb64] ss:$48 sps:$4 sm:$0xff]   ;;  %v10304_v59 = vld [vmem:[%s15683_s4 + $0xb60] ss:$48 sps:$4 sm:$0xff]  }
 0x587   :  { %v15215_v19 = vadd.f32 %v6838_v10, %v6798_v21  ;;  %v6840_v11 = vpop.f32.mrf.mxu1  ;;  %7092 = vmatpush1.bf16.msra.mxu0 %v10271_v36  ;;  %v10305_v22 = vld [vmem:[%s15683_s4 + $0x504] ss:$48 sps:$4 sm:$0xff]   ;;  %v10307_v10 = vld [vmem:[%s15683_s4 + $0x500] ss:$48 sps:$4 sm:$0xff]  }
 0x588   :  { %7133 = vmatpush1.bf16.msra.mxu1 %v10272_v44  ;;  %v6800_v29 = vpop.f32.mrf.mxu0  ;;  %7093 = vmatprep.subr.bf16.mxu0 %v10273_v62  ;;  %v10306_v21 = vld [vmem:[%s15683_s4 + $0xb04] ss:$48 sps:$4 sm:$0xff]   ;;  %v10308_v6 = vld [vmem:[%s15683_s4 + $0xb00] ss:$48 sps:$4 sm:$0xff]  }
 0x589   :  { %v6841_v37 = vpop.f32.mrf.mxu1  ;;  %7134 = vmatprep.subr.bf16.mxu1 %v10274_v34  ;;  %v10309_v0 = vld [vmem:[%s15683_s4 + $0x4a4] ss:$48 sps:$4 sm:$0xff]   ;;  %v10311_v11 = vld [vmem:[%s15683_s4 + $0x4a0] ss:$48 sps:$4 sm:$0xff]  }
 0x58a   :  { %v10310_v3 = vld [vmem:[%s15683_s4 + $0xaa4] ss:$48 sps:$4 sm:$0xff]   ;;  %v10312_v36 = vld [vmem:[%s15683_s4 + $0xaa0] ss:$48 sps:$4 sm:$0xff]  }
 0x58b   :  { %7094 = vmatpush1.bf16.msra.mxu0 %v10275_v1  ;;  %v10313_v44 = vld [vmem:[%s15683_s4 + $0x444] ss:$48 sps:$4 sm:$0xff]   ;;  %v10315_v62 = vld [vmem:[%s15683_s4 + $0x440] ss:$48 sps:$4 sm:$0xff]  }
 0x58c   :  { %7135 = vmatpush1.bf16.msra.mxu1 %v10276_v38  ;;  %7095 = vmatprep.subr.bf16.mxu0 %v10277_v47  ;;  %v10314_v29 = vld [vmem:[%s15683_s4 + $0xa44] ss:$48 sps:$4 sm:$0xff]   ;;  %v10316_v37 = vld [vmem:[%s15683_s4 + $0xa40] ss:$48 sps:$4 sm:$0xff]  }
 0x58d   :  { %7136 = vmatprep.subr.bf16.mxu1 %v10278_v14  ;;  %v10317_v34 = vld [vmem:[%s15683_s4 + $0x3e4] ss:$48 sps:$4 sm:$0xff]   ;;  %v10319_v38 = vld [vmem:[%s15683_s4 + $0x3e0] ss:$48 sps:$4 sm:$0xff]  }
 0x58e   :  { %v10318_v1 = vld [vmem:[%s15683_s4 + $0x9e4] ss:$48 sps:$4 sm:$0xff]   ;;  %v10320_v47 = vld [vmem:[%s15683_s4 + $0x9e0] ss:$48 sps:$4 sm:$0xff]  }
 0x58f   :  { %7096 = vmatpush1.bf16.msra.mxu0 %v10279_v40  ;;  %v10321_v14 = vld [vmem:[%s15683_s4 + $0x384] ss:$48 sps:$4 sm:$0xff]  }
 0x590   :  { %7137 = vmatpush1.bf16.msra.mxu1 %v10280_v2  ;;  %7097 = vmatprep.subr.bf16.mxu0 %v10281_v28  ;;  %v10322_v40 = vld [vmem:[%s15683_s4 + $0x984] ss:$48 sps:$4 sm:$0xff]   ;;  %v10323_v2 = vld [vmem:[%s15683_s4 + $0x380] ss:$48 sps:$4 sm:$0xff]  }
 0x591   :  { %7138 = vmatprep.subr.bf16.mxu1 %v10282_v45  ;;  %v10324_v28 = vld [vmem:[%s15683_s4 + $0x980] ss:$48 sps:$4 sm:$0xff]   ;;  %v10325_v45 = vld [vmem:[%s15683_s4 + $0x324] ss:$48 sps:$4 sm:$0xff]  }
 0x593   :  { %7098 = vmatpush1.bf16.msra.mxu0 %v10283_v17  ;;  %v10326_v17 = vld [vmem:[%s15683_s4 + $0x924] ss:$48 sps:$4 sm:$0xff]  }
 0x594   :  { %7139 = vmatpush1.bf16.msra.mxu1 %v10284_v25  ;;  %7099 = vmatprep.subr.bf16.mxu0 %v10285_v63  ;;  %v10327_v25 = vld [vmem:[%s15683_s4 + $0x320] ss:$48 sps:$4 sm:$0xff]  }
 0x595   :  { %7140 = vmatprep.subr.bf16.mxu1 %v10286_v39  ;;  %v10328_v63 = vld [vmem:[%s15683_s4 + $0x920] ss:$48 sps:$4 sm:$0xff]   ;;  %v10329_v39 = vld [vmem:[%s15683_s4 + $0x2cc] ss:$48 sps:$4 sm:$0xff]  }
 0x597   :  { %7100 = vmatpush1.bf16.msra.mxu0 %v10287_v46  ;;  %v10330_v46 = vld [vmem:[%s15683_s4 + $0x8cc] ss:$48 sps:$4 sm:$0xff]  }
 0x598   :  { %7141 = vmatpush1.bf16.msra.mxu1 %v10288_v7  ;;  %7101 = vmatprep.subr.bf16.mxu0 %v10289_v56 }
 0x599   :  { %7142 = vmatprep.subr.bf16.mxu1 %v10290_v52 }
 0x59b   :  { %7102 = vmatpush1.bf16.msra.mxu0 %v10291_v15  ;;  %v10331_v15 = vld [vmem:[%s15683_s4 + $0x2c8] ss:$48 sps:$4 sm:$0xff]  }
 0x59c   :  { %7143 = vmatpush1.bf16.msra.mxu1 %v10292_v55  ;;  %7103 = vmatprep.subr.bf16.mxu0 %v10293_v42  ;;  %v10332_v55 = vld [vmem:[%s15683_s4 + $0x8c8] ss:$48 sps:$4 sm:$0xff]  }
 0x59d   :  { %7144 = vmatprep.subr.bf16.mxu1 %v10294_v54 }
 0x59f   :  { %7104 = vmatpush1.bf16.msra.mxu0 %v10295_v43 }
 0x5a0   :  { %7145 = vmatpush1.bf16.msra.mxu1 %v10296_v13  ;;  %7105 = vmatprep.subr.bf16.mxu0 %v10297_v33  ;;  %v10333_v13 = vld [vmem:[%s15683_s4 + $0x26c] ss:$48 sps:$4 sm:$0xff]  }
 0x5a1   :  { %7146 = vmatprep.subr.bf16.mxu1 %v10298_v41 }
 0x5a3   :  { %7106 = vmatpush2.bf16.msra.mxu0 %v10299_v57 }
 0x5a4   :  { %7147 = vmatpush2.bf16.msra.mxu1 %v10300_v27  ;;  %7107 = vmatprep.subr.bf16.mxu0 %v10301_v12  ;;  %v10337_v12 = vld [vmem:[%s15683_s4 + $0x20c] ss:$48 sps:$4 sm:$0xff]  }
 0x5a5   :  { %7148 = vmatprep.subr.bf16.mxu1 %v10302_v9 }
 0x5a7   :  { %7108 = vmatpush2.bf16.msra.mxu0 %v10303_v60  ;;  %v10338_v60 = vld [vmem:[%s15683_s4 + $0x80c] ss:$48 sps:$4 sm:$0xff]  }
 0x5a8   :  { %7149 = vmatpush2.bf16.msra.mxu1 %v10304_v59  ;;  %7109 = vmatprep.subr.bf16.mxu0 %v10305_v22  ;;  %v10339_v59 = vld [vmem:[%s15683_s4 + $0x208] ss:$48 sps:$4 sm:$0xff]  }
 0x5a9   :  { %7150 = vmatprep.subr.bf16.mxu1 %v10306_v21  ;;  %v10340_v22 = vld [vmem:[%s15683_s4 + $0x808] ss:$48 sps:$4 sm:$0xff]   ;;  %v10341_v21 = vld [vmem:[%s15683_s4 + $0x1ac] ss:$48 sps:$4 sm:$0xff]  }
 0x5ab   :  { %7110 = vmatpush2.bf16.msra.mxu0 %v10307_v10  ;;  %v10342_v10 = vld [vmem:[%s15683_s4 + $0x7ac] ss:$48 sps:$4 sm:$0xff]  }
 0x5ac   :  { %7151 = vmatpush2.bf16.msra.mxu1 %v10308_v6  ;;  %7111 = vmatprep.subr.bf16.mxu0 %v10309_v0  ;;  %v10343_v6 = vld [vmem:[%s15683_s4 + $0x1a8] ss:$48 sps:$4 sm:$0xff]  }
 0x5ad   :  { %7152 = vmatprep.subr.bf16.mxu1 %v10310_v3  ;;  %v10344_v0 = vld [vmem:[%s15683_s4 + $0x7a8] ss:$48 sps:$4 sm:$0xff]   ;;  %v10345_v3 = vld [vmem:[%s15683_s4 + $0x14c] ss:$48 sps:$4 sm:$0xff]  }
 0x5af   :  { %7112 = vmatpush2.bf16.msra.mxu0 %v10311_v11  ;;  %v10346_v11 = vld [vmem:[%s15683_s4 + $0x74c] ss:$48 sps:$4 sm:$0xff]  }
 0x5b0   :  { %7153 = vmatpush2.bf16.msra.mxu1 %v10312_v36  ;;  %7113 = vmatprep.subr.bf16.mxu0 %v10313_v44  ;;  %v10347_v36 = vld [vmem:[%s15683_s4 + $0x148] ss:$48 sps:$4 sm:$0xff]  }
 0x5b1   :  { %7154 = vmatprep.subr.bf16.mxu1 %v10314_v29  ;;  %v10348_v44 = vld [vmem:[%s15683_s4 + $0x748] ss:$48 sps:$4 sm:$0xff]   ;;  %v10349_v29 = vld [vmem:[%s15683_s4 + $0xec] ss:$48 sps:$4 sm:$0xff]  }
 0x5b3   :  { %7114 = vmatpush2.bf16.msra.mxu0 %v10315_v62  ;;  %v10350_v62 = vld [vmem:[%s15683_s4 + $0x6ec] ss:$48 sps:$4 sm:$0xff]  }
 0x5b4   :  { %7155 = vmatpush2.bf16.msra.mxu1 %v10316_v37  ;;  %7115 = vmatprep.subr.bf16.mxu0 %v10317_v34  ;;  %v10351_v37 = vld [vmem:[%s15683_s4 + $0xe8] ss:$48 sps:$4 sm:$0xff]  }
 0x5b5   :  { %7156 = vmatprep.subr.bf16.mxu1 %v10318_v1  ;;  %v10352_v34 = vld [vmem:[%s15683_s4 + $0x6e8] ss:$48 sps:$4 sm:$0xff]   ;;  %v10353_v1 = vld [vmem:[%s15683_s4 + $0x8c] ss:$48 sps:$4 sm:$0xff]  }
 0x5b7   :  { %7116 = vmatpush2.bf16.msra.mxu0 %v10319_v38  ;;  %v10354_v38 = vld [vmem:[%s15683_s4 + $0x68c] ss:$48 sps:$4 sm:$0xff]  }
 0x5b8   :  { %7157 = vmatpush2.bf16.msra.mxu1 %v10320_v47  ;;  %7117 = vmatprep.subr.bf16.mxu0 %v10321_v14  ;;  %v10355_v47 = vld [vmem:[%s15683_s4 + $0x88] ss:$48 sps:$4 sm:$0xff]  }
 0x5b9   :  { %7158 = vmatprep.subr.bf16.mxu1 %v10322_v40  ;;  %v10356_v14 = vld [vmem:[%s15683_s4 + $0x688] ss:$48 sps:$4 sm:$0xff]   ;;  %v10357_v40 = vld [vmem:[%s15683_s4 + $0x2c] ss:$48 sps:$4 sm:$0xff]  }
 0x5bb   :  { %7118 = vmatpush2.bf16.msra.mxu0 %v10323_v2  ;;  %v10358_v2 = vld [vmem:[%s15683_s4 + $0x62c] ss:$48 sps:$4 sm:$0xff]  }
 0x5bc   :  { %7159 = vmatpush2.bf16.msra.mxu1 %v10324_v28  ;;  %7119 = vmatprep.subr.bf16.mxu0 %v10325_v45  ;;  %v10359_v28 = vld [vmem:[%s15683_s4 + $0x28] ss:$48 sps:$4 sm:$0xff]  }
 0x5bd   :  { %7160 = vmatprep.subr.bf16.mxu1 %v10326_v17  ;;  %v10360_v45 = vld [vmem:[%s15683_s4 + $0x628] ss:$48 sps:$4 sm:$0xff]   ;;  %v10361_v17 = vld [vmem:[%s15683_s4 + $0x5cc] ss:$48 sps:$4 sm:$0xff]  }
 0x5bf   :  { %7120 = vmatpush2.bf16.msra.mxu0 %v10327_v25  ;;  %v10362_v25 = vld [vmem:[%s15683_s4 + $0xbcc] ss:$48 sps:$4 sm:$0xff]  }
 0x5c0   :  { %7161 = vmatpush2.bf16.msra.mxu1 %v10328_v63  ;;  %7171 = vmatprep.subr.bf16.mxu0 %v10329_v39  ;;  %v10363_v63 = vld [vmem:[%s15683_s4 + $0x5c8] ss:$48 sps:$4 sm:$0xff]  }
 0x5c1   :  { %7212 = vmatprep.subr.bf16.mxu1 %v10330_v46  ;;  %v10364_v39 = vld [vmem:[%s15683_s4 + $0xbc8] ss:$48 sps:$4 sm:$0xff]   ;;  %v10365_v46 = vld [vmem:[%s15683_s4 + $0x56c] ss:$48 sps:$4 sm:$0xff]  }
 0x5c2   :  { %v6877_v7 = vpop.f32.mrf.mxu0  ;;  %7122 = vmatmul.mubr.bf16.vlgmr.msra.gmra.mxu0 %v14508_v31 }
 0x5c3   :  { %v6878_v56 = vadd.f32 %v6877_v7, %v12781_v50  ;;  %v6918_v52 = vpop.f32.mrf.mxu1  ;;  %7163 = vmatmul.mubr.bf16.vlgmr.msra.gmra.mxu1 %v14515_v23  ;;  %7172 = vmatpush1.bf16.msra.mxu0 %v10331_v15  ;;  %v10366_v7 = vld [vmem:[%s15683_s4 + $0xb6c] ss:$48 sps:$4 sm:$0xff]  }
 0x5c4   :  { %7203 = vmatprep.mubr.bf16.mxu0 %v14305_v53  ;;  %7213 = vmatpush1.bf16.msra.mxu1 %v10332_v55  ;;  %v6879_v42 = vpop.f32.mrf.mxu0  ;;  %v10334_v53 = vld [vmem:[%s15683_s4 + $0x86c] ss:$48 sps:$4 sm:$0xff]  }
 0x5c5   :  { %v15407_v54 = vadd.f32 %v6918_v52, %v6878_v56  ;;  %7244 = vmatprep.mubr.bf16.mxu1 %v14314_v4  ;;  %v6880_v50 = vadd.f32 %v6879_v42, %v12797_v51  ;;  %v6920_v43 = vpop.f32.mrf.mxu1  ;;  %7173 = vmatprep.subr.bf16.mxu0 %v10333_v13  ;;  %v10335_v4 = vld [vmem:[%s15683_s4 + $0x268] ss:$48 sps:$4 sm:$0xff]   ;;  %v10369_v15 = vld [vmem:[%s15683_s4 + $0x50c] ss:$48 sps:$4 sm:$0xff]  }
 0x5c6   :  { %v6881_v33 = vpop.f32.mrf.mxu0  ;;  %7214 = vmatprep.subr.bf16.mxu1 %v10334_v53  ;;  %v10336_v51 = vld [vmem:[%s15683_s4 + $0x868] ss:$48 sps:$4 sm:$0xff]   ;;  %v10370_v55 = vld [vmem:[%s15683_s4 + $0xb0c] ss:$48 sps:$4 sm:$0xff]  }
 0x5c7   :  { %v15417_v41 = vadd.f32 %v6920_v43, %v6880_v50  ;;  %v6922_v57 = vpop.f32.mrf.mxu1  ;;  %7174 = vmatpush1.bf16.msra.mxu0 %v10335_v4  ;;  %v10367_v56 = vld [vmem:[%s15683_s4 + $0x568] ss:$48 sps:$4 sm:$0xff]   ;;  %v10373_v43 = vld [vmem:[%s15683_s4 + $0x4ac] ss:$48 sps:$4 sm:$0xff]  }
 0x5c8   :  { %7215 = vmatpush1.bf16.msra.mxu1 %v10336_v51  ;;  %v6882_v27 = vpop.f32.mrf.mxu0  ;;  %7175 = vmatprep.subr.bf16.mxu0 %v10337_v12  ;;  %v10368_v52 = vld [vmem:[%s15683_s4 + $0xb68] ss:$48 sps:$4 sm:$0xff]   ;;  %v10374_v13 = vld [vmem:[%s15683_s4 + $0xaac] ss:$48 sps:$4 sm:$0xff]  }
 0x5c9   :  { %v6923_v9 = vpop.f32.mrf.mxu1  ;;  %7216 = vmatprep.subr.bf16.mxu1 %v10338_v60  ;;  %v10371_v42 = vld [vmem:[%s15683_s4 + $0x508] ss:$48 sps:$4 sm:$0xff]   ;;  %v10377_v57 = vld [vmem:[%s15683_s4 + $0x44c] ss:$48 sps:$4 sm:$0xff]  }
 0x5ca   :  { %v10372_v50 = vld [vmem:[%s15683_s4 + $0xb08] ss:$48 sps:$4 sm:$0xff]   ;;  %v10378_v4 = vld [vmem:[%s15683_s4 + $0xa4c] ss:$48 sps:$4 sm:$0xff]  }
 0x5cb   :  { %7176 = vmatpush1.bf16.msra.mxu0 %v10339_v59  ;;  %v10375_v33 = vld [vmem:[%s15683_s4 + $0x4a8] ss:$48 sps:$4 sm:$0xff]   ;;  %v10381_v12 = vld [vmem:[%s15683_s4 + $0x3ec] ss:$48 sps:$4 sm:$0xff]  }
 0x5cc   :  { %7217 = vmatpush1.bf16.msra.mxu1 %v10340_v22  ;;  %7177 = vmatprep.subr.bf16.mxu0 %v10341_v21  ;;  %v10376_v53 = vld [vmem:[%s15683_s4 + $0xaa8] ss:$48 sps:$4 sm:$0xff]   ;;  %v10382_v9 = vld [vmem:[%s15683_s4 + $0x9ec] ss:$48 sps:$4 sm:$0xff]  }
 0x5cd   :  { %7218 = vmatprep.subr.bf16.mxu1 %v10342_v10  ;;  %v10379_v51 = vld [vmem:[%s15683_s4 + $0x448] ss:$48 sps:$4 sm:$0xff]   ;;  %v10385_v22 = vld [vmem:[%s15683_s4 + $0x38c] ss:$48 sps:$4 sm:$0xff]  }
 0x5ce   :  { %v10380_v27 = vld [vmem:[%s15683_s4 + $0xa48] ss:$48 sps:$4 sm:$0xff]   ;;  %v10386_v21 = vld [vmem:[%s15683_s4 + $0x98c] ss:$48 sps:$4 sm:$0xff]  }
 0x5cf   :  { %7178 = vmatpush1.bf16.msra.mxu0 %v10343_v6  ;;  %v10383_v60 = vld [vmem:[%s15683_s4 + $0x3e8] ss:$48 sps:$4 sm:$0xff]  }
 0x5d0   :  { %7219 = vmatpush1.bf16.msra.mxu1 %v10344_v0  ;;  %7179 = vmatprep.subr.bf16.mxu0 %v10345_v3  ;;  %v10384_v59 = vld [vmem:[%s15683_s4 + $0x9e8] ss:$48 sps:$4 sm:$0xff]   ;;  %v10389_v0 = vld [vmem:[%s15683_s4 + $0x32c] ss:$48 sps:$4 sm:$0xff]  }
 0x5d1   :  { %7220 = vmatprep.subr.bf16.mxu1 %v10346_v11  ;;  %v10387_v10 = vld [vmem:[%s15683_s4 + $0x388] ss:$48 sps:$4 sm:$0xff]   ;;  %v10390_v3 = vld [vmem:[%s15683_s4 + $0x92c] ss:$48 sps:$4 sm:$0xff]  }
 0x5d2   :  { %v10388_v6 = vld [vmem:[%s15683_s4 + $0x988] ss:$48 sps:$4 sm:$0xff]  }
 0x5d3   :  { %7180 = vmatpush1.bf16.msra.mxu0 %v10347_v36  ;;  %v10391_v11 = vld [vmem:[%s15683_s4 + $0x328] ss:$48 sps:$4 sm:$0xff]  }
 0x5d4   :  { %7221 = vmatpush1.bf16.msra.mxu1 %v10348_v44  ;;  %7181 = vmatprep.subr.bf16.mxu0 %v10349_v29  ;;  %v10392_v36 = vld [vmem:[%s15683_s4 + $0x928] ss:$48 sps:$4 sm:$0xff]  }
 0x5d5   :  { %7222 = vmatprep.subr.bf16.mxu1 %v10350_v62 }
 0x5d7   :  { %7182 = vmatpush1.bf16.msra.mxu0 %v10351_v37 }
 0x5d8   :  { %7223 = vmatpush1.bf16.msra.mxu1 %v10352_v34  ;;  %7183 = vmatprep.subr.bf16.mxu0 %v10353_v1 }
 0x5d9   :  { %7224 = vmatprep.subr.bf16.mxu1 %v10354_v38 }
 0x5db   :  { %7184 = vmatpush1.bf16.msra.mxu0 %v10355_v47 }
 0x5dc   :  { %7225 = vmatpush1.bf16.msra.mxu1 %v10356_v14  ;;  %7185 = vmatprep.subr.bf16.mxu0 %v10357_v40 }
 0x5dd   :  { %7226 = vmatprep.subr.bf16.mxu1 %v10358_v2 }
 0x5df   :  { %7186 = vmatpush1.bf16.msra.mxu0 %v10359_v28 }
 0x5e0   :  { %7227 = vmatpush1.bf16.msra.mxu1 %v10360_v45  ;;  %7187 = vmatprep.subr.bf16.mxu0 %v10361_v17 }
 0x5e1   :  { %7228 = vmatprep.subr.bf16.mxu1 %v10362_v25 }
 0x5e3   :  { %7188 = vmatpush2.bf16.msra.mxu0 %v10363_v63 }
 0x5e4   :  { %7229 = vmatpush2.bf16.msra.mxu1 %v10364_v39  ;;  %7189 = vmatprep.subr.bf16.mxu0 %v10365_v46 }
 0x5e5   :  { %7230 = vmatprep.subr.bf16.mxu1 %v10366_v7 }
 0x5e7   :  { %7190 = vmatpush2.bf16.msra.mxu0 %v10367_v56 }
 0x5e8   :  { %7231 = vmatpush2.bf16.msra.mxu1 %v10368_v52  ;;  %7191 = vmatprep.subr.bf16.mxu0 %v10369_v15  ;;  %v7486_v52 = vld [vmem:[%s15680_s1 + $0x60] sm:$0xff] }
 0x5e9   :  { %7232 = vmatprep.subr.bf16.mxu1 %v10370_v55  ;;  %v7253_v15 = vadd.f32 %v7486_v52, %v15205_v20 }
 0x5eb   :  { %7192 = vmatpush2.bf16.msra.mxu0 %v10371_v42 }
 0x5ec   :  { %7233 = vmatpush2.bf16.msra.mxu1 %v10372_v50  ;;  %7193 = vmatprep.subr.bf16.mxu0 %v10373_v43  ;;  %v7490_v50 = vld [vmem:[%s15680_s1 + $0x80] sm:$0xff]  ;;  %v7491_v43 = vld [vmem:[%s15680_s1 + $0x88] sm:$0xff] }
 0x5ed   :  { %7234 = vmatprep.subr.bf16.mxu1 %v10374_v13 }
 0x5ef   :  { %7194 = vmatpush2.bf16.msra.mxu0 %v10375_v33 }
 0x5f0   :  { %7235 = vmatpush2.bf16.msra.mxu1 %v10376_v53  ;;  %7195 = vmatprep.subr.bf16.mxu0 %v10377_v57 }
 0x5f1   :  { %7236 = vmatprep.subr.bf16.mxu1 %v10378_v4 }
 0x5f3   :  { %7196 = vmatpush2.bf16.msra.mxu0 %v10379_v51 }
 0x5f4   :  { %7237 = vmatpush2.bf16.msra.mxu1 %v10380_v27  ;;  %7197 = vmatprep.subr.bf16.mxu0 %v10381_v12 }
 0x5f5   :  { %7238 = vmatprep.subr.bf16.mxu1 %v10382_v9 }
 0x5f7   :  { %7198 = vmatpush2.bf16.msra.mxu0 %v10383_v60 }
 0x5f8   :  { %7239 = vmatpush2.bf16.msra.mxu1 %v10384_v59  ;;  %7199 = vmatprep.subr.bf16.mxu0 %v10385_v22 }
 0x5f9   :  { %7240 = vmatprep.subr.bf16.mxu1 %v10386_v21 }
 0x5fb   :  { %7200 = vmatpush2.bf16.msra.mxu0 %v10387_v10 }
 0x5fc   :  { %7241 = vmatpush2.bf16.msra.mxu1 %v10388_v6  ;;  %7201 = vmatprep.subr.bf16.mxu0 %v10389_v0 }
 0x5fd   :  { %7242 = vmatprep.subr.bf16.mxu1 %v10390_v3 }
 0x5ff   :  { %7202 = vmatpush2.bf16.msra.mxu0 %v10391_v11 }
 0x600   :  { %7243 = vmatpush2.bf16.msra.mxu1 %v10392_v36  ;;  %v7494_v36 = vld [vmem:[%s15680_s1 + $0xa0] sm:$0xff] }
 0x602   :  { %v6959_v44 = vpop.f32.mrf.mxu0  ;;  %7204 = vmatmul.mubr.bf16.vlgmr.msra.gmra.mxu0 %v14508_v31 }
 0x603   :  { %v6960_v29 = vadd.f32 %v6959_v44, %v12986_v24  ;;  %v7000_v62 = vpop.f32.mrf.mxu1  ;;  %7245 = vmatmul.mubr.bf16.vlgmr.msra.gmra.mxu1 %v14515_v23 }
 0x604   :  { %v6961_v37 = vpop.f32.mrf.mxu0 }
 0x605   :  { %v7001_v34 = vadd.f32 %v7000_v62, %v6960_v29  ;;  %v6962_v1 = vadd.f32 %v6961_v37, %v13001_v30  ;;  %v7002_v38 = vpop.f32.mrf.mxu1 }
 0x606   :  { %v6963_v47 = vpop.f32.mrf.mxu0 }
 0x607   :  { %v7003_v14 = vadd.f32 %v7002_v38, %v6962_v1  ;;  %v7004_v40 = vpop.f32.mrf.mxu1  ;;  %v7281_v13 = vadd.f32 %v7490_v50, %v7001_v34 }
 0x608   :  { %v6964_v2 = vpop.f32.mrf.mxu0 }
 0x609   :  { %v7005_v28 = vpop.f32.mrf.mxu1  ;;  %v7282_v33 = vadd.f32 %v7491_v43, %v7003_v14  ;;  %v8306_v53 = vmul.f32 -1.442695, %v7281_v13  ;;  %v6128_v2 = vrot.slane %v13545_v61, 4 }
 0x60a   :  { %v6134_v28 = vrot.slane %v13560_v35, 4 }
 0x60b   :  { %v8307_v57 = vmul.f32 -1.442695, %v7282_v33 }
 0x642   :  { %v7041_v45 = vpop.f32.mrf.mxu0 }
 0x643   :  { %v7042_v17 = vadd.f32 %v7041_v45, %v13203_v16  ;;  %v7082_v25 = vpop.f32.mrf.mxu1  ;;  %v7487_v16 = vld [vmem:[%s15680_s1 + $0x68] sm:$0xff] }
 0x644   :  { %v7043_v31 = vpop.f32.mrf.mxu0  ;;  %v7254_v55 = vadd.f32 %v7487_v16, %v15215_v19 }
 0x645   :  { %v15598_v63 = vadd.f32 %v7082_v25, %v7042_v17  ;;  %v7044_v24 = vadd.f32 %v7043_v31, %v13225_v26  ;;  %v7084_v23 = vpop.f32.mrf.mxu1  ;;  %v8302_v26 = vmul.f32 -1.442695, %v7253_v15  ;;  %v6129_v31 = vadd.f32 %v6128_v2, %v13545_v61 }
 0x646   :  { %v7045_v39 = vpop.f32.mrf.mxu0  ;;  %v8303_v42 = vmul.f32 -1.442695, %v7254_v55 }
 0x647   :  { %v15601_v46 = vadd.f32 %v7084_v23, %v7044_v24  ;;  %v7086_v30 = vpop.f32.mrf.mxu1  ;;  %9584 = vpow2.f32 %v8302_v26  ;;  %v6135_v24 = vadd.f32 %v6134_v28, %v13560_v35  ;;  %v6130_v55 = vrot.slane %v6129_v31, 2  ;;  %v7489_v26 = vld [vmem:[%s15680_s1 + $0x78] sm:$0xff] }
 0x648   :  { %v7046_v7 = vpop.f32.mrf.mxu0  ;;  %9586 = vpow2.f32 %v8303_v42  ;;  %v7256_v13 = vadd.f32 %v7489_v26, %v15417_v41  ;;  %v7492_v41 = vld [vmem:[%s15680_s1 + $0x90] sm:$0xff] }
 0x649   :  { %v7087_v56 = vpop.f32.mrf.mxu1  ;;  %9588 = vpow2.f32 %v8306_v53  ;;  %v6136_v42 = vrot.slane %v6135_v24, 2 }
 0x64a   :  { %9590 = vpow2.f32 %v8307_v57  ;;  %v7488_v56 = vld [vmem:[%s15680_s1 + $0x70] sm:$0xff]  ;;  %v6131_v57 = vadd.f32 %v6130_v55, %v6129_v31 }
 0x64b   :  { %v7255_v50 = vadd.f32 %v7488_v56, %v15407_v54 }
 0x654   :  { %v9585_v4 = vpop.eup %9584 }
 0x655   :  { %v9587_v20 = vpop.eup %9586  ;;  %v7269_v19 = vadd.f32 1.0, %v9585_v4  ;;  %v6137_v4 = vadd.f32 %v6136_v42, %v6135_v24 }
 0x656   :  { %v7270_v51 = vadd.f32 1.0, %v9587_v20  ;;  %v9589_v27 = vpop.eup %9588  ;;  %v8304_v20 = vmul.f32 -1.442695, %v7255_v50  ;;  %v6140_v50 = vrot.slane %v13774_v5, 4 }
 0x657   :  { %9592 = vrcp.f32 %v7269_v19  ;;  %v9591_v12 = vpop.eup %9590  ;;  %v7297_v60 = vadd.f32 1.0, %v9589_v27 }
 0x658   :  { %9594 = vrcp.f32 %v7270_v51  ;;  %v7298_v10 = vadd.f32 1.0, %v9591_v12  ;;  %v8305_v51 = vmul.f32 -1.442695, %v7256_v13 }
 0x659   :  { %9596 = vrcp.f32 %v7297_v60  ;;  %v6138_v60 = vrot.slane %v6137_v4, 1 }
 0x65a   :  { %9598 = vrcp.f32 %v7298_v10 }
 0x664   :  { %v9593_v11 = vpop.eup %9592 }
 0x665   :  { %v9595_v34 = vpop.eup %9594 }
 0x666   :  { %v9597_v40 = vpop.eup %9596 }
 0x667   :  { %v9599_v45 = vpop.eup %9598  ;;  %v7321_v17 = vsub.f32 1.0, %v9597_v40  ;;  %v7329_v23 = vmul.f32 %v9597_v40, %v13545_v61 }
 0x668   :  { %v7322_v30 = vsub.f32 1.0, %v9599_v45  ;;  %v7330_v52 = vmul.f32 %v9599_v45, %v13560_v35 }
 0x682   :  { %v7123_v9 = vpop.f32.mrf.mxu0 }
 0x683   :  { %v7124_v59 = vadd.f32 %v7123_v9, %v13443_v58  ;;  %v7164_v22 = vpop.f32.mrf.mxu1  ;;  %v7495_v58 = vld [vmem:[%s15680_s1 + $0xa8] sm:$0xff]  ;;  %v6132_v9 = vrot.slane %v6131_v57, 1 }
 0x684   :  { %v7125_v21 = vpop.f32.mrf.mxu0 }
 0x685   :  { %v7165_v6 = vadd.f32 %v7164_v22, %v7124_v59  ;;  %v7126_v0 = vadd.f32 %v7125_v21, %v13456_v8  ;;  %v7166_v3 = vpop.f32.mrf.mxu1  ;;  %v6133_v10 = vadd.f32 %v6132_v9, %v6131_v57 }
 0x686   :  { %v7127_v44 = vpop.f32.mrf.mxu0 }
 0x687   :  { %v7309_v29 = vmul.f32 %v9593_v11, %v7165_v6  ;;  %v7167_v62 = vadd.f32 %v7166_v3, %v7126_v0  ;;  %v7168_v37 = vpop.f32.mrf.mxu1  ;;  %v6139_v6 = vadd.f32 %v6138_v60, %v6137_v4  ;;  %v7493_v3 = vld [vmem:[%s15680_s1 + $0x98] sm:$0xff]  ;;  %v7283_v11 = vadd.f32 %v7492_v41, %v15598_v63 }
 0x688   :  { %v7128_v1 = vpop.f32.mrf.mxu0 }
 0x689   :  { %v7313_v38 = vadd.f32 %v7494_v36, %v7309_v29  ;;  %v7310_v8 = vmul.f32 %v9595_v34, %v7167_v62  ;;  %v7169_v47 = vpop.f32.mrf.mxu1  ;;  %v7284_v62 = vadd.f32 %v7493_v3, %v15601_v46  ;;  %v8308_v37 = vmul.f32 -1.442695, %v7283_v11 }
 0x68b   :  { %9600 = vtanh.f32 %v7313_v38  ;;  %v7314_v14 = vadd.f32 %v7495_v58, %v7310_v8  ;;  %v8309_v34 = vmul.f32 -1.442695, %v7284_v62 }
 0x68d   :  { %9602 = vtanh.f32 %v7314_v14 }
 0x68e   :  { %9604 = vpow2.f32 %v8304_v20 }
 0x68f   :  { %9606 = vpow2.f32 %v8305_v51 }
 0x690   :  { %9608 = vpow2.f32 %v8308_v37 }
 0x691   :  { %9610 = vpow2.f32 %v8309_v34 }
 0x698   :  { %v9601_v25 = vpop.eup %9600 }
 0x699   :  { %v7325_v39 = vmul.f32 %v9601_v25, %v7321_v17 }
 0x69a   :  { %v9603_v7 = vpop.eup %9602 }
 0x69b   :  { %v7333_v16 = vadd.f32 %v7329_v23, %v7325_v39  ;;  %v7326_v15 = vmul.f32 %v9603_v7, %v7322_v30  ;;  %v9605_v58 = vpop.eup %9604  ;;  %v7496_v23 = vld [vmem:[%s15680_s1 + $0xb0] sm:$0xff] }
 0x69c   :  { %v9607_v1 = vpop.eup %9606  ;;  %v7271_v38 = vadd.f32 1.0, %v9605_v58 }
 0x69d   :  { %v7361_v61 = vrot.slane %v7333_v16, 4  ;;  %v7334_v43 = vadd.f32 %v7330_v52, %v7326_v15  ;;  %v7272_v8 = vadd.f32 1.0, %v9607_v1  ;;  %v9609_v63 = vpop.eup %9608 }
 0x69e   :  { %9612 = vrcp.f32 %v7271_v38  ;;  %v9611_v47 = vpop.eup %9610  ;;  %v7299_v40 = vadd.f32 1.0, %v9609_v63 }
 0x69f   :  { %v7362_v33 = vadd.f32 %v7361_v61, %v7333_v16  ;;  %v7367_v53 = vrot.slane %v7334_v43, 4  ;;  %9614 = vrcp.f32 %v7272_v8  ;;  %v7300_v17 = vadd.f32 1.0, %v9611_v47 }
 0x6a0   :  { %9616 = vrcp.f32 %v7299_v40  ;;  %v6146_v61 = vrot.slane %v13785_v49, 4 }
 0x6a1   :  { %v7363_v35 = vrot.slane %v7362_v33, 2  ;;  %v7368_v19 = vadd.f32 %v7367_v53, %v7334_v43  ;;  %9618 = vrcp.f32 %v7300_v17  ;;  %v6141_v53 = vadd.f32 %v6140_v50, %v13774_v5 }
 0x6a2   :  { %v6147_v57 = vadd.f32 %v6146_v61, %v13785_v49 }
 0x6a3   :  { %v7364_v27 = vadd.f32 %v7363_v35, %v7362_v33  ;;  %v7369_v12 = vrot.slane %v7368_v19, 2  ;;  %v6142_v9 = vrot.slane %v6141_v53, 2 }
 0x6a4   :  { %v6148_v60 = vrot.slane %v6147_v57, 2 }
 0x6a5   :  { %v7365_v59 = vrot.slane %v7364_v27, 1  ;;  %v7370_v22 = vadd.f32 %v7369_v12, %v7368_v19  ;;  %v6143_v41 = vadd.f32 %v6142_v9, %v6141_v53 }
 0x6a7   :  { %v7366_v54 = vadd.f32 %v7365_v59, %v7364_v27  ;;  %v7371_v21 = vrot.slane %v7370_v22, 1 }
 0x6a9   :  { %v7372_v0 = vadd.f32 %v7371_v21, %v7370_v22  ;;  %v15647_v36 = vsel %vm7393_vm0, %v7366_v54, %v6133_v10  ;;  %v6149_v10 = vadd.f32 %v6148_v60, %v6147_v57 }
 0x6ab   :  { %v15650_v44 = vsel %vm7393_vm0, %v7372_v0, %v6139_v6  ;;  %v9613_v24 = vpop.eup %9612  ;;  %v6150_v62 = vrot.slane %v6149_v10, 1 }
 0x6ac   :  { %v7438_v29 = vcombine.low %v15647_v36, %v15650_v44  ;;  %v9615_v52 = vpop.eup %9614 }
 0x6ad   :  { %v9617_v42 = vpop.eup %9616  ;;  %v6151_v38 = vadd.f32 %v6150_v62, %v6149_v10 }
 0x6ae   :  { %v9619_v43 = vpop.eup %9618  ;;  %v7323_v13 = vsub.f32 1.0, %v9617_v42  ;;  %v7331_v4 = vmul.f32 %v9617_v42, %v13774_v5  ;;  %v6144_v5 = vrot.slane %v6143_v41, 1  ;;  %v7446_v40 = vrot.slane %v7438_v29, %v15111_v48 }
 0x6af   :  { %v7324_v35 = vsub.f32 1.0, %v9619_v43  ;;  %v7332_v51 = vmul.f32 %v9619_v43, %v13785_v49 }
 0x6b0   :  { %v6145_v1 = vadd.f32 %v6144_v5, %v6143_v41 }
 0x6c2   :  { %v7205_v14 = vpop.f32.mrf.mxu0 }
 0x6c3   :  { %v7206_v2 = vadd.f32 %v7205_v14, %v13675_v18  ;;  %v7246_v28 = vpop.f32.mrf.mxu1  ;;  %v7497_v18 = vld [vmem:[%s15680_s1 + $0xb8] sm:$0xff] }
 0x6c4   :  { %v7207_v45 = vpop.f32.mrf.mxu0 }
 0x6c5   :  { %v7247_v46 = vadd.f32 %v7246_v28, %v7206_v2  ;;  %v7208_v25 = vadd.f32 %v7207_v45, %v13688_v32  ;;  %v7248_v31 = vpop.f32.mrf.mxu1 }
 0x6c6   :  { %v7209_v39 = vpop.f32.mrf.mxu0 }
 0x6c7   :  { %v7311_v30 = vmul.f32 %v9613_v24, %v7247_v46  ;;  %v7249_v7 = vadd.f32 %v7248_v31, %v7208_v25  ;;  %v7250_v56 = vpop.f32.mrf.mxu1 }
 0x6c8   :  { %v7210_v16 = vpop.f32.mrf.mxu0 }
 0x6c9   :  { %v7315_v15 = vadd.f32 %v7496_v23, %v7311_v30  ;;  %v7312_v32 = vmul.f32 %v9615_v52, %v7249_v7  ;;  %v7251_v55 = vpop.f32.mrf.mxu1 }
 0x6cb   :  { %9620 = vtanh.f32 %v7315_v15  ;;  %v7316_v26 = vadd.f32 %v7497_v18, %v7312_v32 }
 0x6cd   :  { %9622 = vtanh.f32 %v7316_v26 }
 0x6d8   :  { %v9621_v33 = vpop.eup %9620 }
 0x6d9   :  { %v7327_v20 = vmul.f32 %v9621_v33, %v7323_v13 }
 0x6da   :  { %v9623_v19 = vpop.eup %9622 }
 0x6db   :  { %v7335_v27 = vadd.f32 %v7331_v4, %v7327_v20  ;;  %v7328_v12 = vmul.f32 %v9623_v19, %v7324_v35 }
 0x6dd   :  { %v7373_v59 = vrot.slane %v7335_v27, 4  ;;  %v7336_v22 = vadd.f32 %v7332_v51, %v7328_v12 }
 0x6df   :  { %v7374_v54 = vadd.f32 %v7373_v59, %v7335_v27  ;;  %v7379_v21 = vrot.slane %v7336_v22, 4 }
 0x6e1   :  { %v7375_v6 = vrot.slane %v7374_v54, 2  ;;  %v7380_v0 = vadd.f32 %v7379_v21, %v7336_v22 }
 0x6e3   :  { %v7376_v3 = vadd.f32 %v7375_v6, %v7374_v54  ;;  %v7381_v11 = vrot.slane %v7380_v0, 2 }
 0x6e5   :  { %v7377_v37 = vrot.slane %v7376_v3, 1  ;;  %v7382_v34 = vadd.f32 %v7381_v11, %v7380_v0 }
 0x6e7   :  { %v7378_v58 = vadd.f32 %v7377_v37, %v7376_v3  ;;  %v7383_v49 = vrot.slane %v7382_v34, 1 }
 0x6e9   :  { %v7384_v8 = vadd.f32 %v7383_v49, %v7382_v34  ;;  %v7429_v63 = vsel %vm7393_vm0, %v7378_v58, %v6145_v1 }
 0x6eb   :  { %v7430_v47 = vsel %vm7393_vm0, %v7384_v8, %v6151_v38 }
 0x6ec   :  { %v7439_v14 = vcombine.low %v7429_v63, %v7430_v47 }
 0x6ee   :  { %v7453_v2 = vrot.slane %v7439_v14, %v15111_v48 }
 0x6f0   :  { %v7454_v28 = vcombine.low %v7446_v40, %v7453_v2 }
 0x6f2   :  { %7461 = vst [vmem:[%s15686_s7] sm:$0xff] %v7454_v28 }

</bundles_post_ra>
